<compile_context>
chip_gen: v7x
topology: tpu7x:2x2x1
jax: 0.10.0
libtpu: 0.0.40
codegen_flags: <defaults>
</compile_context>

<pallas_src>
import jax
import jax.numpy as jnp
from jax import lax
from jax.experimental import pallas as pl
from jax.experimental.pallas import tpu as pltpu

LEAKY_SLOPE = 0.2


def _lrelu(v):
    return jnp.where(v > 0.0, v, LEAKY_SLOPE * v)


def _dup_rows(a3):
    """Nearest 2x duplication along H: (H, W, C) -> (2H, W, C).
    Leading-dim concat + leading-dim merge only (no minor-dim relayout)."""
    H, W, C = a3.shape
    a4 = a3[:, None]                                   # (H, 1, W, C)
    return jnp.concatenate([a4, a4], axis=1).reshape(2 * H, W, C)


def _conv_im2col(p3, w_ref, b_ref):
    """3x3 'SAME' conv as a single im2col matmul.

    p3:    (Hh, Wp, C2) bf16 activation (possibly W-phase-packed, C2 = F*Ci).
    w_ref: (9*C2, OutL) bf16 weights (pre-reshaped / phase-packed in the wrapper).
    b_ref: (1, OutL) f32 bias.
    Returns (Hh*Wp, OutL) f32.
    """
    Hh, Wp, C2 = p3.shape
    zrow = jnp.zeros((1, Wp, C2), p3.dtype)
    zcol = jnp.zeros((Hh + 2, 1, C2), p3.dtype)
    pp = jnp.concatenate([zrow, p3, zrow], axis=0)       # halo via value concat
    pp = jnp.concatenate([zcol, pp, zcol], axis=1)       # (Hh+2, Wp+2, C2)
    taps = [pp[dy:dy + Hh, dx:dx + Wp, :]
            for dy in range(3) for dx in range(3)]       # 9 x (Hh, Wp, C2)
    patches = jnp.concatenate(taps, axis=-1)             # (Hh, Wp, 9*C2) bf16
    patches = patches.reshape(Hh * Wp, 9 * C2)           # last dim unchanged
    return (jnp.dot(patches, w_ref[...], preferred_element_type=jnp.float32)
            + b_ref[...])


def _to_lane_dense(flat, Hh, Wp):
    """(Hh*Wp, L) -> (Hh, Wp*L) using only last-dim-preserving reshape + lane concat
    (avoids a sublane<->lane reshape at the store)."""
    L = flat.shape[-1]
    x3 = flat.reshape(Hh, Wp, L)
    return jnp.concatenate([x3[:, j, :] for j in range(Wp)], axis=-1)


def _make_g_block_kernel(upsample, learnable_sc):
    F = 2 if upsample else 1

    def kernel(*refs):
        if learnable_sc:
            (x_ref, gb1_ref, gb2_ref, w1_ref, b1_ref, w2_ref, b2_ref,
             wsc_ref, bsc_ref, o_ref) = refs
        else:
            (x_ref, gb1_ref, gb2_ref, w1_ref, b1_ref, w2_ref, b2_ref,
             o_ref) = refs

        _, H_in, W_in, Cin = x_ref.shape
        out_lanes = b2_ref.shape[-1]                    # F * Cout
        Cout = out_lanes // F

        x2d = x_ref[0].reshape(H_in * W_in, Cin)        # (N, Cin) f32

        # fuse1 (commutes with nearest duplication -> run on the small tensor).
        gb1 = gb1_ref[0]                                # (4, Cin): g0,b0,g1,b1
        h = _lrelu(gb1[0:1, :] * x2d + gb1[1:2, :])
        h = _lrelu(gb1[2:3, :] * h + gb1[3:4, :])

        # Single bf16 cast for the whole conv1 input.
        h3 = h.astype(jnp.bfloat16).reshape(H_in, W_in, Cin)
        if upsample:
            h3 = _dup_rows(h3)                          # H duplication (exact)
            h3 = jnp.concatenate([h3, h3], axis=-1)     # W phases packed in lanes
        Hh = h3.shape[0]                                # = F * H_in

        # c1: one im2col matmul (K = 9*F*Cin), f32 accumulation.
        h1 = _conv_im2col(h3, w1_ref, b1_ref)           # (Hh*W_in, F*Cout) f32

        # fuse2 (gamma/beta pre-tiled to F*Cout lanes in the wrapper).
        gb2 = gb2_ref[0]
        h1 = _lrelu(gb2[0:1, :] * h1 + gb2[1:2, :])
        h1 = _lrelu(gb2[2:3, :] * h1 + gb2[3:4, :])

        # c2: one im2col matmul (K = 9*F*Cout).
        h1p = h1.astype(jnp.bfloat16).reshape(Hh, W_in, F * Cout)
        h2 = _conv_im2col(h1p, w2_ref, b2_ref)          # (Hh*W_in, F*Cout) f32

        # Shortcut: 1x1 conv commutes with nearest upsample -> do it small (bf16 MXU).
        if learnable_sc:
            sc = (jnp.dot(x2d.astype(jnp.bfloat16), wsc_ref[...],
                          preferred_element_type=jnp.float32) + bsc_ref[...])
        else:
            sc = x2d                                    # Cin == Cout
        if upsample:
            sc3 = _dup_rows(sc.reshape(H_in, W_in, Cout))
            sc = jnp.concatenate([sc3, sc3], axis=-1).reshape(Hh * W_in, F * Cout)

        out = h2 + sc                                   # (Hh*W_in, F*Cout) f32
        # Lane-dense store: (Hh, W_in*F*Cout) == (H2, W2*Cout) in flat order.
        o_ref[0] = _to_lane_dense(out, Hh, W_in)

    return kernel


def _pack_conv_w_upsample(w):
    """(3,3,Ci,Co) conv weights -> (18*Ci, 2*Co) weights for the W-phase-packed conv.

    Packed input lanes are [phase0 channels | phase1 channels]; packed output lanes
    are [even-column outputs | odd-column outputs].  Exact (pure zero-padding /
    reordering of the original weights)."""
    _, _, Ci, Co = w.shape
    Wpk = jnp.zeros((3, 3, 2, Ci, 2, Co), w.dtype)      # (dy, dxp, ph, c, b, o)
    # output phase b=0 (even full-res column 2j): taps at cols 2j-1, 2j, 2j+1
    Wpk = Wpk.at[:, 0, 1, :, 0, :].set(w[:, 0])
    Wpk = Wpk.at[:, 1, 0, :, 0, :].set(w[:, 1])
    Wpk = Wpk.at[:, 1, 1, :, 0, :].set(w[:, 2])
    # output phase b=1 (odd full-res column 2j+1): taps at cols 2j, 2j+1, 2j+2
    Wpk = Wpk.at[:, 1, 0, :, 1, :].set(w[:, 0])
    Wpk = Wpk.at[:, 1, 1, :, 1, :].set(w[:, 1])
    Wpk = Wpk.at[:, 2, 0, :, 1, :].set(w[:, 2])
    return Wpk.reshape(18 * Ci, 2 * Co)


def _g_block_forward_impl(params, x, y, upsample, learnable_sc):
    """x: NHWC (B, H, W, Cin); y: (B, cond_dim).  Returns NHWC (B, H2, W2, Cout)."""
    B, H_in, W_in, Cin = x.shape
    Cout = params['c1_w'].shape[-1]
    F = 2 if upsample else 1
    H2, W2 = F * H_in, F * W_in
    assert learnable_sc == ('csc_w' in params) and (learnable_sc or Cin == Cout)

    # Hoisted conditioning MLPs (tiny; recomputing per grid step would be waste).
    def mlp(q):
        return jax.nn.relu(y @ q['w1'] + q['b1']) @ q['w2'] + q['b2']

    gb1 = jnp.stack([mlp(params['fuse1'][k]) for k in ('g0', 'b0', 'g1', 'b1')], axis=1)
    gb2 = jnp.stack([mlp(params['fuse2'][k]) for k in ('g0', 'b0', 'g1', 'b1')], axis=1)

    if upsample:
        w1 = _pack_conv_w_upsample(params['c1_w'])
        w2 = _pack_conv_w_upsample(params['c2_w'])
        b1 = jnp.tile(params['c1_b'], (1, 2))
        b2 = jnp.tile(params['c2_b'], (1, 2))
        gb2 = jnp.tile(gb2, (1, 1, 2))                  # same per-channel value per phase
    else:
        w1 = params['c1_w'].reshape(9 * Cin, Cout)
        w2 = params['c2_w'].reshape(9 * Cout, Cout)
        b1, b2 = params['c1_b'], params['c2_b']
    w1 = w1.astype(jnp.bfloat16)
    w2 = w2.astype(jnp.bfloat16)

    args = [x, gb1, gb2, w1, b1, w2, b2]
    in_specs = [
        pl.BlockSpec((1, H_in, W_in, Cin), lambda b: (b, 0, 0, 0)),
        pl.BlockSpec((1, 4, Cin), lambda b: (b, 0, 0)),
        pl.BlockSpec((1, 4, F * Cout), lambda b: (b, 0, 0)),
        # Grid-invariant operands: constant index maps keep them VMEM-resident.
        # TODO(synk): pipeline_mode=pl.Buffered(1) at production channel counts.
        pl.BlockSpec(w1.shape, lambda b: (0, 0)),
        pl.BlockSpec(b1.shape, lambda b: (0, 0)),
        pl.BlockSpec(w2.shape, lambda b: (0, 0)),
        pl.BlockSpec(b2.shape, lambda b: (0, 0)),
    ]
    if learnable_sc:
        args += [params['csc_w'].astype(jnp.bfloat16), params['csc_b']]
        in_specs += [pl.BlockSpec((Cin, Cout), lambda b: (0, 0)),
                     pl.BlockSpec((1, Cout), lambda b: (0, 0))]

    out_rows = F * H_in                                  # = H2
    out_lanes = W_in * F * Cout                          # = W2 * Cout (lane-dense)

    kernel = _make_g_block_kernel(upsample, learnable_sc)
    out = pl.pallas_call(
        kernel,
        out_shape=jax.ShapeDtypeStruct((B, out_rows, out_lanes), jnp.float32),
        grid=(B,),
        in_specs=in_specs,
        out_specs=pl.BlockSpec((1, out_rows, out_lanes), lambda b: (b, 0, 0)),
        compiler_params=pltpu.CompilerParams(dimension_semantics=("parallel",)),
    )(*args)
    # Flat-order-preserving reshape (free): (B, H2, W2*Cout) -> (B, H2, W2, Cout).
    return out.reshape(B, H2, W2, Cout)


g_block_forward = jax.jit(_g_block_forward_impl, static_argnums=(3, 4))


# ----------------------------------------------------------------------------
# Pure-JAX reference (mirrors the PyTorch forward exactly: upsample first), NHWC.
# ----------------------------------------------------------------------------
def _ref_forward(params, x, y, upsample, learnable_sc):
    if upsample:
        x = jnp.repeat(jnp.repeat(x, 2, axis=1), 2, axis=2)

    def mlp(q):
        return jax.nn.relu(y @ q['w1'] + q['b1']) @ q['w2'] + q['b2']

    def dfblk_ref(h, p):
        for g, b in (('g0', 'b0'), ('g1', 'b1')):
            gam = mlp(p[g])[:, None, None, :]
            bet = mlp(p[b])[:, None, None, :]
            h = gam * h + bet
            h = jnp.where(h > 0, h, LEAKY_SLOPE * h)
        return h

    def conv_ref(h, w, b):
        out = lax.conv_general_dilated(h, w, (1, 1), 'SAME',
                                       dimension_numbers=('NHWC', 'HWIO', 'NHWC'))
        return out + b.reshape(1, 1, 1, -1)

    h = dfblk_ref(x, params['fuse1'])
    h = conv_ref(h, params['c1_w'], params['c1_b'])
    h = dfblk_ref(h, params['fuse2'])
    h = conv_ref(h, params['c2_w'], params['c2_b'])
    sc = (x @ params['csc_w'] + params['csc_b'].reshape(1, 1, 1, -1)
          if learnable_sc else x)
    return sc + h


# ----------------------------------------------------------------------------
# Deterministic synthetic parameter init (shapes from G_Block.__init__).
# ----------------------------------------------------------------------------
def init_params(key, cond_dim, in_ch, out_ch):
    keys = iter(jax.random.split(key, 64))

    def lin(d_in, d_out, scale=0.1):
        w = jax.random.normal(next(keys), (d_in, d_out), jnp.float32) * scale
        b = jax.random.normal(next(keys), (1, d_out), jnp.float32) * scale
        return w, b

    def affine(ch):
        w1, b1 = lin(cond_dim, ch)
        w2, b2 = lin(ch, ch)
        return {'w1': w1, 'b1': b1, 'w2': w2, 'b2': b2}

    def dfblk_p(ch):
        return {'g0': affine(ch), 'b0': affine(ch),
                'g1': affine(ch), 'b1': affine(ch)}

    def convw(ci, co, scale=0.1):
        return jax.random.normal(next(keys), (3, 3, ci, co), jnp.float32) * scale

    params = {
        'fuse1': dfblk_p(in_ch),
        'fuse2': dfblk_p(out_ch),
        'c1_w': convw(in_ch, out_ch),
        'c1_b': jax.random.normal(next(keys), (1, out_ch), jnp.float32) * 0.1,
        'c2_w': convw(out_ch, out_ch),
        'c2_b': jax.random.normal(next(keys), (1, out_ch), jnp.float32) * 0.1,
    }
    if in_ch != out_ch:
        params['csc_w'], params['csc_b'] = lin(in_ch, out_ch)
    return params


if __name__ == "__main__":
    key = jax.random.PRNGKey(0)
    kx_, ky_, kp_ = jax.random.split(key, 3)

    cond_dim, B, H, W = 32, 2, 16, 16
    y = jax.random.normal(ky_, (B, cond_dim), jnp.float32)

    # All four (upsample, learnable_sc) combinations exercised.
    configs = [
        (8, 16, True),    # upsample + learnable shortcut
        (16, 16, False),  # no upsample, identity shortcut
        (16, 16, True),   # upsample, identity shortcut
        (8, 16, False),   # no upsample, learnable shortcut
    ]
    for idx, (cin, cout, ups) in enumerate(configs):
        lsc = cin != cout
        params = init_params(jax.random.fold_in(kp_, idx), cond_dim, cin, cout)
        x = jax.random.normal(jax.random.fold_in(kx_, idx), (B, H, W, cin),
                              jnp.float32)                       # NHWC
        out = jax.block_until_ready(g_block_forward(params, x, y, ups, lsc))
        ref = _ref_forward(params, x, y, ups, lsc)
        f = 2 if ups else 1
        assert out.shape == (B, f * H, f * W, cout), (idx, out.shape)
        # bf16 MXU operands with f32 accumulation vs f32 reference.
        err = float(jnp.max(jnp.abs(out - ref)))
        assert err < 5e-2, f"config {idx}: max abs error vs reference: {err}"

    print("KERNEL_OK")
</pallas_src>

<mosaic_0001>
module attributes {stable_mosaic.version = 11 : i64} {
  func.func @kernel(%arg0: i32, %arg1: memref<1x16x16x8xf32, #tpu.memory_space<vmem>>, %arg2: memref<1x4x8xf32, #tpu.memory_space<vmem>>, %arg3: memref<1x4x32xf32, #tpu.memory_space<vmem>>, %arg4: memref<144x32xbf16, #tpu.memory_space<vmem>>, %arg5: memref<1x32xf32, #tpu.memory_space<vmem>>, %arg6: memref<288x32xbf16, #tpu.memory_space<vmem>>, %arg7: memref<1x32xf32, #tpu.memory_space<vmem>>, %arg8: memref<8x16xbf16, #tpu.memory_space<vmem>>, %arg9: memref<1x16xf32, #tpu.memory_space<vmem>>, %arg10: memref<1x32x512xf32, #tpu.memory_space<vmem>>) attributes {dimension_semantics = [#tpu.dimension_semantics<parallel>], iteration_bounds = array<i64: 2>, scalar_prefetch = 0 : i64, scratch_operands = 0 : i64, tpu.core_type = #tpu.core_type<tc>, window_params = [{transform_indices = @transform_0, window_bounds = array<i64: 1, 16, 16, 8>}, {transform_indices = @transform_1, window_bounds = array<i64: 1, 4, 8>}, {transform_indices = @transform_2, window_bounds = array<i64: 1, 4, 32>}, {pipeline_mode = #tpu.pipeline_mode<synchronous>, transform_indices = @transform_3, window_bounds = array<i64: 144, 32>}, {pipeline_mode = #tpu.pipeline_mode<synchronous>, transform_indices = @transform_4, window_bounds = array<i64: 1, 32>}, {pipeline_mode = #tpu.pipeline_mode<synchronous>, transform_indices = @transform_5, window_bounds = array<i64: 288, 32>}, {pipeline_mode = #tpu.pipeline_mode<synchronous>, transform_indices = @transform_6, window_bounds = array<i64: 1, 32>}, {pipeline_mode = #tpu.pipeline_mode<synchronous>, transform_indices = @transform_7, window_bounds = array<i64: 8, 16>}, {pipeline_mode = #tpu.pipeline_mode<synchronous>, transform_indices = @transform_8, window_bounds = array<i64: 1, 16>}, {transform_indices = @transform_9, window_bounds = array<i64: 1, 32, 512>}]} {
    %c0 = arith.constant 0 : index
    %c0_0 = arith.constant 0 : index
    %c0_1 = arith.constant 0 : index
    %c0_2 = arith.constant 0 : index
    %0 = vector.load %arg1[%c0, %c0_0, %c0_1, %c0_2] : memref<1x16x16x8xf32, #tpu.memory_space<vmem>>, vector<1x16x16x8xf32>
    %1 = vector.shape_cast %0 : vector<1x16x16x8xf32> to vector<16x16x8xf32>
    %2 = vector.shape_cast %1 : vector<16x16x8xf32> to vector<256x8xf32>
    %c0_3 = arith.constant 0 : index
    %c0_4 = arith.constant 0 : index
    %c0_5 = arith.constant 0 : index
    %3 = vector.load %arg2[%c0_3, %c0_4, %c0_5] : memref<1x4x8xf32, #tpu.memory_space<vmem>>, vector<1x4x8xf32>
    %4 = vector.shape_cast %3 : vector<1x4x8xf32> to vector<4x8xf32>
    %5 = vector.extract_strided_slice %4 {offsets = [0, 0], sizes = [1, 8], strides = [1, 1]} : vector<4x8xf32> to vector<1x8xf32>
    %6 = vector.broadcast %5 : vector<1x8xf32> to vector<256x8xf32>
    %7 = arith.mulf %6, %2 : vector<256x8xf32>
    %8 = vector.extract_strided_slice %4 {offsets = [1, 0], sizes = [1, 8], strides = [1, 1]} : vector<4x8xf32> to vector<1x8xf32>
    %9 = vector.broadcast %8 : vector<1x8xf32> to vector<256x8xf32>
    %10 = arith.addf %7, %9 : vector<256x8xf32>
    %cst = arith.constant 0.000000e+00 : f32
    %11 = vector.broadcast %cst : f32 to vector<256x8xf32>
    %12 = arith.cmpf ogt, %10, %11 : vector<256x8xf32>
    %cst_6 = arith.constant 2.000000e-01 : f32
    %13 = vector.broadcast %cst_6 : f32 to vector<256x8xf32>
    %14 = arith.mulf %13, %10 : vector<256x8xf32>
    %15 = arith.select %12, %10, %14 : vector<256x8xi1>, vector<256x8xf32>
    %16 = vector.extract_strided_slice %4 {offsets = [2, 0], sizes = [1, 8], strides = [1, 1]} : vector<4x8xf32> to vector<1x8xf32>
    %17 = vector.broadcast %16 : vector<1x8xf32> to vector<256x8xf32>
    %18 = arith.mulf %17, %15 : vector<256x8xf32>
    %19 = vector.extract_strided_slice %4 {offsets = [3, 0], sizes = [1, 8], strides = [1, 1]} : vector<4x8xf32> to vector<1x8xf32>
    %20 = vector.broadcast %19 : vector<1x8xf32> to vector<256x8xf32>
    %21 = arith.addf %18, %20 : vector<256x8xf32>
    %cst_7 = arith.constant 0.000000e+00 : f32
    %22 = vector.broadcast %cst_7 : f32 to vector<256x8xf32>
    %23 = arith.cmpf ogt, %21, %22 : vector<256x8xf32>
    %cst_8 = arith.constant 2.000000e-01 : f32
    %24 = vector.broadcast %cst_8 : f32 to vector<256x8xf32>
    %25 = arith.mulf %24, %21 : vector<256x8xf32>
    %26 = arith.select %23, %21, %25 : vector<256x8xi1>, vector<256x8xf32>
    %27 = arith.truncf %26 : vector<256x8xf32> to vector<256x8xbf16>
    %28 = vector.shape_cast %27 : vector<256x8xbf16> to vector<16x16x8xbf16>
    %29 = vector.shape_cast %28 : vector<16x16x8xbf16> to vector<16x1x16x8xbf16>
    %30 = tpu.concatenate %29, %29 in 1 : vector<16x1x16x8xbf16>, vector<16x1x16x8xbf16> -> vector<16x2x16x8xbf16>
    %31 = vector.shape_cast %30 : vector<16x2x16x8xbf16> to vector<32x16x8xbf16>
    %32 = tpu.concatenate %31, %31 in 2 : vector<32x16x8xbf16>, vector<32x16x8xbf16> -> vector<32x16x16xbf16>
    %cst_9 = arith.constant 0.000000e+00 : bf16
    %33 = vector.broadcast %cst_9 : bf16 to vector<1x16x16xbf16>
    %cst_10 = arith.constant 0.000000e+00 : bf16
    %34 = vector.broadcast %cst_10 : bf16 to vector<34x1x16xbf16>
    %35 = tpu.concatenate %33, %32, %33 in 0 : vector<1x16x16xbf16>, vector<32x16x16xbf16>, vector<1x16x16xbf16> -> vector<34x16x16xbf16>
    %36 = tpu.concatenate %34, %35, %34 in 1 : vector<34x1x16xbf16>, vector<34x16x16xbf16>, vector<34x1x16xbf16> -> vector<34x18x16xbf16>
    %37 = vector.extract_strided_slice %36 {offsets = [0, 0, 0], sizes = [32, 16, 16], strides = [1, 1, 1]} : vector<34x18x16xbf16> to vector<32x16x16xbf16>
    %38 = vector.extract_strided_slice %36 {offsets = [0, 1, 0], sizes = [32, 16, 16], strides = [1, 1, 1]} : vector<34x18x16xbf16> to vector<32x16x16xbf16>
    %39 = vector.extract_strided_slice %36 {offsets = [0, 2, 0], sizes = [32, 16, 16], strides = [1, 1, 1]} : vector<34x18x16xbf16> to vector<32x16x16xbf16>
    %40 = vector.extract_strided_slice %36 {offsets = [1, 0, 0], sizes = [32, 16, 16], strides = [1, 1, 1]} : vector<34x18x16xbf16> to vector<32x16x16xbf16>
    %41 = vector.extract_strided_slice %36 {offsets = [1, 1, 0], sizes = [32, 16, 16], strides = [1, 1, 1]} : vector<34x18x16xbf16> to vector<32x16x16xbf16>
    %42 = vector.extract_strided_slice %36 {offsets = [1, 2, 0], sizes = [32, 16, 16], strides = [1, 1, 1]} : vector<34x18x16xbf16> to vector<32x16x16xbf16>
    %43 = vector.extract_strided_slice %36 {offsets = [2, 0, 0], sizes = [32, 16, 16], strides = [1, 1, 1]} : vector<34x18x16xbf16> to vector<32x16x16xbf16>
    %44 = vector.extract_strided_slice %36 {offsets = [2, 1, 0], sizes = [32, 16, 16], strides = [1, 1, 1]} : vector<34x18x16xbf16> to vector<32x16x16xbf16>
    %45 = vector.extract_strided_slice %36 {offsets = [2, 2, 0], sizes = [32, 16, 16], strides = [1, 1, 1]} : vector<34x18x16xbf16> to vector<32x16x16xbf16>
    %46 = tpu.concatenate %37, %38, %39, %40, %41, %42, %43, %44, %45 in 2 : vector<32x16x16xbf16>, vector<32x16x16xbf16>, vector<32x16x16xbf16>, vector<32x16x16xbf16>, vector<32x16x16xbf16>, vector<32x16x16xbf16>, vector<32x16x16xbf16>, vector<32x16x16xbf16>, vector<32x16x16xbf16> -> vector<32x16x144xbf16>
    %47 = vector.shape_cast %46 : vector<32x16x144xbf16> to vector<512x144xbf16>
    %c0_11 = arith.constant 0 : index
    %c0_12 = arith.constant 0 : index
    %48 = vector.load %arg4[%c0_11, %c0_12] : memref<144x32xbf16, #tpu.memory_space<vmem>>, vector<144x32xbf16>
    %cst_13 = arith.constant dense<0.000000e+00> : vector<512x32xf32>
    %49 = tpu.matmul %47, %48, %cst_13 {dimension_numbers = #tpu.dot_dimension_numbers<[1], [0], [0], [1], [0, 0, 1, 1], [], []>} : vector<512x144xbf16>, vector<144x32xbf16>, vector<512x32xf32> -> vector<512x32xf32>
    %c0_14 = arith.constant 0 : index
    %c0_15 = arith.constant 0 : index
    %50 = vector.load %arg5[%c0_14, %c0_15] : memref<1x32xf32, #tpu.memory_space<vmem>>, vector<1x32xf32>
    %51 = vector.broadcast %50 : vector<1x32xf32> to vector<512x32xf32>
    %52 = arith.addf %49, %51 : vector<512x32xf32>
    %c0_16 = arith.constant 0 : index
    %c0_17 = arith.constant 0 : index
    %c0_18 = arith.constant 0 : index
    %53 = vector.load %arg3[%c0_16, %c0_17, %c0_18] : memref<1x4x32xf32, #tpu.memory_space<vmem>>, vector<1x4x32xf32>
    %54 = vector.shape_cast %53 : vector<1x4x32xf32> to vector<4x32xf32>
    %55 = vector.extract_strided_slice %54 {offsets = [0, 0], sizes = [1, 32], strides = [1, 1]} : vector<4x32xf32> to vector<1x32xf32>
    %56 = vector.broadcast %55 : vector<1x32xf32> to vector<512x32xf32>
    %57 = arith.mulf %56, %52 : vector<512x32xf32>
    %58 = vector.extract_strided_slice %54 {offsets = [1, 0], sizes = [1, 32], strides = [1, 1]} : vector<4x32xf32> to vector<1x32xf32>
    %59 = vector.broadcast %58 : vector<1x32xf32> to vector<512x32xf32>
    %60 = arith.addf %57, %59 : vector<512x32xf32>
    %cst_19 = arith.constant 0.000000e+00 : f32
    %61 = vector.broadcast %cst_19 : f32 to vector<512x32xf32>
    %62 = arith.cmpf ogt, %60, %61 : vector<512x32xf32>
    %cst_20 = arith.constant 2.000000e-01 : f32
    %63 = vector.broadcast %cst_20 : f32 to vector<512x32xf32>
    %64 = arith.mulf %63, %60 : vector<512x32xf32>
    %65 = arith.select %62, %60, %64 : vector<512x32xi1>, vector<512x32xf32>
    %66 = vector.extract_strided_slice %54 {offsets = [2, 0], sizes = [1, 32], strides = [1, 1]} : vector<4x32xf32> to vector<1x32xf32>
    %67 = vector.broadcast %66 : vector<1x32xf32> to vector<512x32xf32>
    %68 = arith.mulf %67, %65 : vector<512x32xf32>
    %69 = vector.extract_strided_slice %54 {offsets = [3, 0], sizes = [1, 32], strides = [1, 1]} : vector<4x32xf32> to vector<1x32xf32>
    %70 = vector.broadcast %69 : vector<1x32xf32> to vector<512x32xf32>
    %71 = arith.addf %68, %70 : vector<512x32xf32>
    %cst_21 = arith.constant 0.000000e+00 : f32
    %72 = vector.broadcast %cst_21 : f32 to vector<512x32xf32>
    %73 = arith.cmpf ogt, %71, %72 : vector<512x32xf32>
    %cst_22 = arith.constant 2.000000e-01 : f32
    %74 = vector.broadcast %cst_22 : f32 to vector<512x32xf32>
    %75 = arith.mulf %74, %71 : vector<512x32xf32>
    %76 = arith.select %73, %71, %75 : vector<512x32xi1>, vector<512x32xf32>
    %77 = arith.truncf %76 : vector<512x32xf32> to vector<512x32xbf16>
    %78 = vector.shape_cast %77 : vector<512x32xbf16> to vector<32x16x32xbf16>
    %cst_23 = arith.constant 0.000000e+00 : bf16
    %79 = vector.broadcast %cst_23 : bf16 to vector<1x16x32xbf16>
    %cst_24 = arith.constant 0.000000e+00 : bf16
    %80 = vector.broadcast %cst_24 : bf16 to vector<34x1x32xbf16>
    %81 = tpu.concatenate %79, %78, %79 in 0 : vector<1x16x32xbf16>, vector<32x16x32xbf16>, vector<1x16x32xbf16> -> vector<34x16x32xbf16>
    %82 = tpu.concatenate %80, %81, %80 in 1 : vector<34x1x32xbf16>, vector<34x16x32xbf16>, vector<34x1x32xbf16> -> vector<34x18x32xbf16>
    %83 = vector.extract_strided_slice %82 {offsets = [0, 0, 0], sizes = [32, 16, 32], strides = [1, 1, 1]} : vector<34x18x32xbf16> to vector<32x16x32xbf16>
    %84 = vector.extract_strided_slice %82 {offsets = [0, 1, 0], sizes = [32, 16, 32], strides = [1, 1, 1]} : vector<34x18x32xbf16> to vector<32x16x32xbf16>
    %85 = vector.extract_strided_slice %82 {offsets = [0, 2, 0], sizes = [32, 16, 32], strides = [1, 1, 1]} : vector<34x18x32xbf16> to vector<32x16x32xbf16>
    %86 = vector.extract_strided_slice %82 {offsets = [1, 0, 0], sizes = [32, 16, 32], strides = [1, 1, 1]} : vector<34x18x32xbf16> to vector<32x16x32xbf16>
    %87 = vector.extract_strided_slice %82 {offsets = [1, 1, 0], sizes = [32, 16, 32], strides = [1, 1, 1]} : vector<34x18x32xbf16> to vector<32x16x32xbf16>
    %88 = vector.extract_strided_slice %82 {offsets = [1, 2, 0], sizes = [32, 16, 32], strides = [1, 1, 1]} : vector<34x18x32xbf16> to vector<32x16x32xbf16>
    %89 = vector.extract_strided_slice %82 {offsets = [2, 0, 0], sizes = [32, 16, 32], strides = [1, 1, 1]} : vector<34x18x32xbf16> to vector<32x16x32xbf16>
    %90 = vector.extract_strided_slice %82 {offsets = [2, 1, 0], sizes = [32, 16, 32], strides = [1, 1, 1]} : vector<34x18x32xbf16> to vector<32x16x32xbf16>
    %91 = vector.extract_strided_slice %82 {offsets = [2, 2, 0], sizes = [32, 16, 32], strides = [1, 1, 1]} : vector<34x18x32xbf16> to vector<32x16x32xbf16>
    %92 = tpu.concatenate %83, %84, %85, %86, %87, %88, %89, %90, %91 in 2 : vector<32x16x32xbf16>, vector<32x16x32xbf16>, vector<32x16x32xbf16>, vector<32x16x32xbf16>, vector<32x16x32xbf16>, vector<32x16x32xbf16>, vector<32x16x32xbf16>, vector<32x16x32xbf16>, vector<32x16x32xbf16> -> vector<32x16x288xbf16>
    %93 = vector.shape_cast %92 : vector<32x16x288xbf16> to vector<512x288xbf16>
    %c0_25 = arith.constant 0 : index
    %c0_26 = arith.constant 0 : index
    %94 = vector.load %arg6[%c0_25, %c0_26] : memref<288x32xbf16, #tpu.memory_space<vmem>>, vector<288x32xbf16>
    %cst_27 = arith.constant dense<0.000000e+00> : vector<512x32xf32>
    %95 = tpu.matmul %93, %94, %cst_27 {dimension_numbers = #tpu.dot_dimension_numbers<[1], [0], [0], [1], [0, 0, 1, 1], [], []>} : vector<512x288xbf16>, vector<288x32xbf16>, vector<512x32xf32> -> vector<512x32xf32>
    %c0_28 = arith.constant 0 : index
    %c0_29 = arith.constant 0 : index
    %96 = vector.load %arg7[%c0_28, %c0_29] : memref<1x32xf32, #tpu.memory_space<vmem>>, vector<1x32xf32>
    %97 = vector.broadcast %96 : vector<1x32xf32> to vector<512x32xf32>
    %98 = arith.addf %95, %97 : vector<512x32xf32>
    %99 = arith.truncf %2 : vector<256x8xf32> to vector<256x8xbf16>
    %c0_30 = arith.constant 0 : index
    %c0_31 = arith.constant 0 : index
    %100 = vector.load %arg8[%c0_30, %c0_31] : memref<8x16xbf16, #tpu.memory_space<vmem>>, vector<8x16xbf16>
    %cst_32 = arith.constant dense<0.000000e+00> : vector<256x16xf32>
    %101 = tpu.matmul %99, %100, %cst_32 {dimension_numbers = #tpu.dot_dimension_numbers<[1], [0], [0], [1], [0, 0, 1, 1], [], []>} : vector<256x8xbf16>, vector<8x16xbf16>, vector<256x16xf32> -> vector<256x16xf32>
    %c0_33 = arith.constant 0 : index
    %c0_34 = arith.constant 0 : index
    %102 = vector.load %arg9[%c0_33, %c0_34] : memref<1x16xf32, #tpu.memory_space<vmem>>, vector<1x16xf32>
    %103 = vector.broadcast %102 : vector<1x16xf32> to vector<256x16xf32>
    %104 = arith.addf %101, %103 : vector<256x16xf32>
    %105 = vector.shape_cast %104 : vector<256x16xf32> to vector<16x16x16xf32>
    %106 = vector.shape_cast %105 : vector<16x16x16xf32> to vector<16x1x16x16xf32>
    %107 = tpu.concatenate %106, %106 in 1 : vector<16x1x16x16xf32>, vector<16x1x16x16xf32> -> vector<16x2x16x16xf32>
    %108 = vector.shape_cast %107 : vector<16x2x16x16xf32> to vector<32x16x16xf32>
    %109 = tpu.concatenate %108, %108 in 2 : vector<32x16x16xf32>, vector<32x16x16xf32> -> vector<32x16x32xf32>
    %110 = vector.shape_cast %109 : vector<32x16x32xf32> to vector<512x32xf32>
    %111 = arith.addf %98, %110 : vector<512x32xf32>
    %112 = vector.shape_cast %111 : vector<512x32xf32> to vector<32x16x32xf32>
    %113 = vector.extract_strided_slice %112 {offsets = [0, 0, 0], sizes = [32, 1, 32], strides = [1, 1, 1]} : vector<32x16x32xf32> to vector<32x1x32xf32>
    %114 = vector.shape_cast %113 : vector<32x1x32xf32> to vector<32x32xf32>
    %115 = vector.extract_strided_slice %112 {offsets = [0, 1, 0], sizes = [32, 1, 32], strides = [1, 1, 1]} : vector<32x16x32xf32> to vector<32x1x32xf32>
    %116 = vector.shape_cast %115 : vector<32x1x32xf32> to vector<32x32xf32>
    %117 = vector.extract_strided_slice %112 {offsets = [0, 2, 0], sizes = [32, 1, 32], strides = [1, 1, 1]} : vector<32x16x32xf32> to vector<32x1x32xf32>
    %118 = vector.shape_cast %117 : vector<32x1x32xf32> to vector<32x32xf32>
    %119 = vector.extract_strided_slice %112 {offsets = [0, 3, 0], sizes = [32, 1, 32], strides = [1, 1, 1]} : vector<32x16x32xf32> to vector<32x1x32xf32>
    %120 = vector.shape_cast %119 : vector<32x1x32xf32> to vector<32x32xf32>
    %121 = vector.extract_strided_slice %112 {offsets = [0, 4, 0], sizes = [32, 1, 32], strides = [1, 1, 1]} : vector<32x16x32xf32> to vector<32x1x32xf32>
    %122 = vector.shape_cast %121 : vector<32x1x32xf32> to vector<32x32xf32>
    %123 = vector.extract_strided_slice %112 {offsets = [0, 5, 0], sizes = [32, 1, 32], strides = [1, 1, 1]} : vector<32x16x32xf32> to vector<32x1x32xf32>
    %124 = vector.shape_cast %123 : vector<32x1x32xf32> to vector<32x32xf32>
    %125 = vector.extract_strided_slice %112 {offsets = [0, 6, 0], sizes = [32, 1, 32], strides = [1, 1, 1]} : vector<32x16x32xf32> to vector<32x1x32xf32>
    %126 = vector.shape_cast %125 : vector<32x1x32xf32> to vector<32x32xf32>
    %127 = vector.extract_strided_slice %112 {offsets = [0, 7, 0], sizes = [32, 1, 32], strides = [1, 1, 1]} : vector<32x16x32xf32> to vector<32x1x32xf32>
    %128 = vector.shape_cast %127 : vector<32x1x32xf32> to vector<32x32xf32>
    %129 = vector.extract_strided_slice %112 {offsets = [0, 8, 0], sizes = [32, 1, 32], strides = [1, 1, 1]} : vector<32x16x32xf32> to vector<32x1x32xf32>
    %130 = vector.shape_cast %129 : vector<32x1x32xf32> to vector<32x32xf32>
    %131 = vector.extract_strided_slice %112 {offsets = [0, 9, 0], sizes = [32, 1, 32], strides = [1, 1, 1]} : vector<32x16x32xf32> to vector<32x1x32xf32>
    %132 = vector.shape_cast %131 : vector<32x1x32xf32> to vector<32x32xf32>
    %133 = vector.extract_strided_slice %112 {offsets = [0, 10, 0], sizes = [32, 1, 32], strides = [1, 1, 1]} : vector<32x16x32xf32> to vector<32x1x32xf32>
    %134 = vector.shape_cast %133 : vector<32x1x32xf32> to vector<32x32xf32>
    %135 = vector.extract_strided_slice %112 {offsets = [0, 11, 0], sizes = [32, 1, 32], strides = [1, 1, 1]} : vector<32x16x32xf32> to vector<32x1x32xf32>
    %136 = vector.shape_cast %135 : vector<32x1x32xf32> to vector<32x32xf32>
    %137 = vector.extract_strided_slice %112 {offsets = [0, 12, 0], sizes = [32, 1, 32], strides = [1, 1, 1]} : vector<32x16x32xf32> to vector<32x1x32xf32>
    %138 = vector.shape_cast %137 : vector<32x1x32xf32> to vector<32x32xf32>
    %139 = vector.extract_strided_slice %112 {offsets = [0, 13, 0], sizes = [32, 1, 32], strides = [1, 1, 1]} : vector<32x16x32xf32> to vector<32x1x32xf32>
    %140 = vector.shape_cast %139 : vector<32x1x32xf32> to vector<32x32xf32>
    %141 = vector.extract_strided_slice %112 {offsets = [0, 14, 0], sizes = [32, 1, 32], strides = [1, 1, 1]} : vector<32x16x32xf32> to vector<32x1x32xf32>
    %142 = vector.shape_cast %141 : vector<32x1x32xf32> to vector<32x32xf32>
    %143 = vector.extract_strided_slice %112 {offsets = [0, 15, 0], sizes = [32, 1, 32], strides = [1, 1, 1]} : vector<32x16x32xf32> to vector<32x1x32xf32>
    %144 = vector.shape_cast %143 : vector<32x1x32xf32> to vector<32x32xf32>
    %145 = tpu.concatenate %114, %116, %118, %120, %122, %124, %126, %128, %130, %132, %134, %136, %138, %140, %142, %144 in 1 : vector<32x32xf32>, vector<32x32xf32>, vector<32x32xf32>, vector<32x32xf32>, vector<32x32xf32>, vector<32x32xf32>, vector<32x32xf32>, vector<32x32xf32>, vector<32x32xf32>, vector<32x32xf32>, vector<32x32xf32>, vector<32x32xf32>, vector<32x32xf32>, vector<32x32xf32>, vector<32x32xf32>, vector<32x32xf32> -> vector<32x512xf32>
    %c0_35 = arith.constant 0 : index
    %c0_36 = arith.constant 0 : index
    %c0_37 = arith.constant 0 : index
    %146 = vector.load %arg10[%c0_35, %c0_36, %c0_37] : memref<1x32x512xf32, #tpu.memory_space<vmem>>, vector<1x32x512xf32>
    %147 = vector.shape_cast %146 : vector<1x32x512xf32> to vector<32x512xf32>
    %148 = vector.shape_cast %145 : vector<32x512xf32> to vector<1x32x512xf32>
    tpu.vector_store %arg10[%c0_35, %c0_36, %c0_37], %148 {strides = array<i32>} : memref<1x32x512xf32, #tpu.memory_space<vmem>>, vector<1x32x512xf32>,
    return
  }
  func.func @transform_0(%arg0: i32) -> (i32, i32, i32, i32) {
    %c0_i32 = arith.constant 0 : i32
    %c0_i32_0 = arith.constant 0 : i32
    %c0_i32_1 = arith.constant 0 : i32
    %c0_i32_2 = arith.constant 0 : i32
    return %arg0, %c0_i32, %c0_i32_0, %c0_i32_1 : i32, i32, i32, i32
  }
  func.func @transform_1(%arg0: i32) -> (i32, i32, i32) {
    %c0_i32 = arith.constant 0 : i32
    %c0_i32_0 = arith.constant 0 : i32
    %c0_i32_1 = arith.constant 0 : i32
    return %arg0, %c0_i32, %c0_i32_0 : i32, i32, i32
  }
  func.func @transform_2(%arg0: i32) -> (i32, i32, i32) {
    %c0_i32 = arith.constant 0 : i32
    %c0_i32_0 = arith.constant 0 : i32
    %c0_i32_1 = arith.constant 0 : i32
    return %arg0, %c0_i32, %c0_i32_0 : i32, i32, i32
  }
  func.func @transform_3(%arg0: i32) -> (i32, i32) {
    %c0_i32 = arith.constant 0 : i32
    %c0_i32_0 = arith.constant 0 : i32
    %c0_i32_1 = arith.constant 0 : i32
    return %c0_i32, %c0_i32_0 : i32, i32
  }
  func.func @transform_4(%arg0: i32) -> (i32, i32) {
    %c0_i32 = arith.constant 0 : i32
    %c0_i32_0 = arith.constant 0 : i32
    %c0_i32_1 = arith.constant 0 : i32
    return %c0_i32, %c0_i32_0 : i32, i32
  }
  func.func @transform_5(%arg0: i32) -> (i32, i32) {
    %c0_i32 = arith.constant 0 : i32
    %c0_i32_0 = arith.constant 0 : i32
    %c0_i32_1 = arith.constant 0 : i32
    return %c0_i32, %c0_i32_0 : i32, i32
  }
  func.func @transform_6(%arg0: i32) -> (i32, i32) {
    %c0_i32 = arith.constant 0 : i32
    %c0_i32_0 = arith.constant 0 : i32
    %c0_i32_1 = arith.constant 0 : i32
    return %c0_i32, %c0_i32_0 : i32, i32
  }
  func.func @transform_7(%arg0: i32) -> (i32, i32) {
    %c0_i32 = arith.constant 0 : i32
    %c0_i32_0 = arith.constant 0 : i32
    %c0_i32_1 = arith.constant 0 : i32
    return %c0_i32, %c0_i32_0 : i32, i32
  }
  func.func @transform_8(%arg0: i32) -> (i32, i32) {
    %c0_i32 = arith.constant 0 : i32
    %c0_i32_0 = arith.constant 0 : i32
    %c0_i32_1 = arith.constant 0 : i32
    return %c0_i32, %c0_i32_0 : i32, i32
  }
  func.func @transform_9(%arg0: i32) -> (i32, i32, i32) {
    %c0_i32 = arith.constant 0 : i32
    %c0_i32_0 = arith.constant 0 : i32
    %c0_i32_1 = arith.constant 0 : i32
    return %arg0, %c0_i32, %c0_i32_0 : i32, i32, i32
  }
}

</mosaic_0001>

<bundles_post_ra>
// kernel: tile.29
= control target key start
LH: loop header
LB: loop body
LE: loop exit
PB: predicated region body
PF: predicated region fallthrough
CT: control target
= control target key end

     0   :  { %vm42_vm0 = vcmask 1047556   ;;  %vm44_vm1 = vcmask 130048   ;;  %vm56_vm2 = vcmask 261248   ;;  %s127_s0 = inlined_call_operand.vmem [shape: f32[2,4,2,16], index: 0, kind: input, shape index: {}]   ;;  %s128_s1 = inlined_call_operand.vmem [shape: f32[2,4,32], index: 1, kind: output, shape index: {}]  }
   0x1   :  { %v77_v0 = vld [vmem:[%s127_s0 + $0xe] sm:$0x3]  ;;  %v78_v1 = vld [vmem:[%s127_s0 + $0xc] sm:$0x3]  ;;  %v79_v2 = vld [vmem:[%s127_s0 + $0xa] sm:$0x3] }
   0x2   :  { %8 = vst [vmem:[#allocation1 + $0x38] sm:$0x3] %v77_v0  ;;  %13 = vst [vmem:[#allocation1 + $0x30] sm:$0x3] %v78_v1  ;;  %v80_v3 = vld [vmem:[%s127_s0 + $0x8] sm:$0x3] }
   0x3   :  { %18 = vst [vmem:[#allocation1 + $0x28] sm:$0x3] %v79_v2  ;;  %v81_v4 = vld [vmem:[%s127_s0 + $0x6] sm:$0x3]  ;;  %v82_v5 = vld [vmem:[%s127_s0 + $0x4] sm:$0x3] }
   0x4   :  { %23 = vst [vmem:[#allocation1 + $0x20] sm:$0x3] %v80_v3  ;;  %28 = vst [vmem:[#allocation1 + $0x18] sm:$0x3] %v81_v4  ;;  %v83_v6 = vld [vmem:[%s127_s0 + $0x2] sm:$0x3] }
   0x5   :  { %33 = vst [vmem:[#allocation1 + $0x10] sm:$0x3] %v82_v5  ;;  %v38_v7 = vld [vmem:[%s127_s0] sm:$0x3]  ;;  %37 = vst [vmem:[#allocation1 + $0x8] sm:$0x3] %v83_v6 }
   0x6   :  { %39 = vst [vmem:[#allocation1] sm:$0x3] %v38_v7  ;;  %s86_s0 = smov 16  }
   0xb   :  { %v41_v8 = vld [vmem:[#allocation1] ss:$8 sm:$0xf0]   ;;  %v51_v9 = vld [vmem:[#allocation1 + $0x1] ss:$8 sm:$0xf0]  }
   0xd   :  { %v40_v10 = vld [vmem:[#allocation1] ss:$8 sm:$0xf]   ;;  %v49_v11 = vld [vmem:[#allocation1 + $0x1] ss:$8 sm:$0xf]  }
   0xe   :  { %v43_v12 = vsel %vm42_vm0, %v41_v8, %v40_v10  ;;  %v53_v13 = vsel %vm42_vm0, %v51_v9, %v49_v11 }
   0xf   :  { %54 = vrot.lane.b32.xlu0 %v53_v13, %s86_s0  ;;  %45 = vst.msk [vmem:[#allocation0] sm:$0xf] %vm44_vm1, %v43_v12   ;;  %47 = vst.msk [vmem:[#allocation0 + $0x4] sm:$0xf0] %vm44_vm1, %v43_v12  }
  0x81   :  { %v55_v14 = vpop.permute.xlu0 %54  }
  0x82   :  { %57 = vst.msk [vmem:[#allocation0] sm:$0xf] %vm56_vm2, %v55_v14   ;;  %59 = vst.msk [vmem:[#allocation0 + $0x4] sm:$0xf0] %vm56_vm2, %v55_v14  }
  0x89   :  { %v63_v15 = vld [vmem:[#allocation0] sm:$0xf]  ;;  %v67_v16 = vld [vmem:[#allocation0 + $0x8] sm:$0xf] }
  0x8a   :  { %65 = vst [vmem:[%s128_s1] sm:$0xf] %v63_v15  ;;  %84 = vst [vmem:[%s128_s1 + $0x4] sm:$0xf] %v67_v16 }

// kernel: _g_block_forward_impl.1
= control target key start
LH: loop header
LB: loop body
LE: loop exit
PB: predicated region body
PF: predicated region fallthrough
CT: control target
= control target key end

     0   :  { %s7751_s30 = smov 0   ;;  %s13565_s0 = inlined_call_operand.vmem [shape: f32[2,16,16,8], index: 0, kind: input, shape index: {}]   ;;  %s13566_s1 = inlined_call_operand.vmem [shape: f32[2,4,8], index: 1, kind: input, shape index: {}]   ;;  %s13567_s2 = inlined_call_operand.vmem [shape: f32[2,4,32], index: 2, kind: input, shape index: {}]   ;;  %s13568_s3 = inlined_call_operand.vmem [shape: bf16[144,32], index: 3, kind: input, shape index: {}]   ;;  %s13569_s4 = inlined_call_operand.vmem [shape: f32[1,32], index: 4, kind: input, shape index: {}]   ;;  %s13570_s5 = inlined_call_operand.vmem [shape: bf16[288,32], index: 5, kind: input, shape index: {}]   ;;  %s13571_s6 = inlined_call_operand.vmem [shape: f32[1,32], index: 6, kind: input, shape index: {}]   ;;  %s13572_s7 = inlined_call_operand.vmem [shape: bf16[8,16], index: 7, kind: input, shape index: {}]   ;;  %s13573_s8 = inlined_call_operand.vmem [shape: f32[1,16], index: 8, kind: input, shape index: {}]   ;;  %s13574_s9 = inlined_call_operand.vmem [shape: f32[2,32,512], index: 9, kind: output, shape index: {}]  }
   0x1 LB: > { %s7319_s10 = sadd.s32 4294967295, %s7690_s30   ;;  %p7323_p0 = scmp.ge.s32.totalorder %s7690_s30, 1  ;;  %s7690_s30 = sphi %s7751_s30, %s19_s30  }
   0x2   : > { %p305_p1 = scmp.lt.s32.totalorder %s7690_s30, 3 }
   0x4   : > { %p306_p2 = pnand %p7323_p0, %p305_p1 }
   0x6   : > { %309 = sbr.rel (%p306_p2) target bundleno = 1802 (0x70a), region = 56 }
   0xd   : > { %vm987_vm0 = vcmask 1040384   ;;  %vm988_vm1 = vsmask.f32 256  ;;  %v13575_v0 = vmov 0   ;;  %v401_v3 = vlaneseq  ;;  %p349_p3 = scmp.lt.s32.totalorder %s7319_s10, 1  ;;  %s7693_s19 = smov 32  }
   0xe   : > { %v853_v1 = vrot.slane %v13575_v0, 7  ;;  %vm7760_vm2 = vmand %vm987_vm0, %vm988_vm1  ;;  %2026 = vmatprep.subr.bf16.mxu0 %v13575_v0  ;;  %5010 = vmatprep.subr.bf16.mxu1 %v13575_v0  ;;  %vm1024_vm3 = vsmask.f32 7424  ;;  %vm1297_vm4 = vcmask 1046528   ;;  %s7694_s23 = smov 16   ;;  %s7695_s24 = smov 8  }
   0xf   : > { %v402_v6 = vshrl.u32 %v401_v3, 7  ;;  %s14154_s10 = smov (!%p349_p3, %s7319_s10), 1  ;;  %s7696_s25 = smov 48  }
  0x10   : > { %v7768_v4 = vsel %vm7760_vm2, 0, %v853_v1  ;;  %v1007_v5 = vsel %vm7760_vm2, %v853_v1, 0  ;;  %s7442_s11 = sshll.u32 %s14154_s10, 8  ;;  %s7326_s12 = sshll.u32 %s14154_s10, 2 }
  0x11   : > { %13762 = vst [vmem:[#allocation2_spill] sm:$0xff] %v7768_v4  ;;  %v1026_v7 = vshrl.u32 %v7768_v4, 16  ;;  %v1028_v8 = vshll.u32 %v7768_v4, 16  ;;  %v1033_v9 = vshll.u32 %v1007_v5, 16  ;;  %v1298_v10 = vrot.slane %v7768_v4, 1  ;;  %s7785_s15 = scalar_lea.vmem %s13565_s0, %s7442_s11  ;;  %s357_s18 = scalar_lea.vmem %s13566_s1, %s7326_s12 }
  0x12   : > { %v1299_v11 = vrot.slane %v1007_v5, 1  ;;  %v403_v12 = vsub.s32 0, %v402_v6  ;;  %v439_v13 = vsub.s32 1, %v402_v6  ;;  %v571_v14 = vsub.s32 2, %v402_v6  ;;  %s361_s22 = scalar_lea.vmem %s13567_s2, %s7326_s12  ;;  %v368_v20 = vld [vmem:[%s7785_s15] sm:$0xff]  ;;  %v369_v21 = vld [vmem:[%s7785_s15 + $0x8] sm:$0xff] }
  0x13   : > { %v1030_v15 = vrot.slane %v1028_v8, 1  ;;  %v1035_v16 = vrot.slane %v1033_v9, 1  ;;  %v607_v17 = vsub.s32 3, %v402_v6  ;;  %v400_v22 = vld [vmem:[%s357_s18] sm:$0xf]  ;;  %v370_v28 = vld [vmem:[%s7785_s15 + $0x10] sm:$0xff] }
  0x14   : > { %v7780_v18 = vsel %vm1297_vm4, %v1298_v10, %v1299_v11  ;;  %v7797_v23 = vrot.slane %v400_v22, %v403_v12  ;;  %v7799_v24 = vrot.slane %v400_v22, %v439_v13  ;;  %v7801_v25 = vrot.slane %v400_v22, %v571_v14  ;;  %v2315_v27 = vld [vmem:[%s361_s22] sm:$0xf]  ;;  %v371_v29 = vld [vmem:[%s7785_s15 + $0x18] sm:$0xff]  ;;  %v373_v35 = vld [vmem:[%s7785_s15 + $0x28] sm:$0xff]  ;;  %s7697_s28 = smov 96   ;;  %s7698_s27 = smov 64  }
  0x15   : > { %13763 = vst [vmem:[#allocation3_spill] sm:$0xff] %v7780_v18  ;;  %v1031_v19 = vor.u32 %v1030_v15, %v1026_v7  ;;  %1349 = vrot.lane.b32.xlu0 %v7780_v18, %s7693_s19  ;;  %v7803_v26 = vrot.slane %v400_v22, %v607_v17  ;;  %v7810_v31 = vrot.slane %v2315_v27, %v403_v12  ;;  %v372_v34 = vld [vmem:[%s7785_s15 + $0x20] sm:$0xff]  ;;  %v374_v36 = vld [vmem:[%s7785_s15 + $0x30] sm:$0xff]  ;;  %v375_v41 = vld [vmem:[%s7785_s15 + $0x38] sm:$0xff]  ;;  %s7699_s12 = smov 112   ;;  %s7700_s16 = smov 80  }
  0x16   : > { %v7812_v32 = vrot.slane %v2315_v27, %v439_v13  ;;  %v7814_v33 = vrot.slane %v2315_v27, %v571_v14  ;;  %v405_v37 = vmul.f32 %v7797_v23, %v368_v20  ;;  %v406_v38 = vmul.f32 %v7797_v23, %v369_v21 }
  0x17   : > { %v7808_v30 = vsel %vm1024_vm3, %v1031_v19, %v1035_v16  ;;  %13765 = vst [vmem:[#allocation5_spill] sm:$0xff] %v7810_v31  ;;  %v7823_v39 = vrot.slane %v2315_v27, %v607_v17  ;;  %v407_v40 = vmul.f32 %v7797_v23, %v370_v28  ;;  %v408_v42 = vmul.f32 %v7797_v23, %v371_v29  ;;  %v376_v16 = vld [vmem:[%s7785_s15 + $0x40] sm:$0xff]  ;;  %v377_v17 = vld [vmem:[%s7785_s15 + $0x48] sm:$0xff]  ;;  %v378_v29 = vld [vmem:[%s7785_s15 + $0x50] sm:$0xff] }
  0x18   : > { %13764 = vst [vmem:[#allocation4_spill] sm:$0xff] %v7808_v30  ;;  %13766 = vst [vmem:[#allocation6_spill] sm:$0xff] %v7812_v32  ;;  %1229 = vrot.lane.b32.xlu1 %v7808_v30, %s7694_s23  ;;  %v409_v43 = vmul.f32 %v7797_v23, %v372_v34  ;;  %v410_v44 = vmul.f32 %v7797_v23, %v373_v35  ;;  %v411_v45 = vmul.f32 %v7797_v23, %v374_v36 }
  0x19   : > { %13767 = vst [vmem:[#allocation7_spill] sm:$0xff] %v7814_v33  ;;  %13768 = vst [vmem:[#allocation8_spill] sm:$0xff] %v7823_v39  ;;  %v441_v46 = vadd.f32 %v7799_v24, %v405_v37  ;;  %v442_v47 = vadd.f32 %v7799_v24, %v406_v38  ;;  %v443_v48 = vadd.f32 %v7799_v24, %v407_v40 }
  0x1a   : > { %v412_v49 = vmul.f32 %v7797_v23, %v375_v41  ;;  %v444_v50 = vadd.f32 %v7799_v24, %v408_v42  ;;  %v445_v51 = vadd.f32 %v7799_v24, %v409_v43  ;;  %v446_v52 = vadd.f32 %v7799_v24, %v410_v44 }
  0x1b   : > { %v7839_v53 = vadd.f32 %v7799_v24, %v411_v45  ;;  %vm473_vm5 = vcmp.gt.f32.partialorder %v441_v46, 0.0  ;;  %vm474_vm6 = vcmp.gt.f32.partialorder %v442_v47, 0.0  ;;  %v505_v54 = vmul.f32 0.2, %v441_v46  ;;  %v379_v45 = vld [vmem:[%s7785_s15 + $0x58] sm:$0xff] }
  0x1c   : > { %v506_v55 = vmul.f32 0.2, %v442_v47  ;;  %vm475_vm7 = vcmp.gt.f32.partialorder %v443_v48, 0.0  ;;  %vm476_vm8 = vcmp.gt.f32.partialorder %v444_v50, 0.0  ;;  %v507_v56 = vmul.f32 0.2, %v443_v48 }
  0x1d   : > { %v508_v57 = vmul.f32 0.2, %v444_v50  ;;  %v537_v58 = vsel %vm473_vm5, %v441_v46, %v505_v54  ;;  %vm477_vm9 = vcmp.gt.f32.partialorder %v445_v51, 0.0  ;;  %vm478_vm10 = vcmp.gt.f32.partialorder %v446_v52, 0.0 }
  0x1e   : > { %v538_v59 = vsel %vm474_vm6, %v442_v47, %v506_v55  ;;  %v573_v60 = vmul.f32 %v7801_v25, %v537_v58  ;;  %v539_v62 = vsel %vm475_vm7, %v443_v48, %v507_v56  ;;  %v509_v5 = vmul.f32 0.2, %v445_v51 }
  0x1f   : > { %v574_v61 = vmul.f32 %v7801_v25, %v538_v59  ;;  %v540_v63 = vsel %vm476_vm8, %v444_v50, %v508_v57  ;;  %v575_v1 = vmul.f32 %v7801_v25, %v539_v62  ;;  %v510_v6 = vmul.f32 0.2, %v446_v52  ;;  %v381_v50 = vld [vmem:[%s7785_s15 + $0x68] sm:$0xff] }
  0x20   : > { %v576_v3 = vmul.f32 %v7801_v25, %v540_v63  ;;  %v609_v7 = vadd.f32 %v7803_v26, %v573_v60  ;;  %v448_v9 = vadd.f32 %v7799_v24, %v412_v49  ;;  %vm479_vm11 = vcmp.gt.f32.partialorder %v7839_v53, 0.0  ;;  %v380_v49 = vld [vmem:[%s7785_s15 + $0x60] sm:$0xff] }
  0x21   : > { %v610_v8 = vadd.f32 %v7803_v26, %v574_v61  ;;  %v611_v10 = vadd.f32 %v7803_v26, %v575_v1  ;;  %v541_v12 = vsel %vm477_vm9, %v445_v51, %v509_v5  ;;  %v542_v13 = vsel %vm478_vm10, %v446_v52, %v510_v6 }
  0x22   : > { %v612_v11 = vadd.f32 %v7803_v26, %v576_v3  ;;  %vm641_vm12 = vcmp.gt.f32.partialorder %v609_v7, 0.0  ;;  %v673_v14 = vmul.f32 0.2, %v609_v7  ;;  %v577_v27 = vmul.f32 %v7801_v25, %v541_v12 }
  0x23   : > { %vm642_vm13 = vcmp.gt.f32.partialorder %v610_v8, 0.0  ;;  %v674_v15 = vmul.f32 0.2, %v610_v8  ;;  %vm643_vm14 = vcmp.gt.f32.partialorder %v611_v10, 0.0  ;;  %v675_v19 = vmul.f32 0.2, %v611_v10 }
  0x24   : > { %vm644_vm15 = vcmp.gt.f32.partialorder %v612_v11, 0.0  ;;  %v676_v20 = vmul.f32 0.2, %v612_v11  ;;  %v705_v21 = vsel %vm641_vm12, %v609_v7, %v673_v14  ;;  %v578_v28 = vmul.f32 %v7801_v25, %v542_v13 }
  0x25   : > { %v706_v22 = vsel %vm642_vm13, %v610_v8, %v674_v15  ;;  %v707_v35 = vsel %vm643_vm14, %v611_v10, %v675_v19  ;;  %vm480_vm0 = vcmp.gt.f32.partialorder %v448_v9, 0.0  ;;  %v613_v38 = vadd.f32 %v7803_v26, %v577_v27 }
  0x26   : > { %v7858_v34 = vpack.c.bf16 %v706_v22, %v705_v21  ;;  %v708_v36 = vsel %vm644_vm15, %v612_v11, %v676_v20  ;;  %v614_v40 = vadd.f32 %v7803_v26, %v578_v28  ;;  %v511_v41 = vmul.f32 0.2, %v7839_v53 }
  0x27   : > { %v7860_v37 = vpack.c.bf16 %v708_v36, %v707_v35  ;;  %v512_v42 = vmul.f32 0.2, %v448_v9  ;;  %v413_v43 = vmul.f32 %v7797_v23, %v376_v16  ;;  %v414_v44 = vmul.f32 %v7797_v23, %v377_v17 }
  0x28   : > { %769 = vrot.lane.b32.xlu0 %v7858_v34, %s7695_s24  ;;  %v415_v46 = vmul.f32 %v7797_v23, %v378_v29  ;;  %vm645_vm1 = vcmp.gt.f32.partialorder %v613_v38, 0.0  ;;  %vm646_vm5 = vcmp.gt.f32.partialorder %v614_v40, 0.0  ;;  %v677_v47 = vmul.f32 0.2, %v613_v38 }
  0x29   : > { %v678_v48 = vmul.f32 0.2, %v614_v40  ;;  %v543_v51 = vsel %vm479_vm11, %v7839_v53, %v511_v41  ;;  %v544_v52 = vsel %vm480_vm0, %v448_v9, %v512_v42  ;;  %v449_v54 = vadd.f32 %v7799_v24, %v413_v43 }
  0x2a   : > { %v450_v55 = vadd.f32 %v7799_v24, %v414_v44  ;;  %v709_v56 = vsel %vm645_vm1, %v613_v38, %v677_v47  ;;  %v579_v58 = vmul.f32 %v7801_v25, %v543_v51  ;;  %v580_v59 = vmul.f32 %v7801_v25, %v544_v52  ;;  %v382_v38 = vld [vmem:[%s7785_s15 + $0x70] sm:$0xff] }
  0x2b   : > { %v710_v57 = vsel %vm646_vm5, %v614_v40, %v678_v48  ;;  %vm481_vm6 = vcmp.gt.f32.partialorder %v449_v54, 0.0  ;;  %v513_v53 = vmul.f32 0.2, %v449_v54  ;;  %v416_v1 = vmul.f32 %v7797_v23, %v379_v45  ;;  %v383_v48 = vld [vmem:[%s7785_s15 + $0x78] sm:$0xff] }
  0x2c   : > { %771 = vrot.lane.b32.xlu0 %v7860_v37, %s7695_s24  ;;  %v7883_v60 = vpack.c.bf16 %v710_v57, %v709_v56  ;;  %vm482_vm7 = vcmp.gt.f32.partialorder %v450_v55, 0.0  ;;  %v615_v61 = vadd.f32 %v7803_v26, %v579_v58  ;;  %v616_v62 = vadd.f32 %v7803_v26, %v580_v59 }
  0x2d   : > { %v514_v63 = vmul.f32 0.2, %v450_v55  ;;  %v545_v3 = vsel %vm481_vm6, %v449_v54, %v513_v53  ;;  %v451_v5 = vadd.f32 %v7799_v24, %v415_v46  ;;  %v417_v6 = vmul.f32 %v7797_v23, %v380_v49 }
  0x2e   : > { %773 = vrot.lane.b32.xlu1 %v7883_v60, %s7695_s24  ;;  %v418_v7 = vmul.f32 %v7797_v23, %v381_v50  ;;  %vm647_vm8 = vcmp.gt.f32.partialorder %v615_v61, 0.0  ;;  %vm648_vm9 = vcmp.gt.f32.partialorder %v616_v62, 0.0  ;;  %v679_v8 = vmul.f32 0.2, %v615_v61  ;;  %v384_v50 = vld [vmem:[%s7785_s15 + $0x80] sm:$0xff] }
  0x2f   : > { %v680_v9 = vmul.f32 0.2, %v616_v62  ;;  %v546_v10 = vsel %vm482_vm7, %v450_v55, %v514_v63  ;;  %v581_v11 = vmul.f32 %v7801_v25, %v545_v3  ;;  %v452_v12 = vadd.f32 %v7799_v24, %v416_v1  ;;  %v385_v55 = vld [vmem:[%s7785_s15 + $0x88] sm:$0xff] }
  0x30   : > { %vm483_vm10 = vcmp.gt.f32.partialorder %v451_v5, 0.0  ;;  %v711_v13 = vsel %vm647_vm8, %v615_v61, %v679_v8  ;;  %v582_v15 = vmul.f32 %v7801_v25, %v546_v10  ;;  %v515_v16 = vmul.f32 0.2, %v451_v5 }
  0x31   : > { %v712_v14 = vsel %vm648_vm9, %v616_v62, %v680_v9  ;;  %v617_v19 = vadd.f32 %v7803_v26, %v581_v11  ;;  %vm484_vm11 = vcmp.gt.f32.partialorder %v452_v12, 0.0  ;;  %v516_v20 = vmul.f32 0.2, %v452_v12 }
  0x32   : > { %v7896_v17 = vpack.c.bf16 %v712_v14, %v711_v13  ;;  %v618_v21 = vadd.f32 %v7803_v26, %v582_v15  ;;  %v547_v22 = vsel %vm483_vm10, %v451_v5, %v515_v16  ;;  %v453_v27 = vadd.f32 %v7799_v24, %v417_v6 }
  0x33   : > { %v454_v28 = vadd.f32 %v7799_v24, %v418_v7  ;;  %vm649_vm12 = vcmp.gt.f32.partialorder %v617_v19, 0.0  ;;  %v681_v29 = vmul.f32 0.2, %v617_v19  ;;  %v548_v35 = vsel %vm484_vm11, %v452_v12, %v516_v20  ;;  %v387_v20 = vld [vmem:[%s7785_s15 + $0x98] sm:$0xff] }
  0x34   : > { %775 = vrot.lane.b32.xlu1 %v7896_v17, %s7695_s24  ;;  %v583_v36 = vmul.f32 %v7801_v25, %v547_v22  ;;  %vm650_vm13 = vcmp.gt.f32.partialorder %v618_v21, 0.0  ;;  %v682_v40 = vmul.f32 0.2, %v618_v21  ;;  %v584_v41 = vmul.f32 %v7801_v25, %v548_v35 }
  0x35   : > { %vm485_vm14 = vcmp.gt.f32.partialorder %v453_v27, 0.0  ;;  %v713_v42 = vsel %vm649_vm12, %v617_v19, %v681_v29  ;;  %vm486_vm15 = vcmp.gt.f32.partialorder %v454_v28, 0.0  ;;  %v517_v44 = vmul.f32 0.2, %v453_v27  ;;  %v386_v19 = vld [vmem:[%s7785_s15 + $0x90] sm:$0xff]  ;;  %v388_v29 = vld [vmem:[%s7785_s15 + $0xa0] sm:$0xff] }
  0x36   : > { %v619_v43 = vadd.f32 %v7803_v26, %v583_v36  ;;  %v714_v45 = vsel %vm650_vm13, %v618_v21, %v682_v40  ;;  %v620_v46 = vadd.f32 %v7803_v26, %v584_v41  ;;  %v518_v47 = vmul.f32 0.2, %v454_v28 }
  0x37   : > { %v419_v49 = vmul.f32 %v7797_v23, %v382_v38  ;;  %v7912_v51 = vpack.c.bf16 %v714_v45, %v713_v42  ;;  %v549_v54 = vsel %vm485_vm14, %v453_v27, %v517_v44  ;;  %v420_v61 = vmul.f32 %v7797_v23, %v383_v48 }
  0x38   : > { %vm651_vm0 = vcmp.gt.f32.partialorder %v619_v43, 0.0  ;;  %v683_v52 = vmul.f32 0.2, %v619_v43  ;;  %vm652_vm1 = vcmp.gt.f32.partialorder %v620_v46, 0.0  ;;  %v684_v56 = vmul.f32 0.2, %v620_v46 }
  0x39   : > { %v550_v57 = vsel %vm486_vm15, %v454_v28, %v518_v47  ;;  %v585_v58 = vmul.f32 %v7801_v25, %v549_v54  ;;  %777 = vrot.lane.b32.xlu0 %v7912_v51, %s7695_s24  ;;  %v455_v62 = vadd.f32 %v7799_v24, %v419_v49  ;;  %v421_v3 = vmul.f32 %v7797_v23, %v384_v50 }
  0x3a   : > { %v715_v59 = vsel %vm651_vm0, %v619_v43, %v683_v52  ;;  %v586_v53 = vmul.f32 %v7801_v25, %v550_v57  ;;  %v716_v63 = vsel %vm652_vm1, %v620_v46, %v684_v56  ;;  %v422_v5 = vmul.f32 %v7797_v23, %v385_v55 }
  0x3b   : > { %v621_v1 = vadd.f32 %v7803_v26, %v585_v58  ;;  %v7924_v6 = vpack.c.bf16 %v716_v63, %v715_v59  ;;  %v456_v8 = vadd.f32 %v7799_v24, %v420_v61  ;;  %vm487_vm5 = vcmp.gt.f32.partialorder %v455_v62, 0.0  ;;  %v389_v59 = vld [vmem:[%s7785_s15 + $0xa8] sm:$0xff] }
  0x3c   : > { %v622_v7 = vadd.f32 %v7803_v26, %v586_v53  ;;  %v519_v10 = vmul.f32 0.2, %v455_v62  ;;  %v457_v11 = vadd.f32 %v7799_v24, %v421_v3  ;;  %v458_v16 = vadd.f32 %v7799_v24, %v422_v5 }
  0x3d   : > { %vm653_vm6 = vcmp.gt.f32.partialorder %v621_v1, 0.0  ;;  %v685_v9 = vmul.f32 0.2, %v621_v1  ;;  %779 = vrot.lane.b32.xlu0 %v7924_v6, %s7695_s24  ;;  %vm488_vm8 = vcmp.gt.f32.partialorder %v456_v8, 0.0  ;;  %v520_v13 = vmul.f32 0.2, %v456_v8 }
  0x3e   : > { %vm654_vm7 = vcmp.gt.f32.partialorder %v622_v7, 0.0  ;;  %v686_v12 = vmul.f32 0.2, %v622_v7  ;;  %v551_v15 = vsel %vm487_vm5, %v455_v62, %v519_v10  ;;  %vm489_vm9 = vcmp.gt.f32.partialorder %v457_v11, 0.0 }
  0x3f   : > { %v717_v14 = vsel %vm653_vm6, %v621_v1, %v685_v9  ;;  %v552_v22 = vsel %vm488_vm8, %v456_v8, %v520_v13  ;;  %v587_v27 = vmul.f32 %v7801_v25, %v551_v15  ;;  %v521_v28 = vmul.f32 0.2, %v457_v11 }
  0x40   : > { %v718_v21 = vsel %vm654_vm7, %v622_v7, %v686_v12  ;;  %v588_v36 = vmul.f32 %v7801_v25, %v552_v22  ;;  %vm490_vm10 = vcmp.gt.f32.partialorder %v458_v16, 0.0  ;;  %v522_v38 = vmul.f32 0.2, %v458_v16 }
  0x41   : > { %v7936_v35 = vpack.c.bf16 %v718_v21, %v717_v14  ;;  %v623_v40 = vadd.f32 %v7803_v26, %v587_v27  ;;  %v553_v41 = vsel %vm489_vm9, %v457_v11, %v521_v28  ;;  %v423_v42 = vmul.f32 %v7797_v23, %v386_v19 }
  0x42   : > { %v424_v43 = vmul.f32 %v7797_v23, %v387_v20  ;;  %v624_v44 = vadd.f32 %v7803_v26, %v588_v36  ;;  %v554_v45 = vsel %vm490_vm10, %v458_v16, %v522_v38  ;;  %v589_v46 = vmul.f32 %v7801_v25, %v553_v41 }
  0x43   : > { %781 = vrot.lane.b32.xlu0 %v7936_v35, %s7695_s24  ;;  %v425_v47 = vmul.f32 %v7797_v23, %v388_v29  ;;  %vm655_vm11 = vcmp.gt.f32.partialorder %v623_v40, 0.0  ;;  %v687_v48 = vmul.f32 0.2, %v623_v40  ;;  %v590_v49 = vmul.f32 %v7801_v25, %v554_v45 }
  0x44   : > { %v459_v50 = vadd.f32 %v7799_v24, %v423_v42  ;;  %vm656_vm12 = vcmp.gt.f32.partialorder %v624_v44, 0.0  ;;  %v688_v52 = vmul.f32 0.2, %v624_v44  ;;  %v625_v54 = vadd.f32 %v7803_v26, %v589_v46 }
  0x45   : > { %v460_v55 = vadd.f32 %v7799_v24, %v424_v43  ;;  %v719_v56 = vsel %vm655_vm11, %v623_v40, %v687_v48  ;;  %v626_v57 = vadd.f32 %v7803_v26, %v590_v49  ;;  %v426_v7 = vmul.f32 %v7797_v23, %v389_v59 }
  0x46   : > { %vm491_vm13 = vcmp.gt.f32.partialorder %v459_v50, 0.0  ;;  %v523_v58 = vmul.f32 0.2, %v459_v50  ;;  %v720_v53 = vsel %vm656_vm12, %v624_v44, %v688_v52  ;;  %vm657_vm14 = vcmp.gt.f32.partialorder %v625_v54, 0.0 }
  0x47   : > { %v689_v61 = vmul.f32 0.2, %v625_v54  ;;  %vm492_vm15 = vcmp.gt.f32.partialorder %v460_v55, 0.0  ;;  %v7953_v62 = vpack.c.bf16 %v720_v53, %v719_v56  ;;  %vm658_vm0 = vcmp.gt.f32.partialorder %v626_v57, 0.0 }
  0x48   : > { %v690_v63 = vmul.f32 0.2, %v626_v57  ;;  %v524_v1 = vmul.f32 0.2, %v460_v55  ;;  %v555_v5 = vsel %vm491_vm13, %v459_v50, %v523_v58  ;;  %v461_v8 = vadd.f32 %v7799_v24, %v425_v47 }
  0x49   : > { %v721_v3 = vsel %vm657_vm14, %v625_v54, %v689_v61  ;;  %783 = vrot.lane.b32.xlu0 %v7953_v62, %s7695_s24  ;;  %v591_v11 = vmul.f32 %v7801_v25, %v555_v5  ;;  %v462_v14 = vadd.f32 %v7799_v24, %v426_v7  ;;  %vm801_vm10 = vcmask 64512   ;;  %v390_v5 = vld [vmem:[%s7785_s15 + $0xb0] sm:$0xff] }
  0x4a   : > { %v722_v9 = vsel %vm658_vm0, %v626_v57, %v690_v63  ;;  %v556_v10 = vsel %vm492_vm15, %v460_v55, %v524_v1  ;;  %vm493_vm1 = vcmp.gt.f32.partialorder %v461_v8, 0.0  ;;  %v525_v16 = vmul.f32 0.2, %v461_v8 }
  0x4b   : > { %v7960_v12 = vpack.c.bf16 %v722_v9, %v721_v3  ;;  %v592_v13 = vmul.f32 %v7801_v25, %v556_v10  ;;  %v627_v15 = vadd.f32 %v7803_v26, %v591_v11  ;;  %vm494_vm5 = vcmp.gt.f32.partialorder %v462_v14, 0.0 }
  0x4c   : > { %v526_v20 = vmul.f32 0.2, %v462_v14  ;;  %v557_v22 = vsel %vm493_vm1, %v461_v8, %v525_v16  ;;  %v427_v16 = vmul.f32 %v7797_v23, %v390_v5  ;;  %vm1547_vm11 = vcmask 130048  }
  0x4d   : > { %v628_v19 = vadd.f32 %v7803_v26, %v592_v13  ;;  %785 = vrot.lane.b32.xlu0 %v7960_v12, %s7695_s24  ;;  %vm659_vm6 = vcmp.gt.f32.partialorder %v627_v15, 0.0  ;;  %v691_v21 = vmul.f32 0.2, %v627_v15  ;;  %v593_v29 = vmul.f32 %v7801_v25, %v557_v22  ;;  %v7619_v22 = vld [vmem:[%s13568_s3] sm:$0xff]  }
  0x4e   : > { %v558_v28 = vsel %vm494_vm5, %v462_v14, %v526_v20  ;;  %2027 = vmatpush1.bf16.msra.mxu0 %v7619_v22 }
  0x4f   : > { %vm660_vm7 = vcmp.gt.f32.partialorder %v628_v19, 0.0  ;;  %v692_v27 = vmul.f32 0.2, %v628_v19  ;;  %v723_v36 = vsel %vm659_vm6, %v627_v15, %v691_v21  ;;  %v594_v38 = vmul.f32 %v7801_v25, %v558_v28  ;;  %2028 = vmatprep.subr.bf16.mxu0 %v13575_v0 }
  0x50   : > { %v629_v41 = vadd.f32 %v7803_v26, %v593_v29 }
  0x51   : > { %v724_v40 = vsel %vm660_vm7, %v628_v19, %v692_v27  ;;  %v630_v43 = vadd.f32 %v7803_v26, %v594_v38 }
  0x52   : > { %v7971_v42 = vpack.c.bf16 %v724_v40, %v723_v36  ;;  %vm661_vm8 = vcmp.gt.f32.partialorder %v629_v41, 0.0  ;;  %v693_v44 = vmul.f32 0.2, %v629_v41 }
  0x53   : > { %vm662_vm9 = vcmp.gt.f32.partialorder %v630_v43, 0.0  ;;  %v694_v45 = vmul.f32 0.2, %v630_v43 }
  0x54   : > { %787 = vrot.lane.b32.xlu0 %v7971_v42, %s7695_s24  ;;  %v725_v46 = vsel %vm661_vm8, %v629_v41, %v693_v44 }
  0x55   : > { %v726_v47 = vsel %vm662_vm9, %v630_v43, %v694_v45 }
  0x56   : > { %v7976_v48 = vpack.c.bf16 %v726_v47, %v725_v46  ;;  %v463_v46 = vadd.f32 %v7799_v24, %v427_v16  ;;  %v392_v16 = vld [vmem:[%s7785_s15 + $0xc0] sm:$0xff] }
  0x58   : > { %789 = vrot.lane.b32.xlu0 %v7976_v48, %s7695_s24  ;;  %vm495_vm12 = vcmp.gt.f32.partialorder %v463_v46, 0.0 }
  0x87   : > { %v7980_v49 = vpop.permute.xlu0 %1349 }
  0x8a   : > { %v7984_v54 = vpop.permute.xlu1 %1229 }
  0x9a   : > { %v770_v50 = vpop.permute.xlu0 %769 }
  0x9b   : > { %v804_v52 = vsel %vm801_vm10, %v7858_v34, %v770_v50 }
  0x9c   : > { %v857_v55 = vshrl.u32 %v804_v52, 16  ;;  %v860_v57 = vshll.u32 %v804_v52, 16 }
  0x9e   : > { %v859_v56 = vrot.slane %v857_v55, 7  ;;  %v772_v58 = vpop.permute.xlu0 %771  ;;  %v7620_v55 = vld [vmem:[%s13568_s3 + $0x8] sm:$0xff]  }
  0x9f   : > { %v807_v59 = vsel %vm801_vm10, %v7860_v37, %v772_v58  ;;  %v391_v37 = vld [vmem:[%s7785_s15 + $0xb8] sm:$0xff]  ;;  %2029 = vmatpush1.bf16.msra.mxu0 %v7620_v55 }
  0xa0   : > { %v862_v53 = vor.u32 %v860_v57, %v859_v56  ;;  %v7990_v61 = vsel %vm7760_vm2, %v859_v56, 0  ;;  %v863_v63 = vshrl.u32 %v807_v59, 16  ;;  %v866_v1 = vshll.u32 %v807_v59, 16  ;;  %v774_v3 = vpop.permute.xlu1 %773  ;;  %2030 = vmatprep.subr.bf16.mxu0 %v13575_v0 }
  0xa1   : > { %v810_v34 = vsel %vm801_vm10, %v7883_v60, %v774_v3  ;;  %v1302_v13 = vrot.slane %v7990_v61, 1  ;;  %v428_v21 = vmul.f32 %v7797_v23, %v391_v37 }
  0xa2   : > { %v7997_v7 = vsel %vm7760_vm2, 0, %v862_v53  ;;  %v865_v8 = vrot.slane %v863_v63, 7  ;;  %v869_v9 = vshrl.u32 %v810_v34, 16  ;;  %v872_v10 = vshll.u32 %v810_v34, 16 }
  0xa3   : > { %1383 = vrot.lane.b32.xlu1 %v7997_v7, %s7696_s25  ;;  %v1301_v11 = vrot.slane %v7997_v7, 1  ;;  %v464_v50 = vadd.f32 %v7799_v24, %v428_v21 }
  0xa4   : > { %v868_v14 = vor.u32 %v866_v1, %v865_v8  ;;  %v8006_v60 = vsel %vm7760_vm2, %v865_v8, 0  ;;  %v871_v15 = vrot.slane %v869_v9, 7  ;;  %v527_v1 = vmul.f32 0.2, %v463_v46  ;;  %v7621_v9 = vld [vmem:[%s13568_s3 + $0x10] sm:$0xff]  }
  0xa5   : > { %v1305_v19 = vrot.slane %v8006_v60, 1  ;;  %v8011_v20 = vsel %vm1297_vm4, %v1301_v11, %v1302_v13  ;;  %v528_v3 = vmul.f32 0.2, %v464_v50  ;;  %vm496_vm13 = vcmp.gt.f32.partialorder %v464_v50, 0.0  ;;  %2031 = vmatpush1.bf16.msra.mxu0 %v7621_v9 }
  0xa6   : > { %v8019_v27 = vsel %vm7760_vm2, 0, %v868_v14  ;;  %v874_v28 = vor.u32 %v872_v10, %v871_v15  ;;  %v8023_v29 = vsel %vm7760_vm2, %v871_v15, 0  ;;  %v776_v36 = vpop.permute.xlu1 %775  ;;  %1351 = vrot.lane.b32.xlu0 %v8011_v20, %s7693_s19  ;;  %7340 = vmatprep.mubr.msk.bf16.mxu0 %vm1547_vm11, %v8011_v20  ;;  %v559_v14 = vsel %vm495_vm12, %v463_v46, %v527_v1 }
  0xa7   : > { %v1308_v38 = vrot.slane %v8023_v29, 1  ;;  %v813_v40 = vsel %vm801_vm10, %v7896_v17, %v776_v36  ;;  %1479 = vrot.lane.b32.xlu1 %v7997_v7, %s7697_s28  ;;  %v1304_v41 = vrot.slane %v8019_v27, 1  ;;  %v560_v15 = vsel %vm496_vm13, %v464_v50, %v528_v3  ;;  %2032 = vmatprep.subr.bf16.mxu0 %v13575_v0 }
  0xa8   : > { %v8037_v43 = vsel %vm7760_vm2, 0, %v874_v28  ;;  %v875_v44 = vshrl.u32 %v813_v40, 16  ;;  %v878_v45 = vshll.u32 %v813_v40, 16  ;;  %v393_v40 = vld [vmem:[%s7785_s15 + $0xc8] sm:$0xff]  ;;  %v429_v46 = vmul.f32 %v7797_v23, %v392_v16 }
  0xa9   : > { %v8042_v47 = vsel %vm1297_vm4, %v1304_v41, %v1305_v19  ;;  %v1307_v17 = vrot.slane %v8037_v43, 1 }
  0xaa   : > { %v877_v52 = vrot.slane %v875_v44, 7  ;;  %1353 = vrot.lane.b32.xlu0 %v8042_v47, %s7693_s19 }
  0xab   : > { %1481 = vrot.lane.b32.xlu1 %v8019_v27, %s7697_s28  ;;  %v8054_v56 = vsel %vm1297_vm4, %v1307_v17, %v1308_v38  ;;  %v778_v59 = vpop.permute.xlu0 %777  ;;  %v1040_v38 = vshll.u32 %v7997_v7, 16 }
  0xac   : > { %v880_v57 = vor.u32 %v878_v45, %v877_v52  ;;  %v8058_v58 = vsel %vm7760_vm2, %v877_v52, 0  ;;  %v816_v63 = vsel %vm801_vm10, %v7912_v51, %v778_v59  ;;  %v595_v45 = vmul.f32 %v7801_v25, %v559_v14 }
  0xad   : > { %v1311_v53 = vrot.slane %v8058_v58, 1  ;;  %v881_v5 = vshrl.u32 %v816_v63, 16  ;;  %v884_v8 = vshll.u32 %v816_v63, 16  ;;  %v596_v52 = vmul.f32 %v7801_v25, %v560_v15  ;;  %v7623_v63 = vld [vmem:[%s13568_s3 + $0x20] sm:$0xff]  }
  0xae   : > { %v8066_v34 = vsel %vm7760_vm2, 0, %v880_v57  ;;  %1355 = vrot.lane.b32.xlu0 %v8054_v56, %s7693_s19 }
  0xaf   : > { %1385 = vrot.lane.b32.xlu1 %v8019_v27, %s7696_s25  ;;  %v1310_v51 = vrot.slane %v8066_v34, 1  ;;  %v883_v10 = vrot.slane %v881_v5, 7  ;;  %v780_v37 = vpop.permute.xlu0 %779  ;;  %v1042_v5 = vrot.slane %v1040_v38, 1  ;;  %v632_v14 = vadd.f32 %v7803_v26, %v596_v52 }
  0xb0   : > { %v819_v11 = vsel %vm801_vm10, %v7924_v6, %v780_v37  ;;  %v7622_v6 = vld [vmem:[%s13568_s3 + $0x18] sm:$0xff]  }
  0xb1   : > { %v8079_v13 = vsel %vm1297_vm4, %v1310_v51, %v1311_v53  ;;  %v886_v19 = vor.u32 %v884_v8, %v883_v10  ;;  %v8086_v21 = vsel %vm7760_vm2, %v883_v10, 0  ;;  %v887_v22 = vshrl.u32 %v819_v11, 16  ;;  %2033 = vmatpush1.bf16.msra.mxu0 %v7622_v6 }
  0xb2   : > { %v890_v28 = vshll.u32 %v819_v11, 16  ;;  %1357 = vrot.lane.b32.xlu0 %v8079_v13, %s7693_s19  ;;  %v1314_v36 = vrot.slane %v8086_v21, 1  ;;  %2034 = vmatprep.subr.bf16.mxu0 %v13575_v0  ;;  %v430_v53 = vmul.f32 %v7797_v23, %v393_v40  ;;  %v465_v51 = vadd.f32 %v7799_v24, %v429_v46  ;;  %v7625_v46 = vld [vmem:[%s13568_s3 + $0x30] sm:$0xff]  }
  0xb3   : > { %1483 = vrot.lane.b32.xlu1 %v8037_v43, %s7697_s28  ;;  %v8100_v41 = vsel %vm7760_vm2, 0, %v886_v19  ;;  %v889_v44 = vrot.slane %v887_v22, 7  ;;  %v1045_v10 = vshll.u32 %v7990_v61, 16  ;;  %v1038_v11 = vshrl.u32 %v7997_v7, 16  ;;  %v7624_v22 = vld [vmem:[%s13568_s3 + $0x28] sm:$0xff]  }
  0xb4   : > { %v1313_v17 = vrot.slane %v8100_v41, 1  ;;  %v466_v19 = vadd.f32 %v7799_v24, %v430_v53  ;;  %v529_v6 = vmul.f32 0.2, %v465_v51  ;;  %v696_v40 = vmul.f32 0.2, %v632_v14 }
  0xb5   : > { %v782_v50 = vpop.permute.xlu0 %781  ;;  %v892_v55 = vor.u32 %v890_v28, %v889_v44  ;;  %v8109_v57 = vsel %vm7760_vm2, %v889_v44, 0  ;;  %2035 = vmatpush1.bf16.msra.mxu0 %v7623_v63  ;;  %v1043_v61 = vor.u32 %v1042_v5, %v1038_v11  ;;  %vm664_vm15 = vcmp.gt.f32.partialorder %v632_v14, 0.0  ;;  %v7626_v5 = vld [vmem:[%s13568_s3 + $0x38] sm:$0xff]  }
  0xb6   : > { %v822_v59 = vsel %vm801_vm10, %v7936_v35, %v782_v50  ;;  %v1317_v1 = vrot.slane %v8109_v57, 1  ;;  %v8119_v3 = vsel %vm1297_vm4, %v1313_v17, %v1314_v36  ;;  %v631_v35 = vadd.f32 %v7803_v26, %v595_v45  ;;  %2036 = vmatprep.subr.bf16.mxu0 %v13575_v0 }
  0xb7   : > { %1387 = vrot.lane.b32.xlu1 %v8037_v43, %s7696_s25  ;;  %v893_v8 = vshrl.u32 %v822_v59, 16  ;;  %v8125_v9 = vsel %vm7760_vm2, 0, %v892_v55  ;;  %1359 = vrot.lane.b32.xlu0 %v8119_v3, %s7693_s19  ;;  %v896_v16 = vshll.u32 %v822_v59, 16  ;;  %v1047_v36 = vrot.slane %v1045_v10, 1  ;;  %v394_v10 = vld [vmem:[%s7785_s15 + $0xd0] sm:$0xff] }
  0xb8   : > { %v1316_v37 = vrot.slane %v8125_v9, 1  ;;  %v695_v38 = vmul.f32 0.2, %v631_v35  ;;  %vm663_vm14 = vcmp.gt.f32.partialorder %v631_v35, 0.0  ;;  %v530_v45 = vmul.f32 0.2, %v466_v19 }
  0xb9   : > { %v895_v15 = vrot.slane %v893_v8, 7  ;;  %2037 = vmatpush1.bf16.msra.mxu0 %v7624_v22  ;;  %v8152_v17 = vsel %vm1024_vm3, %v1043_v61, %v1047_v36  ;;  %vm497_vm0 = vcmp.gt.f32.partialorder %v465_v51, 0.0  ;;  %vm498_vm1 = vcmp.gt.f32.partialorder %v466_v19, 0.0  ;;  %v7627_v61 = vld [vmem:[%s13568_s3 + $0x40] sm:$0xff]  }
  0xba   : > { %v8141_v28 = vsel %vm1297_vm4, %v1316_v37, %v1317_v1  ;;  %2038 = vmatprep.subr.bf16.mxu0 %v13575_v0  ;;  %v727_v52 = vsel %vm663_vm14, %v631_v35, %v695_v38  ;;  %v728_v55 = vsel %vm664_vm15, %v632_v14, %v696_v40  ;;  %v561_v63 = vsel %vm497_vm0, %v465_v51, %v529_v6  ;;  %v395_v37 = vld [vmem:[%s7785_s15 + $0xd8] sm:$0xff] }
  0xbb   : > { %1485 = vrot.lane.b32.xlu1 %v8066_v34, %s7697_s28  ;;  %1361 = vrot.lane.b32.xlu0 %v8141_v28, %s7693_s19  ;;  %v898_v44 = vor.u32 %v896_v16, %v895_v15  ;;  %v784_v50 = vpop.permute.xlu0 %783  ;;  %v8165_v53 = vsel %vm7760_vm2, %v895_v15, 0  ;;  %v562_v1 = vsel %vm498_vm1, %v466_v19, %v530_v45  ;;  %v1052_v8 = vshll.u32 %v8019_v27, 16 }
  0xbc   : > { %v825_v35 = vsel %vm801_vm10, %v7953_v62, %v784_v50  ;;  %v8179_v51 = vpack.c.bf16 %v728_v55, %v727_v52  ;;  %v1320_v11 = vrot.slane %v8165_v53, 1  ;;  %v597_v15 = vmul.f32 %v7801_v25, %v561_v63 }
  0xbd   : > { %2039 = vmatpush1.bf16.msra.mxu0 %v7625_v46  ;;  %v8161_v59 = vsel %vm7760_vm2, 0, %v898_v44  ;;  %v598_v16 = vmul.f32 %v7801_v25, %v562_v1  ;;  %v899_v62 = vshrl.u32 %v825_v35, 16  ;;  %v431_v19 = vmul.f32 %v7797_v23, %v394_v10 }
  0xbe   : > { %2040 = vmatprep.subr.bf16.mxu0 %v13575_v0  ;;  %v1319_v14 = vrot.slane %v8161_v59, 1  ;;  %v432_v22 = vmul.f32 %v7797_v23, %v395_v37  ;;  %v1057_v6 = vshll.u32 %v8006_v60, 16  ;;  %v1050_v36 = vshrl.u32 %v8019_v27, 16 }
  0xbf   : > { %1389 = vrot.lane.b32.xlu1 %v8066_v34, %s7696_s25  ;;  %1415 = vrot.lane.b32.xlu0 %v8152_v17, %s7698_s27  ;;  %v1054_v38 = vrot.slane %v1052_v8, 1  ;;  %v633_v44 = vadd.f32 %v7803_v26, %v597_v15  ;;  %v634_v45 = vadd.f32 %v7803_v26, %v598_v16  ;;  %v901_v46 = vrot.slane %v899_v62, 7 }
  0xc0   : > { %v8198_v40 = vsel %vm1297_vm4, %v1319_v14, %v1320_v11  ;;  %v902_v50 = vshll.u32 %v825_v35, 16  ;;  %v467_v60 = vadd.f32 %v7799_v24, %v431_v19  ;;  %v468_v52 = vadd.f32 %v7799_v24, %v432_v22 }
  0xc1   : > { %2041 = vmatpush1.bf16.msra.mxu0 %v7626_v5  ;;  %v1055_v55 = vor.u32 %v1054_v38, %v1050_v36  ;;  %v1059_v63 = vrot.slane %v1057_v6, 1  ;;  %vm665_vm5 = vcmp.gt.f32.partialorder %v633_v44, 0.0  ;;  %v697_v1 = vmul.f32 0.2, %v633_v44 }
  0xc2   : > { %2042 = vmatprep.subr.bf16.mxu0 %v13575_v0  ;;  %v698_v5 = vmul.f32 0.2, %v634_v45  ;;  %v904_v8 = vor.u32 %v902_v50, %v901_v46  ;;  %vm666_vm6 = vcmp.gt.f32.partialorder %v634_v45, 0.0  ;;  %v531_v10 = vmul.f32 0.2, %v467_v60 }
  0xc3   : > { %1487 = vrot.lane.b32.xlu1 %v8100_v41, %s7697_s28  ;;  %1513 = vrot.lane.b32.xlu0 %v8152_v17, %s7699_s12  ;;  %v532_v37 = vmul.f32 0.2, %v468_v52  ;;  %v8209_v35 = vsel %vm1024_vm3, %v1055_v55, %v1059_v63  ;;  %vm499_vm7 = vcmp.gt.f32.partialorder %v467_v60, 0.0  ;;  %vm500_vm8 = vcmp.gt.f32.partialorder %v468_v52, 0.0 }
  0xc4   : > { %v729_v11 = vsel %vm665_vm5, %v633_v44, %v697_v1  ;;  %v730_v14 = vsel %vm666_vm6, %v634_v45, %v698_v5  ;;  %v8217_v15 = vsel %vm7760_vm2, 0, %v904_v8  ;;  %v8221_v16 = vsel %vm7760_vm2, %v901_v46, 0 }
  0xc5   : > { %2043 = vmatpush1.bf16.msra.mxu0 %v7627_v61  ;;  %13769 = vst [vmem:[#allocation9_spill] sm:$0xff] %v8217_v15  ;;  %v563_v62 = vsel %vm499_vm7, %v467_v60, %v531_v10  ;;  %v564_v19 = vsel %vm500_vm8, %v468_v52, %v532_v37  ;;  %v1064_v22 = vshll.u32 %v8037_v43, 16  ;;  %v8228_v61 = vpack.c.bf16 %v730_v14, %v729_v11 }
  0xc6   : > { %v1323_v6 = vrot.slane %v8221_v16, 1  ;;  %v1322_v36 = vrot.slane %v8217_v15, 1  ;;  %v599_v38 = vmul.f32 %v7801_v25, %v563_v62  ;;  %v600_v44 = vmul.f32 %v7801_v25, %v564_v19 }
  0xc7   : > { %1391 = vrot.lane.b32.xlu1 %v8100_v41, %s7696_s25  ;;  %791 = vrot.lane.b32.xlu0 %v8179_v51, %s7695_s24  ;;  %v1069_v45 = vshll.u32 %v8023_v29, 16  ;;  %v1066_v46 = vrot.slane %v1064_v22, 1  ;;  %v1076_v8 = vshll.u32 %v8066_v34, 16  ;;  %v1081_v11 = vshll.u32 %v8058_v58, 16 }
  0xc8   : > { %v8241_v50 = vsel %vm1297_vm4, %v1322_v36, %v1323_v6  ;;  %v635_v60 = vadd.f32 %v7803_v26, %v599_v38  ;;  %v636_v52 = vadd.f32 %v7803_v26, %v600_v44  ;;  %v1074_v14 = vshrl.u32 %v8066_v34, 16 }
  0xc9   : > { %v1071_v55 = vrot.slane %v1069_v45, 1  ;;  %v1078_v62 = vrot.slane %v1076_v8, 1  ;;  %v1083_v6 = vrot.slane %v1081_v11, 1  ;;  %v1088_v36 = vshll.u32 %v8100_v41, 16 }
  0xca   : > { %v699_v63 = vmul.f32 0.2, %v635_v60  ;;  %v700_v1 = vmul.f32 0.2, %v636_v52  ;;  %vm667_vm9 = vcmp.gt.f32.partialorder %v635_v60, 0.0  ;;  %vm668_vm12 = vcmp.gt.f32.partialorder %v636_v52, 0.0 }
  0xcb   : > { %1489 = vrot.lane.b32.xlu1 %v8125_v9, %s7697_s28  ;;  %1363 = vrot.lane.b32.xlu0 %v8198_v40, %s7693_s19  ;;  %v1079_v22 = vor.u32 %v1078_v62, %v1074_v14  ;;  %v1093_v58 = vshll.u32 %v8086_v21, 16  ;;  %v1086_v44 = vshrl.u32 %v8100_v41, 16  ;;  %v1090_v45 = vrot.slane %v1088_v36, 1  ;;  %v786_v21 = vpop.permute.xlu0 %785 }
  0xcc   : > { %v731_v10 = vsel %vm667_vm9, %v635_v60, %v699_v63  ;;  %v732_v37 = vsel %vm668_vm12, %v636_v52, %v700_v1  ;;  %v1100_v60 = vshll.u32 %v8125_v9, 16  ;;  %v1105_v52 = vshll.u32 %v8109_v57, 16 }
  0xcd   : > { %v8263_v19 = vpack.c.bf16 %v732_v37, %v731_v10  ;;  %v8272_v38 = vsel %vm1024_vm3, %v1079_v22, %v1083_v6  ;;  %v828_v63 = vsel %vm801_vm10, %v7960_v12, %v786_v21  ;;  %v1112_v10 = vshll.u32 %v8161_v59, 16 }
  0xce   : > { %v905_v1 = vshrl.u32 %v828_v63, 16  ;;  %v1107_v8 = vrot.slane %v1105_v52, 1  ;;  %v908_v11 = vshll.u32 %v828_v63, 16  ;;  %v1117_v14 = vshll.u32 %v8165_v53, 16 }
  0xcf   : > { %1393 = vrot.lane.b32.xlu1 %v8125_v9, %s7696_s25  ;;  %1515 = vrot.lane.b32.xlu0 %v8209_v35, %s7699_s12  ;;  %v1110_v62 = vshrl.u32 %v8161_v59, 16  ;;  %v1114_v22 = vrot.slane %v1112_v10, 1  ;;  %v788_v6 = vpop.permute.xlu0 %787  ;;  %v1129_v21 = vshll.u32 %v8221_v16, 16  ;;  %vm1582_vm8 = vcmask 261120  }
  0xd0   : > { %v907_v37 = vrot.slane %v905_v1, 7  ;;  %v1119_v53 = vrot.slane %v1117_v14, 1  ;;  %vm1617_vm9 = vcmask 392192   ;;  %vm1666_vm12 = vcmask 523264  }
  0xd2   : > { %v910_v36 = vor.u32 %v908_v11, %v907_v37  ;;  %v1016_v16 = vsel %vm7760_vm2, %v907_v37, 0  ;;  %v1131_v11 = vrot.slane %v1129_v21, 1 }
  0xd3   : > { %1447 = vrot.lane.b32.xlu1 %v8011_v20, %s7700_s16  ;;  %1417 = vrot.lane.b32.xlu0 %v8209_v35, %s7698_s27  ;;  %v1062_v20 = vshrl.u32 %v8037_v43, 16  ;;  %v1326_v21 = vrot.slane %v1016_v16, 1 }
  0xd5   : > { %v1067_v29 = vor.u32 %v1066_v46, %v1062_v20  ;;  %v1091_v20 = vor.u32 %v1090_v45, %v1086_v44  ;;  %v1095_v46 = vrot.slane %v1093_v58, 1  ;;  %v1115_v58 = vor.u32 %v1114_v22, %v1110_v62 }
  0xd6   : > { %v1124_v44 = vshll.u32 %v8217_v15, 16  ;;  %v831_v45 = vsel %vm801_vm10, %v7971_v42, %v788_v6  ;;  %v1122_v42 = vshrl.u32 %v8217_v15, 16  ;;  %v1141_v62 = vshll.u32 %v1016_v16, 16 }
  0xd7   : > { %1449 = vrot.lane.b32.xlu1 %v8042_v47, %s7700_s16  ;;  %793 = vrot.lane.b32.xlu0 %v8228_v61, %s7695_s24  ;;  %v8250_v5 = vsel %vm1024_vm3, %v1067_v29, %v1071_v55  ;;  %v1098_v29 = vshrl.u32 %v8125_v9, 16  ;;  %v1102_v55 = vrot.slane %v1100_v60, 1  ;;  %v397_v60 = vld [vmem:[%s7785_s15 + $0xe8] sm:$0xff]  ;;  %v8324_v52 = vsel %vm1024_vm3, %v1115_v58, %v1119_v53 }
  0xd8   : > { %v434_v1 = vmul.f32 %v7797_v23, %v397_v60  ;;  %v790_v60 = vpop.permute.xlu0 %789 }
  0xd9   : > { %v1103_v57 = vor.u32 %v1102_v55, %v1098_v29  ;;  %v1126_v29 = vrot.slane %v1124_v44, 1  ;;  %v1143_v44 = vrot.slane %v1141_v62, 1 }
  0xdb   : > { %1451 = vrot.lane.b32.xlu1 %v8054_v56, %s7700_s16  ;;  %1365 = vrot.lane.b32.xlu0 %v8241_v50, %s7693_s19  ;;  %v8302_v12 = vsel %vm1024_vm3, %v1103_v57, %v1107_v8  ;;  %v914_v8 = vshll.u32 %v831_v45, 16  ;;  %v1127_v10 = vor.u32 %v1126_v29, %v1122_v42 }
  0xdd   : > { %v8344_v37 = vsel %vm1024_vm3, %v1127_v10, %v1131_v11 }
  0xdf   : > { %1453 = vrot.lane.b32.xlu1 %v8079_v13, %s7700_s16  ;;  %1517 = vrot.lane.b32.xlu0 %v8250_v5, %s7699_s12 }
  0xe3   : > { %1455 = vrot.lane.b32.xlu1 %v8119_v3, %s7700_s16  ;;  %1419 = vrot.lane.b32.xlu0 %v8250_v5, %s7698_s27 }
  0xe7   : > { %1457 = vrot.lane.b32.xlu1 %v8141_v28, %s7700_s16  ;;  %795 = vrot.lane.b32.xlu0 %v8263_v19, %s7695_s24 }
  0xeb   : > { %1231 = vrot.lane.b32.xlu1 %v8152_v17, %s7694_s23  ;;  %1519 = vrot.lane.b32.xlu0 %v8272_v38, %s7699_s12  ;;  %v8286_v17 = vsel %vm1024_vm3, %v1091_v20, %v1095_v46  ;;  %v8319_v20 = vsel %vm7760_vm2, 0, %v910_v36  ;;  %v911_v46 = vshrl.u32 %v831_v45, 16  ;;  %v470_v36 = vadd.f32 %v7799_v24, %v434_v1 }
  0xec   : > { %13770 = vst [vmem:[#allocation10_spill] sm:$0xff] %v8319_v20  ;;  %v1136_v63 = vshll.u32 %v8319_v20, 16  ;;  %v1134_v22 = vshrl.u32 %v8319_v20, 16  ;;  %v1325_v42 = vrot.slane %v8319_v20, 1 }
  0xed   : > { %v913_v57 = vrot.slane %v911_v46, 7  ;;  %vm502_vm14 = vcmp.gt.f32.partialorder %v470_v36, 0.0 }
  0xee   : > { %v1138_v6 = vrot.slane %v1136_v63, 1  ;;  %v8376_v16 = vsel %vm1297_vm4, %v1325_v42, %v1326_v21 }
  0xef   : > { %1491 = vrot.lane.b32.xlu1 %v8161_v59, %s7697_s28  ;;  %1421 = vrot.lane.b32.xlu0 %v8272_v38, %s7698_s27  ;;  %v916_v58 = vor.u32 %v914_v8, %v913_v57  ;;  %v398_v8 = vld [vmem:[%s7785_s15 + $0xf0] sm:$0xff]  ;;  %v8368_v10 = vsel %vm7760_vm2, %v913_v57, 0  ;;  %13772 = vst [vmem:[#allocation12_spill] sm:$0xff] %v8376_v16 }
  0xf0   : > { %v1139_v53 = vor.u32 %v1138_v6, %v1134_v22  ;;  %v435_v22 = vmul.f32 %v7797_v23, %v398_v8  ;;  %v1153_v57 = vshll.u32 %v8368_v10, 16 }
  0xf1   : > { %v8352_v46 = vsel %vm7760_vm2, 0, %v916_v58 }
  0xf2   : > { %13771 = vst [vmem:[#allocation11_spill] sm:$0xff] %v8352_v46  ;;  %v8362_v29 = vsel %vm1024_vm3, %v1139_v53, %v1143_v44 }
  0xf3   : > { %1395 = vrot.lane.b32.xlu1 %v8161_v59, %s7696_s25  ;;  %1521 = vrot.lane.b32.xlu0 %v8286_v17, %s7699_s12 }
  0xf7   : > { %1459 = vrot.lane.b32.xlu1 %v8198_v40, %s7700_s16  ;;  %1423 = vrot.lane.b32.xlu0 %v8286_v17, %s7698_s27 }
  0xfb   : > { %1233 = vrot.lane.b32.xlu1 %v8209_v35, %s7694_s23  ;;  %1523 = vrot.lane.b32.xlu0 %v8302_v12, %s7699_s12  ;;  %v396_v35 = vld [vmem:[%s7785_s15 + $0xe0] sm:$0xff] }
  0xfc   : > { %v433_v55 = vmul.f32 %v7797_v23, %v396_v35  ;;  %v534_v35 = vmul.f32 0.2, %v470_v36 }
  0xfe   : > { %v469_v14 = vadd.f32 %v7799_v24, %v433_v55  ;;  %v1148_v55 = vshll.u32 %v8352_v46, 16  ;;  %v566_v1 = vsel %vm502_vm14, %v470_v36, %v534_v35  ;;  %v1146_v36 = vshrl.u32 %v8352_v46, 16 }
  0xff   : > { %1493 = vrot.lane.b32.xlu1 %v8217_v15, %s7697_s28  ;;  %1425 = vrot.lane.b32.xlu0 %v8302_v12, %s7698_s27  ;;  %vm1764_vm14 = vcmask 785408  }
 0x100   : > { %v533_v45 = vmul.f32 0.2, %v469_v14  ;;  %vm501_vm13 = vcmp.gt.f32.partialorder %v469_v14, 0.0  ;;  %v1150_v58 = vrot.slane %v1148_v55, 1  ;;  %v1155_v55 = vrot.slane %v1153_v57, 1 }
 0x102   : > { %v565_v63 = vsel %vm501_vm13, %v469_v14, %v533_v45  ;;  %v602_v14 = vmul.f32 %v7801_v25, %v566_v1  ;;  %vm1715_vm13 = vcmask 654336  }
 0x103   : > { %1397 = vrot.lane.b32.xlu1 %v8217_v15, %s7696_s25  ;;  %1525 = vrot.lane.b32.xlu0 %v8324_v52, %s7699_s12  ;;  %v601_v62 = vmul.f32 %v7801_v25, %v565_v63  ;;  %v1151_v63 = vor.u32 %v1150_v58, %v1146_v36 }
 0x104   : > { %v638_v21 = vadd.f32 %v7803_v26, %v602_v14 }
 0x106   : > { %v702_v14 = vmul.f32 0.2, %v638_v21  ;;  %vm670_vm0 = vcmp.gt.f32.partialorder %v638_v21, 0.0 }
 0x107   : > { %1461 = vrot.lane.b32.xlu1 %v8241_v50, %s7700_s16  ;;  %1427 = vrot.lane.b32.xlu0 %v8324_v52, %s7698_s27 }
 0x10b   : > { %1235 = vrot.lane.b32.xlu1 %v8250_v5, %s7694_s23  ;;  %1527 = vrot.lane.b32.xlu0 %v8344_v37, %s7699_s12  ;;  %v834_v5 = vsel %vm801_vm10, %v7976_v48, %v790_v60  ;;  %v399_v48 = vld [vmem:[%s7785_s15 + $0xf8] sm:$0xff]  ;;  %v637_v60 = vadd.f32 %v7803_v26, %v601_v62  ;;  %v8407_v62 = vsel %vm1024_vm3, %v1151_v63, %v1155_v55 }
 0x10c   : > { %v917_v11 = vshrl.u32 %v834_v5, 16  ;;  %v436_v53 = vmul.f32 %v7797_v23, %v399_v48  ;;  %v920_v45 = vshll.u32 %v834_v5, 16  ;;  %v471_v23 = vadd.f32 %v7799_v24, %v435_v22 }
 0x10d   : > { %vm669_vm15 = vcmp.gt.f32.partialorder %v637_v60, 0.0 }
 0x10e   : > { %v919_v44 = vrot.slane %v917_v11, 7  ;;  %v472_v5 = vadd.f32 %v7799_v24, %v436_v53  ;;  %v701_v11 = vmul.f32 0.2, %v637_v60  ;;  %v535_v22 = vmul.f32 0.2, %v471_v23 }
 0x10f   : > { %1495 = vrot.lane.b32.xlu1 %v8319_v20, %s7697_s28  ;;  %1429 = vrot.lane.b32.xlu0 %v8344_v37, %s7698_s27  ;;  %vm503_vm1 = vcmp.gt.f32.partialorder %v471_v23, 0.0  ;;  %v734_v53 = vsel %vm670_vm0, %v638_v21, %v702_v14 }
 0x110   : > { %v922_v1 = vor.u32 %v920_v45, %v919_v44  ;;  %v536_v57 = vmul.f32 0.2, %v472_v5  ;;  %vm504_vm5 = vcmp.gt.f32.partialorder %v472_v5, 0.0  ;;  %v733_v36 = vsel %vm669_vm15, %v637_v60, %v701_v11 }
 0x111   : > { %v567_v63 = vsel %vm503_vm1, %v471_v23, %v535_v22  ;;  %v8431_v60 = vpack.c.bf16 %v734_v53, %v733_v36  ;;  %vm1814_vm15 = vcmask 916480  }
 0x112   : > { %v8411_v24 = vsel %vm7760_vm2, 0, %v922_v1  ;;  %v568_v55 = vsel %vm504_vm5, %v472_v5, %v536_v57  ;;  %v1018_v1 = vsel %vm7760_vm2, %v919_v44, 0  ;;  %v603_v21 = vmul.f32 %v7801_v25, %v567_v63 }
 0x113   : > { %1399 = vrot.lane.b32.xlu1 %v8319_v20, %s7696_s25  ;;  %1529 = vrot.lane.b32.xlu0 %v8362_v29, %s7699_s12  ;;  %13773 = vst [vmem:[#allocation13_spill] sm:$0xff] %v8411_v24  ;;  %v1160_v45 = vshll.u32 %v8411_v24, 16  ;;  %v604_v23 = vmul.f32 %v7801_v25, %v568_v55  ;;  %v1165_v5 = vshll.u32 %v1018_v1, 16  ;;  %v1328_v44 = vrot.slane %v8352_v46, 1 }
 0x115   : > { %v8382_v6 = vpop.permute.xlu1 %1383  ;;  %v1162_v14 = vrot.slane %v1160_v45, 1  ;;  %v1167_v36 = vrot.slane %v1165_v5, 1  ;;  %v640_v53 = vadd.f32 %v7803_v26, %v604_v23 }
 0x117   : > { %1463 = vrot.lane.b32.xlu1 %v8376_v16, %s7700_s16  ;;  %1431 = vrot.lane.b32.xlu0 %v8362_v29, %s7698_s27  ;;  %vm672_vm7 = vcmp.gt.f32.partialorder %v640_v53, 0.0 }
 0x118   : > { %v8390_v35 = vpop.permute.xlu0 %1351 }
 0x119   : > { %v8394_v42 = vpop.permute.xlu1 %1479 }
 0x11b   : > { %1237 = vrot.lane.b32.xlu1 %v8272_v38, %s7694_s23  ;;  %1367 = vrot.lane.b32.xlu0 %v8376_v16, %s7693_s19 }
 0x11c   : > { %v8402_v8 = vpop.permute.xlu0 %1353 }
 0x11d   : > { %v8404_v48 = vpop.permute.xlu1 %1481 }
 0x11f   : > { %1239 = vrot.lane.b32.xlu1 %v8286_v17, %s7694_s23  ;;  %1531 = vrot.lane.b32.xlu0 %v8407_v62, %s7699_s12  ;;  %v1329_v17 = vrot.slane %v8368_v10, 1  ;;  %v639_v10 = vadd.f32 %v7803_v26, %v603_v21 }
 0x120   : > { %v8417_v38 = vpop.permute.xlu0 %1355 }
 0x121   : > { %v8419_v58 = vpop.permute.xlu1 %1385  ;;  %v8447_v25 = vsel %vm1297_vm4, %v1328_v44, %v1329_v17  ;;  %v703_v55 = vmul.f32 0.2, %v639_v10  ;;  %v704_v17 = vmul.f32 0.2, %v640_v53  ;;  %vm671_vm6 = vcmp.gt.f32.partialorder %v639_v10, 0.0 }
 0x122   : > { %13774 = vst [vmem:[#allocation14_spill] sm:$0xff] %v8447_v25 }
 0x123   : > { %1241 = vrot.lane.b32.xlu1 %v8302_v12, %s7694_s23  ;;  %1433 = vrot.lane.b32.xlu0 %v8407_v62, %s7698_s27  ;;  %v1158_v12 = vshrl.u32 %v8411_v24, 16  ;;  %v736_v23 = vsel %vm672_vm7, %v640_v53, %v704_v17 }
 0x124   : > { %v8429_v0 = vpop.permute.xlu0 %1357 }
 0x125   : > { %v8435_v11 = vpop.permute.xlu1 %1483  ;;  %v1163_v57 = vor.u32 %v1162_v14, %v1158_v12  ;;  %v1332_v12 = vrot.slane %v1018_v1, 1 }
 0x127   : > { %1243 = vrot.lane.b32.xlu1 %v8324_v52, %s7694_s23  ;;  %797 = vrot.lane.b32.xlu0 %v8431_v60, %s7695_s24  ;;  %v8459_v45 = vsel %vm1024_vm3, %v1163_v57, %v1167_v36 }
 0x129   : > { %v8444_v22 = vpop.permute.xlu1 %1387  ;;  %v8450_v63 = vpop.permute.xlu0 %1359 }
 0x12b   : > { %1245 = vrot.lane.b32.xlu1 %v8344_v37, %s7694_s23  ;;  %1369 = vrot.lane.b32.xlu0 %v8447_v25, %s7693_s19  ;;  %v735_v37 = vsel %vm671_vm6, %v639_v10, %v703_v55 }
 0x12c   : > { %v8475_v44 = vpack.c.bf16 %v736_v23, %v735_v37 }
 0x12d   : > { %v8456_v52 = vpop.permute.xlu1 %1485  ;;  %v8461_v21 = vpop.permute.xlu0 %1361 }
 0x12f   : > { %1247 = vrot.lane.b32.xlu1 %v8362_v29, %s7694_s23  ;;  %1533 = vrot.lane.b32.xlu0 %v8459_v45, %s7699_s12  ;;  %v1331_v29 = vrot.slane %v8411_v24, 1 }
 0x131   : > { %v8467_v26 = vpop.permute.xlu1 %1389  ;;  %v8469_v5 = vpop.permute.xlu0 %1415  ;;  %v8487_v36 = vsel %vm1297_vm4, %v1331_v29, %v1332_v12 }
 0x132   : > { %13775 = vst [vmem:[#allocation15_spill] sm:$0xff] %v8487_v36 }
 0x133   : > { %1497 = vrot.lane.b32.xlu1 %v8352_v46, %s7697_s28  ;;  %1435 = vrot.lane.b32.xlu0 %v8459_v45, %s7698_s27 }
 0x135   : > { %v8477_v14 = vpop.permute.xlu1 %1487  ;;  %v1514_v57 = vpop.permute.xlu0 %1513 }
 0x137   : > { %1401 = vrot.lane.b32.xlu1 %v8352_v46, %s7696_s25  ;;  %799 = vrot.lane.b32.xlu0 %v8475_v44, %s7695_s24 }
 0x139   : > { %v8484_v10 = vpop.permute.xlu1 %1391  ;;  %v792_v53 = vpop.permute.xlu0 %791 }
 0x13a   : > { %v837_v1 = vsel %vm801_vm10, %v8179_v51, %v792_v53  ;;  %v1549_v51 = vsel %vm1547_vm11, %v7768_v4, %v7984_v54 }
 0x13b   : > { %1465 = vrot.lane.b32.xlu1 %v8447_v25, %s7700_s16  ;;  %v923_v55 = vshrl.u32 %v837_v1, 16  ;;  %v926_v17 = vshll.u32 %v837_v1, 16  ;;  %1371 = vrot.lane.b32.xlu0 %v8487_v36, %s7693_s19 }
 0x13d   : > { %v8495_v37 = vpop.permute.xlu1 %1489  ;;  %v925_v23 = vrot.slane %v923_v55, 7  ;;  %v8497_v39 = vpop.permute.xlu0 %1363 }
 0x13f   : > { %1249 = vrot.lane.b32.xlu1 %v8407_v62, %s7694_s23  ;;  %v928_v12 = vor.u32 %v926_v17, %v925_v23  ;;  %v1019_v29 = vsel %vm7760_vm2, %v925_v23, 0  ;;  %v1584_v62 = vsel %vm1582_vm8, %v1549_v51, %v7980_v49 }
 0x140   : > { %v1177_v53 = vshll.u32 %v1019_v29, 16  ;;  %v1619_v23 = vsel %vm1617_vm9, %v1584_v62, %v8382_v6 }
 0x141   : > { %v8506_v1 = vpop.permute.xlu1 %1393  ;;  %v8510_v55 = vsel %vm7760_vm2, 0, %v928_v12  ;;  %v8512_v33 = vpop.permute.xlu0 %1515  ;;  %v1668_v12 = vsel %vm1666_vm12, %v1619_v23, %v8469_v5 }
 0x142   : > { %13776 = vst [vmem:[#allocation16_spill] sm:$0xff] %v8510_v55  ;;  %v1170_v54 = vshrl.u32 %v8510_v55, 16  ;;  %v1172_v17 = vshll.u32 %v8510_v55, 16  ;;  %v1179_v46 = vrot.slane %v1177_v53, 1 }
 0x143   : > { %1499 = vrot.lane.b32.xlu1 %v8411_v24, %s7697_s28 }
 0x144   : > { %v1174_v31 = vrot.slane %v1172_v17, 1 }
 0x145   : > { %v8524_v32 = vpop.permute.xlu1 %1447  ;;  %v8526_v49 = vpop.permute.xlu0 %1417 }
 0x146   : > { %v1717_v51 = vsel %vm1715_vm13, %v1668_v12, %v8524_v32  ;;  %v1175_v25 = vor.u32 %v1174_v31, %v1170_v54 }
 0x147   : > { %1403 = vrot.lane.b32.xlu1 %v8411_v24, %s7696_s25  ;;  %v1766_v62 = vsel %vm1764_vm14, %v1717_v51, %v8394_v42 }
 0x148   : > { %v1816_v20 = vsel %vm1814_vm15, %v1766_v62, %v1514_v57  ;;  %v1180_v23 = vsel %vm1024_vm3, %v1175_v25, %v1179_v46 }
 0x149   : > { %v8536_v18 = vpop.permute.xlu1 %1449  ;;  %2059 = vmatmul.mubr.bf16.vlgmr.msra.gmra.mrb[0].mxu0 %v1816_v20  ;;  %1535 = vrot.lane.b32.xlu0 %v1180_v23, %s7699_s12  ;;  %v794_v53 = vpop.permute.xlu0 %793 }
 0x14a   : > { %7341 = vmatprep.mubr.msk.bf16.mxu0 %vm1547_vm11, %v8042_v47  ;;  %v840_v17 = vsel %vm801_vm10, %v8228_v61, %v794_v53  ;;  %v1334_v53 = vrot.slane %v8510_v55, 1 }
 0x14b   : > { %1467 = vrot.lane.b32.xlu1 %v8487_v36, %s7700_s16  ;;  %v929_v31 = vshrl.u32 %v840_v17, 16  ;;  %v932_v42 = vshll.u32 %v840_v17, 16 }
 0x14d   : > { %v8545_v57 = vpop.permute.xlu1 %1451  ;;  %v931_v46 = vrot.slane %v929_v31, 7  ;;  %1437 = vrot.lane.b32.xlu0 %v1180_v23, %s7698_s27  ;;  %v8548_v20 = vpop.permute.xlu0 %1365 }
 0x14e   : > { %13777 = vst [vmem:[#allocation17_spill] sm:$0xff] %v8548_v20 }
 0x14f   : > { %1251 = vrot.lane.b32.xlu1 %v8459_v45, %s7694_s23  ;;  %v934_v25 = vor.u32 %v932_v42, %v931_v46  ;;  %v1020_v51 = vsel %vm7760_vm2, %v931_v46, 0  ;;  %v1335_v45 = vrot.slane %v1019_v29, 1 }
 0x150   : > { %v1189_v31 = vshll.u32 %v1020_v51, 16 }
 0x151   : > { %v8552_v54 = vpop.permute.xlu1 %1453  ;;  %v8556_v61 = vsel %vm7760_vm2, 0, %v934_v25  ;;  %1253 = vrot.lane.b32.xlu0 %v1180_v23, %s7694_s23  ;;  %v8559_v12 = vpop.permute.xlu0 %1517  ;;  %v1338_v23 = vrot.slane %v1020_v51, 1  ;;  %v8578_v29 = vsel %vm1297_vm4, %v1334_v53, %v1335_v45 }
 0x152   : > { %13778 = vst [vmem:[#allocation18_spill] sm:$0xff] %v8556_v61  ;;  %v1184_v62 = vshll.u32 %v8556_v61, 16  ;;  %v1337_v46 = vrot.slane %v8556_v61, 1  ;;  %v1182_v25 = vshrl.u32 %v8556_v61, 16  ;;  %v1191_v30 = vrot.slane %v1189_v31, 1 }
 0x153   : > { %1501 = vrot.lane.b32.xlu1 %v8510_v55, %s7697_s28 }
 0x154   : > { %v1186_v24 = vrot.slane %v1184_v62, 1 }
 0x155   : > { %v8567_v17 = vpop.permute.xlu1 %1455  ;;  %v8569_v42 = vpop.permute.xlu0 %1419  ;;  %1503 = vrot.lane.b32.xlu0 %v8556_v61, %s7697_s28 }
 0x156   : > { %v1187_v62 = vor.u32 %v1186_v24, %v1182_v25 }
 0x157   : > { %1405 = vrot.lane.b32.xlu1 %v8510_v55, %s7696_s25  ;;  %v8589_v55 = vsel %vm1297_vm4, %v1337_v46, %v1338_v23 }
 0x159   : > { %v8580_v36 = vpop.permute.xlu1 %1457  ;;  %v796_v16 = vpop.permute.xlu0 %795  ;;  %1407 = vrot.lane.b32.xlu0 %v8556_v61, %s7696_s25 }
 0x15a   : > { %v843_v51 = vsel %vm801_vm10, %v8263_v19, %v796_v16  ;;  %v1192_v16 = vsel %vm1024_vm3, %v1187_v62, %v1191_v30 }
 0x15b   : > { %1469 = vrot.lane.b32.xlu1 %v8578_v29, %s7700_s16  ;;  %v935_v4 = vshrl.u32 %v843_v51, 16  ;;  %v938_v45 = vshll.u32 %v843_v51, 16 }
 0x15d   : > { %v1232_v53 = vpop.permute.xlu1 %1231  ;;  %v937_v20 = vrot.slane %v935_v4, 7  ;;  %v8591_v15 = vpop.permute.xlu0 %1519  ;;  %1471 = vrot.lane.b32.xlu0 %v8589_v55, %s7700_s16 }
 0x15e   : > { %v1551_v61 = vsel %vm1547_vm11, %v7997_v7, %v1232_v53 }
 0x15f   : > { %v1586_v19 = vsel %vm1582_vm8, %v1551_v61, %v8390_v35  ;;  %1373 = vrot.lane.b32.xlu1 %v8578_v29, %s7693_s19  ;;  %v940_v24 = vor.u32 %v938_v45, %v937_v20  ;;  %v1021_v4 = vsel %vm7760_vm2, %v937_v20, 0 }
 0x160   : > { %v1620_v31 = vsel %vm1617_vm9, %v1586_v19, %v8382_v6  ;;  %v1622_v7 = vsel %vm1617_vm9, %v1586_v19, %v8419_v58  ;;  %v1201_v23 = vshll.u32 %v1021_v4, 16 }
 0x161   : > { %v8608_v46 = vpop.permute.xlu1 %1491  ;;  %v1669_v35 = vsel %vm1666_vm12, %v1620_v31, %v8469_v5  ;;  %v8614_v61 = vsel %vm7760_vm2, 0, %v940_v24  ;;  %v8616_v30 = vpop.permute.xlu0 %1421  ;;  %1375 = vrot.lane.b32.xlu0 %v8589_v55, %s7693_s19  ;;  %v1671_v51 = vsel %vm1666_vm12, %v1622_v7, %v8526_v49 }
 0x162   : > { %v1718_v6 = vsel %vm1715_vm13, %v1669_v35, %v8524_v32  ;;  %v1194_v25 = vshrl.u32 %v8614_v61, 16  ;;  %v1196_v5 = vshll.u32 %v8614_v61, 16  ;;  %v1203_v45 = vrot.slane %v1201_v23, 1 }
 0x163   : > { %1537 = vrot.lane.b32.xlu1 %v1192_v16, %s7699_s12  ;;  %v1768_v20 = vsel %vm1764_vm14, %v1718_v6, %v8404_v48  ;;  %v1720_v24 = vsel %vm1715_vm13, %v1671_v51, %v8536_v18 }
 0x164   : > { %v1819_v62 = vsel %vm1814_vm15, %v1768_v20, %v8512_v33  ;;  %v1198_v32 = vrot.slane %v1196_v5, 1  ;;  %v1769_v23 = vsel %vm1764_vm14, %v1720_v24, %v8404_v48 }
 0x165   : > { %v8631_v53 = vpop.permute.xlu1 %1395  ;;  %2067 = vmatmul.mubr.bf16.gmra.mrb[4].mxu0 %v1819_v62  ;;  %v8633_v19 = vpop.permute.xlu0 %1521  ;;  %v1340_v62 = vrot.slane %v8614_v61, 1 }
 0x166   : > { %7342 = vmatprep.mubr.msk.bf16.mxu0 %vm1547_vm11, %v8042_v47  ;;  %v1199_v31 = vor.u32 %v1198_v32, %v1194_v25  ;;  %v1821_v47 = vsel %vm1814_vm15, %v1769_v23, %v8512_v33 }
 0x167   : > { %1439 = vrot.lane.b32.xlu1 %v1192_v16, %s7698_s27 }
 0x168   : > { %v1204_v7 = vsel %vm1024_vm3, %v1199_v31, %v1203_v45 }
 0x169   : > { %v8641_v35 = vpop.permute.xlu1 %1459  ;;  %1539 = vrot.lane.b32.xlu0 %v1204_v7, %s7699_s12  ;;  %v8646_v6 = vpop.permute.xlu0 %1423 }
 0x16b   : > { %1255 = vrot.lane.b32.xlu1 %v1192_v16, %s7694_s23  ;;  %v1341_v16 = vrot.slane %v1021_v4, 1 }
 0x16d   : > { %v1234_v20 = vpop.permute.xlu1 %1233  ;;  %2075 = vmatmul.mubr.bf16.gmra.mrb[8].mxu0 %v1821_v47  ;;  %1441 = vrot.lane.b32.xlu0 %v1204_v7, %s7698_s27  ;;  %v8652_v25 = vpop.permute.xlu0 %1523 }
 0x16e   : > { %v1553_v5 = vsel %vm1547_vm11, %v8019_v27, %v1234_v20  ;;  %7343 = vmatprep.mubr.msk.bf16.mxu0 %vm1547_vm11, %v8054_v56 }
 0x16f   : > { %v1588_v48 = vsel %vm1582_vm8, %v1553_v5, %v8402_v8  ;;  %1505 = vrot.lane.b32.xlu1 %v8614_v61, %s7697_s28 }
 0x170   : > { %v1623_v33 = vsel %vm1617_vm9, %v1588_v48, %v8419_v58  ;;  %v1625_v51 = vsel %vm1617_vm9, %v1588_v48, %v8444_v22 }
 0x171   : > { %v8667_v45 = vpop.permute.xlu1 %1493  ;;  %v1672_v27 = vsel %vm1666_vm12, %v1623_v33, %v8526_v49  ;;  %1257 = vrot.lane.b32.xlu0 %v1204_v7, %s7694_s23  ;;  %v8672_v8 = vpop.permute.xlu0 %1425  ;;  %v1674_v32 = vsel %vm1666_vm12, %v1625_v51, %v8569_v42  ;;  %v8685_v49 = vsel %vm1297_vm4, %v1340_v62, %v1341_v16 }
 0x172   : > { %v1721_v4 = vsel %vm1715_vm13, %v1672_v27, %v8536_v18  ;;  %v1723_v18 = vsel %vm1715_vm13, %v1674_v32, %v8545_v57 }
 0x173   : > { %1409 = vrot.lane.b32.xlu1 %v8614_v61, %s7696_s25  ;;  %v1771_v58 = vsel %vm1764_vm14, %v1721_v4, %v8435_v11  ;;  %v1772_v47 = vsel %vm1764_vm14, %v1723_v18, %v8435_v11 }
 0x174   : > { %v1824_v24 = vsel %vm1814_vm15, %v1771_v58, %v8559_v12  ;;  %v1826_v5 = vsel %vm1814_vm15, %v1772_v47, %v8559_v12 }
 0x175   : > { %v8687_v31 = vpop.permute.xlu1 %1397  ;;  %2083 = vmatmul.mubr.bf16.gmra.mrb[12].mxu0 %v1824_v24  ;;  %v8689_v7 = vpop.permute.xlu0 %1525 }
 0x176   : > { %7344 = vmatprep.mubr.msk.bf16.mxu0 %vm1547_vm11, %v8054_v56 }
 0x177   : > { %1473 = vrot.lane.b32.xlu1 %v8685_v49, %s7700_s16 }
 0x179   : > { %v8697_v23 = vpop.permute.xlu1 %1461  ;;  %v8701_v20 = vpop.permute.xlu0 %1427 }
 0x17b   : > { %1377 = vrot.lane.b32.xlu1 %v8685_v49, %s7693_s19 }
 0x17d   : > { %v1236_v56 = vpop.permute.xlu1 %1235  ;;  %2091 = vmatmul.mubr.bf16.gmra.mrb[16].mxu0 %v1826_v5  ;;  %v8707_v48 = vpop.permute.xlu0 %1527 }
 0x17e   : > { %v1555_v16 = vsel %vm1547_vm11, %v8037_v43, %v1236_v56  ;;  %7345 = vmatprep.mubr.msk.bf16.mxu0 %vm1547_vm11, %v8079_v13 }
 0x17f   : > { %v1590_v11 = vsel %vm1582_vm8, %v1555_v16, %v8417_v38 }
 0x180   : > { %v1626_v33 = vsel %vm1617_vm9, %v1590_v11, %v8444_v22  ;;  %v1628_v51 = vsel %vm1617_vm9, %v1590_v11, %v8467_v26 }
 0x181   : > { %v8719_v12 = vpop.permute.xlu1 %1495  ;;  %v1675_v62 = vsel %vm1666_vm12, %v1626_v33, %v8569_v42  ;;  %v8723_v27 = vpop.permute.xlu0 %1429  ;;  %v1677_v38 = vsel %vm1666_vm12, %v1628_v51, %v8616_v30 }
 0x182   : > { %v1724_v43 = vsel %vm1715_vm13, %v1675_v62, %v8545_v57  ;;  %v1726_v57 = vsel %vm1715_vm13, %v1677_v38, %v8552_v54 }
 0x183   : > { %v1774_v4 = vsel %vm1764_vm14, %v1724_v43, %v8456_v52  ;;  %v1775_v24 = vsel %vm1764_vm14, %v1726_v57, %v8456_v52 }
 0x184   : > { %v1829_v22 = vsel %vm1814_vm15, %v1774_v4, %v8591_v15  ;;  %v1831_v47 = vsel %vm1814_vm15, %v1775_v24, %v8591_v15 }
 0x185   : > { %v8733_v58 = vpop.permute.xlu1 %1399  ;;  %2099 = vmatmul.mubr.bf16.gmra.mrb[20].mxu0 %v1829_v22  ;;  %v8735_v32 = vpop.permute.xlu0 %1529 }
 0x186   : > { %7346 = vmatprep.mubr.msk.bf16.mxu0 %vm1547_vm11, %v8079_v13 }
 0x189   : > { %v8741_v42 = vpop.permute.xlu1 %1463  ;;  %v8745_v18 = vpop.permute.xlu0 %1431 }
 0x18d   : > { %v1238_v5 = vpop.permute.xlu1 %1237  ;;  %2107 = vmatmul.mubr.bf16.gmra.mrb[24].mxu0 %v1831_v47  ;;  %v8749_v56 = vpop.permute.xlu0 %1367 }
 0x18e   : > { %v1557_v13 = vsel %vm1547_vm11, %v8066_v34, %v1238_v5  ;;  %7347 = vmatprep.mubr.msk.bf16.mxu0 %vm1547_vm11, %v8119_v3 }
 0x18f   : > { %v1592_v16 = vsel %vm1582_vm8, %v1557_v13, %v8429_v0 }
 0x190   : > { %v1629_v52 = vsel %vm1617_vm9, %v1592_v16, %v8467_v26  ;;  %v1631_v11 = vsel %vm1617_vm9, %v1592_v16, %v8484_v10 }
 0x191   : > { %v1240_v15 = vpop.permute.xlu1 %1239  ;;  %v1678_v33 = vsel %vm1666_vm12, %v1629_v52, %v8616_v30  ;;  %v8763_v51 = vpop.permute.xlu0 %1531  ;;  %v1680_v26 = vsel %vm1666_vm12, %v1631_v11, %v8646_v6 }
 0x192   : > { %v1559_v34 = vsel %vm1547_vm11, %v8100_v41, %v1240_v15  ;;  %v1727_v62 = vsel %vm1715_vm13, %v1678_v33, %v8552_v54  ;;  %v1729_v41 = vsel %vm1715_vm13, %v1680_v26, %v8567_v17 }
 0x193   : > { %v1777_v0 = vsel %vm1764_vm14, %v1727_v62, %v8477_v14  ;;  %v1594_v30 = vsel %vm1582_vm8, %v1559_v34, %v8450_v63  ;;  %v1778_v22 = vsel %vm1764_vm14, %v1729_v41, %v8477_v14 }
 0x194   : > { %v1834_v43 = vsel %vm1814_vm15, %v1777_v0, %v8633_v19  ;;  %v1632_v54 = vsel %vm1617_vm9, %v1594_v30, %v8484_v10 }
 0x195   : > { %v1242_v4 = vpop.permute.xlu1 %1241  ;;  %2115 = vmatmul.mubr.bf16.gmra.mrb[28].mxu0 %v1834_v43  ;;  %v8777_v38 = vpop.permute.xlu0 %1433  ;;  %v1681_v47 = vsel %vm1666_vm12, %v1632_v54, %v8646_v6 }
 0x196   : > { %7348 = vmatprep.mubr.msk.bf16.mxu0 %vm1547_vm11, %v8119_v3  ;;  %v1836_v3 = vsel %vm1814_vm15, %v1778_v22, %v8633_v19  ;;  %v1730_v14 = vsel %vm1715_vm13, %v1681_v47, %v8567_v17  ;;  %v1561_v33 = vsel %vm1547_vm11, %v8125_v9, %v1242_v4 }
 0x197   : > { %v1780_v15 = vsel %vm1764_vm14, %v1730_v14, %v8495_v37  ;;  %v1596_v4 = vsel %vm1582_vm8, %v1561_v33, %v8461_v21 }
 0x198   : > { %v1839_v9 = vsel %vm1814_vm15, %v1780_v15, %v8652_v25  ;;  %v1635_v21 = vsel %vm1617_vm9, %v1596_v4, %v8506_v1 }
 0x199   : > { %v798_v57 = vpop.permute.xlu0 %797  ;;  %v1244_v24 = vpop.permute.xlu1 %1243 }
 0x19a   : > { %v846_v63 = vsel %vm801_vm10, %v8431_v60, %v798_v57  ;;  %v1634_v60 = vsel %vm1617_vm9, %v1594_v30, %v8506_v1  ;;  %v1684_v1 = vsel %vm1666_vm12, %v1635_v21, %v8672_v8 }
 0x19b   : > { %v941_v5 = vshrl.u32 %v846_v63, 16  ;;  %v944_v13 = vshll.u32 %v846_v63, 16  ;;  %v1683_v26 = vsel %vm1666_vm12, %v1634_v60, %v8672_v8  ;;  %v1637_v8 = vsel %vm1617_vm9, %v1596_v4, %v8631_v53 }
 0x19c   : > { %v1732_v63 = vsel %vm1715_vm13, %v1683_v26, %v8580_v36 }
 0x19d   : > { %2123 = vmatmul.mubr.bf16.gmra.mrb[32].mxu0 %v1836_v3  ;;  %v943_v16 = vrot.slane %v941_v5, 7  ;;  %v8793_v52 = vpop.permute.xlu0 %1369  ;;  %v8803_v11 = vpop.permute.xlu1 %1245  ;;  %v1781_v3 = vsel %vm1764_vm14, %v1732_v63, %v8495_v37 }
 0x19e   : > { %7349 = vmatprep.mubr.msk.bf16.mxu0 %vm1547_vm11, %v8141_v28 }
 0x19f   : > { %v946_v10 = vor.u32 %v944_v13, %v943_v16  ;;  %v1022_v6 = vsel %vm7760_vm2, %v943_v16, 0 }
 0x1a0   : > { %v1213_v19 = vshll.u32 %v1022_v6, 16  ;;  %v1344_v43 = vrot.slane %v1022_v6, 1  ;;  %v1841_v6 = vsel %vm1814_vm15, %v1781_v3, %v8652_v25 }
 0x1a1   : > { %v8811_v34 = vsel %vm7760_vm2, 0, %v946_v10  ;;  %v8813_v17 = vpop.permute.xlu0 %1533  ;;  %v8826_v22 = vpop.permute.xlu1 %1247 }
 0x1a2   : > { %1507 = vrot.lane.b32.xlu0 %v8811_v34, %s7697_s28  ;;  %v1206_v62 = vshrl.u32 %v8811_v34, 16  ;;  %v1208_v0 = vshll.u32 %v8811_v34, 16  ;;  %v1343_v30 = vrot.slane %v8811_v34, 1  ;;  %v1215_v41 = vrot.slane %v1213_v19, 1 }
 0x1a4   : > { %v1210_v54 = vrot.slane %v1208_v0, 1  ;;  %v8839_v5 = vsel %vm1297_vm4, %v1343_v30, %v1344_v43 }
 0x1a5   : > { %2131 = vmatmul.mubr.bf16.gmra.mrb[36].mxu0 %v1839_v9  ;;  %v8828_v57 = vpop.permute.xlu0 %1435  ;;  %v8851_v14 = vpop.permute.xlu1 %1497  ;;  %v1686_v9 = vsel %vm1666_vm12, %v1637_v8, %v8701_v20 }
 0x1a6   : > { %7350 = vmatprep.mubr.msk.bf16.mxu0 %vm1547_vm11, %v8141_v28  ;;  %1411 = vrot.lane.b32.xlu0 %v8811_v34, %s7696_s25  ;;  %v1211_v47 = vor.u32 %v1210_v54, %v1206_v62  ;;  %v1563_v62 = vsel %vm1547_vm11, %v8161_v59, %v1244_v24 }
 0x1a7   : > { %v1598_v59 = vsel %vm1582_vm8, %v1563_v62, %v8497_v39 }
 0x1a8   : > { %v1216_v13 = vsel %vm1024_vm3, %v1211_v47, %v1215_v41  ;;  %v1735_v41 = vsel %vm1715_vm13, %v1686_v9, %v8641_v35  ;;  %v1638_v21 = vsel %vm1617_vm9, %v1598_v59, %v8631_v53 }
 0x1a9   : > { %1541 = vrot.lane.b32.xlu1 %v1216_v13, %s7699_s12  ;;  %v800_v28 = vpop.permute.xlu0 %799  ;;  %v8874_v0 = vpop.permute.xlu1 %1401  ;;  %v1784_v3 = vsel %vm1764_vm14, %v1735_v41, %v8608_v46 }
 0x1aa   : > { %v849_v16 = vsel %vm801_vm10, %v8475_v44, %v800_v28  ;;  %1475 = vrot.lane.b32.xlu0 %v8839_v5, %s7700_s16  ;;  %v1733_v44 = vsel %vm1715_vm13, %v1684_v1, %v8580_v36  ;;  %v1687_v28 = vsel %vm1666_vm12, %v1638_v21, %v8701_v20  ;;  %v1846_v53 = vsel %vm1814_vm15, %v1784_v3, %v8689_v7 }
 0x1ab   : > { %v947_v60 = vshrl.u32 %v849_v16, 16  ;;  %v950_v10 = vshll.u32 %v849_v16, 16  ;;  %v1783_v33 = vsel %vm1764_vm14, %v1733_v44, %v8608_v46  ;;  %v1736_v46 = vsel %vm1715_vm13, %v1687_v28, %v8641_v35 }
 0x1ac   : > { %v1844_v30 = vsel %vm1814_vm15, %v1783_v33, %v8689_v7  ;;  %v1640_v1 = vsel %vm1617_vm9, %v1598_v59, %v8687_v31  ;;  %v1786_v20 = vsel %vm1764_vm14, %v1736_v46, %v8667_v45  ;;  %v13779_v7 = vld [vmem:[#allocation9_spill] sm:$0xff] }
 0x1ad   : > { %2139 = vmatmul.mubr.bf16.gmra.mrb[40].mxu0 %v1841_v6  ;;  %v949_v37 = vrot.slane %v947_v60, 7  ;;  %1443 = vrot.lane.b32.xlu1 %v1216_v13, %s7698_s27  ;;  %v8894_v39 = vpop.permute.xlu1 %1465  ;;  %v1565_v60 = vsel %vm1547_vm11, %v13779_v7, %v8803_v11  ;;  %v1689_v35 = vsel %vm1666_vm12, %v1640_v1, %v8723_v27  ;;  %v1849_v6 = vsel %vm1814_vm15, %v1786_v20, %v8707_v48  ;;  %v13781_v11 = vld [vmem:[#allocation2_spill] sm:$0xff]  ;;  %v1372_v3 = vpop.permute.xlu0 %1371 }
 0x1ae   : > { %7351 = vmatprep.mubr.msk.bf16.mxu0 %vm1547_vm11, %v8198_v40  ;;  %1379 = vrot.lane.b32.xlu0 %v8839_v5, %s7693_s19  ;;  %v1738_v8 = vsel %vm1715_vm13, %v1689_v35, %v8697_v23 }
 0x1af   : > { %v952_v19 = vor.u32 %v950_v10, %v949_v37  ;;  %v1023_v25 = vsel %vm7760_vm2, %v949_v37, 0  ;;  %v13780_v37 = vld [vmem:[#allocation17_spill] sm:$0xff] }
 0x1b0   : > { %v1225_v15 = vshll.u32 %v1023_v25, 16  ;;  %v1347_v54 = vrot.slane %v1023_v25, 1  ;;  %v1600_v44 = vsel %vm1582_vm8, %v1565_v60, %v13780_v37 }
 0x1b1   : > { %v8872_v36 = vsel %vm7760_vm2, 0, %v952_v19  ;;  %1259 = vrot.lane.b32.xlu1 %v1216_v13, %s7694_s23  ;;  %v1250_v16 = vpop.permute.xlu1 %1249  ;;  %v13782_v19 = vld [vmem:[#allocation4_spill] sm:$0xff]  ;;  %v1641_v25 = vsel %vm1617_vm9, %v1600_v44, %v8687_v31 }
 0x1b2   : > { %v1218_v26 = vshrl.u32 %v8872_v36, 16  ;;  %v1220_v43 = vshll.u32 %v8872_v36, 16  ;;  %v1227_v24 = vrot.slane %v1225_v15, 1  ;;  %v1346_v47 = vrot.slane %v8872_v36, 1 }
 0x1b3   : > { %v1787_v15 = vsel %vm1764_vm14, %v1738_v8, %v8667_v45  ;;  %v13784_v45 = vld [vmem:[#allocation3_spill] sm:$0xff] }
 0x1b4   : > { %v1222_v4 = vrot.slane %v1220_v43, 1  ;;  %v1851_v62 = vsel %vm1814_vm15, %v1787_v15, %v8707_v48  ;;  %v1643_v43 = vsel %vm1617_vm9, %v1600_v44, %v8733_v58  ;;  %v13785_v48 = vld [vmem:[#allocation10_spill] sm:$0xff]  ;;  %v13788_v15 = vld [vmem:[#allocation15_spill] sm:$0xff] }
 0x1b5   : > { %2147 = vmatmul.mubr.bf16.gmra.mrb[44].mxu0 %v1844_v30  ;;  %1509 = vrot.lane.b32.xlu1 %v8872_v36, %s7697_s28  ;;  %v8928_v10 = vpop.permute.xlu1 %1499  ;;  %v1567_v30 = vsel %vm1547_vm11, %v13785_v48, %v8826_v22  ;;  %v1692_v59 = vsel %vm1666_vm12, %v1643_v43, %v8745_v18  ;;  %v8982_v22 = vld [vmem:[%s13570_s5 + $0x80] sm:$0xff]  }
 0x1b6   : > { %7352 = vmatprep.mubr.msk.bf16.mxu0 %vm1547_vm11, %v8198_v40  ;;  %v1223_v63 = vor.u32 %v1222_v4, %v1218_v26  ;;  %v8903_v40 = vsel %vm1297_vm4, %v1346_v47, %v1347_v54  ;;  %v13783_v26 = vld [vmem:[#allocation12_spill] sm:$0xff]  ;;  %v1741_v41 = vsel %vm1715_vm13, %v1692_v59, %v8741_v42  ;;  %7495 = vmatprep.subr.bf16.mxu0 %v8982_v22  ;;  %v7629_v47 = vld [vmem:[%s13570_s5 + $0x88] sm:$0xff]  }
 0x1b7   : > { %7496 = vmatpush3.bf16.msra.mxu0 %v8982_v22 }
 0x1b8   : > { %v1228_v13 = vsel %vm1024_vm3, %v1223_v63, %v1227_v24  ;;  %v1602_v24 = vsel %vm1582_vm8, %v1567_v30, %v8749_v56  ;;  %v1790_v63 = vsel %vm1764_vm14, %v1741_v41, %v8719_v12  ;;  %7497 = vmatprep.subr.bf16.mxu0 %v7629_v47 }
 0x1b9   : > { %1413 = vrot.lane.b32.xlu1 %v8872_v36, %s7696_s25  ;;  %1543 = vrot.lane.b32.xlu0 %v1228_v13, %s7699_s12  ;;  %v8946_v33 = vpop.permute.xlu1 %1403  ;;  %v1644_v54 = vsel %vm1617_vm9, %v1602_v24, %v8733_v58  ;;  %v13786_v58 = vld [vmem:[#allocation14_spill] sm:$0xff]  ;;  %v1646_v28 = vsel %vm1617_vm9, %v1602_v24, %v8874_v0 }
 0x1ba   : > { %v1693_v56 = vsel %vm1666_vm12, %v1644_v54, %v8745_v18 }
 0x1bb   : > { %7498 = vmatpush3.bf16.msra.mxu0 %v7629_v47  ;;  %v1536_v1 = vpop.permute.xlu0 %1535 }
 0x1bd   : > { %2155 = vmatmul.mubr.bf16.gmra.mrb[48].mxu0 %v1846_v53  ;;  %1445 = vrot.lane.b32.xlu0 %v1228_v13, %s7698_s27  ;;  %v13787_v53 = vld [vmem:[#allocation11_spill] sm:$0xff] }
 0x1be   : > { %1477 = vrot.lane.b32.xlu1 %v8903_v40, %s7700_s16  ;;  %7353 = vmatprep.mubr.msk.bf16.mxu0 %vm1547_vm11, %v8241_v50  ;;  %v1569_v46 = vsel %vm1547_vm11, %v13787_v53, %v1250_v16 }
 0x1bf   : > { %v1604_v7 = vsel %vm1582_vm8, %v1569_v46, %v8793_v52 }
 0x1c0   : > { %v1647_v16 = vsel %vm1617_vm9, %v1604_v7, %v8874_v0 }
 0x1c1   : > { %1261 = vrot.lane.b32.xlu0 %v1228_v13, %s7694_s23  ;;  %v1856_v13 = vsel %vm1814_vm15, %v1790_v63, %v8735_v32  ;;  %v1696_v44 = vsel %vm1666_vm12, %v1647_v16, %v8777_v38 }
 0x1c2   : > { %1381 = vrot.lane.b32.xlu1 %v8903_v40, %s7693_s19  ;;  %v1745_v8 = vsel %vm1715_vm13, %v1696_v44, %v8894_v39 }
 0x1c5   : > { %2163 = vmatmul.mubr.bf16.gmra.mrb[52].mxu0 %v1849_v6  ;;  %1511 = vrot.lane.b32.xlu0 %v13781_v11, %s7697_s28  ;;  %v1438_v6 = vpop.permute.xlu0 %1437 }
 0x1c6   : > { %7354 = vmatprep.mubr.msk.bf16.mxu0 %vm1547_vm11, %v8241_v50  ;;  %1545 = vrot.lane.b32.xlu1 %v13782_v19, %s7699_s12  ;;  %v1690_v50 = vsel %vm1666_vm12, %v1641_v25, %v8723_v27  ;;  %v8962_v27 = vpop.permute.xlu1 %1467 }
 0x1c7   : > { %v1739_v31 = vsel %vm1715_vm13, %v1690_v50, %v8697_v23  ;;  %v1795_v50 = vsel %vm1764_vm14, %v1745_v8, %v8928_v10 }
 0x1c8   : > { %v1789_v9 = vsel %vm1764_vm14, %v1739_v31, %v8719_v12  ;;  %v1742_v12 = vsel %vm1715_vm13, %v1693_v56, %v8741_v42  ;;  %v1695_v42 = vsel %vm1666_vm12, %v1646_v28, %v8777_v38  ;;  %v1864_v31 = vsel %vm1814_vm15, %v1795_v50, %v8813_v17  ;;  %v13790_v56 = vld [vmem:[#allocation16_spill] sm:$0xff] }
 0x1c9   : > { %v1854_v23 = vsel %vm1814_vm15, %v1789_v9, %v8735_v32  ;;  %v1792_v18 = vsel %vm1764_vm14, %v1742_v12, %v8851_v14  ;;  %v1744_v60 = vsel %vm1715_vm13, %v1695_v42, %v8894_v39  ;;  %v1254_v0 = vpop.permute.xlu0 %1253 }
 0x1ca   : > { %3728 = vrot.lane.b32.xlu1 %v13782_v19, %s7693_s19  ;;  %v1252_v4 = vpop.permute.xlu1 %1251  ;;  %v1859_v20 = vsel %vm1814_vm15, %v1792_v18, %v8763_v51  ;;  %v1793_v37 = vsel %vm1764_vm14, %v1744_v60, %v8851_v14  ;;  %v1649_v14 = vsel %vm1617_vm9, %v1604_v7, %v8946_v33  ;;  %v13791_v7 = vld [vmem:[#allocation18_spill] sm:$0xff] }
 0x1cb   : > { %v1861_v52 = vsel %vm1814_vm15, %v1793_v37, %v8763_v51  ;;  %v1698_v39 = vsel %vm1666_vm12, %v1649_v14, %v8828_v57 }
 0x1cc   : > { %v1747_v9 = vsel %vm1715_vm13, %v1698_v39, %v8962_v27 }
 0x1cd   : > { %2171 = vmatmul.mubr.bf16.gmra.mrb[56].mxu0 %v1851_v62  ;;  %v13789_v62 = vld [vmem:[#allocation13_spill] sm:$0xff]  ;;  %v1796_v59 = vsel %vm1764_vm14, %v1747_v9, %v8928_v10 }
 0x1ce   : > { %7355 = vmatprep.mubr.msk.bf16.mxu0 %vm1547_vm11, %v13783_v26  ;;  %3947 = vrot.lane.b32.xlu1 %v13784_v45, %s7698_s27  ;;  %v8995_v21 = vpop.permute.xlu1 %1501  ;;  %v1571_v38 = vsel %vm1547_vm11, %v13789_v62, %v1252_v4  ;;  %v1866_v4 = vsel %vm1814_vm15, %v1796_v59, %v8813_v17 }
 0x1cf   : > { %v1606_v43 = vsel %vm1582_vm8, %v1571_v38, %v1372_v3 }
 0x1d0   : > { %v1650_v48 = vsel %vm1617_vm9, %v1606_v43, %v8946_v33 }
 0x1d1   : > { %v1699_v24 = vsel %vm1666_vm12, %v1650_v48, %v8828_v57  ;;  %v1573_v57 = vsel %vm1547_vm11, %v13790_v56, %v1254_v0  ;;  %v7630_v56 = vld [vmem:[%s13570_s5] sm:$0xff]  }
 0x1d2   : > { %v1406_v32 = vpop.permute.xlu1 %1405  ;;  %v1748_v41 = vsel %vm1715_vm13, %v1699_v24, %v8962_v27  ;;  %5011 = vmatpush1.bf16.msra.mxu1 %v7630_v56 }
 0x1d3   : > { %v1798_v63 = vsel %vm1764_vm14, %v1748_v41, %v8995_v21  ;;  %v1652_v10 = vsel %vm1617_vm9, %v1606_v43, %v1406_v32  ;;  %v13792_v43 = vld [vmem:[#allocation5_spill] sm:$0xff] }
 0x1d4   : > { %v1869_v47 = vsel %vm1814_vm15, %v1798_v63, %v1536_v1  ;;  %v1701_v17 = vsel %vm1666_vm12, %v1652_v10, %v1438_v6 }
 0x1d5   : > { %2179 = vmatmul.mubr.bf16.gmra.mrb[60].mxu0 %v1854_v23 }
 0x1d6   : > { %7356 = vmatprep.mubr.msk.bf16.mxu0 %vm1547_vm11, %v13783_v26  ;;  %v1470_v35 = vpop.permute.xlu1 %1469  ;;  %v1504_v26 = vpop.permute.xlu0 %1503 }
 0x1d7   : > { %v1750_v12 = vsel %vm1715_vm13, %v1701_v17, %v1470_v35 }
 0x1d8   : > { %v1799_v18 = vsel %vm1764_vm14, %v1750_v12, %v8995_v21 }
 0x1da   : > { %v1374_v25 = vpop.permute.xlu1 %1373  ;;  %v1408_v30 = vpop.permute.xlu0 %1407 }
 0x1dd   : > { %2187 = vmatmul.mubr.bf16.gmra.mrb[64].mxu0 %v1856_v13  ;;  %v1608_v13 = vsel %vm1582_vm8, %v1573_v57, %v1374_v25 }
 0x1de   : > { %7357 = vmatprep.mubr.msk.bf16.mxu0 %vm1547_vm11, %v13786_v58  ;;  %v1538_v51 = vpop.permute.xlu1 %1537  ;;  %v1472_v54 = vpop.permute.xlu0 %1471  ;;  %v1653_v3 = vsel %vm1617_vm9, %v1608_v13, %v1406_v32  ;;  %v1655_v21 = vsel %vm1617_vm9, %v1608_v13, %v1408_v30 }
 0x1df   : > { %v1702_v28 = vsel %vm1666_vm12, %v1653_v3, %v1438_v6 }
 0x1e0   : > { %v1751_v42 = vsel %vm1715_vm13, %v1702_v28, %v1470_v35 }
 0x1e1   : > { %v1801_v32 = vsel %vm1764_vm14, %v1751_v42, %v1504_v26 }
 0x1e2   : > { %v1440_v23 = vpop.permute.xlu1 %1439  ;;  %v1376_v27 = vpop.permute.xlu0 %1375 }
 0x1e3   : > { %v1704_v6 = vsel %vm1666_vm12, %v1655_v21, %v1440_v23 }
 0x1e4   : > { %v1753_v35 = vsel %vm1715_vm13, %v1704_v6, %v1472_v54 }
 0x1e5   : > { %2195 = vmatmul.mubr.bf16.gmra.mrb[68].mxu0 %v1859_v20  ;;  %v1871_v20 = vsel %vm1814_vm15, %v1799_v18, %v1536_v1  ;;  %v1874_v1 = vsel %vm1814_vm15, %v1801_v32, %v1538_v51  ;;  %v1802_v25 = vsel %vm1764_vm14, %v1753_v35, %v1504_v26  ;;  %v7631_v18 = vld [vmem:[%s13570_s5 + $0x8] sm:$0xff]   ;;  %v13795_v32 = vmov 0  }
 0x1e6   : > { %7358 = vmatprep.mubr.msk.bf16.mxu0 %vm1547_vm11, %v13786_v58  ;;  %v1256_v33 = vpop.permute.xlu1 %1255  ;;  %v9075_v53 = vpop.permute.xlu0 %1539  ;;  %5012 = vmatprep.subr.bf16.mxu1 %v13795_v32 }
 0x1e7   : > { %v1575_v60 = vsel %vm1547_vm11, %v13791_v7, %v1256_v33  ;;  %v13796_v7 = vld [vmem:[#allocation8_spill] sm:$0xff]  ;;  %5013 = vmatpush1.bf16.msra.mxu1 %v7631_v18 }
 0x1e8   : > { %v1610_v37 = vsel %vm1582_vm8, %v1575_v60, %v1376_v27  ;;  %v13794_v27 = vld [vmem:[#allocation7_spill] sm:$0xff]  ;;  %5014 = vmatprep.subr.bf16.mxu1 %v13795_v32 }
 0x1ea   : > { %v9067_v58 = vpop.permute.xlu1 %1505 }
 0x1ed   : > { %2203 = vmatmul.mubr.bf16.gmra.mrb[72].mxu0 %v1861_v52  ;;  %v1656_v52 = vsel %vm1617_vm9, %v1610_v37, %v1408_v30 }
 0x1ee   : > { %7359 = vmatprep.mubr.msk.bf16.mxu0 %vm1547_vm11, %v13788_v15  ;;  %v9077_v46 = vpop.permute.xlu1 %1409  ;;  %v1705_v0 = vsel %vm1666_vm12, %v1656_v52, %v1440_v23  ;;  %v13793_v23 = vld [vmem:[#allocation6_spill] sm:$0xff] }
 0x1ef   : > { %v1754_v26 = vsel %vm1715_vm13, %v1705_v0, %v1472_v54  ;;  %v1658_v41 = vsel %vm1617_vm9, %v1610_v37, %v9077_v46 }
 0x1f0   : > { %v1804_v59 = vsel %vm1764_vm14, %v1754_v26, %v9067_v58  ;;  %v7633_v26 = vld [vmem:[%s13570_s5 + $0x18] sm:$0xff]  }
 0x1f1   : > { %v1879_v10 = vsel %vm1814_vm15, %v1804_v59, %v9075_v53 }
 0x1f2   : > { %v9089_v16 = vpop.permute.xlu1 %1473 }
 0x1f5   : > { %2211 = vmatmul.mubr.bf16.gmra.mrb[76].mxu0 %v1864_v31 }
 0x1f6   : > { %7360 = vmatprep.mubr.msk.bf16.mxu0 %vm1547_vm11, %v13788_v15  ;;  %v1378_v8 = vpop.permute.xlu1 %1377  ;;  %v9102_v15 = vld [vmem:[%s13569_s4] ss:$0 sm:$0xff] }
 0x1fd   : > { %2219 = vmatmul.mubr.bf16.gmra.mrb[80].mxu0 %v1866_v4 }
 0x1fe   : > { %7361 = vmatprep.mubr.msk.bf16.mxu0 %vm1547_vm11, %v8578_v29 }
 0x205   : > { %2227 = vmatmul.mubr.bf16.gmra.mrb[84].mxu0 %v1869_v47 }
 0x206   : > { %7362 = vmatprep.mubr.msk.bf16.mxu0 %vm1547_vm11, %v8578_v29  ;;  %v9083_v29 = vpop.permute.xlu0 %1441 }
 0x207   : > { %v1707_v57 = vsel %vm1666_vm12, %v1658_v41, %v9083_v29 }
 0x208   : > { %v1756_v13 = vsel %vm1715_vm13, %v1707_v57, %v9089_v16 }
 0x20a   : > { %v1258_v44 = vpop.permute.xlu0 %1257 }
 0x20b   : > { %v1577_v28 = vsel %vm1547_vm11, %v8614_v61, %v1258_v44 }
 0x20c   : > { %v1612_v21 = vsel %vm1582_vm8, %v1577_v28, %v1378_v8 }
 0x20d   : > { %2235 = vmatmul.mubr.bf16.gmra.mrb[88].mxu0 %v1871_v20  ;;  %v1659_v61 = vsel %vm1617_vm9, %v1612_v21, %v9077_v46 }
 0x20e   : > { %7363 = vmatprep.mubr.msk.bf16.mxu0 %vm1547_vm11, %v8589_v55 }
 0x214   : > { %v9105_v50 = vpop.permute.xlu0 %1507 }
 0x215   : > { %2243 = vmatmul.mubr.bf16.gmra.mrb[92].mxu0 %v1874_v1 }
 0x216   : > { %7364 = vmatprep.mubr.msk.bf16.mxu0 %vm1547_vm11, %v8589_v55  ;;  %v1876_v55 = vsel %vm1814_vm15, %v1802_v25, %v1538_v51 }
 0x218   : > { %v9124_v54 = vpop.permute.xlu0 %1411 }
 0x21b   : > { %v9107_v14 = vpop.permute.xlu1 %1541 }
 0x21c   : > { %v2060_v62 = vpop.f32.mrb[0].mxu0  ;;  %v9137_v3 = vpop.permute.xlu0 %1475 }
 0x21d   : > { %v2061_v38 = vadd.f32 %v9102_v15, %v2060_v62  ;;  %v2062_v31 = vpop.f32.mrb[1].mxu0  ;;  %2251 = vmatmul.mubr.bf16.gmra.mrb[96].mxu0 %v1876_v55  ;;  %v7632_v55 = vld [vmem:[%s13570_s5 + $0x10] sm:$0xff]  }
 0x21e   : > { %v2063_v39 = vpop.f32.mrb[2].mxu0  ;;  %7365 = vmatprep.mubr.msk.bf16.mxu0 %vm1547_vm11, %v8685_v49  ;;  %5015 = vmatpush1.bf16.msra.mxu1 %v7632_v55 }
 0x21f   : > { %v2320_v9 = vmul.f32 %v13792_v43, %v2061_v38  ;;  %v2064_v48 = vadd.f32 %v9102_v15, %v2063_v39  ;;  %v2065_v30 = vpop.f32.mrb[3].mxu0  ;;  %v9120_v4 = vpop.permute.xlu1 %1443  ;;  %5016 = vmatprep.subr.bf16.mxu1 %v13795_v32 }
 0x220   : > { %v1380_v44 = vpop.permute.xlu0 %1379 }
 0x221   : > { %v2388_v51 = vadd.f32 %v13793_v23, %v2320_v9  ;;  %v2321_v24 = vmul.f32 %v13792_v43, %v2064_v48 }
 0x222   : > { %5017 = vmatpush1.bf16.msra.mxu1 %v7633_v26 }
 0x223   : > { %vm2452_vm0 = vcmp.gt.f32.partialorder %v2388_v51, 0.0  ;;  %v2516_v33 = vmul.f32 0.2, %v2388_v51  ;;  %v2389_v63 = vadd.f32 %v13793_v23, %v2321_v24  ;;  %v1260_v42 = vpop.permute.xlu1 %1259  ;;  %5018 = vmatprep.subr.bf16.mxu1 %v13795_v32 }
 0x224   : > { %v1579_v9 = vsel %vm1547_vm11, %v8811_v34, %v1260_v42 }
 0x225   : > { %v2580_v47 = vsel %vm2452_vm0, %v2388_v51, %v2516_v33  ;;  %vm2453_vm1 = vcmp.gt.f32.partialorder %v2389_v63, 0.0  ;;  %v2517_v17 = vmul.f32 0.2, %v2389_v63  ;;  %2259 = vmatmul.mubr.bf16.gmra.mrb[100].mxu0 %v1879_v10  ;;  %v1614_v33 = vsel %vm1582_vm8, %v1579_v9, %v1380_v44 }
 0x226   : > { %v2648_v12 = vmul.f32 %v13794_v27, %v2580_v47  ;;  %7366 = vmatprep.mubr.msk.bf16.mxu0 %vm1547_vm11, %v8685_v49  ;;  %v1805_v49 = vsel %vm1764_vm14, %v1756_v13, %v9067_v58  ;;  %v1708_v58 = vsel %vm1666_vm12, %v1659_v61, %v9083_v29  ;;  %v1661_v29 = vsel %vm1617_vm9, %v1612_v21, %v9124_v54 }
 0x227   : > { %v2581_v20 = vsel %vm2453_vm1, %v2389_v63, %v2517_v17  ;;  %v1881_v52 = vsel %vm1814_vm15, %v1805_v49, %v9075_v53  ;;  %v9158_v8 = vpop.permute.xlu1 %1509  ;;  %v1757_v53 = vsel %vm1715_vm13, %v1708_v58, %v9089_v16  ;;  %v1710_v39 = vsel %vm1666_vm12, %v1661_v29, %v9120_v4  ;;  %v7634_v63 = vld [vmem:[%s13570_s5 + $0x20] sm:$0xff]  }
 0x228   : > { %v2716_v60 = vadd.f32 %v13796_v7, %v2648_v12  ;;  %v2649_v6 = vmul.f32 %v13794_v27, %v2581_v20  ;;  %v1807_v31 = vsel %vm1764_vm14, %v1757_v53, %v9105_v50  ;;  %v1759_v41 = vsel %vm1715_vm13, %v1710_v39, %v9137_v3  ;;  %5019 = vmatpush1.bf16.msra.mxu1 %v7634_v63 }
 0x229   : > { %v1884_v59 = vsel %vm1814_vm15, %v1807_v31, %v9107_v14  ;;  %v1662_v13 = vsel %vm1617_vm9, %v1614_v33, %v9124_v54  ;;  %v1808_v20 = vsel %vm1764_vm14, %v1759_v41, %v9105_v50  ;;  %v7635_v54 = vld [vmem:[%s13570_s5 + $0x28] sm:$0xff]   ;;  %5020 = vmatprep.subr.bf16.mxu1 %v13795_v32 }
 0x22a   : > { %v2844_v1 = vmul.f32 0.2, %v2716_v60  ;;  %v2717_v37 = vadd.f32 %v13796_v7, %v2649_v6  ;;  %vm2780_vm5 = vcmp.gt.f32.partialorder %v2716_v60, 0.0  ;;  %v1711_v50 = vsel %vm1666_vm12, %v1662_v13, %v9120_v4 }
 0x22b   : > { %v9164_v62 = vpop.permute.xlu0 %1543  ;;  %v9182_v48 = vpop.permute.xlu1 %1413 }
 0x22c   : > { %v2845_v35 = vmul.f32 0.2, %v2717_v37  ;;  %vm2781_vm6 = vcmp.gt.f32.partialorder %v2717_v37, 0.0  ;;  %v2908_v25 = vsel %vm2780_vm5, %v2716_v60, %v2844_v1  ;;  %5021 = vmatpush1.bf16.msra.mxu1 %v7635_v54  ;;  %v1664_v53 = vsel %vm1617_vm9, %v1614_v33, %v9182_v48 }
 0x22d   : > { %2267 = vmatmul.mubr.bf16.gmra.mrb[104].mxu0 %v1881_v52  ;;  %5022 = vmatprep.subr.bf16.mxu1 %v13795_v32 }
 0x22e   : > { %7367 = vmatprep.mubr.msk.bf16.mxu0 %vm1547_vm11, %v8839_v5  ;;  %v2909_v46 = vsel %vm2781_vm6, %v2717_v37, %v2845_v35  ;;  %v1886_v35 = vsel %vm1814_vm15, %v1808_v20, %v9107_v14  ;;  %v1760_v14 = vsel %vm1715_vm13, %v1711_v50, %v9137_v3 }
 0x22f   : > { %v2972_v0 = vpack.c.bf16 %v2909_v46, %v2908_v25  ;;  %v9192_v34 = vpop.permute.xlu0 %1445  ;;  %v1810_v9 = vsel %vm1764_vm14, %v1760_v14, %v9158_v8 }
 0x230   : > { %v9210_v12 = vpop.permute.xlu1 %1477 }
 0x231   : > { %v3005_v38 = vshrl.u32 %v2972_v0, 16  ;;  %v3008_v30 = vshll.u32 %v2972_v0, 16 }
 0x233   : > { %v3007_v16 = vrot.slane %v3005_v38, 7  ;;  %v1262_v42 = vpop.permute.xlu0 %1261 }
 0x234   : > { %v1581_v58 = vsel %vm1547_vm11, %v8872_v36, %v1262_v42  ;;  %v1382_v25 = vpop.permute.xlu1 %1381 }
 0x235   : > { %2275 = vmatmul.mubr.bf16.gmra.mrb[108].mxu0 %v1884_v59  ;;  %v3010_v51 = vor.u32 %v3008_v30, %v3007_v16  ;;  %v3324_v24 = vsel %vm7760_vm2, %v3007_v16, 0  ;;  %v1616_v38 = vsel %vm1582_vm8, %v1581_v58, %v1382_v25  ;;  %v1713_v16 = vsel %vm1666_vm12, %v1664_v53, %v9192_v34  ;;  %v7638_v53 = vld [vmem:[%s13570_s5 + $0x40] sm:$0xff]  }
 0x236   : > { %7368 = vmatprep.mubr.msk.bf16.mxu0 %vm1547_vm11, %v8839_v5  ;;  %v3855_v47 = vrot.slane %v3324_v24, 1  ;;  %v3364_v17 = vshll.u32 %v3324_v24, 16  ;;  %v1665_v24 = vsel %vm1617_vm9, %v1616_v38, %v9182_v48  ;;  %v1762_v48 = vsel %vm1715_vm13, %v1713_v16, %v9210_v12 }
 0x237   : > { %v9201_v10 = vsel %vm7760_vm2, 0, %v3010_v51  ;;  %v7636_v51 = vld [vmem:[%s13570_s5 + $0x30] sm:$0xff]   ;;  %v1714_v42 = vsel %vm1666_vm12, %v1665_v24, %v9192_v34  ;;  %v1811_v54 = vsel %vm1764_vm14, %v1762_v48, %v9158_v8  ;;  %v1512_v58 = vpop.permute.xlu0 %1511 }
 0x238   : > { %v2068_v56 = vpop.f32.mrb[4].mxu0  ;;  %4012 = vrot.lane.b32.xlu1 %v9201_v10, %s7697_s28  ;;  %v3854_v57 = vrot.slane %v9201_v10, 1  ;;  %v3359_v5 = vshll.u32 %v9201_v10, 16  ;;  %v3357_v6 = vshrl.u32 %v9201_v10, 16  ;;  %v3366_v52 = vrot.slane %v3364_v17, 1  ;;  %5023 = vmatpush1.bf16.msra.mxu1 %v7636_v51  ;;  %v7637_v17 = vld [vmem:[%s13570_s5 + $0x38] sm:$0xff]  }
 0x239   : > { %v2069_v18 = vadd.f32 %v9102_v15, %v2068_v56  ;;  %v2070_v28 = vpop.f32.mrb[5].mxu0  ;;  %5024 = vmatprep.subr.bf16.mxu1 %v13795_v32 }
 0x23a   : > { %v2071_v21 = vpop.f32.mrb[6].mxu0  ;;  %v3856_v60 = vsel %vm1297_vm4, %v3854_v57, %v3855_v47  ;;  %v3361_v49 = vrot.slane %v3359_v5, 1  ;;  %v1889_v5 = vsel %vm1814_vm15, %v1810_v9, %v9164_v62 }
 0x23b   : > { %v2322_v1 = vmul.f32 %v13792_v43, %v2069_v18  ;;  %v2072_v37 = vadd.f32 %v9102_v15, %v2071_v21  ;;  %v2073_v61 = vpop.f32.mrb[7].mxu0  ;;  %4092 = vrot.lane.b32.xlu0 %v3856_v60, %s7693_s19 }
 0x23c   : > { %3949 = vrot.lane.b32.xlu1 %v3856_v60, %s7698_s27  ;;  %v3362_v44 = vor.u32 %v3361_v49, %v3357_v6  ;;  %5025 = vmatpush1.bf16.msra.mxu1 %v7637_v17 }
 0x23d   : > { %v2390_v46 = vadd.f32 %v13793_v23, %v2322_v1  ;;  %v2323_v0 = vmul.f32 %v13792_v43, %v2072_v37  ;;  %2283 = vmatmul.mubr.bf16.gmra.mrb[112].mxu0 %v1886_v35  ;;  %5026 = vmatprep.subr.bf16.mxu1 %v13795_v32 }
 0x23e   : > { %7369 = vmatprep.mubr.msk.bf16.mxu0 %vm1547_vm11, %v8903_v40  ;;  %v9236_v4 = vsel %vm1024_vm3, %v3362_v44, %v3366_v52 }
 0x23f   : > { %vm2454_vm7 = vcmp.gt.f32.partialorder %v2390_v46, 0.0  ;;  %v2518_v55 = vmul.f32 0.2, %v2390_v46  ;;  %v2391_v36 = vadd.f32 %v13793_v23, %v2323_v0 }
 0x240   : > { %v2076_v31 = vpop.f32.mrb[8].mxu0  ;;  %3730 = vrot.lane.b32.xlu1 %v9236_v4, %s7693_s19  ;;  %5027 = vmatpush1.bf16.msra.mxu1 %v7638_v53 }
 0x241   : > { %v2582_v29 = vsel %vm2454_vm7, %v2390_v46, %v2518_v55  ;;  %vm2455_vm0 = vcmp.gt.f32.partialorder %v2391_v36, 0.0  ;;  %v2519_v26 = vmul.f32 0.2, %v2391_v36  ;;  %v2077_v3 = vadd.f32 %v9102_v15, %v2076_v31  ;;  %v2078_v39 = vpop.f32.mrb[9].mxu0  ;;  %5028 = vmatprep.subr.bf16.mxu1 %v13795_v32 }
 0x242   : > { %v2650_v30 = vmul.f32 %v13794_v27, %v2582_v29  ;;  %v2079_v59 = vpop.f32.mrb[10].mxu0 }
 0x243   : > { %v2583_v41 = vsel %vm2455_vm0, %v2391_v36, %v2519_v26  ;;  %v2324_v33 = vmul.f32 %v13792_v43, %v2077_v3  ;;  %v2080_v63 = vadd.f32 %v9102_v15, %v2079_v59  ;;  %v2081_v56 = vpop.f32.mrb[11].mxu0 }
 0x244   : > { %v2718_v57 = vadd.f32 %v13796_v7, %v2650_v30  ;;  %v2651_v47 = vmul.f32 %v13794_v27, %v2583_v41 }
 0x245   : > { %v2392_v13 = vadd.f32 %v13793_v23, %v2324_v33  ;;  %v2325_v18 = vmul.f32 %v13792_v43, %v2080_v63  ;;  %2291 = vmatmul.mubr.bf16.gmra.mrb[116].mxu0 %v1889_v5  ;;  %v1546_v33 = vpop.permute.xlu1 %1545 }
 0x246   : > { %v2846_v28 = vmul.f32 0.2, %v2718_v57  ;;  %v2719_v20 = vadd.f32 %v13796_v7, %v2651_v47  ;;  %7370 = vmatprep.mubr.msk.bf16.mxu0 %vm1547_vm11, %v8903_v40  ;;  %vm2782_vm9 = vcmp.gt.f32.partialorder %v2718_v57, 0.0  ;;  %v1763_v40 = vsel %vm1715_vm13, %v1714_v42, %v9210_v12 }
 0x247   : > { %vm2456_vm1 = vcmp.gt.f32.partialorder %v2392_v13, 0.0  ;;  %v2520_v21 = vmul.f32 0.2, %v2392_v13  ;;  %v2393_v60 = vadd.f32 %v13793_v23, %v2325_v18  ;;  %v1891_v12 = vsel %vm1814_vm15, %v1811_v54, %v9164_v62  ;;  %v7639_v62 = vld [vmem:[%s13570_s5 + $0x48] sm:$0xff]  }
 0x248   : > { %vm2783_vm5 = vcmp.gt.f32.partialorder %v2719_v20, 0.0  ;;  %v2847_v6 = vmul.f32 0.2, %v2719_v20  ;;  %v2084_v49 = vpop.f32.mrb[12].mxu0  ;;  %v2910_v44 = vsel %vm2782_vm9, %v2718_v57, %v2846_v28  ;;  %v1813_v26 = vsel %vm1764_vm14, %v1763_v40, %v1512_v58  ;;  %5029 = vmatpush1.bf16.msra.mxu1 %v7639_v62  ;;  %v7640_v28 = vld [vmem:[%s13570_s5 + $0x50] sm:$0xff]  }
 0x249   : > { %v2584_v1 = vsel %vm2456_vm1, %v2392_v13, %v2520_v21  ;;  %vm2457_vm6 = vcmp.gt.f32.partialorder %v2393_v60, 0.0  ;;  %v2521_v37 = vmul.f32 0.2, %v2393_v60  ;;  %v2085_v34 = vadd.f32 %v9102_v15, %v2084_v49  ;;  %v2086_v61 = vpop.f32.mrb[13].mxu0  ;;  %5030 = vmatprep.subr.bf16.mxu1 %v13795_v32 }
 0x24a   : > { %v2652_v50 = vmul.f32 %v13794_v27, %v2584_v1  ;;  %v2087_v35 = vpop.f32.mrb[14].mxu0  ;;  %v2911_v52 = vsel %vm2783_vm5, %v2719_v20, %v2847_v6 }
 0x24b   : > { %v2585_v8 = vsel %vm2457_vm6, %v2393_v60, %v2521_v37  ;;  %v2326_v25 = vmul.f32 %v13792_v43, %v2085_v34  ;;  %v2088_v46 = vadd.f32 %v9102_v15, %v2087_v35  ;;  %v2089_v0 = vpop.f32.mrb[15].mxu0  ;;  %v2973_v14 = vpack.c.bf16 %v2911_v52, %v2910_v44  ;;  %v7641_v44 = vld [vmem:[%s13570_s5 + $0x58] sm:$0xff]  }
 0x24c   : > { %v2720_v55 = vadd.f32 %v13796_v7, %v2652_v50  ;;  %v2653_v36 = vmul.f32 %v13794_v27, %v2585_v8  ;;  %v1894_v37 = vsel %vm1814_vm15, %v1813_v26, %v1546_v33  ;;  %5031 = vmatpush1.bf16.msra.mxu1 %v7640_v28 }
 0x24d   : > { %v2394_v38 = vadd.f32 %v13793_v23, %v2326_v25  ;;  %v2327_v31 = vmul.f32 %v13792_v43, %v2088_v46  ;;  %2299 = vmatmul.mubr.bf16.gmra.mrb[120].mxu0 %v1891_v12  ;;  %v3012_v29 = vshrl.u32 %v2973_v14, 16  ;;  %v3015_v41 = vshll.u32 %v2973_v14, 16  ;;  %5032 = vmatprep.subr.bf16.mxu1 %v13795_v32 }
 0x24e   : > { %vm2784_vm13 = vcmp.gt.f32.partialorder %v2720_v55, 0.0  ;;  %v2848_v3 = vmul.f32 0.2, %v2720_v55  ;;  %v2721_v39 = vadd.f32 %v13796_v7, %v2653_v36  ;;  %7371 = vmatprep.mubr.msk.bf16.mxu0 %vm1547_vm11, %v13784_v45 }
 0x24f   : > { %vm2458_vm7 = vcmp.gt.f32.partialorder %v2394_v38, 0.0  ;;  %v2522_v9 = vmul.f32 0.2, %v2394_v38  ;;  %v2395_v16 = vadd.f32 %v13793_v23, %v2327_v31  ;;  %v3014_v30 = vrot.slane %v3012_v29, 7 }
 0x250   : > { %v2912_v59 = vsel %vm2784_vm13, %v2720_v55, %v2848_v3  ;;  %vm2785_vm0 = vcmp.gt.f32.partialorder %v2721_v39, 0.0  ;;  %v2849_v51 = vmul.f32 0.2, %v2721_v39  ;;  %v2092_v24 = vpop.f32.mrb[16].mxu0  ;;  %5033 = vmatpush1.bf16.msra.mxu1 %v7641_v44 }
 0x251   : > { %v2586_v63 = vsel %vm2458_vm7, %v2394_v38, %v2522_v9  ;;  %vm2459_vm9 = vcmp.gt.f32.partialorder %v2395_v16, 0.0  ;;  %v2523_v56 = vmul.f32 0.2, %v2395_v16  ;;  %v2093_v57 = vadd.f32 %v9102_v15, %v2092_v24  ;;  %v2094_v47 = vpop.f32.mrb[17].mxu0  ;;  %5034 = vmatprep.subr.bf16.mxu1 %v13795_v32 }
 0x252   : > { %v2913_v5 = vsel %vm2785_vm0, %v2721_v39, %v2849_v51  ;;  %v2654_v17 = vmul.f32 %v13794_v27, %v2586_v63  ;;  %v2095_v48 = vpop.f32.mrb[18].mxu0  ;;  %v3017_v13 = vor.u32 %v3015_v41, %v3014_v30  ;;  %v3325_v18 = vsel %vm7760_vm2, %v3014_v30, 0 }
 0x253   : > { %v9313_v20 = vpack.c.bf16 %v2913_v5, %v2912_v59  ;;  %v2587_v42 = vsel %vm2459_vm9, %v2395_v16, %v2523_v56  ;;  %v2328_v21 = vmul.f32 %v13792_v43, %v2093_v57  ;;  %v2096_v60 = vadd.f32 %v9102_v15, %v2095_v48  ;;  %v2097_v6 = vpop.f32.mrb[19].mxu0  ;;  %v7642_v5 = vld [vmem:[%s13570_s5 + $0x60] sm:$0xff]  }
 0x254   : > { %v2722_v49 = vadd.f32 %v13796_v7, %v2654_v17  ;;  %v2655_v54 = vmul.f32 %v13794_v27, %v2587_v42  ;;  %v9322_v1 = vsel %vm7760_vm2, 0, %v3017_v13  ;;  %v3858_v50 = vrot.slane %v3325_v18, 1  ;;  %5035 = vmatpush1.bf16.msra.mxu1 %v7642_v5 }
 0x255   : > { %v2396_v34 = vadd.f32 %v13793_v23, %v2328_v21  ;;  %v2329_v61 = vmul.f32 %v13792_v43, %v2096_v60  ;;  %4014 = vrot.lane.b32.xlu1 %v9322_v1, %s7697_s28  ;;  %4156 = vrot.lane.b32.xlu0 %v9322_v1, %s7698_s27  ;;  %v3857_v40 = vrot.slane %v9322_v1, 1  ;;  %v3371_v0 = vshll.u32 %v9322_v1, 16  ;;  %v7643_v60 = vld [vmem:[%s13570_s5 + $0x68] sm:$0xff]  }
 0x256   : > { %v2723_v35 = vadd.f32 %v13796_v7, %v2655_v54  ;;  %2307 = vmatmul.mubr.bf16.gmra.mrb[124].mxu0 %v1894_v37  ;;  %vm2786_vm1 = vcmp.gt.f32.partialorder %v2722_v49, 0.0  ;;  %v3376_v14 = vshll.u32 %v3325_v18, 16  ;;  %v3369_v31 = vshrl.u32 %v9322_v1, 16  ;;  %5036 = vmatprep.subr.bf16.mxu1 %v13795_v32 }
 0x257   : > { %vm2460_vm15 = vcmp.gt.f32.partialorder %v2396_v34, 0.0  ;;  %v2524_v52 = vmul.f32 0.2, %v2396_v34  ;;  %v2397_v58 = vadd.f32 %v13793_v23, %v2329_v61  ;;  %v3859_v8 = vsel %vm1297_vm4, %v3857_v40, %v3858_v50 }
 0x258   : > { %v2851_v25 = vmul.f32 0.2, %v2723_v35  ;;  %7499 = vmatprep.mubr.msk.bf16.mxu0 %vm1582_vm8, %v3859_v8  ;;  %v2100_v46 = vpop.f32.mrb[20].mxu0  ;;  %vm2787_vm6 = vcmp.gt.f32.partialorder %v2723_v35, 0.0  ;;  %v3373_v29 = vrot.slane %v3371_v0, 1  ;;  %v3019_v26 = vshrl.u32 %v9313_v20, 16  ;;  %5037 = vmatpush1.bf16.msra.mxu1 %v7643_v60 }
 0x259   : > { %v2588_v55 = vsel %vm2460_vm15, %v2396_v34, %v2524_v52  ;;  %vm2461_vm5 = vcmp.gt.f32.partialorder %v2397_v58, 0.0  ;;  %v2525_v36 = vmul.f32 0.2, %v2397_v58  ;;  %v2101_v12 = vadd.f32 %v9102_v15, %v2100_v46  ;;  %3951 = vrot.lane.b32.xlu1 %v3859_v8, %s7698_s27  ;;  %4094 = vrot.lane.b32.xlu0 %v3859_v8, %s7693_s19  ;;  %v2102_v53 = vpop.f32.mrb[21].mxu0 }
 0x25a   : > { %v2103_v38 = vpop.f32.mrb[22].mxu0  ;;  %v2850_v3 = vmul.f32 0.2, %v2722_v49  ;;  %v2656_v30 = vmul.f32 %v13794_v27, %v2588_v55  ;;  %v3374_v59 = vor.u32 %v3373_v29, %v3369_v31  ;;  %v3378_v51 = vrot.slane %v3376_v14, 1  ;;  %5038 = vmatprep.subr.bf16.mxu1 %v13795_v32  ;;  %v7644_v31 = vld [vmem:[%s13570_s5 + $0x70] sm:$0xff]  }
 0x25b   : > { %v2589_v39 = vsel %vm2461_vm5, %v2397_v58, %v2525_v36  ;;  %v2330_v62 = vmul.f32 %v13792_v43, %v2101_v12  ;;  %v2104_v9 = vadd.f32 %v9102_v15, %v2103_v38  ;;  %v2105_v16 = vpop.f32.mrb[23].mxu0  ;;  %v3021_v24 = vrot.slane %v3019_v26, 7 }
 0x25c   : > { %v3022_v41 = vshll.u32 %v9313_v20, 16  ;;  %v2915_v56 = vsel %vm2787_vm6, %v2723_v35, %v2851_v25  ;;  %v2657_v57 = vmul.f32 %v13794_v27, %v2589_v39  ;;  %v9356_v47 = vsel %vm1024_vm3, %v3374_v59, %v3378_v51  ;;  %5039 = vmatpush1.bf16.msra.mxu1 %v7644_v31 }
 0x25d   : > { %v2398_v33 = vadd.f32 %v13793_v23, %v2330_v62  ;;  %v2331_v63 = vmul.f32 %v13792_v43, %v2104_v9  ;;  %3732 = vrot.lane.b32.xlu1 %v9356_v47, %s7693_s19  ;;  %4220 = vrot.lane.b32.xlu0 %v9356_v47, %s7697_s28  ;;  %v2914_v18 = vsel %vm2786_vm1, %v2722_v49, %v2850_v3  ;;  %v9372_v20 = vsel %vm7760_vm2, %v3021_v24, 0 }
 0x25e   : > { %v3024_v13 = vor.u32 %v3022_v41, %v3021_v24  ;;  %v9368_v28 = vadd.f32 %v13796_v7, %v2656_v30  ;;  %v2975_v21 = vpack.c.bf16 %v2915_v56, %v2914_v18  ;;  %v9383_v37 = vadd.f32 %v13796_v7, %v2657_v57  ;;  %v7645_v30 = vld [vmem:[%s13570_s5 + $0x78] sm:$0xff]   ;;  %5040 = vmatprep.subr.bf16.mxu1 %v13795_v32 }
 0x25f   : > { %v2526_v17 = vmul.f32 0.2, %v2398_v33  ;;  %v2399_v48 = vadd.f32 %v13793_v23, %v2331_v63  ;;  %vm2462_vm13 = vcmp.gt.f32.partialorder %v2398_v33, 0.0  ;;  %v3861_v61 = vrot.slane %v9372_v20, 1 }
 0x260   : > { %v2108_v42 = vpop.f32.mrb[24].mxu0  ;;  %v9379_v49 = vsel %vm7760_vm2, 0, %v3024_v13  ;;  %v3026_v58 = vshrl.u32 %v2975_v21, 16  ;;  %vm2788_vm0 = vcmp.gt.f32.partialorder %v9368_v28, 0.0  ;;  %v3029_v55 = vshll.u32 %v2975_v21, 16  ;;  %5041 = vmatpush1.bf16.msra.mxu1 %v7645_v30 }
 0x261   : > { %vm2463_vm7 = vcmp.gt.f32.partialorder %v2399_v48, 0.0  ;;  %v2527_v6 = vmul.f32 0.2, %v2399_v48  ;;  %v2110_v54 = vpop.f32.mrb[25].mxu0  ;;  %v3860_v34 = vrot.slane %v9379_v49, 1  ;;  %v2109_v40 = vadd.f32 %v9102_v15, %v2108_v42  ;;  %4016 = vrot.lane.b32.xlu1 %v9379_v49, %s7697_s28  ;;  %4158 = vrot.lane.b32.xlu0 %v9379_v49, %s7698_s27 }
 0x262   : > { %v2111_v50 = vpop.f32.mrb[26].mxu0  ;;  %v2590_v35 = vsel %vm2462_vm13, %v2398_v33, %v2526_v17  ;;  %v3028_v14 = vrot.slane %v3026_v58, 7  ;;  %v3383_v36 = vshll.u32 %v9379_v49, 16  ;;  %v2852_v12 = vmul.f32 0.2, %v9368_v28  ;;  %7597 = vmatprep.subr.bf16.mxu1 %v8982_v22 }
 0x263   : > { %v2112_v44 = vadd.f32 %v9102_v15, %v2111_v50  ;;  %v2113_v52 = vpop.f32.mrb[27].mxu0  ;;  %v2591_v8 = vsel %vm2463_vm7, %v2399_v48, %v2527_v6  ;;  %v3862_v25 = vsel %vm1297_vm4, %v3860_v34, %v3861_v61  ;;  %v2332_v46 = vmul.f32 %v13792_v43, %v2109_v40 }
 0x264   : > { %7500 = vmatmul.mubr.msk.bf16.vlgmr.msra.gmra.mrb[128].mxu0 %vm1582_vm8, %v3862_v25  ;;  %vm2789_vm9 = vcmp.gt.f32.partialorder %v9383_v37, 0.0  ;;  %v2658_v53 = vmul.f32 %v13794_v27, %v2590_v35  ;;  %v3031_v26 = vor.u32 %v3029_v55, %v3028_v14  ;;  %v9414_v3 = vsel %vm7760_vm2, %v3028_v14, 0 }
 0x265   : > { %v2333_v0 = vmul.f32 %v13792_v43, %v2112_v44  ;;  %v2400_v38 = vadd.f32 %v13793_v23, %v2332_v46  ;;  %3953 = vrot.lane.b32.xlu1 %v3862_v25, %s7698_s27  ;;  %4096 = vrot.lane.b32.xlu0 %v3862_v25, %s7693_s19  ;;  %v3385_v39 = vrot.slane %v3383_v36, 1  ;;  %v2853_v62 = vmul.f32 0.2, %v9383_v37 }
 0x266   : > { %v2659_v9 = vmul.f32 %v13794_v27, %v2591_v8  ;;  %v9423_v51 = vsel %vm7760_vm2, 0, %v3031_v26  ;;  %v3381_v41 = vshrl.u32 %v9379_v49, 16  ;;  %v3864_v56 = vrot.slane %v9414_v3, 1 }
 0x267   : > { %v2401_v29 = vadd.f32 %v13793_v23, %v2333_v0  ;;  %vm2464_vm15 = vcmp.gt.f32.partialorder %v2400_v38, 0.0  ;;  %v2528_v16 = vmul.f32 0.2, %v2400_v38  ;;  %13797 = vst [vmem:[#allocation9_spill] sm:$0xff] %v9423_v51  ;;  %v3863_v63 = vrot.slane %v9423_v51, 1 }
 0x268   : > { %v2116_v24 = vpop.f32.mrb[28].mxu0  ;;  %v9431_v17 = vadd.f32 %v13796_v7, %v2658_v53  ;;  %v3386_v13 = vor.u32 %v3385_v39, %v3381_v41  ;;  %v3388_v18 = vshll.u32 %v9372_v20, 16  ;;  %v9435_v21 = vadd.f32 %v13796_v7, %v2659_v9 }
 0x269   : > { %vm2465_vm1 = vcmp.gt.f32.partialorder %v2401_v29, 0.0  ;;  %v2529_v59 = vmul.f32 0.2, %v2401_v29  ;;  %v2592_v33 = vsel %vm2464_vm15, %v2400_v38, %v2528_v16  ;;  %v2117_v57 = vadd.f32 %v9102_v15, %v2116_v24  ;;  %v2118_v5 = vpop.f32.mrb[29].mxu0 }
 0x26a   : > { %v2119_v42 = vpop.f32.mrb[30].mxu0  ;;  %v3865_v32 = vsel %vm1297_vm4, %v3863_v63, %v3864_v56  ;;  %v2660_v34 = vmul.f32 %v13794_v27, %v2592_v33  ;;  %v3390_v61 = vrot.slane %v3388_v18, 1  ;;  %v2916_v20 = vsel %vm2788_vm0, %v9368_v28, %v2852_v12 }
 0x26b   : > { %v2593_v48 = vsel %vm2465_vm1, %v2401_v29, %v2529_v59  ;;  %v2334_v60 = vmul.f32 %v13792_v43, %v2117_v57  ;;  %v2120_v6 = vadd.f32 %v9102_v15, %v2119_v42  ;;  %v2121_v54 = vpop.f32.mrb[31].mxu0  ;;  %7503 = vmatprep.mubr.msk.bf16.mxu0 %vm1582_vm8, %v3865_v32  ;;  %v2917_v40 = vsel %vm2789_vm9, %v9383_v37, %v2853_v62 }
 0x26c   : > { %v2661_v50 = vmul.f32 %v13794_v27, %v2593_v48  ;;  %v2976_v52 = vpack.c.bf16 %v2917_v40, %v2916_v20  ;;  %v9453_v58 = vsel %vm1024_vm3, %v3386_v13, %v3390_v61  ;;  %v3395_v8 = vshll.u32 %v9423_v51, 16 }
 0x26d   : > { %v2402_v35 = vadd.f32 %v13793_v23, %v2334_v60  ;;  %v2335_v44 = vmul.f32 %v13792_v43, %v2120_v6  ;;  %vm2790_vm5 = vcmp.gt.f32.partialorder %v9431_v17, 0.0  ;;  %v2854_v28 = vmul.f32 0.2, %v9431_v17  ;;  %3734 = vrot.lane.b32.xlu1 %v9453_v58, %s7693_s19  ;;  %4222 = vrot.lane.b32.xlu0 %v9453_v58, %s7697_s28 }
 0x26e   : > { %vm2791_vm6 = vcmp.gt.f32.partialorder %v9435_v21, 0.0  ;;  %v9464_v22 = vadd.f32 %v13796_v7, %v2660_v34  ;;  %v3033_v46 = vshrl.u32 %v2976_v52, 16  ;;  %v2855_v14 = vmul.f32 0.2, %v9435_v21 }
 0x26f   : > { %v2530_v37 = vmul.f32 0.2, %v2402_v35  ;;  %vm2466_vm13 = vcmp.gt.f32.partialorder %v2402_v35, 0.0  ;;  %v2403_v25 = vadd.f32 %v13793_v23, %v2335_v44  ;;  %v2729_v55 = vadd.f32 %v13796_v7, %v2661_v50 }
 0x270   : > { %v2124_v0 = vpop.f32.mrb[32].mxu0  ;;  %v3393_v53 = vshrl.u32 %v9423_v51, 16  ;;  %v3035_v31 = vrot.slane %v3033_v46, 7  ;;  %v3036_v29 = vshll.u32 %v2976_v52, 16  ;;  %v3397_v39 = vrot.slane %v3395_v8, 1 }
 0x271   : > { %v2125_v36 = vadd.f32 %v9102_v15, %v2124_v0  ;;  %v2126_v12 = vpop.f32.mrb[33].mxu0  ;;  %v2531_v38 = vmul.f32 0.2, %v2403_v25  ;;  %v2594_v62 = vsel %vm2466_vm13, %v2402_v35, %v2530_v37  ;;  %vm2467_vm7 = vcmp.gt.f32.partialorder %v2403_v25, 0.0  ;;  %4018 = vrot.lane.b32.xlu1 %v9423_v51, %s7697_s28  ;;  %4160 = vrot.lane.b32.xlu0 %v9423_v51, %s7698_s27 }
 0x272   : > { %v2127_v26 = vpop.f32.mrb[34].mxu0  ;;  %vm2792_vm0 = vcmp.gt.f32.partialorder %v9464_v22, 0.0  ;;  %v3038_v59 = vor.u32 %v3036_v29, %v3035_v31  ;;  %v9480_v24 = vsel %vm7760_vm2, %v3035_v31, 0  ;;  %v3400_v41 = vshll.u32 %v9414_v3, 16 }
 0x273   : > { %v2336_v9 = vmul.f32 %v13792_v43, %v2125_v36  ;;  %v2128_v16 = vadd.f32 %v9102_v15, %v2127_v26  ;;  %v2129_v30 = vpop.f32.mrb[35].mxu0  ;;  %v2856_v33 = vmul.f32 0.2, %v9464_v22  ;;  %v2857_v63 = vmul.f32 0.2, %v2729_v55 }
 0x274   : > { %v2662_v5 = vmul.f32 %v13794_v27, %v2594_v62  ;;  %v2595_v48 = vsel %vm2467_vm7, %v2403_v25, %v2531_v38  ;;  %v9489_v13 = vsel %vm7760_vm2, 0, %v3038_v59  ;;  %v3398_v18 = vor.u32 %v3397_v39, %v3393_v53 }
 0x275   : > { %v2404_v56 = vadd.f32 %v13793_v23, %v2336_v9  ;;  %v2337_v57 = vmul.f32 %v13792_v43, %v2128_v16  ;;  %13798 = vst [vmem:[#allocation17_spill] sm:$0xff] %v9489_v13  ;;  %v3866_v42 = vrot.slane %v9489_v13, 1  ;;  %v3867_v60 = vrot.slane %v9480_v24, 1  ;;  %3955 = vrot.lane.b32.xlu1 %v3865_v32, %s7698_s27  ;;  %4098 = vrot.lane.b32.xlu0 %v3865_v32, %s7693_s19 }
 0x276   : > { %vm2793_vm15 = vcmp.gt.f32.partialorder %v2729_v55, 0.0  ;;  %v3402_v54 = vrot.slane %v3400_v41, 1  ;;  %v2919_v34 = vsel %vm2791_vm6, %v9435_v21, %v2855_v14  ;;  %v2918_v44 = vsel %vm2790_vm5, %v9431_v17, %v2854_v28 }
 0x277   : > { %vm2468_vm9 = vcmp.gt.f32.partialorder %v2404_v56, 0.0  ;;  %v2532_v3 = vmul.f32 0.2, %v2404_v56  ;;  %v3868_v40 = vsel %vm1297_vm4, %v3866_v42, %v3867_v60  ;;  %v2405_v35 = vadd.f32 %v13793_v23, %v2337_v57 }
 0x278   : > { %v2132_v6 = vpop.f32.mrb[36].mxu0  ;;  %v9505_v52 = vadd.f32 %v13796_v7, %v2662_v5  ;;  %v2663_v8 = vmul.f32 %v13794_v27, %v2595_v48  ;;  %7504 = vmatmul.mubr.msk.bf16.gmra.mrb[132].mxu0 %vm1582_vm8, %v3868_v40  ;;  %v9510_v21 = vsel %vm1024_vm3, %v3398_v18, %v3402_v54  ;;  %v2977_v37 = vpack.c.bf16 %v2919_v34, %v2918_v44 }
 0x279   : > { %v2133_v61 = vadd.f32 %v9102_v15, %v2132_v6  ;;  %v2134_v20 = vpop.f32.mrb[37].mxu0  ;;  %v2596_v50 = vsel %vm2468_vm9, %v2404_v56, %v2532_v3  ;;  %3736 = vrot.lane.b32.xlu1 %v9510_v21, %s7693_s19  ;;  %4224 = vrot.lane.b32.xlu0 %v9510_v21, %s7697_s28  ;;  %v2921_v46 = vsel %vm2793_vm15, %v2729_v55, %v2857_v63  ;;  %v2533_v12 = vmul.f32 0.2, %v2405_v35 }
 0x27a   : > { %v2135_v32 = vpop.f32.mrb[38].mxu0  ;;  %v2664_v0 = vmul.f32 %v13794_v27, %v2596_v50  ;;  %v3040_v14 = vshrl.u32 %v2977_v37, 16  ;;  %v2920_v36 = vsel %vm2792_vm0, %v9464_v22, %v2856_v33  ;;  %vm2469_vm1 = vcmp.gt.f32.partialorder %v2405_v35, 0.0 }
 0x27b   : > { %v2137_v25 = vpop.f32.mrb[39].mxu0  ;;  %v2338_v17 = vmul.f32 %v13792_v43, %v2133_v61  ;;  %v2136_v28 = vadd.f32 %v9102_v15, %v2135_v32  ;;  %v2978_v31 = vpack.c.bf16 %v2921_v46, %v2920_v36  ;;  %v3043_v26 = vshll.u32 %v2977_v37, 16 }
 0x27c   : > { %v3042_v29 = vrot.slane %v3040_v14, 7  ;;  %vm2794_vm5 = vcmp.gt.f32.partialorder %v9505_v52, 0.0  ;;  %v2858_v55 = vmul.f32 0.2, %v9505_v52  ;;  %v2731_v39 = vadd.f32 %v13796_v7, %v2663_v8 }
 0x27d   : > { %v2406_v53 = vadd.f32 %v13793_v23, %v2338_v17  ;;  %v2339_v38 = vmul.f32 %v13792_v43, %v2136_v28  ;;  %4020 = vrot.lane.b32.xlu1 %v9489_v13, %s7697_s28  ;;  %4162 = vrot.lane.b32.xlu0 %v9489_v13, %s7698_s27  ;;  %v3407_v9 = vshll.u32 %v9489_v13, 16  ;;  %v9535_v16 = vadd.f32 %v13796_v7, %v2664_v0 }
 0x27e   : > { %v3045_v30 = vor.u32 %v3043_v26, %v3042_v29  ;;  %v9539_v59 = vsel %vm7760_vm2, %v3042_v29, 0  ;;  %v3047_v41 = vshrl.u32 %v2978_v31, 16  ;;  %v2597_v63 = vsel %vm2469_vm1, %v2405_v35, %v2533_v12 }
 0x27f   : > { %v2407_v22 = vadd.f32 %v13793_v23, %v2339_v38  ;;  %vm2470_vm6 = vcmp.gt.f32.partialorder %v2406_v53, 0.0  ;;  %v2534_v56 = vmul.f32 0.2, %v2406_v53  ;;  %v3050_v57 = vshll.u32 %v2978_v31, 16 }
 0x280   : > { %v2140_v62 = vpop.f32.mrb[40].mxu0  ;;  %v9544_v48 = vsel %vm7760_vm2, 0, %v3045_v30  ;;  %v3870_v18 = vrot.slane %v9539_v59, 1  ;;  %v3049_v6 = vrot.slane %v3047_v41, 7  ;;  %v3409_v34 = vrot.slane %v3407_v9, 1 }
 0x281   : > { %v2142_v33 = vpop.f32.mrb[41].mxu0  ;;  %13799 = vst [vmem:[#allocation12_spill] sm:$0xff] %v9544_v48  ;;  %vm2471_vm13 = vcmp.gt.f32.partialorder %v2407_v22, 0.0  ;;  %v2535_v42 = vmul.f32 0.2, %v2407_v22  ;;  %v3869_v3 = vrot.slane %v9544_v48, 1  ;;  %3957 = vrot.lane.b32.xlu1 %v3868_v40, %s7698_s27  ;;  %4100 = vrot.lane.b32.xlu0 %v3868_v40, %s7693_s19  ;;  %v2141_v54 = vadd.f32 %v9102_v15, %v2140_v62 }
 0x282   : > { %v2143_v5 = vpop.f32.mrb[42].mxu0  ;;  %vm2795_vm7 = vcmp.gt.f32.partialorder %v2731_v39, 0.0  ;;  %v2859_v61 = vmul.f32 0.2, %v2731_v39  ;;  %v3412_v20 = vshll.u32 %v9480_v24, 16  ;;  %v3052_v44 = vor.u32 %v3050_v57, %v3049_v6 }
 0x283   : > { %v2145_v60 = vpop.f32.mrb[43].mxu0  ;;  %v2144_v50 = vadd.f32 %v9102_v15, %v2143_v5  ;;  %v9554_v35 = vsel %vm1297_vm4, %v3869_v3, %v3870_v18  ;;  %v9558_v32 = vsel %vm7760_vm2, %v3049_v6, 0  ;;  %v3405_v40 = vshrl.u32 %v9489_v13, 16 }
 0x284   : > { %v2665_v8 = vmul.f32 %v13794_v27, %v2597_v63  ;;  %7507 = vmatprep.mubr.msk.bf16.mxu0 %vm1582_vm8, %v9554_v35  ;;  %v2598_v37 = vsel %vm2470_vm6, %v2406_v53, %v2534_v56  ;;  %v2599_v24 = vsel %vm2471_vm13, %v2407_v22, %v2535_v42  ;;  %v2340_v15 = vmul.f32 %v13792_v43, %v2141_v54  ;;  %v9600_v56 = vld [vmem:[%s13569_s4] ss:$0 sm:$0xff] }
 0x285   : > { %v9568_v25 = vmul.f32 0.2, %v9535_v16  ;;  %v9572_v17 = vsel %vm7760_vm2, 0, %v3052_v44  ;;  %v3410_v28 = vor.u32 %v3409_v34, %v3405_v40  ;;  %v3414_v46 = vrot.slane %v3412_v20, 1 }
 0x286   : > { %13800 = vst [vmem:[#allocation10_spill] sm:$0xff] %v9572_v17  ;;  %v3872_v14 = vrot.slane %v9572_v17, 1  ;;  %v3873_v36 = vrot.slane %v9558_v32, 1  ;;  %v2408_v12 = vadd.f32 %v13793_v23, %v2340_v15  ;;  %v2341_v53 = vmul.f32 %v13792_v43, %v2144_v50 }
 0x287   : > { %v2666_v31 = vmul.f32 %v13794_v27, %v2598_v37  ;;  %v2667_v29 = vmul.f32 %v13794_v27, %v2599_v24  ;;  %v9581_v26 = vsel %vm1024_vm3, %v3410_v28, %v3414_v46  ;;  %v2923_v22 = vsel %vm2795_vm7, %v2731_v39, %v2859_v61 }
 0x288   : > { %v2148_v0 = vpop.f32.mrb[44].mxu0  ;;  %13801 = vst [vmem:[#allocation14_spill] sm:$0xff] %v9581_v26  ;;  %v9585_v9 = vsel %vm1297_vm4, %v3872_v14, %v3873_v36  ;;  %v2536_v30 = vmul.f32 0.2, %v2408_v12  ;;  %3738 = vrot.lane.b32.xlu1 %v9581_v26, %s7693_s19  ;;  %4226 = vrot.lane.b32.xlu0 %v9581_v26, %s7697_s28  ;;  %v2409_v41 = vadd.f32 %v13793_v23, %v2341_v53  ;;  %vm2472_vm0 = vcmp.gt.f32.partialorder %v2408_v12, 0.0 }
 0x289   : > { %v2150_v38 = vpop.f32.mrb[45].mxu0  ;;  %v2922_v33 = vsel %vm2794_vm5, %v9505_v52, %v2858_v55  ;;  %7508 = vmatmul.mubr.msk.bf16.gmra.mrb[136].mxu0 %vm1582_vm8, %v9585_v9  ;;  %v2149_v57 = vadd.f32 %v9600_v56, %v2148_v0  ;;  %v2733_v18 = vadd.f32 %v13796_v7, %v2665_v8  ;;  %v3419_v52 = vshll.u32 %v9544_v48, 16 }
 0x28a   : > { %v2151_v62 = vpop.f32.mrb[46].mxu0  ;;  %v2979_v39 = vpack.c.bf16 %v2923_v22, %v2922_v33  ;;  %vm2473_vm9 = vcmp.gt.f32.partialorder %v2409_v41, 0.0  ;;  %v2537_v42 = vmul.f32 0.2, %v2409_v41  ;;  %v9607_v55 = vadd.f32 %v13796_v7, %v2666_v31 }
 0x28b   : > { %v2153_v63 = vpop.f32.mrb[47].mxu0  ;;  %v2152_v5 = vadd.f32 %v9600_v56, %v2151_v62  ;;  %v2735_v60 = vadd.f32 %v13796_v7, %v2667_v29  ;;  %v2342_v6 = vmul.f32 %v13792_v43, %v2149_v57  ;;  %v2600_v54 = vsel %vm2472_vm0, %v2408_v12, %v2536_v30 }
 0x28c   : > { %v3054_v3 = vshrl.u32 %v2979_v39, 16  ;;  %4022 = vrot.lane.b32.xlu1 %v9544_v48, %s7697_s28  ;;  %4164 = vrot.lane.b32.xlu0 %v9544_v48, %s7698_s27  ;;  %v3057_v34 = vshll.u32 %v2979_v39, 16  ;;  %v3417_v61 = vshrl.u32 %v9544_v48, 16  ;;  %v3421_v20 = vrot.slane %v3419_v52, 1 }
 0x28d   : > { %v2601_v50 = vsel %vm2473_vm9, %v2409_v41, %v2537_v42  ;;  %v2343_v40 = vmul.f32 %v13792_v43, %v2152_v5  ;;  %v3424_v8 = vshll.u32 %v9539_v59, 16  ;;  %vm2796_vm15 = vcmp.gt.f32.partialorder %v9535_v16, 0.0 }
 0x28e   : > { %v3056_v44 = vrot.slane %v3054_v3, 7  ;;  %vm2797_vm1 = vcmp.gt.f32.partialorder %v2733_v18, 0.0  ;;  %v2861_v24 = vmul.f32 0.2, %v2733_v18  ;;  %v2410_v15 = vadd.f32 %v13793_v23, %v2342_v6 }
 0x28f   : > { %v2862_v46 = vmul.f32 0.2, %v9607_v55  ;;  %vm2799_vm5 = vcmp.gt.f32.partialorder %v2735_v60, 0.0  ;;  %v3422_v14 = vor.u32 %v3421_v20, %v3417_v61  ;;  %v2863_v12 = vmul.f32 0.2, %v2735_v60 }
 0x290   : > { %v2156_v37 = vpop.f32.mrb[48].mxu0  ;;  %v3059_v0 = vor.u32 %v3057_v34, %v3056_v44  ;;  %v2668_v53 = vmul.f32 %v13794_v27, %v2600_v54  ;;  %v2669_v38 = vmul.f32 %v13794_v27, %v2601_v50  ;;  %v9625_v59 = vsel %vm7760_vm2, %v3056_v44, 0  ;;  %3959 = vrot.lane.b32.xlu1 %v9554_v35, %s7698_s27  ;;  %4102 = vrot.lane.b32.xlu0 %v9554_v35, %s7693_s19 }
 0x291   : > { %v2158_v28 = vpop.f32.mrb[49].mxu0  ;;  %v2411_v22 = vadd.f32 %v13793_v23, %v2343_v40  ;;  %v3426_v62 = vrot.slane %v3424_v8, 1  ;;  %v2924_v30 = vsel %vm2796_vm15, %v9535_v16, %v9568_v25  ;;  %v3876_v33 = vrot.slane %v9625_v59, 1 }
 0x292   : > { %v2159_v36 = vpop.f32.mrb[50].mxu0  ;;  %v9633_v29 = vsel %vm7760_vm2, 0, %v3059_v0  ;;  %vm2474_vm6 = vcmp.gt.f32.partialorder %v2410_v15, 0.0  ;;  %v2538_v63 = vmul.f32 0.2, %v2410_v15  ;;  %v2925_v39 = vsel %vm2797_vm1, %v2733_v18, %v2861_v24 }
 0x293   : > { %v2161_v31 = vpop.f32.mrb[51].mxu0  ;;  %13802 = vst [vmem:[#allocation11_spill] sm:$0xff] %v9633_v29  ;;  %v3875_v41 = vrot.slane %v9633_v29, 1  ;;  %v9643_v35 = vsel %vm1024_vm3, %v3422_v14, %v3426_v62  ;;  %v2157_v57 = vadd.f32 %v9600_v56, %v2156_v37  ;;  %v2160_v5 = vadd.f32 %v9600_v56, %v2159_v36 }
 0x294   : > { %13803 = vst [vmem:[#allocation15_spill] sm:$0xff] %v9643_v35  ;;  %vm2798_vm13 = vcmp.gt.f32.partialorder %v9607_v55, 0.0  ;;  %3740 = vrot.lane.b32.xlu1 %v9643_v35, %s7693_s19  ;;  %4228 = vrot.lane.b32.xlu0 %v9643_v35, %s7697_s28  ;;  %v2980_v16 = vpack.c.bf16 %v2925_v39, %v2924_v30  ;;  %v9657_v25 = vadd.f32 %v13796_v7, %v2668_v53  ;;  %vm2475_vm7 = vcmp.gt.f32.partialorder %v2411_v22, 0.0 }
 0x295   : > { %v9650_v42 = vsel %vm1297_vm4, %v3875_v41, %v3876_v33  ;;  %v9660_v18 = vadd.f32 %v13796_v7, %v2669_v38  ;;  %v2344_v52 = vmul.f32 %v13792_v43, %v2157_v57  ;;  %v2345_v3 = vmul.f32 %v13792_v43, %v2160_v5 }
 0x296   : > { %7511 = vmatprep.mubr.msk.bf16.mxu0 %vm1582_vm8, %v9650_v42  ;;  %v2602_v54 = vsel %vm2474_vm6, %v2410_v15, %v2538_v63  ;;  %v3061_v34 = vshrl.u32 %v2980_v16, 16  ;;  %v2927_v61 = vsel %vm2799_vm5, %v2735_v60, %v2863_v12  ;;  %v2539_v50 = vmul.f32 0.2, %v2411_v22 }
 0x297   : > { %v3064_v44 = vshll.u32 %v2980_v16, 16  ;;  %v2412_v40 = vadd.f32 %v13793_v23, %v2344_v52  ;;  %v2926_v8 = vsel %vm2798_vm13, %v9607_v55, %v2862_v46  ;;  %v2413_v15 = vadd.f32 %v13793_v23, %v2345_v3 }
 0x298   : > { %v2164_v6 = vpop.f32.mrb[52].mxu0  ;;  %v3063_v24 = vrot.slane %v3061_v34, 7  ;;  %4024 = vrot.lane.b32.xlu1 %v9572_v17, %s7697_s28  ;;  %4166 = vrot.lane.b32.xlu0 %v9572_v17, %s7698_s27  ;;  %v2981_v60 = vpack.c.bf16 %v2927_v61, %v2926_v8  ;;  %vm2800_vm0 = vcmp.gt.f32.partialorder %v9657_v25, 0.0  ;;  %v2864_v14 = vmul.f32 0.2, %v9657_v25 }
 0x299   : > { %v2166_v20 = vpop.f32.mrb[53].mxu0  ;;  %v2165_v28 = vadd.f32 %v9600_v56, %v2164_v6  ;;  %v2865_v55 = vmul.f32 0.2, %v9660_v18  ;;  %v2540_v12 = vmul.f32 0.2, %v2412_v40  ;;  %v2670_v53 = vmul.f32 %v13794_v27, %v2602_v54 }
 0x29a   : > { %v2167_v37 = vpop.f32.mrb[54].mxu0  ;;  %v3066_v46 = vor.u32 %v3064_v44, %v3063_v24  ;;  %v9683_v36 = vsel %vm7760_vm2, %v3063_v24, 0  ;;  %v2603_v38 = vsel %vm2475_vm7, %v2411_v22, %v2539_v50  ;;  %vm2476_vm9 = vcmp.gt.f32.partialorder %v2412_v40, 0.0 }
 0x29b   : > { %v2169_v0 = vpop.f32.mrb[55].mxu0  ;;  %v3068_v31 = vshrl.u32 %v2981_v60, 16  ;;  %vm2477_vm15 = vcmp.gt.f32.partialorder %v2413_v15, 0.0  ;;  %v2541_v30 = vmul.f32 0.2, %v2413_v15  ;;  %v2346_v41 = vmul.f32 %v13792_v43, %v2165_v28 }
 0x29c   : > { %v9689_v62 = vsel %vm7760_vm2, 0, %v3066_v46  ;;  %3961 = vrot.lane.b32.xlu1 %v9585_v9, %s7698_s27  ;;  %4104 = vrot.lane.b32.xlu0 %v9585_v9, %s7693_s19  ;;  %v3879_v22 = vrot.slane %v9683_v36, 1  ;;  %v3071_v39 = vshll.u32 %v2981_v60, 16  ;;  %v2604_v5 = vsel %vm2476_vm9, %v2412_v40, %v2540_v12 }
 0x29d   : > { %13804 = vst [vmem:[#allocation13_spill] sm:$0xff] %v9689_v62  ;;  %v3878_v33 = vrot.slane %v9689_v62, 1  ;;  %v3070_v63 = vrot.slane %v3068_v31, 7  ;;  %v2414_v16 = vadd.f32 %v13793_v23, %v2346_v41  ;;  %v3431_v52 = vshll.u32 %v9572_v17, 16 }
 0x29e   : > { %v2168_v3 = vadd.f32 %v9600_v56, %v2167_v37  ;;  %v3436_v61 = vshll.u32 %v9558_v32, 16  ;;  %vm2801_vm1 = vcmp.gt.f32.partialorder %v9660_v18, 0.0  ;;  %v9711_v50 = vadd.f32 %v13796_v7, %v2670_v53 }
 0x29f   : > { %v9702_v54 = vsel %vm1297_vm4, %v3878_v33, %v3879_v22  ;;  %v3073_v9 = vor.u32 %v3071_v39, %v3070_v63  ;;  %v9706_v34 = vsel %vm7760_vm2, %v3070_v63, 0  ;;  %v2671_v44 = vmul.f32 %v13794_v27, %v2603_v38 }
 0x2a0   : > { %v2172_v57 = vpop.f32.mrb[56].mxu0  ;;  %7512 = vmatmul.mubr.msk.bf16.gmra.mrb[140].mxu0 %vm1582_vm8, %v9702_v54  ;;  %v3429_v40 = vshrl.u32 %v9572_v17, 16  ;;  %v2672_v37 = vmul.f32 %v13794_v27, %v2604_v5  ;;  %v2605_v24 = vsel %vm2477_vm15, %v2413_v15, %v2541_v30  ;;  %v3882_v60 = vrot.slane %v9706_v34, 1 }
 0x2a1   : > { %v2174_v6 = vpop.f32.mrb[57].mxu0  ;;  %v9721_v32 = vsel %vm7760_vm2, 0, %v3073_v9  ;;  %v2542_v0 = vmul.f32 0.2, %v2414_v16  ;;  %v3433_v46 = vrot.slane %v3431_v52, 1  ;;  %v2347_v12 = vmul.f32 %v13792_v43, %v2168_v3 }
 0x2a2   : > { %v2175_v20 = vpop.f32.mrb[58].mxu0  ;;  %13805 = vst [vmem:[#allocation16_spill] sm:$0xff] %v9721_v32  ;;  %v3881_v28 = vrot.slane %v9721_v32, 1  ;;  %vm2478_vm5 = vcmp.gt.f32.partialorder %v2414_v16, 0.0  ;;  %v3438_v53 = vrot.slane %v3436_v61, 1  ;;  %v2929_v38 = vsel %vm2801_vm1, %v9660_v18, %v2865_v55 }
 0x2a3   : > { %v2177_v8 = vpop.f32.mrb[59].mxu0  ;;  %v2173_v15 = vadd.f32 %v9600_v56, %v2172_v57  ;;  %v3434_v30 = vor.u32 %v3433_v46, %v3429_v40  ;;  %v2415_v41 = vadd.f32 %v13793_v23, %v2347_v12  ;;  %v2928_v33 = vsel %vm2800_vm0, %v9657_v25, %v2864_v14 }
 0x2a4   : > { %v9731_v31 = vsel %vm1297_vm4, %v3881_v28, %v3882_v60  ;;  %v2673_v22 = vmul.f32 %v13794_v27, %v2605_v24  ;;  %v2982_v63 = vpack.c.bf16 %v2929_v38, %v2928_v33  ;;  %v2176_v18 = vadd.f32 %v9600_v56, %v2175_v20  ;;  %v9756_v20 = vpop.permute.xlu1 %3728 }
 0x2a5   : > { %7515 = vmatprep.mubr.msk.bf16.mxu0 %vm1582_vm8, %v9731_v31  ;;  %v2739_v39 = vadd.f32 %v13796_v7, %v2671_v44  ;;  %v9743_v57 = vadd.f32 %v13796_v7, %v2672_v37  ;;  %v2606_v5 = vsel %vm2478_vm5, %v2414_v16, %v2542_v0  ;;  %v9746_v52 = vsel %vm1024_vm3, %v3434_v30, %v3438_v53 }
 0x2a6   : > { %13806 = vst [vmem:[#allocation18_spill] sm:$0xff] %v9746_v52  ;;  %vm2802_vm6 = vcmp.gt.f32.partialorder %v9711_v50, 0.0  ;;  %3742 = vrot.lane.b32.xlu1 %v9746_v52, %s7693_s19  ;;  %4230 = vrot.lane.b32.xlu0 %v9746_v52, %s7697_s28  ;;  %v2543_v25 = vmul.f32 0.2, %v2415_v41  ;;  %v3075_v14 = vshrl.u32 %v2982_v63, 16  ;;  %v2348_v6 = vmul.f32 %v13792_v43, %v2173_v15 }
 0x2a7   : > { %v2866_v61 = vmul.f32 0.2, %v9711_v50  ;;  %vm2479_vm13 = vcmp.gt.f32.partialorder %v2415_v41, 0.0  ;;  %v2349_v16 = vmul.f32 %v13792_v43, %v2176_v18  ;;  %v3443_v44 = vshll.u32 %v9633_v29, 16 }
 0x2a8   : > { %v2180_v55 = vpop.f32.mrb[60].mxu0  ;;  %v2741_v8 = vadd.f32 %v13796_v7, %v2673_v22  ;;  %v2674_v37 = vmul.f32 %v13794_v27, %v2606_v5  ;;  %v3077_v24 = vrot.slane %v3075_v14, 7  ;;  %v3078_v60 = vshll.u32 %v2982_v63, 16 }
 0x2a9   : > { %v2182_v3 = vpop.f32.mrb[61].mxu0  ;;  %vm2803_vm7 = vcmp.gt.f32.partialorder %v2739_v39, 0.0  ;;  %v2867_v28 = vmul.f32 0.2, %v2739_v39  ;;  %vm2804_vm0 = vcmp.gt.f32.partialorder %v9743_v57, 0.0  ;;  %v3445_v0 = vrot.slane %v3443_v44, 1 }
 0x2aa   : > { %v2183_v9 = vpop.f32.mrb[62].mxu0  ;;  %v2607_v46 = vsel %vm2479_vm13, %v2415_v41, %v2543_v25  ;;  %4026 = vrot.lane.b32.xlu1 %v9633_v29, %s7697_s28  ;;  %4168 = vrot.lane.b32.xlu0 %v9633_v29, %s7698_s27  ;;  %v3080_v12 = vor.u32 %v3078_v60, %v3077_v24  ;;  %v9768_v53 = vsel %vm7760_vm2, %v3077_v24, 0  ;;  %v2416_v38 = vadd.f32 %v13793_v23, %v2348_v6 }
 0x2ab   : > { %v2185_v40 = vpop.f32.mrb[63].mxu0  ;;  %v2868_v15 = vmul.f32 0.2, %v9743_v57  ;;  %v2417_v30 = vadd.f32 %v13793_v23, %v2349_v16  ;;  %v3441_v33 = vshrl.u32 %v9633_v29, 16  ;;  %v3448_v41 = vshll.u32 %v9625_v59, 16  ;;  %v9785_v16 = vpop.permute.xlu1 %3947 }
 0x2ac   : > { %vm2805_vm9 = vcmp.gt.f32.partialorder %v2741_v8, 0.0  ;;  %v2869_v22 = vmul.f32 0.2, %v2741_v8  ;;  %v9776_v63 = vadd.f32 %v13796_v7, %v2674_v37  ;;  %v9780_v18 = vsel %vm7760_vm2, 0, %v3080_v12 }
 0x2ad   : > { %13807 = vst [vmem:[#allocation5_spill] sm:$0xff] %v9780_v18  ;;  %v2675_v3 = vmul.f32 %v13794_v27, %v2607_v46  ;;  %v3884_v25 = vrot.slane %v9780_v18, 1  ;;  %v3885_v14 = vrot.slane %v9768_v53, 1  ;;  %v3446_v6 = vor.u32 %v3445_v0, %v3441_v33 }
 0x2ae   : > { %vm2480_vm15 = vcmp.gt.f32.partialorder %v2416_v38, 0.0  ;;  %v2544_v44 = vmul.f32 0.2, %v2416_v38  ;;  %3963 = vrot.lane.b32.xlu1 %v9650_v42, %s7698_s27  ;;  %4106 = vrot.lane.b32.xlu0 %v9650_v42, %s7693_s19  ;;  %v2931_v40 = vsel %vm2803_vm7, %v2739_v39, %v2867_v28  ;;  %v2181_v37 = vadd.f32 %v9600_v56, %v2180_v55 }
 0x2af   : > { %v9794_v60 = vsel %vm1297_vm4, %v3884_v25, %v3885_v14  ;;  %v2545_v0 = vmul.f32 0.2, %v2417_v30  ;;  %v3450_v46 = vrot.slane %v3448_v41, 1  ;;  %v2930_v12 = vsel %vm2802_vm6, %v9711_v50, %v2866_v61 }
 0x2b0   : > { %v2188_v5 = vpop.f32.mrb[64].mxu0  ;;  %7516 = vmatmul.mubr.msk.bf16.gmra.mrb[144].mxu0 %vm1582_vm8, %v9794_v60  ;;  %vm2481_vm1 = vcmp.gt.f32.partialorder %v2417_v30, 0.0  ;;  %v2983_v42 = vpack.c.bf16 %v2931_v40, %v2930_v12  ;;  %v2350_v39 = vmul.f32 %v13792_v43, %v2181_v37  ;;  %v2184_v55 = vadd.f32 %v9600_v56, %v2183_v9 }
 0x2b1   : > { %v2190_v59 = vpop.f32.mrb[65].mxu0  ;;  %v9804_v28 = vadd.f32 %v13796_v7, %v2675_v3  ;;  %v9807_v25 = vsel %vm1024_vm3, %v3446_v6, %v3450_v46  ;;  %v2933_v41 = vsel %vm2805_vm9, %v2741_v8, %v2869_v22  ;;  %v2608_v50 = vsel %vm2480_vm15, %v2416_v38, %v2544_v44  ;;  %v9819_v6 = vpop.permute.xlu1 %4012 }
 0x2b2   : > { %v2191_v24 = vpop.f32.mrb[66].mxu0  ;;  %13808 = vst [vmem:[#allocation6_spill] sm:$0xff] %v9807_v25  ;;  %3744 = vrot.lane.b32.xlu1 %v9807_v25, %s7693_s19  ;;  %4232 = vrot.lane.b32.xlu0 %v9807_v25, %s7697_s28  ;;  %v3082_v61 = vshrl.u32 %v2983_v42, 16  ;;  %v2932_v9 = vsel %vm2804_vm0, %v9743_v57, %v2868_v15  ;;  %v2609_v3 = vsel %vm2481_vm1, %v2417_v30, %v2545_v0  ;;  %v9822_v8 = vmul.f32 0.2, %v9776_v63 }
 0x2b3   : > { %v2193_v33 = vpop.f32.mrb[67].mxu0  ;;  %v2418_v14 = vadd.f32 %v13793_v23, %v2350_v39  ;;  %v2984_v59 = vpack.c.bf16 %v2933_v41, %v2932_v9  ;;  %v3085_v22 = vshll.u32 %v2983_v42, 16  ;;  %v2351_v44 = vmul.f32 %v13792_v43, %v2184_v55 }
 0x2b4   : > { %v3084_v38 = vrot.slane %v3082_v61, 7  ;;  %vm2807_vm5 = vcmp.gt.f32.partialorder %v9804_v28, 0.0  ;;  %v2676_v37 = vmul.f32 %v13794_v27, %v2608_v50  ;;  %v3455_v15 = vshll.u32 %v9689_v62, 16 }
 0x2b5   : > { %v3089_v57 = vshrl.u32 %v2984_v59, 16  ;;  %v2677_v0 = vmul.f32 %v13794_v27, %v2609_v3  ;;  %v2189_v33 = vadd.f32 %v9600_v56, %v2188_v5  ;;  %v2546_v39 = vmul.f32 0.2, %v2418_v14  ;;  %v9850_v45 = vpop.permute.xlu1 %3949 }
 0x2b6   : > { %v3087_v46 = vor.u32 %v3085_v22, %v3084_v38  ;;  %v9833_v12 = vsel %vm7760_vm2, %v3084_v38, 0  ;;  %4028 = vrot.lane.b32.xlu1 %v9689_v62, %s7697_s28  ;;  %4170 = vrot.lane.b32.xlu0 %v9689_v62, %s7698_s27  ;;  %v3453_v55 = vshrl.u32 %v9689_v62, 16  ;;  %v3460_v41 = vshll.u32 %v9683_v36, 16 }
 0x2b7   : > { %v2192_v50 = vadd.f32 %v9600_v56, %v2191_v24  ;;  %v2419_v3 = vadd.f32 %v13793_v23, %v2351_v44  ;;  %v3091_v38 = vrot.slane %v3089_v57, 7  ;;  %v3092_v22 = vshll.u32 %v2984_v59, 16 }
 0x2b8   : > { %v9825_v40 = vpop.f32.mrb[68].mxu0  ;;  %v9845_v9 = vsel %vm7760_vm2, 0, %v3087_v46  ;;  %v3888_v5 = vrot.slane %v9833_v12, 1  ;;  %vm2482_vm6 = vcmp.gt.f32.partialorder %v2418_v14, 0.0  ;;  %v3457_v19 = vrot.slane %v3455_v15, 1 }
 0x2b9   : > { %v2198_v30 = vpop.f32.mrb[69].mxu0  ;;  %13809 = vst [vmem:[#allocation7_spill] sm:$0xff] %v9845_v9  ;;  %v2744_v36 = vadd.f32 %v13796_v7, %v2676_v37  ;;  %v3094_v24 = vor.u32 %v3092_v22, %v3091_v38  ;;  %v9859_v59 = vsel %vm7760_vm2, %v3091_v38, 0  ;;  %v2352_v44 = vmul.f32 %v13792_v43, %v2189_v33 }
 0x2ba   : > { %v2199_v42 = vpop.f32.mrb[70].mxu0  ;;  %v3887_v30 = vrot.slane %v9845_v9, 1  ;;  %3965 = vrot.lane.b32.xlu1 %v9702_v54, %s7698_s27  ;;  %4108 = vrot.lane.b32.xlu0 %v9702_v54, %s7693_s19  ;;  %v2871_v57 = vmul.f32 0.2, %v9804_v28  ;;  %v2745_v46 = vadd.f32 %v13796_v7, %v2677_v0  ;;  %v3458_v37 = vor.u32 %v3457_v19, %v3453_v55 }
 0x2bb   : > { %v2201_v61 = vpop.f32.mrb[71].mxu0  ;;  %vm2483_vm13 = vcmp.gt.f32.partialorder %v2419_v3, 0.0  ;;  %v2547_v54 = vmul.f32 0.2, %v2419_v3  ;;  %v9871_v38 = vsel %vm7760_vm2, 0, %v3094_v24  ;;  %v3891_v0 = vrot.slane %v9859_v59, 1 }
 0x2bc   : > { %v9865_v15 = vsel %vm1297_vm4, %v3887_v30, %v3888_v5  ;;  %v2610_v61 = vsel %vm2482_vm6, %v2418_v14, %v2546_v39  ;;  %13810 = vst [vmem:[#allocation8_spill] sm:$0xff] %v9871_v38  ;;  %v3890_v33 = vrot.slane %v9871_v38, 1  ;;  %v3462_v62 = vrot.slane %v3460_v41, 1  ;;  %v9879_v14 = vpop.permute.xlu0 %4092 }
 0x2bd   : > { %7519 = vmatprep.mubr.msk.bf16.mxu0 %vm1582_vm8, %v9865_v15  ;;  %v2353_v30 = vmul.f32 %v13792_v43, %v2192_v50  ;;  %vm2806_vm7 = vcmp.gt.f32.partialorder %v9776_v63, 0.0  ;;  %v2872_v55 = vmul.f32 0.2, %v2744_v36  ;;  %v2420_v39 = vadd.f32 %v13793_v23, %v2352_v44  ;;  %v9891_v50 = vpop.permute.xlu1 %3730 }
 0x2be   : > { %v2873_v24 = vmul.f32 0.2, %v2745_v46  ;;  %v2678_v29 = vmul.f32 %v13794_v27, %v2610_v61  ;;  %v9886_v25 = vsel %vm1297_vm4, %v3890_v33, %v3891_v0  ;;  %v9889_v41 = vsel %vm1024_vm3, %v3458_v37, %v3462_v62 }
 0x2bf   : > { %13811 = vst [vmem:[#allocation19_spill] sm:$0xff] %v9889_v41  ;;  %vm2809_vm0 = vcmp.gt.f32.partialorder %v2745_v46, 0.0  ;;  %v2611_v17 = vsel %vm2483_vm13, %v2419_v3, %v2547_v54  ;;  %7520 = vmatmul.mubr.msk.bf16.gmra.mrb[148].mxu0 %vm1582_vm8, %v9886_v25  ;;  %3746 = vrot.lane.b32.xlu1 %v9889_v41, %s7693_s19  ;;  %v2421_v44 = vadd.f32 %v13793_v23, %v2353_v30  ;;  %vm2808_vm9 = vcmp.gt.f32.partialorder %v2744_v36, 0.0 }
 0x2c0   : > { %v9873_v22 = vpop.f32.mrb[72].mxu0  ;;  %v2935_v61 = vsel %vm2807_vm5, %v9804_v28, %v2871_v57  ;;  %4234 = vrot.lane.b32.xlu0 %v9889_v41, %s7697_s28  ;;  %v2934_v62 = vsel %vm2806_vm7, %v9776_v63, %v9822_v8  ;;  %v2197_v3 = vadd.f32 %v9600_v56, %v9825_v40  ;;  %v2200_v37 = vadd.f32 %v9600_v56, %v2199_v42 }
 0x2c1   : > { %v2206_v19 = vpop.f32.mrb[73].mxu0  ;;  %vm2484_vm15 = vcmp.gt.f32.partialorder %v2420_v39, 0.0  ;;  %v2548_v54 = vmul.f32 0.2, %v2420_v39  ;;  %v2985_v33 = vpack.c.bf16 %v2935_v61, %v2934_v62  ;;  %v3467_v0 = vshll.u32 %v9721_v32, 16 }
 0x2c2   : > { %v9882_v5 = vpop.f32.mrb[74].mxu0  ;;  %v9913_v28 = vadd.f32 %v13796_v7, %v2678_v29  ;;  %v2679_v57 = vmul.f32 %v13794_v27, %v2611_v17  ;;  %v3465_v30 = vshrl.u32 %v9721_v32, 16  ;;  %v2549_v40 = vmul.f32 0.2, %v2421_v44 }
 0x2c3   : > { %v2209_v19 = vpop.f32.mrb[75].mxu0  ;;  %4030 = vrot.lane.b32.xlu1 %v9721_v32, %s7697_s28  ;;  %v3096_v42 = vshrl.u32 %v2985_v33, 16  ;;  %v3472_v61 = vshll.u32 %v9706_v34, 16  ;;  %v2936_v29 = vsel %vm2808_vm9, %v2744_v36, %v2872_v55  ;;  %v2354_v17 = vmul.f32 %v13792_v43, %v2197_v3 }
 0x2c4   : > { %v2937_v19 = vsel %vm2809_vm0, %v2745_v46, %v2873_v24  ;;  %4172 = vrot.lane.b32.xlu0 %v9721_v32, %s7698_s27  ;;  %v2355_v46 = vmul.f32 %v13792_v43, %v2200_v37  ;;  %v3469_v24 = vrot.slane %v3467_v0, 1  ;;  %v2612_v48 = vsel %vm2484_vm15, %v2420_v39, %v2548_v54 }
 0x2c5   : > { %v2986_v41 = vpack.c.bf16 %v2937_v19, %v2936_v29  ;;  %vm2485_vm1 = vcmp.gt.f32.partialorder %v2421_v44, 0.0  ;;  %v3098_v35 = vrot.slane %v3096_v42, 7  ;;  %v3099_v13 = vshll.u32 %v2985_v33, 16 }
 0x2c6   : > { %v4285_v36 = vsel %vm1582_vm8, %v13781_v11, %v9756_v20  ;;  %v2874_v55 = vmul.f32 0.2, %v9913_v28  ;;  %v3470_v32 = vor.u32 %v3469_v24, %v3465_v30  ;;  %v3474_v33 = vrot.slane %v3472_v61, 1 }
 0x2c7   : > { %v9918_v63 = vpop.permute.xlu1 %4014  ;;  %v9920_v8 = vpop.permute.xlu0 %4156  ;;  %v3103_v3 = vshrl.u32 %v2986_v41, 16  ;;  %v3101_v39 = vor.u32 %v3099_v13, %v3098_v35  ;;  %v9946_v54 = vsel %vm7760_vm2, %v3098_v35, 0  ;;  %3967 = vrot.lane.b32.xlu1 %v9731_v31, %s7698_s27  ;;  %v2680_v0 = vmul.f32 %v13794_v27, %v2612_v48 }
 0x2c8   : > { %v9926_v62 = vpop.f32.mrb[76].mxu0  ;;  %v2613_v30 = vsel %vm2485_vm1, %v2421_v44, %v2549_v40  ;;  %v2422_v19 = vadd.f32 %v13793_v23, %v2354_v17  ;;  %4110 = vrot.lane.b32.xlu0 %v9731_v31, %s7693_s19  ;;  %v2423_v13 = vadd.f32 %v13793_v23, %v2355_v46  ;;  %v9962_v42 = vsel %vm1024_vm3, %v3470_v32, %v3474_v33 }
 0x2c9   : > { %v2214_v52 = vpop.f32.mrb[77].mxu0  ;;  %v9958_v35 = vsel %vm7760_vm2, 0, %v3101_v39  ;;  %13813 = vst [vmem:[#allocation21_spill] sm:$0xff] %v9962_v42  ;;  %v3105_v61 = vrot.slane %v3103_v3, 7  ;;  %v3106_v44 = vshll.u32 %v2986_v41, 16  ;;  %v2205_v40 = vadd.f32 %v9600_v56, %v9873_v22 }
 0x2ca   : > { %v9933_v34 = vpop.f32.mrb[78].mxu0  ;;  %v2747_v52 = vadd.f32 %v13796_v7, %v2679_v57  ;;  %13812 = vst [vmem:[#allocation20_spill] sm:$0xff] %v9958_v35  ;;  %v3894_v57 = vrot.slane %v9946_v54, 1  ;;  %v3893_v48 = vrot.slane %v9958_v35, 1  ;;  %v2208_v31 = vadd.f32 %v9600_v56, %v9882_v5 }
 0x2cb   : > { %v9939_v26 = vpop.permute.xlu1 %3951  ;;  %v9941_v37 = vpop.permute.xlu0 %4094  ;;  %vm2810_vm5 = vcmp.gt.f32.partialorder %v9913_v28, 0.0  ;;  %3748 = vrot.lane.b32.xlu1 %v9962_v42, %s7693_s19  ;;  %v9974_v32 = vsel %vm7760_vm2, %v3105_v61, 0  ;;  %v2550_v22 = vmul.f32 0.2, %v2422_v19  ;;  %v3108_v5 = vor.u32 %v3106_v44, %v3105_v61 }
 0x2cc   : > { %v2217_v20 = vpop.f32.mrb[79].mxu0  ;;  %vm2811_vm6 = vcmp.gt.f32.partialorder %v2747_v52, 0.0  ;;  %v2875_v29 = vmul.f32 0.2, %v2747_v52  ;;  %13814 = vst [vmem:[#allocation22_spill] sm:$0xff] %v9974_v32  ;;  %v9979_v41 = vsel %vm1297_vm4, %v3893_v48, %v3894_v57  ;;  %4236 = vrot.lane.b32.xlu0 %v9962_v42, %s7697_s28  ;;  %v2356_v46 = vmul.f32 %v13792_v43, %v2205_v40 }
 0x2cd   : > { %v9989_v39 = vadd.f32 %v13796_v7, %v2680_v0  ;;  %v2681_v33 = vmul.f32 %v13794_v27, %v2613_v30  ;;  %7523 = vmatprep.mubr.msk.bf16.mxu0 %vm1582_vm8, %v9979_v41  ;;  %vm2486_vm13 = vcmp.gt.f32.partialorder %v2422_v19, 0.0  ;;  %vm2487_vm7 = vcmp.gt.f32.partialorder %v2423_v13, 0.0 }
 0x2ce   : > { %v2551_v20 = vmul.f32 0.2, %v2423_v13  ;;  %v9996_v57 = vsel %vm7760_vm2, 0, %v3108_v5  ;;  %v3897_v61 = vrot.slane %v9974_v32, 1  ;;  %v2357_v48 = vmul.f32 %v13792_v43, %v2208_v31 }
 0x2cf   : > { %v9984_v24 = vpop.permute.xlu1 %3732  ;;  %v9986_v3 = vpop.permute.xlu0 %4220  ;;  %13815 = vst [vmem:[#allocation23_spill] sm:$0xff] %v9996_v57  ;;  %v3896_v0 = vrot.slane %v9996_v57, 1  ;;  %4032 = vrot.lane.b32.xlu1 %v9780_v18, %s7697_s28  ;;  %v2938_v30 = vsel %vm2810_vm5, %v9913_v28, %v2874_v55  ;;  %v2939_v40 = vsel %vm2811_vm6, %v2747_v52, %v2875_v29  ;;  %v2213_v5 = vadd.f32 %v9600_v56, %v9926_v62 }
 0x2d0   : > { %v9976_v17 = vpop.f32.mrb[80].mxu0  ;;  %v10013_v31 = vsel %vm1666_vm12, %v4285_v36, %v9785_v16  ;;  %v2424_v42 = vadd.f32 %v13793_v23, %v2356_v46  ;;  %4174 = vrot.lane.b32.xlu0 %v9780_v18, %s7698_s27  ;;  %v2987_v32 = vpack.c.bf16 %v2939_v40, %v2938_v30  ;;  %v2425_v62 = vadd.f32 %v13793_v23, %v2357_v48 }
 0x2d1   : > { %v2222_v44 = vpop.f32.mrb[81].mxu0  ;;  %v10021_v28 = vsel %vm1297_vm4, %v3896_v0, %v3897_v61  ;;  %v2358_v55 = vmul.f32 %v13792_v43, %v2213_v5  ;;  %v3479_v52 = vshll.u32 %v9780_v18, 16  ;;  %v2615_v29 = vsel %vm2487_vm7, %v2423_v13, %v2551_v20 }
 0x2d2   : > { %v10009_v11 = vpop.f32.mrb[82].mxu0  ;;  %v2614_v44 = vsel %vm2486_vm13, %v2422_v19, %v2550_v22  ;;  %13816 = vst [vmem:[#allocation24_spill] sm:$0xff] %v10021_v28  ;;  %v4510_v19 = vsel %vm1582_vm8, %v9236_v4, %v9879_v14  ;;  %7524 = vmatmul.mubr.msk.bf16.gmra.mrb[152].mxu0 %vm1582_vm8, %v10021_v28  ;;  %v3110_v22 = vshrl.u32 %v2987_v32, 16  ;;  %v3484_v46 = vshll.u32 %v9768_v53, 16 }
 0x2d3   : > { %v10018_v57 = vpop.permute.xlu1 %4016  ;;  %v10026_v16 = vpop.permute.xlu0 %4158  ;;  %v2876_v61 = vmul.f32 0.2, %v9989_v39  ;;  %v2749_v48 = vadd.f32 %v13796_v7, %v2681_v33  ;;  %v2682_v0 = vmul.f32 %v13794_v27, %v2614_v44  ;;  %3969 = vrot.lane.b32.xlu1 %v9794_v60, %s7698_s27  ;;  %v3481_v30 = vrot.slane %v3479_v52, 1 }
 0x2d4   : > { %v2225_v36 = vpop.f32.mrb[83].mxu0  ;;  %4112 = vrot.lane.b32.xlu0 %v9794_v60, %s7693_s19  ;;  %v3112_v4 = vrot.slane %v3110_v22, 7  ;;  %v3113_v14 = vshll.u32 %v2987_v32, 16  ;;  %v3477_v13 = vshrl.u32 %v9780_v18, 16  ;;  %v2216_v53 = vadd.f32 %v9600_v56, %v9933_v34 }
 0x2d5   : > { %v2683_v33 = vmul.f32 %v13794_v27, %v2615_v29  ;;  %v2552_v20 = vmul.f32 0.2, %v2424_v42  ;;  %v2553_v5 = vmul.f32 0.2, %v2425_v62  ;;  %v2426_v44 = vadd.f32 %v13793_v23, %v2358_v55 }
 0x2d6   : > { %v3115_v52 = vor.u32 %v3113_v14, %v3112_v4  ;;  %v10051_v28 = vsel %vm7760_vm2, %v3112_v4, 0  ;;  %v3482_v60 = vor.u32 %v3481_v30, %v3477_v13  ;;  %v3486_v22 = vrot.slane %v3484_v46, 1 }
 0x2d7   : > { %13817 = vst [vmem:[#allocation25_spill] sm:$0xff] %v10051_v28  ;;  %v10053_v32 = vpop.permute.xlu1 %3953  ;;  %v2877_v51 = vmul.f32 0.2, %v2749_v48  ;;  %vm2488_vm0 = vcmp.gt.f32.partialorder %v2424_v42, 0.0  ;;  %vm2489_vm9 = vcmp.gt.f32.partialorder %v2425_v62, 0.0  ;;  %v2359_v34 = vmul.f32 %v13792_v43, %v2216_v53  ;;  %v10058_v29 = vpop.permute.xlu0 %4096 }
 0x2d8   : > { %v10040_v40 = vpop.f32.mrb[84].mxu0  ;;  %vm2812_vm15 = vcmp.gt.f32.partialorder %v9989_v39, 0.0  ;;  %vm2813_vm1 = vcmp.gt.f32.partialorder %v2749_v48, 0.0  ;;  %v10063_v4 = vsel %vm7760_vm2, 0, %v3115_v52  ;;  %v10066_v46 = vsel %vm1024_vm3, %v3482_v60, %v3486_v22 }
 0x2d9   : > { %v2230_v36 = vpop.f32.mrb[85].mxu0  ;;  %13818 = vst [vmem:[#allocation26_spill] sm:$0xff] %v10063_v4  ;;  %13819 = vst [vmem:[#allocation27_spill] sm:$0xff] %v10066_v46  ;;  %v10069_v30 = vadd.f32 %v13796_v7, %v2682_v0  ;;  %v10072_v14 = vadd.f32 %v13796_v7, %v2683_v33  ;;  %v3899_v13 = vrot.slane %v10063_v4, 1  ;;  %v3900_v53 = vrot.slane %v10051_v28, 1  ;;  %3750 = vrot.lane.b32.xlu1 %v10066_v46, %s7693_s19 }
 0x2da   : > { %v10055_v18 = vpop.f32.mrb[86].mxu0  ;;  %4238 = vrot.lane.b32.xlu0 %v10066_v46, %s7697_s28  ;;  %v2616_v36 = vsel %vm2488_vm0, %v2424_v42, %v2552_v20  ;;  %v2617_v52 = vsel %vm2489_vm9, %v2425_v62, %v2553_v5  ;;  %v4605_v60 = vsel %vm1666_vm12, %v4510_v19, %v9920_v8  ;;  %v2554_v0 = vmul.f32 0.2, %v2426_v44 }
 0x2db   : > { %v2233_v55 = vpop.f32.mrb[87].mxu0  ;;  %v10083_v22 = vsel %vm1297_vm4, %v3899_v13, %v3900_v53  ;;  %v2427_v33 = vadd.f32 %v13793_v23, %v2359_v34  ;;  %v2941_v28 = vsel %vm2813_vm1, %v2749_v48, %v2877_v51  ;;  %vm2490_vm5 = vcmp.gt.f32.partialorder %v2426_v44, 0.0 }
 0x2dc   : > { %v2940_v55 = vsel %vm2812_vm15, %v9989_v39, %v2876_v61  ;;  %7527 = vmatprep.mubr.msk.bf16.mxu0 %vm1582_vm8, %v10083_v22  ;;  %v2221_v8 = vadd.f32 %v9600_v56, %v9976_v17  ;;  %v4669_v62 = vsel %vm1764_vm14, %v4605_v60, %v9986_v3  ;;  %v10101_v39 = vsel %vm1582_vm8, %v9201_v10, %v9891_v50 }
 0x2dd   : > { %v2988_v42 = vpack.c.bf16 %v2941_v28, %v2940_v55  ;;  %v2878_v51 = vmul.f32 0.2, %v10069_v30  ;;  %v2879_v61 = vmul.f32 0.2, %v10072_v14  ;;  %4034 = vrot.lane.b32.xlu1 %v9845_v9, %s7697_s28  ;;  %v2684_v3 = vmul.f32 %v13794_v27, %v2616_v36  ;;  %5042 = vmatprep.mubr.bf16.mxu1 %v4669_v62 }
 0x2de   : > { %4176 = vrot.lane.b32.xlu0 %v9845_v9, %s7698_s27  ;;  %v2685_v48 = vmul.f32 %v13794_v27, %v2617_v52  ;;  %v4413_v50 = vsel %vm1764_vm14, %v10013_v31, %v9819_v6  ;;  %v2618_v5 = vsel %vm2490_vm5, %v2426_v44, %v2554_v0  ;;  %vm2491_vm6 = vcmp.gt.f32.partialorder %v2427_v33, 0.0  ;;  %v7647_v6 = vld [vmem:[%s13570_s5 + $0x80] sm:$0xff]  }
 0x2df   : > { %v10109_v17 = vpop.permute.xlu1 %3734  ;;  %v10111_v28 = vpop.permute.xlu0 %4222  ;;  %v3117_v10 = vshrl.u32 %v2988_v42, 16  ;;  %v2555_v34 = vmul.f32 0.2, %v2427_v33  ;;  %5043 = vmatmul.mubr.bf16.vlgmr.msra.gmra.mrb[0].mxu1 %v4413_v50  ;;  %v3491_v13 = vshll.u32 %v9845_v9, 16  ;;  %v3120_v36 = vshll.u32 %v2988_v42, 16 }
 0x2e0   : > { %v10090_v4 = vpop.f32.mrb[88].mxu0  ;;  %v2360_v52 = vmul.f32 %v13792_v43, %v2221_v8  ;;  %v3496_v55 = vshll.u32 %v9833_v12, 16  ;;  %7599 = vmatpush3.bf16.msra.mxu1 %v7647_v6  ;;  %vm2815_vm13 = vcmp.gt.f32.partialorder %v10072_v14, 0.0  ;;  %v2224_v31 = vadd.f32 %v9600_v56, %v10009_v11  ;;  %v7648_v11 = vld [vmem:[%s13570_s5 + $0x88] sm:$0xff]  }
 0x2e1   : > { %v2238_v19 = vpop.f32.mrb[89].mxu0  ;;  %v3119_v60 = vrot.slane %v3117_v10, 7  ;;  %3971 = vrot.lane.b32.xlu1 %v9865_v15, %s7698_s27  ;;  %v3489_v44 = vshrl.u32 %v9845_v9, 16  ;;  %v3493_v0 = vrot.slane %v3491_v13, 1  ;;  %vm2814_vm7 = vcmp.gt.f32.partialorder %v10069_v30, 0.0  ;;  %7598 = vmatprep.subr.bf16.mxu1 %v7648_v11 }
 0x2e2   : > { %v10118_v20 = vpop.f32.mrb[90].mxu0  ;;  %4114 = vrot.lane.b32.xlu0 %v9865_v15, %s7693_s19  ;;  %v10141_v8 = vadd.f32 %v13796_v7, %v2684_v3  ;;  %v10151_v15 = vadd.f32 %v13796_v7, %v2685_v48  ;;  %v2686_v10 = vmul.f32 %v13794_v27, %v2618_v5  ;;  %v2619_v50 = vsel %vm2491_vm6, %v2427_v33, %v2555_v34 }
 0x2e3   : > { %v2241_v53 = vpop.f32.mrb[91].mxu0  ;;  %v10135_v12 = vpop.permute.xlu1 %4018  ;;  %v3122_v62 = vor.u32 %v3120_v36, %v3119_v60  ;;  %v10145_v19 = vsel %vm7760_vm2, %v3119_v60, 0  ;;  %v3494_v13 = vor.u32 %v3493_v0, %v3489_v44  ;;  %v2428_v60 = vadd.f32 %v13793_v23, %v2360_v52 }
 0x2e4   : > { %v10137_v42 = vpop.permute.xlu0 %4160  ;;  %v3498_v36 = vrot.slane %v3496_v55, 1  ;;  %v2943_v6 = vsel %vm2815_vm13, %v10072_v14, %v2879_v61  ;;  %7600 = vmatpush3.bf16.msra.mxu1 %v7648_v11  ;;  %v3903_v33 = vrot.slane %v10145_v19, 1  ;;  %v2361_v34 = vmul.f32 %v13792_v43, %v2224_v31 }
 0x2e5   : > { %v10159_v53 = vsel %vm7760_vm2, 0, %v3122_v62  ;;  %v2942_v44 = vsel %vm2814_vm7, %v10069_v30, %v2878_v51  ;;  %v2880_v55 = vmul.f32 0.2, %v10141_v8  ;;  %v2229_v62 = vadd.f32 %v9600_v56, %v10040_v40 }
 0x2e6   : > { %13820 = vst [vmem:[#allocation28_spill] sm:$0xff] %v10159_v53  ;;  %v3902_v5 = vrot.slane %v10159_v53, 1  ;;  %v10177_v14 = vsel %vm1024_vm3, %v3494_v13, %v3498_v36  ;;  %v2989_v61 = vpack.c.bf16 %v2943_v6, %v2942_v44  ;;  %v2881_v31 = vmul.f32 0.2, %v10151_v15 }
 0x2e7   : > { %v10171_v0 = vpop.permute.xlu1 %3955  ;;  %13821 = vst [vmem:[#allocation29_spill] sm:$0xff] %v10177_v14  ;;  %v4513_v30 = vsel %vm1582_vm8, %v9356_v47, %v9941_v37  ;;  %3752 = vrot.lane.b32.xlu1 %v10177_v14, %s7693_s19  ;;  %4240 = vrot.lane.b32.xlu0 %v10177_v14, %s7697_s28  ;;  %v2687_v13 = vmul.f32 %v13794_v27, %v2619_v50  ;;  %vm2492_vm0 = vcmp.gt.f32.partialorder %v2428_v60, 0.0  ;;  %v2556_v37 = vmul.f32 0.2, %v2428_v60 }
 0x2e8   : > { %v10155_v3 = vpop.f32.mrb[92].mxu0  ;;  %v10173_v52 = vpop.permute.xlu0 %4098  ;;  %v10191_v51 = vsel %vm1297_vm4, %v3902_v5, %v3903_v33  ;;  %v3124_v47 = vshrl.u32 %v2989_v61, 16  ;;  %v2429_v36 = vadd.f32 %v13793_v23, %v2361_v34  ;;  %v2232_v6 = vadd.f32 %v9600_v56, %v10055_v18 }
 0x2e9   : > { %v2246_v48 = vpop.f32.mrb[93].mxu0  ;;  %7528 = vmatmul.mubr.msk.bf16.gmra.mrb[156].mxu0 %vm1582_vm8, %v10191_v51  ;;  %v2362_v9 = vmul.f32 %v13792_v43, %v2229_v62  ;;  %vm2817_vm9 = vcmp.gt.f32.partialorder %v10151_v15, 0.0  ;;  %vm2816_vm15 = vcmp.gt.f32.partialorder %v10141_v8, 0.0  ;;  %v4516_v46 = vsel %vm1582_vm8, %v9453_v58, %v10058_v29 }
 0x2ea   : > { %v10181_v11 = vpop.f32.mrb[94].mxu0  ;;  %v10185_v48 = vadd.f32 %v13796_v7, %v2686_v10  ;;  %v4607_v10 = vsel %vm1666_vm12, %v4513_v30, %v10026_v16  ;;  %v3126_v44 = vrot.slane %v3124_v47, 7  ;;  %v4351_v16 = vsel %vm1666_vm12, %v10101_v39, %v9850_v45 }
 0x2eb   : > { %v2249_v40 = vpop.f32.mrb[95].mxu0  ;;  %v4672_v5 = vsel %vm1764_vm14, %v4607_v10, %v10111_v28  ;;  %v10207_v33 = vpop.permute.xlu1 %3736  ;;  %4036 = vrot.lane.b32.xlu1 %v9871_v38, %s7697_s28  ;;  %4178 = vrot.lane.b32.xlu0 %v9871_v38, %s7698_s27  ;;  %v2363_v56 = vmul.f32 %v13792_v43, %v2232_v6  ;;  %v4416_v18 = vsel %vm1764_vm14, %v4351_v16, %v9918_v63  ;;  %v3503_v28 = vshll.u32 %v9871_v38, 16 }
 0x2ec   : > { %v10209_v50 = vpop.permute.xlu0 %4224  ;;  %v3127_v40 = vshll.u32 %v2989_v61, 16  ;;  %5050 = vmatprep.mubr.bf16.mxu1 %v4672_v5  ;;  %v10228_v45 = vadd.f32 %v13796_v7, %v2687_v13  ;;  %v10232_v61 = vsel %vm7760_vm2, %v3126_v44, 0  ;;  %vm2818_vm1 = vcmp.gt.f32.partialorder %v10185_v48, 0.0 }
 0x2ed   : > { %13822 = vst [vmem:[#allocation30_spill] sm:$0xff] %v10232_v61  ;;  %5051 = vmatmul.mubr.bf16.gmra.mrb[4].mxu1 %v4416_v18  ;;  %v2620_v63 = vsel %vm2492_vm0, %v2428_v60, %v2556_v37  ;;  %vm2493_vm5 = vcmp.gt.f32.partialorder %v2429_v36, 0.0  ;;  %v2557_v30 = vmul.f32 0.2, %v2429_v36  ;;  %v3501_v10 = vshrl.u32 %v9871_v38, 16 }
 0x2ee   : > { %v3129_v39 = vor.u32 %v3127_v40, %v3126_v44  ;;  %v2430_v5 = vadd.f32 %v13793_v23, %v2362_v9  ;;  %v2945_v44 = vsel %vm2817_vm9, %v10151_v15, %v2881_v31  ;;  %v3505_v40 = vrot.slane %v3503_v28, 1 }
 0x2ef   : > { %v10237_v47 = vpop.permute.xlu1 %4020  ;;  %v3906_v16 = vrot.slane %v10232_v61, 1  ;;  %v2431_v18 = vadd.f32 %v13793_v23, %v2363_v56  ;;  %3973 = vrot.lane.b32.xlu1 %v9886_v25, %s7698_s27  ;;  %4116 = vrot.lane.b32.xlu0 %v9886_v25, %s7693_s19  ;;  %v2944_v9 = vsel %vm2816_vm15, %v10141_v8, %v2880_v55  ;;  %v2882_v31 = vmul.f32 0.2, %v10185_v48  ;;  %v10270_v25 = vld [vmem:[%s13569_s4] ss:$0 sm:$0xff] }
 0x2f0   : > { %v10224_v34 = vpop.f32.mrb[96].mxu0  ;;  %v10239_v6 = vpop.permute.xlu0 %4162  ;;  %v10243_v13 = vsel %vm7760_vm2, 0, %v3129_v39  ;;  %v2883_v28 = vmul.f32 0.2, %v10228_v45  ;;  %v2990_v39 = vpack.c.bf16 %v2945_v44, %v2944_v9  ;;  %v3506_v38 = vor.u32 %v3505_v40, %v3501_v10 }
 0x2f1   : > { %v2254_v62 = vpop.f32.mrb[97].mxu0  ;;  %13823 = vst [vmem:[#allocation31_spill] sm:$0xff] %v10243_v13  ;;  %v3905_v37 = vrot.slane %v10243_v13, 1  ;;  %v2237_v8 = vadd.f32 %v10270_v25, %v10090_v4  ;;  %v2240_v55 = vadd.f32 %v10270_v25, %v10118_v20  ;;  %v2621_v44 = vsel %vm2493_vm5, %v2429_v36, %v2557_v30 }
 0x2f2   : > { %v10249_v60 = vpop.f32.mrb[98].mxu0  ;;  %v3508_v62 = vshll.u32 %v9859_v59, 16  ;;  %v2558_v59 = vmul.f32 0.2, %v2430_v5  ;;  %v3131_v10 = vshrl.u32 %v2990_v39, 16  ;;  %vm2494_vm6 = vcmp.gt.f32.partialorder %v2430_v5, 0.0 }
 0x2f3   : > { %v2257_v15 = vpop.f32.mrb[99].mxu0  ;;  %v10265_v56 = vsel %vm1297_vm4, %v3905_v37, %v3906_v16  ;;  %v10280_v40 = vpop.permute.xlu1 %3957  ;;  %v2559_v16 = vmul.f32 0.2, %v2431_v18  ;;  %v2364_v4 = vmul.f32 %v13792_v43, %v2237_v8  ;;  %v2365_v14 = vmul.f32 %v13792_v43, %v2240_v55 }
 0x2f4   : > { %v2688_v15 = vmul.f32 %v13794_v27, %v2620_v63  ;;  %7531 = vmatprep.mubr.msk.bf16.mxu0 %vm1582_vm8, %v10265_v56  ;;  %v10282_v37 = vpop.permute.xlu0 %4100  ;;  %v3510_v9 = vrot.slane %v3508_v62, 1  ;;  %vm2495_vm13 = vcmp.gt.f32.partialorder %v2431_v18, 0.0  ;;  %v3133_v36 = vrot.slane %v3131_v10, 7 }
 0x2f5   : > { %v3134_v63 = vshll.u32 %v2990_v39, 16  ;;  %vm2819_vm7 = vcmp.gt.f32.partialorder %v10228_v45, 0.0  ;;  %v2432_v62 = vadd.f32 %v13793_v23, %v2364_v4  ;;  %v2689_v10 = vmul.f32 %v13794_v27, %v2621_v44 }
 0x2f6   : > { %v10293_v61 = vsel %vm1024_vm3, %v3506_v38, %v3510_v9  ;;  %v10299_v55 = vadd.f32 %v13796_v7, %v2688_v15  ;;  %v2622_v38 = vsel %vm2494_vm6, %v2430_v5, %v2558_v59  ;;  %v2623_v29 = vsel %vm2495_vm13, %v2431_v18, %v2559_v16 }
 0x2f7   : > { %13824 = vst [vmem:[#allocation32_spill] sm:$0xff] %v10293_v61  ;;  %v3136_v39 = vor.u32 %v3134_v63, %v3133_v36  ;;  %3754 = vrot.lane.b32.xlu1 %v10293_v61, %s7693_s19  ;;  %4242 = vrot.lane.b32.xlu0 %v10293_v61, %s7697_s28  ;;  %v4609_v15 = vsel %vm1666_vm12, %v4516_v46, %v10137_v42  ;;  %v2560_v4 = vmul.f32 0.2, %v2432_v62  ;;  %vm2496_vm0 = vcmp.gt.f32.partialorder %v2432_v62, 0.0 }
 0x2f8   : > { %v10286_v20 = vpop.f32.mrb[100].mxu0  ;;  %v2433_v44 = vadd.f32 %v13793_v23, %v2365_v14  ;;  %v2947_v5 = vsel %vm2819_vm7, %v10228_v45, %v2883_v28  ;;  %v4289_v16 = vsel %vm1582_vm8, %v9322_v1, %v9984_v24  ;;  %v4675_v45 = vsel %vm1764_vm14, %v4609_v15, %v10209_v50 }
 0x2f9   : > { %v2262_v30 = vpop.f32.mrb[101].mxu0  ;;  %v10317_v9 = vsel %vm7760_vm2, 0, %v3136_v39  ;;  %vm2820_vm9 = vcmp.gt.f32.partialorder %v10299_v55, 0.0  ;;  %5058 = vmatprep.mubr.bf16.mxu1 %v4675_v45  ;;  %v2691_v24 = vmul.f32 %v13794_v27, %v2623_v29  ;;  %v2884_v29 = vmul.f32 0.2, %v10299_v55 }
 0x2fa   : > { %v10296_v8 = vpop.f32.mrb[102].mxu0  ;;  %v10304_v30 = vsel %vm7760_vm2, %v3133_v36, 0  ;;  %v2946_v36 = vsel %vm2818_vm1, %v10185_v48, %v2882_v31  ;;  %v10325_v59 = vpop.permute.xlu1 %3738  ;;  %v3908_v46 = vrot.slane %v10317_v9, 1  ;;  %v2757_v48 = vadd.f32 %v13796_v7, %v2689_v10 }
 0x2fb   : > { %v2265_v58 = vpop.f32.mrb[103].mxu0  ;;  %v10327_v18 = vpop.permute.xlu0 %4226  ;;  %v3909_v42 = vrot.slane %v10304_v30, 1  ;;  %v2991_v14 = vpack.c.bf16 %v2947_v5, %v2946_v36  ;;  %4038 = vrot.lane.b32.xlu1 %v9958_v35, %s7697_s28  ;;  %4180 = vrot.lane.b32.xlu0 %v9958_v35, %s7698_s27  ;;  %v2690_v31 = vmul.f32 %v13794_v27, %v2622_v38  ;;  %v2624_v10 = vsel %vm2496_vm0, %v2432_v62, %v2560_v4 }
 0x2fc   : > { %vm2497_vm15 = vcmp.gt.f32.partialorder %v2433_v44, 0.0  ;;  %v2561_v39 = vmul.f32 0.2, %v2433_v44  ;;  %v2245_v36 = vadd.f32 %v10270_v25, %v10155_v3  ;;  %v4353_v5 = vsel %vm1666_vm12, %v4289_v16, %v9939_v26 }
 0x2fd   : > { %v10344_v28 = vsel %vm1297_vm4, %v3908_v46, %v3909_v42  ;;  %v3138_v63 = vshrl.u32 %v2991_v14, 16  ;;  %v3141_v15 = vshll.u32 %v2991_v14, 16  ;;  %vm2821_vm1 = vcmp.gt.f32.partialorder %v2757_v48, 0.0 }
 0x2fe   : > { %7532 = vmatmul.mubr.msk.bf16.gmra.mrb[160].mxu0 %vm1582_vm8, %v10344_v28  ;;  %v10351_v50 = vpop.permute.xlu1 %4022  ;;  %v4419_v62 = vsel %vm1764_vm14, %v4353_v5, %v10018_v57  ;;  %v2248_v4 = vadd.f32 %v10270_v25, %v10181_v11  ;;  %v2885_v42 = vmul.f32 0.2, %v2757_v48  ;;  %v2692_v26 = vmul.f32 %v13794_v27, %v2624_v10 }
 0x2ff   : > { %v10353_v58 = vpop.permute.xlu0 %4164  ;;  %v3140_v38 = vrot.slane %v3138_v63, 7  ;;  %3975 = vrot.lane.b32.xlu1 %v9979_v41, %s7698_s27  ;;  %4118 = vrot.lane.b32.xlu0 %v9979_v41, %s7693_s19  ;;  %v10376_v41 = vadd.f32 %v13796_v7, %v2690_v31  ;;  %v2759_v57 = vadd.f32 %v13796_v7, %v2691_v24  ;;  %v2625_v63 = vsel %vm2497_vm15, %v2433_v44, %v2561_v39 }
 0x300   : > { %v10346_v1 = vpop.f32.mrb[104].mxu0  ;;  %5059 = vmatmul.mubr.bf16.gmra.mrb[8].mxu1 %v4419_v62  ;;  %v4519_v11 = vsel %vm1582_vm8, %v9510_v21, %v10173_v52  ;;  %v3515_v31 = vshll.u32 %v9958_v35, 16  ;;  %v3520_v24 = vshll.u32 %v9946_v54, 16  ;;  %v2367_v21 = vmul.f32 %v13792_v43, %v2248_v4 }
 0x301   : > { %v2270_v46 = vpop.f32.mrb[105].mxu0  ;;  %v3143_v14 = vor.u32 %v3141_v15, %v3140_v38  ;;  %v10373_v16 = vsel %vm7760_vm2, %v3140_v38, 0  ;;  %v2366_v15 = vmul.f32 %v13792_v43, %v2245_v36  ;;  %v3513_v52 = vshrl.u32 %v9958_v35, 16 }
 0x302   : > { %v10368_v3 = vpop.f32.mrb[106].mxu0  ;;  %13825 = vst [vmem:[#allocation33_spill] sm:$0xff] %v10373_v16  ;;  %v10383_v5 = vpop.permute.xlu1 %3959  ;;  %v3912_v39 = vrot.slane %v10373_v16, 1  ;;  %v10399_v46 = vadd.f32 %v13796_v7, %v2692_v26  ;;  %v2693_v62 = vmul.f32 %v13794_v27, %v2625_v63  ;;  %v4611_v36 = vsel %vm1666_vm12, %v4519_v11, %v10239_v6 }
 0x303   : > { %v2273_v45 = vpop.f32.mrb[107].mxu0  ;;  %v10385_v10 = vpop.permute.xlu0 %4102  ;;  %v10389_v38 = vsel %vm7760_vm2, 0, %v3143_v14  ;;  %v3517_v14 = vrot.slane %v3515_v31, 1  ;;  %v2948_v4 = vsel %vm2820_vm9, %v10299_v55, %v2884_v29  ;;  %v2949_v35 = vsel %vm2821_vm1, %v2757_v48, %v2885_v42 }
 0x304   : > { %13826 = vst [vmem:[#allocation34_spill] sm:$0xff] %v10389_v38  ;;  %v3911_v44 = vrot.slane %v10389_v38, 1  ;;  %v2253_v26 = vadd.f32 %v10270_v25, %v10224_v34  ;;  %v2434_v6 = vadd.f32 %v13793_v23, %v2366_v15  ;;  %v3522_v11 = vrot.slane %v3520_v24, 1 }
 0x305   : > { %v3518_v63 = vor.u32 %v3517_v14, %v3513_v52  ;;  %v2992_v31 = vpack.c.bf16 %v2949_v35, %v2948_v4  ;;  %v4291_v55 = vsel %vm1582_vm8, %v9379_v49, %v10109_v17  ;;  %v2887_v48 = vmul.f32 0.2, %v2759_v57 }
 0x306   : > { %v10407_v54 = vsel %vm1297_vm4, %v3911_v44, %v3912_v39  ;;  %v10415_v61 = vpop.permute.xlu1 %3740  ;;  %v2435_v34 = vadd.f32 %v13793_v23, %v2367_v21  ;;  %v4678_v29 = vsel %vm1764_vm14, %v4611_v36, %v10327_v18  ;;  %v10431_v15 = vadd.f32 %v13796_v7, %v2693_v62  ;;  %v13829_v62 = vld [vmem:[#allocation9_spill] sm:$0xff] }
 0x307   : > { %13827 = vst [vmem:[#allocation35_spill] sm:$0xff] %v10407_v54  ;;  %7535 = vmatprep.mubr.msk.bf16.mxu0 %vm1582_vm8, %v10407_v54  ;;  %v10420_v44 = vpop.permute.xlu0 %4228  ;;  %v10434_v35 = vsel %vm1024_vm3, %v3518_v63, %v3522_v11  ;;  %v2368_v24 = vmul.f32 %v13792_v43, %v2253_v26  ;;  %v2256_v52 = vadd.f32 %v10270_v25, %v10249_v60  ;;  %vm2822_vm5 = vcmp.gt.f32.partialorder %v10376_v41, 0.0 }
 0x308   : > { %v10404_v45 = vpop.f32.mrb[108].mxu0  ;;  %13828 = vst [vmem:[#allocation36_spill] sm:$0xff] %v10434_v35  ;;  %5066 = vmatprep.mubr.bf16.mxu1 %v4678_v29  ;;  %v2886_v17 = vmul.f32 0.2, %v10376_v41  ;;  %vm2823_vm6 = vcmp.gt.f32.partialorder %v2759_v57, 0.0  ;;  %3756 = vrot.lane.b32.xlu1 %v10434_v35, %s7693_s19  ;;  %v3145_v18 = vshrl.u32 %v2992_v31, 16  ;;  %v10451_v60 = vsel %vm1582_vm8, %v13829_v62, %v10207_v33 }
 0x309   : > { %v2278_v39 = vpop.f32.mrb[109].mxu0  ;;  %4244 = vrot.lane.b32.xlu0 %v10434_v35, %s7697_s28  ;;  %v10446_v21 = vmul.f32 0.2, %v10399_v46  ;;  %vm2498_vm13 = vcmp.gt.f32.partialorder %v2434_v6, 0.0  ;;  %v2562_v36 = vmul.f32 0.2, %v2434_v6  ;;  %v2436_v11 = vadd.f32 %v13793_v23, %v2368_v24 }
 0x30a   : > { %v10428_v42 = vpop.f32.mrb[110].mxu0  ;;  %vm2499_vm7 = vcmp.gt.f32.partialorder %v2435_v34, 0.0  ;;  %v2563_v14 = vmul.f32 0.2, %v2435_v34  ;;  %v3147_v4 = vrot.slane %v3145_v18, 7  ;;  %v3148_v26 = vshll.u32 %v2992_v31, 16  ;;  %v10453_v63 = vpop.permute.xlu1 %4024 }
 0x30b   : > { %v2281_v49 = vpop.f32.mrb[111].mxu0  ;;  %vm2824_vm0 = vcmp.gt.f32.partialorder %v10399_v46, 0.0  ;;  %vm2825_vm9 = vcmp.gt.f32.partialorder %v10431_v15, 0.0  ;;  %v2369_v39 = vmul.f32 %v13792_v43, %v2256_v52  ;;  %v4355_v33 = vsel %vm1666_vm12, %v4291_v55, %v10053_v32  ;;  %v13831_v35 = vld [vmem:[#allocation23_spill] sm:$0xff]  ;;  %v13832_v24 = vld [vmem:[#allocation14_spill] sm:$0xff] }
 0x30c   : > { %v2951_v29 = vsel %vm2823_vm6, %v2759_v57, %v2887_v48  ;;  %v10462_v49 = vpop.permute.xlu0 %4166  ;;  %v3150_v31 = vor.u32 %v3148_v26, %v3147_v4  ;;  %v10468_v18 = vsel %vm7760_vm2, %v3147_v4, 0  ;;  %4040 = vrot.lane.b32.xlu1 %v13831_v35, %s7697_s28  ;;  %v4422_v32 = vsel %vm1764_vm14, %v4355_v33, %v10135_v12 }
 0x30d   : > { %13830 = vst [vmem:[#allocation9_spill] sm:$0xff] %v10468_v18  ;;  %4182 = vrot.lane.b32.xlu0 %v13831_v35, %s7698_s27  ;;  %v2950_v57 = vsel %vm2822_vm5, %v10376_v41, %v2886_v17  ;;  %v2889_v55 = vmul.f32 0.2, %v10431_v15  ;;  %v2626_v48 = vsel %vm2498_vm13, %v2434_v6, %v2562_v36  ;;  %v4522_v52 = vsel %vm1582_vm8, %v13832_v24, %v10282_v37  ;;  %v13834_v41 = vld [vmem:[#allocation22_spill] sm:$0xff] }
 0x30e   : > { %5067 = vmatmul.mubr.bf16.gmra.mrb[12].mxu1 %v4422_v32  ;;  %v2993_v4 = vpack.c.bf16 %v2951_v29, %v2950_v57  ;;  %v2627_v54 = vsel %vm2499_vm7, %v2435_v34, %v2563_v14  ;;  %v10487_v12 = vsel %vm7760_vm2, 0, %v3150_v31  ;;  %v3527_v33 = vshll.u32 %v13831_v35, 16  ;;  %v13835_v31 = vld [vmem:[#allocation24_spill] sm:$0xff] }
 0x30f   : > { %13833 = vst [vmem:[#allocation14_spill] sm:$0xff] %v10487_v12  ;;  %v3532_v17 = vshll.u32 %v13834_v41, 16  ;;  %v3914_v6 = vrot.slane %v10487_v12, 1  ;;  %v3915_v36 = vrot.slane %v10468_v18, 1  ;;  %v2261_v29 = vadd.f32 %v10270_v25, %v10286_v20  ;;  %v10506_v20 = vpop.permute.xlu1 %3961 }
 0x310   : > { %v10464_v62 = vpop.f32.mrb[112].mxu0  ;;  %v3152_v37 = vshrl.u32 %v2993_v4, 16  ;;  %v2564_v34 = vmul.f32 0.2, %v2436_v11  ;;  %v2437_v14 = vadd.f32 %v13793_v23, %v2369_v39  ;;  %3977 = vrot.lane.b32.xlu1 %v13835_v31, %s7698_s27  ;;  %v3525_v57 = vshrl.u32 %v13831_v35, 16 }
 0x311   : > { %v2286_v26 = vpop.f32.mrb[113].mxu0  ;;  %4120 = vrot.lane.b32.xlu0 %v13835_v31, %s7693_s19  ;;  %v3529_v24 = vrot.slane %v3527_v33, 1  ;;  %vm2500_vm15 = vcmp.gt.f32.partialorder %v2436_v11, 0.0  ;;  %v3155_v18 = vshll.u32 %v2993_v4, 16  ;;  %v2694_v39 = vmul.f32 %v13794_v27, %v2626_v48 }
 0x312   : > { %v10491_v16 = vpop.f32.mrb[114].mxu0  ;;  %v10504_v26 = vsel %vm1297_vm4, %v3914_v6, %v3915_v36  ;;  %v3154_v41 = vrot.slane %v3152_v37, 7  ;;  %v3534_v31 = vrot.slane %v3532_v17, 1  ;;  %v2264_v33 = vadd.f32 %v10270_v25, %v10296_v8 }
 0x313   : > { %v2289_v32 = vpop.f32.mrb[115].mxu0  ;;  %13836 = vst [vmem:[#allocation22_spill] sm:$0xff] %v10504_v26  ;;  %7536 = vmatmul.mubr.msk.bf16.gmra.mrb[164].mxu0 %vm1582_vm8, %v10504_v26  ;;  %v3530_v12 = vor.u32 %v3529_v24, %v3525_v57  ;;  %v2695_v6 = vmul.f32 %v13794_v27, %v2627_v54  ;;  %v2370_v37 = vmul.f32 %v13792_v43, %v2261_v29  ;;  %vm2501_vm1 = vcmp.gt.f32.partialorder %v2437_v14, 0.0 }
 0x314   : > { %v10508_v32 = vpop.permute.xlu0 %4104  ;;  %v3157_v36 = vor.u32 %v3155_v18, %v3154_v41  ;;  %v10518_v4 = vsel %vm7760_vm2, %v3154_v41, 0  ;;  %v2628_v48 = vsel %vm2500_vm15, %v2436_v11, %v2564_v34  ;;  %v4613_v57 = vsel %vm1666_vm12, %v4522_v52, %v10353_v58 }
 0x315   : > { %13837 = vst [vmem:[#allocation24_spill] sm:$0xff] %v10518_v4  ;;  %v10526_v17 = vsel %vm1024_vm3, %v3530_v12, %v3534_v31  ;;  %v2565_v24 = vmul.f32 0.2, %v2437_v14  ;;  %v3918_v18 = vrot.slane %v10518_v4, 1  ;;  %v2371_v11 = vmul.f32 %v13792_v43, %v2264_v33 }
 0x316   : > { %13838 = vst [vmem:[#allocation37_spill] sm:$0xff] %v10526_v17  ;;  %v10530_v54 = vsel %vm7760_vm2, 0, %v3157_v36  ;;  %3758 = vrot.lane.b32.xlu1 %v10526_v17, %s7693_s19  ;;  %4246 = vrot.lane.b32.xlu0 %v10526_v17, %s7697_s28  ;;  %v2952_v12 = vsel %vm2824_vm0, %v10399_v46, %v10446_v21  ;;  %v2953_v29 = vsel %vm2825_vm9, %v10431_v15, %v2889_v55 }
 0x317   : > { %13839 = vst [vmem:[#allocation38_spill] sm:$0xff] %v10530_v54  ;;  %v3917_v52 = vrot.slane %v10530_v54, 1  ;;  %v4681_v34 = vsel %vm1764_vm14, %v4613_v57, %v10420_v44  ;;  %v2438_v31 = vadd.f32 %v13793_v23, %v2370_v37  ;;  %v2994_v33 = vpack.c.bf16 %v2953_v29, %v2952_v12  ;;  %v13841_v44 = vld [vmem:[#allocation26_spill] sm:$0xff]  ;;  %v13847_v54 = vld [vmem:[#allocation25_spill] sm:$0xff] }
 0x318   : > { %v10521_v35 = vpop.f32.mrb[116].mxu0  ;;  %5074 = vmatprep.mubr.bf16.mxu1 %v4681_v34  ;;  %v10551_v36 = vpop.permute.xlu1 %3742  ;;  %v2696_v17 = vmul.f32 %v13794_v27, %v2628_v48  ;;  %v2762_v21 = vadd.f32 %v13796_v7, %v2694_v39  ;;  %v2629_v15 = vsel %vm2501_vm1, %v2437_v14, %v2565_v24  ;;  %v4357_v37 = vsel %vm1666_vm12, %v10451_v60, %v10171_v0 }
 0x319   : > { %v2294_v8 = vpop.f32.mrb[117].mxu0  ;;  %v10557_v46 = vsel %vm1297_vm4, %v3917_v52, %v3918_v18  ;;  %v3159_v55 = vshrl.u32 %v2994_v33, 16  ;;  %v2763_v48 = vadd.f32 %v13796_v7, %v2695_v6  ;;  %v2439_v57 = vadd.f32 %v13793_v23, %v2371_v11 }
 0x31a   : > { %v10538_v58 = vpop.f32.mrb[118].mxu0  ;;  %v10553_v8 = vpop.permute.xlu0 %4230  ;;  %13840 = vst [vmem:[#allocation39_spill] sm:$0xff] %v10557_v46  ;;  %7539 = vmatprep.mubr.msk.bf16.mxu0 %vm1582_vm8, %v10557_v46  ;;  %4042 = vrot.lane.b32.xlu1 %v13841_v44, %s7697_s28  ;;  %v2269_v14 = vadd.f32 %v10270_v25, %v10346_v1  ;;  %v4425_v39 = vsel %vm1764_vm14, %v4357_v37, %v10237_v47  ;;  %v2566_v24 = vmul.f32 0.2, %v2438_v31  ;;  %v3162_v52 = vshll.u32 %v2994_v33, 16  ;;  %v13842_v1 = vld [vmem:[#allocation17_spill] sm:$0xff] }
 0x31b   : > { %v2297_v41 = vpop.f32.mrb[119].mxu0  ;;  %4184 = vrot.lane.b32.xlu0 %v13841_v44, %s7698_s27  ;;  %v3161_v18 = vrot.slane %v3159_v55, 7  ;;  %5075 = vmatmul.mubr.bf16.gmra.mrb[16].mxu1 %v4425_v39  ;;  %v10581_v60 = vadd.f32 %v13796_v7, %v2696_v17  ;;  %v2697_v6 = vmul.f32 %v13794_v27, %v2629_v15  ;;  %vm2502_vm5 = vcmp.gt.f32.partialorder %v2438_v31, 0.0 }
 0x31c   : > { %v10576_v12 = vpop.permute.xlu1 %4026  ;;  %vm2826_vm6 = vcmp.gt.f32.partialorder %v2762_v21, 0.0  ;;  %v10589_v47 = vsel %vm1582_vm8, %v13842_v1, %v10325_v59  ;;  %v2890_v41 = vmul.f32 0.2, %v2762_v21  ;;  %vm2827_vm13 = vcmp.gt.f32.partialorder %v2763_v48, 0.0 }
 0x31d   : > { %v3164_v29 = vor.u32 %v3162_v52, %v3161_v18  ;;  %v10593_v34 = vsel %vm7760_vm2, %v3161_v18, 0  ;;  %v2567_v33 = vmul.f32 0.2, %v2439_v57  ;;  %v2372_v15 = vmul.f32 %v13792_v43, %v2269_v14 }
 0x31e   : > { %v10578_v0 = vpop.permute.xlu0 %4168  ;;  %13843 = vst [vmem:[#allocation17_spill] sm:$0xff] %v10593_v34  ;;  %3979 = vrot.lane.b32.xlu1 %v10083_v22, %s7698_s27  ;;  %v2891_v59 = vmul.f32 0.2, %v2763_v48  ;;  %v2630_v37 = vsel %vm2502_vm5, %v2438_v31, %v2566_v24  ;;  %vm2503_vm7 = vcmp.gt.f32.partialorder %v2439_v57, 0.0  ;;  %vm2828_vm0 = vcmp.gt.f32.partialorder %v10581_v60, 0.0  ;;  %v13846_v24 = vld [vmem:[#allocation15_spill] sm:$0xff] }
 0x31f   : > { %4122 = vrot.lane.b32.xlu0 %v10083_v22, %s7693_s19  ;;  %v10604_v39 = vsel %vm7760_vm2, 0, %v3164_v29  ;;  %v2892_v14 = vmul.f32 0.2, %v10581_v60  ;;  %v2765_v1 = vadd.f32 %v13796_v7, %v2697_v6  ;;  %v4525_v29 = vsel %vm1582_vm8, %v13846_v24, %v10385_v10 }
 0x320   : > { %v10584_v11 = vpop.f32.mrb[120].mxu0  ;;  %13844 = vst [vmem:[#allocation40_spill] sm:$0xff] %v10604_v39  ;;  %v10606_v18 = vpop.permute.xlu1 %3963  ;;  %v3920_v22 = vrot.slane %v10604_v39, 1  ;;  %v2272_v46 = vadd.f32 %v10270_v25, %v10368_v3  ;;  %v3539_v4 = vshll.u32 %v13841_v44, 16  ;;  %v3544_v26 = vshll.u32 %v13847_v54, 16 }
 0x321   : > { %v2302_v17 = vpop.f32.mrb[121].mxu0  ;;  %13845 = vst [vmem:[#allocation41_spill] sm:$0xff] %v10606_v18  ;;  %v2698_v18 = vmul.f32 %v13794_v27, %v2630_v37  ;;  %v2631_v38 = vsel %vm2503_vm7, %v2439_v57, %v2567_v33  ;;  %v3537_v10 = vshrl.u32 %v13841_v44, 16  ;;  %v2954_v3 = vsel %vm2826_vm6, %v2762_v21, %v2890_v41 }
 0x322   : > { %v10600_v55 = vpop.f32.mrb[122].mxu0  ;;  %v10608_v52 = vpop.permute.xlu0 %4106  ;;  %v3921_v17 = vrot.slane %v10593_v34, 1  ;;  %v2440_v34 = vadd.f32 %v13793_v23, %v2372_v15  ;;  %v2955_v24 = vsel %vm2827_vm13, %v2763_v48, %v2891_v59  ;;  %vm2829_vm9 = vcmp.gt.f32.partialorder %v2765_v1, 0.0 }
 0x323   : > { %v2305_v31 = vpop.f32.mrb[123].mxu0  ;;  %v2893_v57 = vmul.f32 0.2, %v2765_v1  ;;  %v2995_v33 = vpack.c.bf16 %v2955_v24, %v2954_v3  ;;  %v2277_v15 = vadd.f32 %v10270_v25, %v10404_v45  ;;  %v3546_v21 = vrot.slane %v3544_v26, 1 }
 0x324   : > { %v10624_v6 = vsel %vm1297_vm4, %v3920_v22, %v3921_v17  ;;  %v3541_v31 = vrot.slane %v3539_v4, 1  ;;  %v10632_v39 = vpop.permute.xlu1 %3744  ;;  %v2699_v22 = vmul.f32 %v13794_v27, %v2631_v38  ;;  %v2373_v4 = vmul.f32 %v13792_v43, %v2272_v46 }
 0x325   : > { %7540 = vmatmul.mubr.msk.bf16.gmra.mrb[168].mxu0 %vm1582_vm8, %v10624_v6  ;;  %v10643_v48 = vadd.f32 %v13796_v7, %v2698_v18  ;;  %v4615_v59 = vsel %vm1666_vm12, %v4525_v29, %v10462_v49  ;;  %v3166_v44 = vshrl.u32 %v2995_v33, 16  ;;  %v2280_v3 = vadd.f32 %v10270_v25, %v10428_v42 }
 0x326   : > { %v10634_v54 = vpop.permute.xlu0 %4232  ;;  %v3542_v17 = vor.u32 %v3541_v31, %v3537_v10  ;;  %vm2504_vm15 = vcmp.gt.f32.partialorder %v2440_v34, 0.0  ;;  %v2568_v24 = vmul.f32 0.2, %v2440_v34  ;;  %v4684_v26 = vsel %vm1764_vm14, %v4615_v59, %v10553_v8 }
 0x327   : > { %v3168_v42 = vrot.slane %v3166_v44, 7  ;;  %v3169_v49 = vshll.u32 %v2995_v33, 16  ;;  %v2374_v29 = vmul.f32 %v13792_v43, %v2277_v15  ;;  %v4359_v10 = vsel %vm1666_vm12, %v10589_v47, %v10280_v40  ;;  %5082 = vmatprep.mubr.bf16.mxu1 %v4684_v26 }
 0x328   : > { %v10652_v38 = vsel %vm1024_vm3, %v3542_v17, %v3546_v21  ;;  %v10656_v46 = vpop.permute.xlu1 %4028  ;;  %v10669_v8 = vadd.f32 %v13796_v7, %v2699_v22  ;;  %v13849_v17 = vld [vmem:[#allocation12_spill] sm:$0xff]  ;;  %v4428_v44 = vsel %vm1764_vm14, %v4359_v10, %v10351_v50  ;;  %v2375_v40 = vmul.f32 %v13792_v43, %v2280_v3 }
 0x329   : > { %v10638_v37 = vpop.f32.mrb[124].mxu0  ;;  %13848 = vst [vmem:[#allocation15_spill] sm:$0xff] %v10652_v38  ;;  %3760 = vrot.lane.b32.xlu1 %v10652_v38, %s7693_s19  ;;  %4248 = vrot.lane.b32.xlu0 %v10652_v38, %s7697_s28  ;;  %v10674_v21 = vsel %vm1582_vm8, %v13849_v17, %v10415_v61  ;;  %v3171_v33 = vor.u32 %v3169_v49, %v3168_v42  ;;  %v10681_v15 = vsel %vm7760_vm2, %v3168_v42, 0  ;;  %vm2830_vm1 = vcmp.gt.f32.partialorder %v10643_v48, 0.0 }
 0x32a   : > { %v2310_v41 = vpop.f32.mrb[125].mxu0  ;;  %v10658_v18 = vpop.permute.xlu0 %4170  ;;  %5083 = vmatmul.mubr.bf16.gmra.mrb[20].mxu1 %v4428_v44  ;;  %v2957_v47 = vsel %vm2829_vm9, %v2765_v1, %v2893_v57  ;;  %v2894_v61 = vmul.f32 0.2, %v10643_v48  ;;  %v2632_v22 = vsel %vm2504_vm15, %v2440_v34, %v2568_v24  ;;  %v2956_v50 = vsel %vm2828_vm0, %v10581_v60, %v2892_v14 }
 0x32b   : > { %v10649_v45 = vpop.f32.mrb[126].mxu0  ;;  %v2441_v41 = vadd.f32 %v13793_v23, %v2373_v4  ;;  %v10695_v59 = vsel %vm7760_vm2, 0, %v3171_v33  ;;  %v2442_v1 = vadd.f32 %v13793_v23, %v2374_v29  ;;  %v2996_v57 = vpack.c.bf16 %v2957_v47, %v2956_v50 }
 0x32c   : > { %v2313_v31 = vpop.f32.mrb[127].mxu0  ;;  %v10691_v4 = vpop.permute.xlu1 %3965  ;;  %v3551_v34 = vshll.u32 %v10159_v53, 16  ;;  %v3923_v14 = vrot.slane %v10695_v59, 1  ;;  %v3924_v24 = vrot.slane %v10681_v15, 1  ;;  %v3556_v26 = vshll.u32 %v10145_v19, 16 }
 0x32d   : > { %4044 = vrot.lane.b32.xlu1 %v10159_v53, %s7697_s28  ;;  %4186 = vrot.lane.b32.xlu0 %v10159_v53, %s7698_s27  ;;  %v2569_v60 = vmul.f32 0.2, %v2441_v41  ;;  %vm2831_vm5 = vcmp.gt.f32.partialorder %v10669_v8, 0.0  ;;  %vm2505_vm6 = vcmp.gt.f32.partialorder %v2441_v41, 0.0  ;;  %v2443_v42 = vadd.f32 %v13793_v23, %v2375_v40 }
 0x32e   : > { %v10703_v3 = vpop.permute.xlu0 %4108  ;;  %v3173_v49 = vshrl.u32 %v2996_v57, 16  ;;  %v2895_v29 = vmul.f32 0.2, %v10669_v8  ;;  %v10712_v10 = vsel %vm1297_vm4, %v3923_v14, %v3924_v24  ;;  %v3549_v31 = vshrl.u32 %v10159_v53, 16 }
 0x32f   : > { %v3553_v17 = vrot.slane %v3551_v34, 1  ;;  %v2700_v44 = vmul.f32 %v13794_v27, %v2632_v22  ;;  %7543 = vmatprep.mubr.msk.bf16.mxu0 %vm1582_vm8, %v10712_v10  ;;  %v2570_v19 = vmul.f32 0.2, %v2442_v1  ;;  %v3176_v40 = vshll.u32 %v2996_v57, 16 }
 0x330   : > { %v3175_v33 = vrot.slane %v3173_v49, 7  ;;  %v2633_v47 = vsel %vm2505_vm6, %v2441_v41, %v2569_v60  ;;  %vm2506_vm13 = vcmp.gt.f32.partialorder %v2442_v1, 0.0  ;;  %v3558_v14 = vrot.slane %v3556_v26, 1  ;;  %v13851_v41 = vld [vmem:[#allocation18_spill] sm:$0xff] }
 0x331   : > { %3981 = vrot.lane.b32.xlu1 %v10191_v51, %s7698_s27  ;;  %4124 = vrot.lane.b32.xlu0 %v10191_v51, %s7693_s19  ;;  %v3554_v50 = vor.u32 %v3553_v17, %v3549_v31  ;;  %v10722_v24 = vpop.permute.xlu1 %3746  ;;  %v2571_v34 = vmul.f32 0.2, %v2443_v42  ;;  %v2285_v38 = vadd.f32 %v10270_v25, %v10464_v62  ;;  %v4528_v57 = vsel %vm1582_vm8, %v13851_v41, %v10508_v32 }
 0x332   : > { %v3178_v22 = vor.u32 %v3176_v40, %v3175_v33  ;;  %v10726_v53 = vsel %vm7760_vm2, %v3175_v33, 0  ;;  %v10730_v49 = vpop.permute.xlu0 %4234  ;;  %vm2507_vm7 = vcmp.gt.f32.partialorder %v2443_v42, 0.0  ;;  %v2288_v60 = vadd.f32 %v10270_v25, %v10491_v16 }
 0x333   : > { %13850 = vst [vmem:[#allocation25_spill] sm:$0xff] %v10726_v53  ;;  %v10736_v51 = vsel %vm1024_vm3, %v3554_v50, %v3558_v14  ;;  %v2701_v31 = vmul.f32 %v13794_v27, %v2633_v47  ;;  %v2634_v17 = vsel %vm2506_vm13, %v2442_v1, %v2570_v19  ;;  %v4617_v62 = vsel %vm1666_vm12, %v4528_v57, %v10578_v0 }
 0x334   : > { %13852 = vst [vmem:[#allocation12_spill] sm:$0xff] %v10736_v51  ;;  %v10748_v33 = vsel %vm7760_vm2, 0, %v3178_v22  ;;  %v3927_v40 = vrot.slane %v10726_v53, 1  ;;  %v2958_v0 = vsel %vm2830_vm1, %v10643_v48, %v2894_v61  ;;  %v2959_v1 = vsel %vm2831_vm5, %v10669_v8, %v2895_v29 }
 0x335   : > { %13854 = vst [vmem:[#allocation42_spill] sm:$0xff] %v10748_v33  ;;  %3762 = vrot.lane.b32.xlu1 %v10736_v51, %s7693_s19  ;;  %v3926_v16 = vrot.slane %v10748_v33, 1  ;;  %4250 = vrot.lane.b32.xlu0 %v10736_v51, %s7697_s28  ;;  %v10764_v19 = vpop.permute.xlu1 %4030  ;;  %v2635_v50 = vsel %vm2507_vm7, %v2443_v42, %v2571_v34  ;;  %v2376_v14 = vmul.f32 %v13792_v43, %v2285_v38 }
 0x336   : > { %v2997_v22 = vpack.c.bf16 %v2959_v1, %v2958_v0  ;;  %v4687_v41 = vsel %vm1764_vm14, %v4617_v62, %v10634_v54  ;;  %v10772_v57 = vpop.permute.xlu0 %4172  ;;  %v2377_v8 = vmul.f32 %v13792_v43, %v2288_v60  ;;  %v2768_v61 = vadd.f32 %v13796_v7, %v2700_v44  ;;  %v13860_v1 = vld [vmem:[#allocation10_spill] sm:$0xff] }
 0x337   : > { %v10740_v26 = vpop.f32.mrb[128].mxu0  ;;  %v10777_v48 = vsel %vm1297_vm4, %v3926_v16, %v3927_v40  ;;  %5090 = vmatprep.mubr.bf16.mxu1 %v4687_v41  ;;  %v4361_v54 = vsel %vm1666_vm12, %v10674_v21, %v10383_v5  ;;  %v2769_v42 = vadd.f32 %v13796_v7, %v2701_v31  ;;  %v2702_v29 = vmul.f32 %v13794_v27, %v2634_v17 }
 0x338   : > { %13853 = vst [vmem:[#allocation18_spill] sm:$0xff] %v10740_v26  ;;  %v10752_v32 = vpop.f32.mrb[129].mxu0  ;;  %13858 = vst [vmem:[#allocation46_spill] sm:$0xff] %v10777_v48  ;;  %7544 = vmatmul.mubr.msk.bf16.gmra.mrb[172].mxu0 %vm1582_vm8, %v10777_v48  ;;  %v3180_v38 = vshrl.u32 %v2997_v22, 16  ;;  %v2703_v34 = vmul.f32 %v13794_v27, %v2635_v50  ;;  %v4431_v44 = vsel %vm1764_vm14, %v4361_v54, %v10453_v63  ;;  %v3183_v40 = vshll.u32 %v2997_v22, 16 }
 0x339   : > { %13855 = vst [vmem:[#allocation43_spill] sm:$0xff] %v10752_v32  ;;  %v10766_v47 = vpop.f32.mrb[130].mxu0  ;;  %4046 = vrot.lane.b32.xlu1 %v10243_v13, %s7697_s28  ;;  %4188 = vrot.lane.b32.xlu0 %v10243_v13, %s7698_s27  ;;  %v10795_v60 = vpop.permute.xlu1 %3967  ;;  %v2444_v62 = vadd.f32 %v13793_v23, %v2376_v14  ;;  %v2445_v21 = vadd.f32 %v13793_v23, %v2377_v8  ;;  %vm2832_vm0 = vcmp.gt.f32.partialorder %v2768_v61, 0.0  ;;  %v2896_v31 = vmul.f32 0.2, %v2768_v61 }
 0x33a   : > { %13856 = vst [vmem:[#allocation44_spill] sm:$0xff] %v10766_v47  ;;  %v10774_v26 = vpop.f32.mrb[131].mxu0  ;;  %v3182_v16 = vrot.slane %v3180_v38, 7  ;;  %5091 = vmatmul.mubr.bf16.gmra.mrb[24].mxu1 %v4431_v44  ;;  %v10798_v5 = vpop.permute.xlu0 %4110  ;;  %vm2833_vm9 = vcmp.gt.f32.partialorder %v2769_v42, 0.0  ;;  %v2770_v63 = vadd.f32 %v13796_v7, %v2702_v29  ;;  %v4299_v50 = vsel %vm1582_vm8, %v13860_v1, %v10551_v36 }
 0x33b   : > { %13857 = vst [vmem:[#allocation45_spill] sm:$0xff] %v10774_v26  ;;  %v2771_v14 = vadd.f32 %v13796_v7, %v2703_v34  ;;  %v2897_v41 = vmul.f32 0.2, %v2769_v42  ;;  %v2572_v8 = vmul.f32 0.2, %v2444_v62  ;;  %v3563_v54 = vshll.u32 %v10243_v13, 16 }
 0x33c   : > { %v3185_v17 = vor.u32 %v3183_v40, %v3182_v16  ;;  %v10803_v0 = vsel %vm7760_vm2, %v3182_v16, 0  ;;  %v2573_v44 = vmul.f32 0.2, %v2445_v21  ;;  %v13862_v16 = vld [vmem:[#allocation30_spill] sm:$0xff]  ;;  %vm2508_vm15 = vcmp.gt.f32.partialorder %v2444_v62, 0.0 }
 0x33d   : > { %13859 = vst [vmem:[#allocation47_spill] sm:$0xff] %v10803_v0  ;;  %3983 = vrot.lane.b32.xlu1 %v10265_v56, %s7698_s27  ;;  %4126 = vrot.lane.b32.xlu0 %v10265_v56, %s7693_s19  ;;  %v10814_v22 = vpop.permute.xlu1 %3748  ;;  %v3930_v34 = vrot.slane %v10803_v0, 1  ;;  %v3568_v40 = vshll.u32 %v13862_v16, 16  ;;  %vm2509_vm1 = vcmp.gt.f32.partialorder %v2445_v21, 0.0  ;;  %v3561_v56 = vshrl.u32 %v10243_v13, 16 }
 0x33e   : > { %v10818_v38 = vsel %vm7760_vm2, 0, %v3185_v17  ;;  %v10821_v29 = vpop.permute.xlu0 %4236  ;;  %v3565_v1 = vrot.slane %v3563_v54, 1  ;;  %v2898_v47 = vmul.f32 0.2, %v2770_v63  ;;  %v2899_v26 = vmul.f32 0.2, %v2771_v14 }
 0x33f   : > { %13861 = vst [vmem:[#allocation10_spill] sm:$0xff] %v10818_v38  ;;  %v3929_v36 = vrot.slane %v10818_v38, 1  ;;  %v13863_v17 = vld [vmem:[#allocation6_spill] sm:$0xff]  ;;  %v3570_v0 = vrot.slane %v3568_v40, 1  ;;  %v2960_v38 = vsel %vm2832_vm0, %v2768_v61, %v2896_v31  ;;  %v2961_v54 = vsel %vm2833_vm9, %v2769_v42, %v2897_v41 }
 0x340   : > { %v4531_v51 = vsel %vm1582_vm8, %v13863_v17, %v10608_v52  ;;  %v3566_v16 = vor.u32 %v3565_v1, %v3561_v56  ;;  %v2636_v53 = vsel %vm2508_vm15, %v2444_v62, %v2572_v8  ;;  %v2637_v33 = vsel %vm2509_vm1, %v2445_v21, %v2573_v44 }
 0x341   : > { %v10831_v32 = vsel %vm1297_vm4, %v3929_v36, %v3930_v34  ;;  %v10833_v48 = vpop.permute.xlu1 %4032  ;;  %v4619_v52 = vsel %vm1666_vm12, %v4531_v51, %v10658_v18  ;;  %v2998_v36 = vpack.c.bf16 %v2961_v54, %v2960_v38  ;;  %vm2834_vm5 = vcmp.gt.f32.partialorder %v2770_v63, 0.0 }
 0x342   : > { %7547 = vmatprep.mubr.msk.bf16.mxu0 %vm1582_vm8, %v10831_v32  ;;  %v10839_v13 = vpop.permute.xlu0 %4174  ;;  %vm2835_vm6 = vcmp.gt.f32.partialorder %v2771_v14, 0.0  ;;  %v10844_v34 = vsel %vm1024_vm3, %v3566_v16, %v3570_v0  ;;  %v4690_v40 = vsel %vm1764_vm14, %v4619_v52, %v10730_v49  ;;  %v4363_v42 = vsel %vm1666_vm12, %v4299_v50, %v10506_v20 }
 0x343   : > { %3764 = vrot.lane.b32.xlu1 %v10844_v34, %s7693_s19  ;;  %4252 = vrot.lane.b32.xlu0 %v10844_v34, %s7697_s28  ;;  %v3187_v61 = vshrl.u32 %v2998_v36, 16  ;;  %v2704_v51 = vmul.f32 %v13794_v27, %v2636_v53  ;;  %v2705_v62 = vmul.f32 %v13794_v27, %v2637_v33  ;;  %v2293_v21 = vadd.f32 %v10270_v25, %v10521_v35 }
 0x344   : > { %5098 = vmatprep.mubr.bf16.mxu1 %v4690_v40  ;;  %v4434_v49 = vsel %vm1764_vm14, %v4363_v42, %v10576_v12  ;;  %v3190_v41 = vshll.u32 %v2998_v36, 16  ;;  %v2962_v20 = vsel %vm2834_vm5, %v2770_v63, %v2898_v47  ;;  %v2963_v50 = vsel %vm2835_vm6, %v2771_v14, %v2899_v26 }
 0x345   : > { %v10854_v18 = vpop.permute.xlu1 %3969  ;;  %v3189_v0 = vrot.slane %v3187_v61, 7  ;;  %5099 = vmatmul.mubr.bf16.gmra.mrb[28].mxu1 %v4434_v49  ;;  %v2999_v8 = vpack.c.bf16 %v2963_v50, %v2962_v20  ;;  %v3575_v53 = vshll.u32 %v10317_v9, 16  ;;  %v2296_v33 = vadd.f32 %v10270_v25, %v10538_v58 }
 0x346   : > { %v10862_v31 = vpop.permute.xlu0 %4112  ;;  %v2378_v26 = vmul.f32 %v13792_v43, %v2293_v21  ;;  %v3580_v47 = vshll.u32 %v10304_v30, 16  ;;  %v2772_v58 = vadd.f32 %v13796_v7, %v2704_v51  ;;  %v2773_v14 = vadd.f32 %v13796_v7, %v2705_v62 }
 0x347   : > { %v3192_v35 = vor.u32 %v3190_v41, %v3189_v0  ;;  %v10871_v38 = vsel %vm7760_vm2, %v3189_v0, 0  ;;  %4048 = vrot.lane.b32.xlu1 %v10317_v9, %s7697_s28  ;;  %4190 = vrot.lane.b32.xlu0 %v10317_v9, %s7698_s27  ;;  %v3194_v56 = vshrl.u32 %v2999_v8, 16  ;;  %v3573_v30 = vshrl.u32 %v10317_v9, 16 }
 0x348   : > { %v3933_v54 = vrot.slane %v10871_v38, 1  ;;  %v3577_v52 = vrot.slane %v3575_v53, 1  ;;  %v2379_v40 = vmul.f32 %v13792_v43, %v2296_v33  ;;  %v3197_v42 = vshll.u32 %v2999_v8, 16 }
 0x349   : > { %v10887_v44 = vsel %vm7760_vm2, 0, %v3192_v35  ;;  %v3196_v61 = vrot.slane %v3194_v56, 7  ;;  %v2304_v21 = vadd.f32 %v10270_v25, %v10600_v55  ;;  %v3582_v0 = vrot.slane %v3580_v47, 1  ;;  %v13867_v56 = vld [vmem:[#allocation19_spill] sm:$0xff] }
 0x34a   : > { %13865 = vst [vmem:[#allocation6_spill] sm:$0xff] %v10887_v44  ;;  %v3932_v16 = vrot.slane %v10887_v44, 1  ;;  %v3578_v49 = vor.u32 %v3577_v52, %v3573_v30  ;;  %v10911_v41 = vadd.f32 %v13793_v23, %v2378_v26  ;;  %vm2836_vm13 = vcmp.gt.f32.partialorder %v2772_v58, 0.0  ;;  %v13868_v52 = vld [vmem:[#allocation11_spill] sm:$0xff] }
 0x34b   : > { %v10877_v12 = vpop.f32.mrb[132].mxu0  ;;  %v10889_v1 = vpop.permute.xlu1 %3750  ;;  %3985 = vrot.lane.b32.xlu1 %v10344_v28, %s7698_s27  ;;  %4128 = vrot.lane.b32.xlu0 %v10344_v28, %s7693_s19  ;;  %v3199_v20 = vor.u32 %v3197_v42, %v3196_v61  ;;  %v10917_v28 = vsel %vm7760_vm2, %v3196_v61, 0  ;;  %v2900_v53 = vmul.f32 0.2, %v2772_v58  ;;  %v2901_v55 = vmul.f32 0.2, %v2773_v14 }
 0x34c   : > { %13864 = vst [vmem:[#allocation30_spill] sm:$0xff] %v10877_v12  ;;  %v10881_v63 = vpop.f32.mrb[133].mxu0  ;;  %v10891_v17 = vpop.permute.xlu0 %4238  ;;  %v10906_v62 = vsel %vm1297_vm4, %v3932_v16, %v3933_v54  ;;  %v10924_v33 = vsel %vm1024_vm3, %v3578_v49, %v3582_v0  ;;  %vm2837_vm7 = vcmp.gt.f32.partialorder %v2773_v14, 0.0  ;;  %v2447_v35 = vadd.f32 %v13793_v23, %v2379_v40  ;;  %v13873_v12 = vld [vmem:[#allocation35_spill] sm:$0xff] }
 0x34d   : > { %v10896_v36 = vpop.f32.mrb[134].mxu0  ;;  %7548 = vmatmul.mubr.msk.bf16.gmra.mrb[176].mxu0 %vm1582_vm8, %v10906_v62  ;;  %v2301_v26 = vadd.f32 %v10270_v25, %v10584_v11  ;;  %v10931_v47 = vsel %vm7760_vm2, 0, %v3199_v20  ;;  %v4534_v16 = vsel %vm1582_vm8, %v13867_v56, %v10703_v3  ;;  %v2381_v54 = vmul.f32 %v13792_v43, %v2304_v21 }
 0x34e   : > { %13866 = vst [vmem:[#allocation48_spill] sm:$0xff] %v10896_v36  ;;  %v10903_v51 = vpop.f32.mrb[135].mxu0  ;;  %v3935_v30 = vrot.slane %v10931_v47, 1  ;;  %v3936_v11 = vrot.slane %v10917_v28, 1  ;;  %v4301_v40 = vsel %vm1582_vm8, %v13868_v52, %v10632_v39  ;;  %vm2510_vm0 = vcmp.gt.f32.partialorder %v10911_v41, 0.0 }
 0x34f   : > { %v10919_v50 = vpop.permute.xlu1 %4034  ;;  %3766 = vrot.lane.b32.xlu1 %v10924_v33, %s7693_s19  ;;  %4254 = vrot.lane.b32.xlu0 %v10924_v33, %s7697_s28  ;;  %v4621_v61 = vsel %vm1666_vm12, %v4534_v16, %v10772_v57  ;;  %v2309_v42 = vadd.f32 %v10270_v25, %v10638_v37  ;;  %v2964_v0 = vsel %vm2836_vm13, %v2772_v58, %v2900_v53  ;;  %v2574_v56 = vmul.f32 0.2, %v10911_v41  ;;  %v13869_v25 = vld [vmem:[#allocation34_spill] sm:$0xff] }
 0x350   : > { %v10921_v8 = vpop.permute.xlu0 %4176  ;;  %v10956_v21 = vsel %vm1297_vm4, %v3935_v30, %v3936_v11  ;;  %v2965_v20 = vsel %vm2837_vm7, %v2773_v14, %v2901_v55  ;;  %v4693_v39 = vsel %vm1764_vm14, %v4621_v61, %v10821_v29  ;;  %vm2511_vm9 = vcmp.gt.f32.partialorder %v2447_v35, 0.0  ;;  %v7650_v14 = vld [vmem:[%s13569_s4] ss:$0 sm:$0xff] }
 0x351   : > { %v2380_v57 = vmul.f32 %v13792_v43, %v2301_v26  ;;  %7551 = vmatprep.mubr.msk.bf16.mxu0 %vm1582_vm8, %v10956_v21  ;;  %v3000_v37 = vpack.c.bf16 %v2965_v20, %v2964_v0  ;;  %v2575_v16 = vmul.f32 0.2, %v2447_v35  ;;  %v2449_v58 = vadd.f32 %v13793_v23, %v2381_v54  ;;  %5106 = vmatprep.mubr.bf16.mxu1 %v4693_v39  ;;  %v13870_v26 = vld [vmem:[#allocation21_spill] sm:$0xff] }
 0x352   : > { %v2312_v29 = vadd.f32 %v7650_v14, %v10649_v45  ;;  %v3587_v53 = vshll.u32 %v13869_v25, 16  ;;  %v2382_v55 = vmul.f32 %v13792_v43, %v2309_v42  ;;  %v4537_v30 = vsel %vm1582_vm8, %v13870_v26, %v10798_v5  ;;  %v13871_v54 = vld [vmem:[#allocation41_spill] sm:$0xff] }
 0x353   : > { %v10951_v49 = vpop.permute.xlu1 %3971  ;;  %4050 = vrot.lane.b32.xlu1 %v13869_v25, %s7697_s28  ;;  %4192 = vrot.lane.b32.xlu0 %v13869_v25, %s7698_s27  ;;  %v3201_v11 = vshrl.u32 %v3000_v37, 16  ;;  %v4365_v52 = vsel %vm1666_vm12, %v4301_v40, %v13871_v54  ;;  %v3585_v45 = vshrl.u32 %v13869_v25, 16  ;;  %v13872_v20 = vld [vmem:[#allocation33_spill] sm:$0xff]  ;;  %v2448_v14 = vadd.f32 %v13793_v23, %v2380_v57 }
 0x354   : > { %v10953_v3 = vpop.permute.xlu0 %4114  ;;  %v4437_v61 = vsel %vm1764_vm14, %v4365_v52, %v10656_v46  ;;  %v3589_v0 = vrot.slane %v3587_v53, 1  ;;  %v3592_v39 = vshll.u32 %v13872_v20, 16  ;;  %v3204_v42 = vshll.u32 %v3000_v37, 16 }
 0x355   : > { %v3203_v36 = vrot.slane %v3201_v11, 7  ;;  %5107 = vmatmul.mubr.bf16.gmra.mrb[32].mxu1 %v4437_v61  ;;  %v4623_v5 = vsel %vm1666_vm12, %v4537_v30, %v10839_v13  ;;  %v2383_v46 = vmul.f32 %v13792_v43, %v2312_v29  ;;  %v2577_v11 = vmul.f32 0.2, %v2449_v58 }
 0x356   : > { %v3590_v53 = vor.u32 %v3589_v0, %v3585_v45  ;;  %v3594_v54 = vrot.slane %v3592_v39, 1  ;;  %v4696_v57 = vsel %vm1764_vm14, %v4623_v5, %v10891_v17  ;;  %v2450_v52 = vadd.f32 %v13793_v23, %v2382_v55  ;;  %v13875_v45 = vld [vmem:[#allocation13_spill] sm:$0xff] }
 0x357   : > { %3987 = vrot.lane.b32.xlu1 %v13873_v12, %s7698_s27  ;;  %4130 = vrot.lane.b32.xlu0 %v13873_v12, %s7693_s19  ;;  %v3206_v61 = vor.u32 %v3204_v42, %v3203_v36  ;;  %v11003_v13 = vsel %vm7760_vm2, %v3203_v36, 0  ;;  %v2638_v12 = vsel %vm2510_vm0, %v10911_v41, %v2574_v56  ;;  %v2639_v29 = vsel %vm2511_vm9, %v2447_v35, %v2575_v16  ;;  %v13877_v41 = vld [vmem:[#allocation14_spill] sm:$0xff] }
 0x358   : > { %5114 = vmatprep.mubr.bf16.mxu1 %v4696_v57  ;;  %vm2513_vm15 = vcmp.gt.f32.partialorder %v2449_v58, 0.0  ;;  %v11012_v17 = vsel %vm1024_vm3, %v3590_v53, %v3594_v54  ;;  %v2576_v55 = vmul.f32 0.2, %v2448_v14  ;;  %v4303_v36 = vsel %vm1582_vm8, %v13875_v45, %v10722_v24  ;;  %v13878_v24 = vld [vmem:[#allocation27_spill] sm:$0xff] }
 0x359   : > { %v10991_v40 = vpop.permute.xlu1 %3752  ;;  %v4241_v26 = vpop.permute.xlu0 %4240  ;;  %v11021_v0 = vsel %vm7760_vm2, 0, %v3206_v61  ;;  %v3599_v35 = vshll.u32 %v13877_v41, 16  ;;  %v2451_v20 = vadd.f32 %v13793_v23, %v2383_v46  ;;  %v3939_v42 = vrot.slane %v11003_v13, 1 }
 0x35a   : > { %13876 = vst [vmem:[#allocation11_spill] sm:$0xff] %v11021_v0  ;;  %v3938_v39 = vrot.slane %v11021_v0, 1  ;;  %v4540_v5 = vsel %vm1582_vm8, %v13878_v24, %v10862_v31  ;;  %vm2512_vm1 = vcmp.gt.f32.partialorder %v2448_v14, 0.0  ;;  %v2641_v54 = vsel %vm2513_vm15, %v2449_v58, %v2577_v11  ;;  %v13880_v24 = vld [vmem:[#allocation16_spill] sm:$0xff] }
 0x35b   : > { %3768 = vrot.lane.b32.xlu1 %v11012_v17, %s7693_s19  ;;  %4256 = vrot.lane.b32.xlu0 %v11012_v17, %s7697_s28  ;;  %v2578_v57 = vmul.f32 0.2, %v2450_v52  ;;  %v4625_v23 = vsel %vm1666_vm12, %v4540_v5, %v10921_v8  ;;  %v4367_v61 = vsel %vm1666_vm12, %v4303_v36, %v10691_v4  ;;  %v3601_v45 = vrot.slane %v3599_v35, 1 }
 0x35c   : > { %v10998_v37 = vpop.f32.mrb[136].mxu0  ;;  %v11042_v46 = vsel %vm1297_vm4, %v3938_v39, %v3939_v42  ;;  %v2706_v31 = vmul.f32 %v13794_v27, %v2638_v12  ;;  %vm2514_vm5 = vcmp.gt.f32.partialorder %v2450_v52, 0.0  ;;  %v4440_v8 = vsel %vm1764_vm14, %v4367_v61, %v10764_v19 }
 0x35d   : > { %v11005_v43 = vpop.f32.mrb[137].mxu0  ;;  %v11026_v56 = vpop.permute.xlu1 %4036  ;;  %7552 = vmatmul.mubr.msk.bf16.gmra.mrb[180].mxu0 %vm1582_vm8, %v11042_v46  ;;  %v2640_v58 = vsel %vm2512_vm1, %v2448_v14, %v2576_v55  ;;  %v2579_v11 = vmul.f32 0.2, %v2451_v20  ;;  %5115 = vmatmul.mubr.bf16.gmra.mrb[36].mxu1 %v4440_v8  ;;  %v3597_v4 = vshrl.u32 %v13877_v41, 16  ;;  %v2707_v39 = vmul.f32 %v13794_v27, %v2639_v29 }
 0x35e   : > { %v11014_v30 = vpop.f32.mrb[138].mxu0  ;;  %v4179_v16 = vpop.permute.xlu0 %4178  ;;  %v2709_v42 = vmul.f32 %v13794_v27, %v2641_v54  ;;  %vm2515_vm6 = vcmp.gt.f32.partialorder %v2451_v20, 0.0  ;;  %v2642_v19 = vsel %vm2514_vm5, %v2450_v52, %v2578_v57  ;;  %v2708_v55 = vmul.f32 %v13794_v27, %v2640_v58  ;;  %v13882_v57 = vld [vmem:[#allocation29_spill] sm:$0xff]  ;;  %v13883_v58 = vld [vmem:[#allocation38_spill] sm:$0xff] }
 0x35f   : > { %13874 = vst [vmem:[#allocation19_spill] sm:$0xff] %v11014_v30  ;;  %v11036_v53 = vpop.f32.mrb[139].mxu0  ;;  %v4699_v30 = vsel %vm1764_vm14, %v4625_v23, %v4241_v26  ;;  %4052 = vrot.lane.b32.xlu1 %v13877_v41, %s7697_s28  ;;  %4194 = vrot.lane.b32.xlu0 %v13877_v41, %s7698_s27  ;;  %v13879_v26 = vld [vmem:[#allocation9_spill] sm:$0xff]  ;;  %v3602_v14 = vor.u32 %v3601_v45, %v3597_v4  ;;  %v13881_v23 = vld [vmem:[#allocation22_spill] sm:$0xff]  ;;  %vm6094_vm5 = vcmask 1045509  }
 0x360   : > { %v3604_v12 = vshll.u32 %v13879_v26, 16  ;;  %5122 = vmatprep.mubr.bf16.mxu1 %v4699_v30  ;;  %v4305_v5 = vsel %vm1582_vm8, %v13880_v24, %v10814_v22  ;;  %v2774_v61 = vadd.f32 %v13796_v7, %v2706_v31  ;;  %v2643_v8 = vsel %vm2515_vm6, %v2451_v20, %v2579_v11 }
 0x361   : > { %v11058_v36 = vpop.permute.xlu1 %3973  ;;  %v2775_v30 = vadd.f32 %v13796_v7, %v2707_v39  ;;  %v2777_v52 = vadd.f32 %v13796_v7, %v2709_v42  ;;  %v2710_v54 = vmul.f32 %v13794_v27, %v2642_v19  ;;  %v4543_v22 = vsel %vm1582_vm8, %v13882_v57, %v10953_v3 }
 0x362   : > { %v11060_v35 = vpop.permute.xlu0 %4116  ;;  %v3606_v29 = vrot.slane %v3604_v12, 1  ;;  %v4369_v20 = vsel %vm1666_vm12, %v4305_v5, %v10795_v60  ;;  %v4627_v31 = vsel %vm1666_vm12, %v4543_v22, %v4179_v16  ;;  %v3611_v11 = vshll.u32 %v13883_v58, 16 }
 0x363   : > { %3989 = vrot.lane.b32.xlu1 %v13881_v23, %s7698_s27  ;;  %4132 = vrot.lane.b32.xlu0 %v13881_v23, %s7693_s19  ;;  %v2776_v12 = vadd.f32 %v13796_v7, %v2708_v55  ;;  %v2711_v39 = vmul.f32 %v13794_v27, %v2643_v8  ;;  %v4443_v3 = vsel %vm1764_vm14, %v4369_v20, %v10833_v48  ;;  %v2902_v60 = vmul.f32 0.2, %v2774_v61  ;;  %v13884_v48 = vld [vmem:[#allocation5_spill] sm:$0xff] }
 0x364   : > { %v11081_v45 = vsel %vm1024_vm3, %v3602_v14, %v3606_v29  ;;  %v2778_v16 = vadd.f32 %v13796_v7, %v2710_v54  ;;  %vm2839_vm13 = vcmp.gt.f32.partialorder %v2775_v30, 0.0  ;;  %v2903_v19 = vmul.f32 0.2, %v2775_v30  ;;  %v13885_v29 = vld [vmem:[#allocation24_spill] sm:$0xff] }
 0x365   : > { %5123 = vmatmul.mubr.bf16.gmra.mrb[40].mxu1 %v4443_v3  ;;  %v2905_v14 = vmul.f32 0.2, %v2777_v52  ;;  %v3613_v27 = vrot.slane %v3611_v11, 1  ;;  %v2904_v55 = vmul.f32 0.2, %v2776_v12  ;;  %vm2841_vm7 = vcmp.gt.f32.partialorder %v2777_v52, 0.0 }
 0x366   : > { %v2779_v24 = vadd.f32 %v13796_v7, %v2711_v39  ;;  %v4307_v5 = vsel %vm1582_vm8, %v13884_v48, %v10889_v1  ;;  %vm2838_vm0 = vcmp.gt.f32.partialorder %v2774_v61, 0.0  ;;  %vm2840_vm9 = vcmp.gt.f32.partialorder %v2776_v12, 0.0 }
 0x367   : > { %3770 = vrot.lane.b32.xlu1 %v11081_v45, %s7693_s19  ;;  %4258 = vrot.lane.b32.xlu0 %v11081_v45, %s7697_s28  ;;  %v3609_v8 = vshrl.u32 %v13883_v58, 16  ;;  %v3616_v54 = vshll.u32 %v13885_v29, 16  ;;  %v2906_v7 = vmul.f32 0.2, %v2778_v16  ;;  %v4371_v1 = vsel %vm1666_vm12, %v4307_v5, %v10854_v18 }
 0x368   : > { %v2967_v20 = vsel %vm2839_vm13, %v2775_v30, %v2903_v19  ;;  %v2907_v11 = vmul.f32 0.2, %v2779_v24  ;;  %v4446_v39 = vsel %vm1764_vm14, %v4371_v1, %v10919_v50  ;;  %v2968_v48 = vsel %vm2840_vm9, %v2776_v12, %v2904_v55 }
 0x369   : > { %v11087_v4 = vpop.permute.xlu1 %3754  ;;  %v4243_v26 = vpop.permute.xlu0 %4242  ;;  %v3614_v22 = vor.u32 %v3613_v27, %v3609_v8  ;;  %v3618_v27 = vrot.slane %v3616_v54, 1  ;;  %vm2842_vm15 = vcmp.gt.f32.partialorder %v2778_v16, 0.0  ;;  %vm2843_vm1 = vcmp.gt.f32.partialorder %v2779_v24, 0.0  ;;  %v13888_v54 = vld [vmem:[#allocation7_spill] sm:$0xff] }
 0x36a   : > { %v4702_v42 = vsel %vm1764_vm14, %v4627_v31, %v4243_v26  ;;  %v2969_v31 = vsel %vm2841_vm7, %v2777_v52, %v2905_v14  ;;  %v13886_v26 = vld [vmem:[#allocation39_spill] sm:$0xff]  ;;  %v2970_v5 = vsel %vm2842_vm15, %v2778_v16, %v2906_v7  ;;  %v2971_v8 = vsel %vm2843_vm1, %v2779_v24, %v2907_v11  ;;  %v13890_v7 = vld [vmem:[#allocation17_spill] sm:$0xff] }
 0x36b   : > { %5130 = vmatprep.mubr.bf16.mxu1 %v4702_v42  ;;  %4054 = vrot.lane.b32.xlu1 %v13883_v58, %s7697_s28  ;;  %v2966_v42 = vsel %vm2838_vm0, %v2774_v61, %v2902_v60  ;;  %v11126_v52 = vpack.c.bf16 %v2969_v31, %v2968_v48  ;;  %v11133_v50 = vsel %vm1024_vm3, %v3614_v22, %v3618_v27  ;;  %v13887_v61 = vld [vmem:[#allocation40_spill] sm:$0xff]  ;;  %v3628_v11 = vshll.u32 %v13890_v7, 16 }
 0x36c   : > { %4196 = vrot.lane.b32.xlu0 %v13883_v58, %s7698_s27  ;;  %v11124_v30 = vpack.c.bf16 %v2967_v20, %v2966_v42  ;;  %v3623_v12 = vshll.u32 %v13887_v61, 16  ;;  %v11142_v29 = vpack.c.bf16 %v2971_v8, %v2970_v5  ;;  %v4309_v22 = vsel %vm1582_vm8, %v13888_v54, %v10991_v40  ;;  %v13889_v20 = vld [vmem:[#allocation32_spill] sm:$0xff] }
 0x36d   : > { %v11105_v23 = vpop.permute.xlu1 %4038  ;;  %v4181_v57 = vpop.permute.xlu0 %4180  ;;  %5131 = vmatmul.mubr.bf16.gmra.mrb[44].mxu1 %v4446_v39  ;;  %v4546_v31 = vsel %vm1582_vm8, %v13889_v20, %v11060_v35  ;;  %v3621_v24 = vshrl.u32 %v13887_v61, 16  ;;  %v4373_v35 = vsel %vm1666_vm12, %v4309_v22, %v10951_v49  ;;  %v3635_v49 = vshll.u32 %v10695_v59, 16 }
 0x36e   : > { %v3625_v1 = vrot.slane %v3623_v12, 1  ;;  %v4629_v16 = vsel %vm1666_vm12, %v4546_v31, %v4181_v57  ;;  %v4449_v48 = vsel %vm1764_vm14, %v4373_v35, %v11026_v56  ;;  %v3630_v57 = vrot.slane %v3628_v11, 1 }
 0x36f   : > { %3991 = vrot.lane.b32.xlu1 %v13886_v26, %s7698_s27  ;;  %v3633_v7 = vshrl.u32 %v10695_v59, 16  ;;  %v3640_v11 = vshll.u32 %v10681_v15, 16  ;;  %vm6091_vm6 = vcmask 1044484   ;;  %vm6097_vm13 = vcmask 1046534  }
 0x370   : > { %4134 = vrot.lane.b32.xlu0 %v13886_v26, %s7693_s19  ;;  %v3626_v42 = vor.u32 %v3625_v1, %v3621_v24  ;;  %v13892_v1 = vld [vmem:[#allocation8_spill] sm:$0xff]  ;;  %vm6100_vm7 = vcmask 1047559  }
 0x371   : > { %v11128_v19 = vpop.permute.xlu1 %3975  ;;  %v4119_v60 = vpop.permute.xlu0 %4118  ;;  %v4311_v20 = vsel %vm1582_vm8, %v13892_v1, %v11087_v4  ;;  %v3642_v15 = vrot.slane %v3640_v11, 1 }
 0x372   : > { %v11171_v5 = vsel %vm1024_vm3, %v3626_v42, %v3630_v57  ;;  %v4375_v57 = vsel %vm1666_vm12, %v4311_v20, %v11058_v36  ;;  %v13896_v20 = vld [vmem:[#allocation25_spill] sm:$0xff] }
 0x373   : > { %v11118_v3 = vpop.f32.mrb[140].mxu0  ;;  %3772 = vrot.lane.b32.xlu1 %v11133_v50, %s7693_s19 }
 0x374   : > { %v11122_v18 = vpop.f32.mrb[141].mxu0  ;;  %4260 = vrot.lane.b32.xlu0 %v11133_v50, %s7697_s28 }
 0x375   : > { %v11130_v14 = vpop.f32.mrb[142].mxu0 }
 0x376   : > { %v11136_v55 = vpop.f32.mrb[143].mxu0 }
 0x377   : > { %4056 = vrot.lane.b32.xlu1 %v13887_v61, %s7697_s28 }
 0x378   : > { %4198 = vrot.lane.b32.xlu0 %v13887_v61, %s7698_s27 }
 0x37a   : > { %v11157_v26 = vpop.permute.xlu1 %3756 }
 0x37b   : > { %v4245_v40 = vpop.permute.xlu0 %4244  ;;  %3993 = vrot.lane.b32.xlu1 %v10624_v6, %s7698_s27 }
 0x37c   : > { %v4705_v39 = vsel %vm1764_vm14, %v4629_v16, %v4245_v40  ;;  %4136 = vrot.lane.b32.xlu0 %v10624_v6, %s7693_s19  ;;  %v3637_v6 = vrot.slane %v3635_v49, 1  ;;  %v13894_v16 = vld [vmem:[#allocation36_spill] sm:$0xff]  ;;  %v13895_v49 = vld [vmem:[#allocation42_spill] sm:$0xff] }
 0x37d   : > { %5138 = vmatprep.mubr.bf16.mxu1 %v4705_v39  ;;  %v4549_v24 = vsel %vm1582_vm8, %v13894_v16, %v4119_v60  ;;  %v4452_v60 = vsel %vm1764_vm14, %v4375_v57, %v11105_v23  ;;  %v3652_v16 = vshll.u32 %v13896_v20, 16 }
 0x37e   : > { %5139 = vmatmul.mubr.bf16.gmra.mrb[48].mxu1 %v4449_v48  ;;  %v11168_v27 = vpop.permute.xlu1 %4040  ;;  %v3638_v42 = vor.u32 %v3637_v6, %v3633_v7  ;;  %v3647_v6 = vshll.u32 %v13895_v49, 16 }
 0x37f   : > { %v4183_v12 = vpop.permute.xlu0 %4182  ;;  %3774 = vrot.lane.b32.xlu1 %v11171_v5, %s7693_s19 }
 0x380   : > { %4262 = vrot.lane.b32.xlu0 %v11171_v5, %s7697_s28  ;;  %v4631_v39 = vsel %vm1666_vm12, %v4549_v24, %v4183_v12  ;;  %v11210_v12 = vsel %vm1024_vm3, %v3638_v42, %v3642_v15  ;;  %v3649_v23 = vrot.slane %v3647_v6, 1  ;;  %v13902_v15 = vld [vmem:[#allocation20_spill] sm:$0xff] }
 0x381   : > { %v4313_v6 = vsel %vm1582_vm8, %v13902_v15, %v11157_v26 }
 0x382   : > { %v11178_v56 = vpop.permute.xlu1 %3977 }
 0x383   : > { %v4121_v8 = vpop.permute.xlu0 %4120  ;;  %v11180_v54 = vpop.f32.mrb[144].mxu0  ;;  %4058 = vrot.lane.b32.xlu1 %v10695_v59, %s7697_s28 }
 0x384   : > { %13891 = vst [vmem:[#allocation34_spill] sm:$0xff] %v11180_v54  ;;  %v11182_v22 = vpop.f32.mrb[145].mxu0  ;;  %4200 = vrot.lane.b32.xlu0 %v10695_v59, %s7698_s27 }
 0x385   : > { %v11189_v31 = vpop.f32.mrb[146].mxu0 }
 0x386   : > { %13893 = vst [vmem:[#allocation21_spill] sm:$0xff] %v11189_v31  ;;  %v11197_v40 = vpop.f32.mrb[147].mxu0 }
 0x387   : > { %3995 = vrot.lane.b32.xlu1 %v10712_v10, %s7698_s27 }
 0x388   : > { %v3759_v4 = vpop.permute.xlu1 %3758  ;;  %v4247_v35 = vpop.permute.xlu0 %4246  ;;  %4138 = vrot.lane.b32.xlu0 %v10712_v10, %s7693_s19  ;;  %v3645_v10 = vshrl.u32 %v13895_v49, 16 }
 0x389   : > { %v4708_v48 = vsel %vm1764_vm14, %v4631_v39, %v4247_v35 }
 0x38a   : > { %5146 = vmatprep.mubr.bf16.mxu1 %v4708_v48  ;;  %v3650_v39 = vor.u32 %v3649_v23, %v3645_v10  ;;  %v13900_v48 = vld [vmem:[#allocation46_spill] sm:$0xff] }
 0x38b   : > { %5147 = vmatmul.mubr.bf16.gmra.mrb[52].mxu1 %v4452_v60  ;;  %3776 = vrot.lane.b32.xlu1 %v11210_v12, %s7693_s19  ;;  %v3654_v60 = vrot.slane %v3652_v16, 1  ;;  %v13903_v23 = vld [vmem:[#allocation10_spill] sm:$0xff] }
 0x38c   : > { %v11215_v36 = vpop.permute.xlu1 %4042  ;;  %4264 = vrot.lane.b32.xlu0 %v11210_v12, %s7697_s28  ;;  %v3659_v10 = vshll.u32 %v13903_v23, 16 }
 0x38d   : > { %v4185_v1 = vpop.permute.xlu0 %4184  ;;  %v11243_v20 = vsel %vm1024_vm3, %v3650_v39, %v3654_v60  ;;  %v4377_v39 = vsel %vm1666_vm12, %v4313_v6, %v11128_v19 }
 0x38e   : > { %v4455_v60 = vsel %vm1764_vm14, %v4377_v39, %v11168_v27  ;;  %v13906_v39 = vld [vmem:[#allocation23_spill] sm:$0xff] }
 0x38f   : > { %4060 = vrot.lane.b32.xlu1 %v13895_v49, %s7697_s28 }
 0x390   : > { %4202 = vrot.lane.b32.xlu0 %v13895_v49, %s7698_s27  ;;  %v11227_v7 = vpop.permute.xlu1 %3979 }
 0x391   : > { %v4123_v35 = vpop.permute.xlu0 %4122 }
 0x392   : > { %v11225_v24 = vpop.f32.mrb[148].mxu0 }
 0x393   : > { %13897 = vst [vmem:[#allocation41_spill] sm:$0xff] %v11225_v24  ;;  %v11229_v11 = vpop.f32.mrb[149].mxu0  ;;  %3997 = vrot.lane.b32.xlu1 %v13900_v48, %s7698_s27  ;;  %v13904_v24 = vld [vmem:[#allocation37_spill] sm:$0xff] }
 0x394   : > { %13898 = vst [vmem:[#allocation33_spill] sm:$0xff] %v11229_v11  ;;  %v11231_v42 = vpop.f32.mrb[150].mxu0  ;;  %4140 = vrot.lane.b32.xlu0 %v13900_v48, %s7693_s19 }
 0x395   : > { %13899 = vst [vmem:[#allocation35_spill] sm:$0xff] %v11231_v42  ;;  %v11235_v57 = vpop.f32.mrb[151].mxu0  ;;  %v4552_v42 = vsel %vm1582_vm8, %v13904_v24, %v4121_v8  ;;  %v3661_v8 = vrot.slane %v3659_v10, 1 }
 0x396   : > { %13901 = vst [vmem:[#allocation13_spill] sm:$0xff] %v11235_v57  ;;  %v4633_v57 = vsel %vm1666_vm12, %v4552_v42, %v4185_v1  ;;  %v3657_v42 = vshrl.u32 %v13903_v23, 16 }
 0x397   : > { %3778 = vrot.lane.b32.xlu1 %v11243_v20, %s7693_s19 }
 0x398   : > { %4266 = vrot.lane.b32.xlu0 %v11243_v20, %s7697_s28  ;;  %v3662_v19 = vor.u32 %v3661_v8, %v3657_v42  ;;  %v13908_v42 = vld [vmem:[#allocation15_spill] sm:$0xff] }
 0x39b   : > { %v3761_v16 = vpop.permute.xlu1 %3760  ;;  %v4249_v48 = vpop.permute.xlu0 %4248  ;;  %4062 = vrot.lane.b32.xlu1 %v13903_v23, %s7697_s28 }
 0x39c   : > { %v4711_v26 = vsel %vm1764_vm14, %v4633_v57, %v4249_v48  ;;  %4204 = vrot.lane.b32.xlu0 %v13903_v23, %s7698_s27  ;;  %v13905_v57 = vld [vmem:[#allocation47_spill] sm:$0xff] }
 0x39d   : > { %5154 = vmatprep.mubr.bf16.mxu1 %v4711_v26  ;;  %v3664_v15 = vshll.u32 %v13905_v57, 16  ;;  %v3671_v26 = vshll.u32 %v10887_v44, 16 }
 0x39e   : > { %5155 = vmatmul.mubr.bf16.gmra.mrb[56].mxu1 %v4455_v60  ;;  %v4315_v60 = vsel %vm1582_vm8, %v13906_v39, %v3759_v4 }
 0x39f   : > { %v11262_v1 = vpop.permute.xlu1 %4044  ;;  %v4187_v24 = vpop.permute.xlu0 %4186  ;;  %3999 = vrot.lane.b32.xlu1 %v10831_v32, %s7698_s27  ;;  %v3666_v27 = vrot.slane %v3664_v15, 1  ;;  %v4379_v39 = vsel %vm1666_vm12, %v4315_v60, %v11178_v56 }
 0x3a0   : > { %4142 = vrot.lane.b32.xlu0 %v10831_v32, %s7693_s19  ;;  %v4555_v32 = vsel %vm1582_vm8, %v13908_v42, %v4123_v35  ;;  %v4458_v35 = vsel %vm1764_vm14, %v4379_v39, %v11215_v36  ;;  %v3676_v42 = vshll.u32 %v10871_v38, 16  ;;  %v11319_v38 = vld [vmem:[%s13571_s6] ss:$0 sm:$0xff] }
 0x3a1   : > { %v11273_v48 = vsel %vm1024_vm3, %v3662_v19, %v3666_v27  ;;  %v4635_v19 = vsel %vm1666_vm12, %v4555_v32, %v4187_v24  ;;  %v3669_v24 = vshrl.u32 %v10887_v44, 16 }
 0x3a2   : > { %v3678_v60 = vrot.slane %v3676_v42, 1  ;;  %v13912_v42 = vld [vmem:[#allocation26_spill] sm:$0xff] }
 0x3a3   : > { %v11270_v6 = vpop.permute.xlu1 %3981  ;;  %v4125_v10 = vpop.permute.xlu0 %4124  ;;  %3780 = vrot.lane.b32.xlu1 %v11273_v48, %s7693_s19 }
 0x3a4   : > { %4268 = vrot.lane.b32.xlu0 %v11273_v48, %s7697_s28 }
 0x3a5   : > { %v11280_v8 = vpop.f32.mrb[152].mxu0 }
 0x3a6   : > { %13907 = vst [vmem:[#allocation14_spill] sm:$0xff] %v11280_v8  ;;  %v11288_v15 = vpop.f32.mrb[153].mxu0  ;;  %v3673_v8 = vrot.slane %v3671_v26, 1 }
 0x3a7   : > { %v11286_v57 = vpop.permute.xlu1 %3762  ;;  %13909 = vst [vmem:[#allocation27_spill] sm:$0xff] %v11288_v15  ;;  %v4251_v27 = vpop.permute.xlu0 %4250  ;;  %4064 = vrot.lane.b32.xlu1 %v10887_v44, %s7697_s28 }
 0x3a8   : > { %v11291_v11 = vpop.f32.mrb[154].mxu0  ;;  %v4714_v4 = vsel %vm1764_vm14, %v4635_v19, %v4251_v27  ;;  %4206 = vrot.lane.b32.xlu0 %v10887_v44, %s7698_s27  ;;  %v3674_v26 = vor.u32 %v3673_v8, %v3669_v24  ;;  %v3683_v19 = vshll.u32 %v10931_v47, 16  ;;  %v13915_v44 = vld [vmem:[#allocation12_spill] sm:$0xff] }
 0x3a9   : > { %13910 = vst [vmem:[#allocation9_spill] sm:$0xff] %v11291_v11  ;;  %v11296_v31 = vpop.f32.mrb[155].mxu0  ;;  %5162 = vmatprep.mubr.bf16.mxu1 %v4714_v4  ;;  %v4558_v54 = vsel %vm1582_vm8, %v13915_v44, %v4125_v10 }
 0x3aa   : > { %13911 = vst [vmem:[#allocation16_spill] sm:$0xff] %v11296_v31  ;;  %5163 = vmatmul.mubr.bf16.gmra.mrb[60].mxu1 %v4458_v35  ;;  %v11313_v36 = vsel %vm1024_vm3, %v3674_v26, %v3678_v60  ;;  %v3685_v35 = vrot.slane %v3683_v19, 1  ;;  %v4317_v26 = vsel %vm1582_vm8, %v13912_v42, %v3761_v16  ;;  %v13913_v60 = vld [vmem:[#allocation43_spill] sm:$0xff]  ;;  %v3681_v19 = vshrl.u32 %v10931_v47, 16 }
 0x3ab   : > { %v11306_v32 = vpop.permute.xlu1 %4046  ;;  %v4189_v56 = vpop.permute.xlu0 %4188  ;;  %4001 = vrot.lane.b32.xlu1 %v10906_v62, %s7698_s27  ;;  %v4381_v44 = vsel %vm1666_vm12, %v4317_v26, %v11227_v7 }
 0x3ac   : > { %4144 = vrot.lane.b32.xlu0 %v10906_v62, %s7693_s19  ;;  %v4637_v16 = vsel %vm1666_vm12, %v4558_v54, %v4189_v56  ;;  %v3686_v10 = vor.u32 %v3685_v35, %v3681_v19  ;;  %v3208_v54 = vshrl.u32 %v11124_v30, 16  ;;  %v3695_v35 = vshll.u32 %v11021_v0, 16 }
 0x3ae   : > { %v3210_v19 = vrot.slane %v3208_v54, 7 }
 0x3af   : > { %3782 = vrot.lane.b32.xlu1 %v11313_v36, %s7693_s19  ;;  %v11323_v8 = vpop.permute.xlu1 %3983  ;;  %v4127_v27 = vpop.permute.xlu0 %4126 }
 0x3b0   : > { %4270 = vrot.lane.b32.xlu0 %v11313_v36, %s7697_s28 }
 0x3b2   : > { %v5044_v62 = vpop.f32.mrb[0].mxu1 }
 0x3b3   : > { %v5045_v4 = vadd.f32 %v11319_v38, %v5044_v62  ;;  %v5046_v39 = vpop.f32.mrb[1].mxu1  ;;  %4066 = vrot.lane.b32.xlu1 %v10931_v47, %s7697_s28  ;;  %v3688_v62 = vshll.u32 %v10917_v28, 16  ;;  %v4461_v28 = vsel %vm1764_vm14, %v4381_v44, %v11262_v1 }
 0x3b4   : > { %v5047_v24 = vpop.f32.mrb[2].mxu1  ;;  %4208 = vrot.lane.b32.xlu0 %v10931_v47, %s7698_s27 }
 0x3b5   : > { %v11333_v11 = vadd.f32 %v13913_v60, %v5045_v4  ;;  %v5048_v31 = vadd.f32 %v11319_v38, %v5047_v24  ;;  %v5049_v15 = vpop.f32.mrb[3].mxu1  ;;  %v11343_v39 = vpop.permute.xlu1 %3764  ;;  %v13916_v4 = vld [vmem:[#allocation45_spill] sm:$0xff] }
 0x3b6   : > { %v4253_v42 = vpop.permute.xlu0 %4252 }
 0x3b7   : > { %13914 = vst [vmem:[#allocation22_spill] sm:$0xff] %v11333_v11  ;;  %v11346_v60 = vadd.f32 %v13916_v4, %v5048_v31  ;;  %v4717_v15 = vsel %vm1764_vm14, %v4637_v16, %v4253_v42  ;;  %4003 = vrot.lane.b32.xlu1 %v10956_v21, %s7698_s27  ;;  %v3690_v31 = vrot.slane %v3688_v62, 1  ;;  %v3211_v42 = vshll.u32 %v11124_v30, 16 }
 0x3b8   : > { %5170 = vmatprep.mubr.bf16.mxu1 %v4717_v15  ;;  %4146 = vrot.lane.b32.xlu0 %v10956_v21, %s7693_s19  ;;  %v3697_v4 = vrot.slane %v3695_v35, 1  ;;  %v4561_v30 = vsel %vm1582_vm8, %v10844_v34, %v4127_v27  ;;  %v3693_v35 = vshrl.u32 %v11021_v0, 16 }
 0x3b9   : > { %13917 = vst [vmem:[#allocation29_spill] sm:$0xff] %v11346_v60  ;;  %5171 = vmatmul.mubr.bf16.gmra.mrb[64].mxu1 %v4461_v28  ;;  %v11358_v56 = vpop.permute.xlu1 %4048  ;;  %v11361_v7 = vsel %vm1024_vm3, %v3686_v10, %v3690_v31  ;;  %v13922_v10 = vld [vmem:[#allocation28_spill] sm:$0xff]  ;;  %v3213_v54 = vor.u32 %v3211_v42, %v3210_v19  ;;  %v3215_v31 = vshrl.u32 %v11126_v52, 16 }
 0x3ba   : > { %v4191_v24 = vpop.permute.xlu0 %4190  ;;  %v4319_v28 = vsel %vm1582_vm8, %v13922_v10, %v11286_v57 }
 0x3bb   : > { %3784 = vrot.lane.b32.xlu1 %v11361_v7, %s7693_s19  ;;  %v4639_v10 = vsel %vm1666_vm12, %v4561_v30, %v4191_v24  ;;  %v4383_v27 = vsel %vm1666_vm12, %v4319_v28, %v11270_v6  ;;  %v3217_v24 = vrot.slane %v3215_v31, 7 }
 0x3bc   : > { %v11364_v26 = vpop.f32.mrb[156].mxu0  ;;  %4272 = vrot.lane.b32.xlu0 %v11361_v7, %s7697_s28 }
 0x3bd   : > { %13918 = vst [vmem:[#allocation38_spill] sm:$0xff] %v11364_v26  ;;  %v11368_v1 = vpop.f32.mrb[157].mxu0  ;;  %v11374_v62 = vpop.permute.xlu1 %3985 }
 0x3be   : > { %13919 = vst [vmem:[#allocation5_spill] sm:$0xff] %v11368_v1  ;;  %v11372_v21 = vpop.f32.mrb[158].mxu0  ;;  %v4129_v16 = vpop.permute.xlu0 %4128 }
 0x3bf   : > { %13920 = vst [vmem:[#allocation24_spill] sm:$0xff] %v11372_v21  ;;  %v11377_v15 = vpop.f32.mrb[159].mxu0  ;;  %4068 = vrot.lane.b32.xlu1 %v11021_v0, %s7697_s28  ;;  %v3700_v21 = vshll.u32 %v11003_v13, 16  ;;  %v4464_v13 = vsel %vm1764_vm14, %v4383_v27, %v11306_v32 }
 0x3c0   : > { %13921 = vst [vmem:[#allocation39_spill] sm:$0xff] %v11377_v15  ;;  %v5052_v44 = vpop.f32.mrb[4].mxu1  ;;  %4210 = vrot.lane.b32.xlu0 %v11021_v0, %s7698_s27  ;;  %v13923_v15 = vld [vmem:[#allocation18_spill] sm:$0xff] }
 0x3c1   : > { %v5053_v60 = vadd.f32 %v11319_v38, %v5052_v44  ;;  %v5054_v11 = vpop.f32.mrb[5].mxu1  ;;  %v11393_v26 = vpop.permute.xlu1 %3766  ;;  %v3698_v44 = vor.u32 %v3697_v4, %v3693_v35  ;;  %v3218_v4 = vshll.u32 %v11126_v52, 16 }
 0x3c2   : > { %v5055_v57 = vpop.f32.mrb[6].mxu1  ;;  %v4255_v42 = vpop.permute.xlu0 %4254 }
 0x3c3   : > { %v11396_v1 = vadd.f32 %v13923_v15, %v5053_v60  ;;  %v5056_v11 = vadd.f32 %v11319_v38, %v5055_v57  ;;  %v4720_v34 = vsel %vm1764_vm14, %v4639_v10, %v4255_v42  ;;  %v5057_v0 = vpop.f32.mrb[7].mxu1  ;;  %4005 = vrot.lane.b32.xlu1 %v11042_v46, %s7698_s27  ;;  %v11408_v60 = vsel %vm7760_vm2, 0, %v3213_v54  ;;  %v13925_v15 = vld [vmem:[#allocation44_spill] sm:$0xff]  ;;  %v13927_v42 = vld [vmem:[#allocation31_spill] sm:$0xff] }
 0x3c4   : > { %5178 = vmatprep.mubr.bf16.mxu1 %v4720_v34  ;;  %4148 = vrot.lane.b32.xlu0 %v11042_v46, %s7693_s19  ;;  %v3702_v0 = vrot.slane %v3700_v21, 1  ;;  %v3707_v54 = vshll.u32 %v11408_v60, 16  ;;  %v3220_v31 = vor.u32 %v3218_v4, %v3217_v24  ;;  %v3353_v21 = vsel %vm7760_vm2, %v3210_v19, 0 }
 0x3c5   : > { %13924 = vst [vmem:[#allocation40_spill] sm:$0xff] %v11396_v1  ;;  %v11411_v30 = vadd.f32 %v13925_v15, %v5056_v11  ;;  %5179 = vmatmul.mubr.bf16.gmra.mrb[68].mxu1 %v4464_v13  ;;  %v11415_v6 = vpop.permute.xlu1 %4050  ;;  %v3941_v52 = vrot.slane %v11408_v60, 1  ;;  %v4321_v11 = vsel %vm1582_vm8, %v13927_v42, %v11343_v39  ;;  %v3942_v34 = vrot.slane %v3353_v21, 1 }
 0x3c6   : > { %v4193_v28 = vpop.permute.xlu0 %4192  ;;  %v11419_v32 = vsel %vm1024_vm3, %v3698_v44, %v3702_v0  ;;  %v3709_v57 = vrot.slane %v3707_v54, 1  ;;  %v11435_v10 = vsel %vm7760_vm2, 0, %v3220_v31  ;;  %v3705_v19 = vshrl.u32 %v11408_v60, 16 }
 0x3c7   : > { %13926 = vst [vmem:[#allocation7_spill] sm:$0xff] %v11411_v30  ;;  %3786 = vrot.lane.b32.xlu1 %v11419_v32, %s7693_s19  ;;  %v3712_v27 = vshll.u32 %v3353_v21, 16  ;;  %v4564_v44 = vsel %vm1582_vm8, %v10924_v33, %v4129_v16  ;;  %v11451_v54 = vsel %vm1297_vm4, %v3941_v52, %v3942_v34  ;;  %v3719_v42 = vshll.u32 %v11435_v10, 16 }
 0x3c8   : > { %4274 = vrot.lane.b32.xlu0 %v11419_v32, %s7697_s28  ;;  %v4641_v0 = vsel %vm1666_vm12, %v4564_v44, %v4193_v28  ;;  %v3710_v39 = vor.u32 %v3709_v57, %v3705_v19  ;;  %v4385_v16 = vsel %vm1666_vm12, %v4321_v11, %v11323_v8  ;;  %v3222_v34 = vshrl.u32 %v11142_v29, 16 }
 0x3c9   : > { %v11426_v46 = vpop.permute.xlu1 %3987  ;;  %v4467_v28 = vsel %vm1764_vm14, %v4385_v16, %v11358_v56  ;;  %v3714_v52 = vrot.slane %v3712_v27, 1  ;;  %v3354_v8 = vsel %vm7760_vm2, %v3217_v24, 0  ;;  %v3721_v56 = vrot.slane %v3719_v42, 1 }
 0x3ca   : > { %v4131_v35 = vpop.permute.xlu0 %4130  ;;  %v3717_v24 = vshrl.u32 %v11435_v10, 16 }
 0x3cb   : > { %4070 = vrot.lane.b32.xlu1 %v11408_v60, %s7697_s28 }
 0x3cc   : > { %4212 = vrot.lane.b32.xlu0 %v11408_v60, %s7698_s27  ;;  %v3722_v1 = vor.u32 %v3721_v56, %v3717_v24 }
 0x3cd   : > { %v11445_v13 = vpop.permute.xlu1 %3768 }
 0x3ce   : > { %v4257_v4 = vpop.permute.xlu0 %4256 }
 0x3cf   : > { %4007 = vrot.lane.b32.xlu1 %v11451_v54, %s7698_s27  ;;  %v4723_v33 = vsel %vm1764_vm14, %v4641_v0, %v4257_v4 }
 0x3d0   : > { %4150 = vrot.lane.b32.xlu0 %v11451_v54, %s7693_s19  ;;  %5186 = vmatprep.mubr.bf16.mxu1 %v4723_v33  ;;  %v11476_v33 = vsel %vm1024_vm3, %v3710_v39, %v3714_v52 }
 0x3d1   : > { %v11447_v15 = vpop.f32.mrb[160].mxu0  ;;  %5187 = vmatmul.mubr.bf16.gmra.mrb[72].mxu1 %v4467_v28  ;;  %v11470_v44 = vpop.permute.xlu1 %4052 }
 0x3d2   : > { %v11453_v31 = vpop.f32.mrb[161].mxu0  ;;  %v4195_v4 = vpop.permute.xlu0 %4194 }
 0x3d3   : > { %v11461_v21 = vpop.f32.mrb[162].mxu0  ;;  %v5060_v19 = vpop.f32.mrb[8].mxu1  ;;  %3788 = vrot.lane.b32.xlu1 %v11476_v33, %s7693_s19 }
 0x3d4   : > { %v11467_v57 = vpop.f32.mrb[163].mxu0  ;;  %v5061_v11 = vadd.f32 %v11319_v38, %v5060_v19  ;;  %v5062_v0 = vpop.f32.mrb[9].mxu1  ;;  %4276 = vrot.lane.b32.xlu0 %v11476_v33, %s7697_s28  ;;  %v3724_v19 = vshll.u32 %v3354_v8, 16 }
 0x3d5   : > { %v5063_v27 = vpop.f32.mrb[10].mxu1  ;;  %v3224_v0 = vrot.slane %v3222_v34, 7  ;;  %v11487_v39 = vpop.permute.xlu1 %3989 }
 0x3d6   : > { %v11481_v16 = vadd.f32 %v10881_v63, %v5061_v11  ;;  %v5064_v28 = vadd.f32 %v11319_v38, %v5063_v27  ;;  %v5065_v30 = vpop.f32.mrb[11].mxu1  ;;  %v4133_v52 = vpop.permute.xlu0 %4132  ;;  %v3225_v63 = vshll.u32 %v11142_v29, 16  ;;  %v4323_v11 = vsel %vm1582_vm8, %v10317_v9, %v11393_v26 }
 0x3d7   : > { %4072 = vrot.lane.b32.xlu1 %v11435_v10, %s7697_s28  ;;  %v3944_v30 = vrot.slane %v11435_v10, 1  ;;  %v3726_v34 = vrot.slane %v3724_v19, 1  ;;  %v3945_v29 = vrot.slane %v3354_v8, 1  ;;  %v4570_v2 = vsel %vm1582_vm8, %v11081_v45, %v4133_v52 }
 0x3d8   : > { %13928 = vst [vmem:[#allocation32_spill] sm:$0xff] %v11481_v16  ;;  %v11490_v42 = vadd.f32 %v10903_v51, %v5064_v28  ;;  %4214 = vrot.lane.b32.xlu0 %v11435_v10, %s7698_s27  ;;  %v3227_v27 = vor.u32 %v3225_v63, %v3224_v0  ;;  %v4567_v51 = vsel %vm1582_vm8, %v11012_v17, %v4131_v35 }
 0x3d9   : > { %v11503_v56 = vpop.permute.xlu1 %3770  ;;  %v4643_v28 = vsel %vm1666_vm12, %v4567_v51, %v4195_v4  ;;  %v11512_v9 = vsel %vm1297_vm4, %v3944_v30, %v3945_v29  ;;  %v4387_v17 = vsel %vm1666_vm12, %v4323_v11, %v11374_v62 }
 0x3da   : > { %13929 = vst [vmem:[#allocation17_spill] sm:$0xff] %v11490_v42  ;;  %v4259_v24 = vpop.permute.xlu0 %4258  ;;  %v11507_v42 = vsel %vm1024_vm3, %v3722_v1, %v3726_v34  ;;  %v4470_v35 = vsel %vm1764_vm14, %v4387_v17, %v11415_v6  ;;  %v3323_v1 = vsel %vm7760_vm2, 0, %v3227_v27  ;;  %v13930_v34 = vld [vmem:[#allocation30_spill] sm:$0xff] }
 0x3db   : > { %3790 = vrot.lane.b32.xlu1 %v11507_v42, %s7693_s19  ;;  %v4726_v26 = vsel %vm1764_vm14, %v4643_v28, %v4259_v24  ;;  %v4079_v63 = vshll.u32 %v3323_v1, 16  ;;  %v3355_v24 = vsel %vm7760_vm2, %v3224_v0, 0  ;;  %vm5660_vm2 = vcmask 1043456  }
 0x3dc   : > { %4152 = vrot.lane.b32.xlu0 %v11512_v9, %s7693_s19  ;;  %5194 = vmatprep.mubr.bf16.mxu1 %v4726_v26  ;;  %v4089_v26 = vrot.slane %v3323_v1, 1 }
 0x3dd   : > { %5195 = vmatmul.mubr.bf16.gmra.mrb[76].mxu1 %v4470_v35  ;;  %v11523_v8 = vpop.permute.xlu1 %4054  ;;  %v4081_v35 = vrot.slane %v4079_v63, 1  ;;  %v4084_v63 = vshll.u32 %v3355_v24, 16 }
 0x3de   : > { %v4197_v4 = vpop.permute.xlu0 %4196 }
 0x3df   : > { %4009 = vrot.lane.b32.xlu1 %v11512_v9, %s7698_s27 }
 0x3e0   : > { %4278 = vrot.lane.b32.xlu0 %v11507_v42, %s7697_s28 }
 0x3e1   : > { %v5068_v19 = vpop.f32.mrb[12].mxu1  ;;  %v11530_v6 = vpop.permute.xlu1 %3991 }
 0x3e2   : > { %v5069_v62 = vadd.f32 %v11319_v38, %v5068_v19  ;;  %v5070_v30 = vpop.f32.mrb[13].mxu1  ;;  %v4135_v28 = vpop.permute.xlu0 %4134  ;;  %v13932_v19 = vld [vmem:[#allocation48_spill] sm:$0xff] }
 0x3e3   : > { %v5071_v11 = vpop.f32.mrb[14].mxu1  ;;  %4074 = vrot.lane.b32.xlu1 %v3323_v1, %s7697_s28 }
 0x3e4   : > { %v11533_v27 = vadd.f32 %v13930_v34, %v5069_v62  ;;  %v5072_v51 = vadd.f32 %v11319_v38, %v5071_v11  ;;  %v5073_v29 = vpop.f32.mrb[15].mxu1  ;;  %v4325_v62 = vsel %vm1582_vm8, %v13869_v25, %v11445_v13  ;;  %4216 = vrot.lane.b32.xlu0 %v3323_v1, %s7698_s27  ;;  %v4090_v34 = vrot.slane %v3355_v24, 1 }
 0x3e5   : > { %v3773_v0 = vpop.permute.xlu1 %3772  ;;  %v4389_v16 = vsel %vm1666_vm12, %v4325_v62, %v11426_v46 }
 0x3e6   : > { %13931 = vst [vmem:[#allocation8_spill] sm:$0xff] %v11533_v27  ;;  %v11539_v17 = vpop.f32.mrb[164].mxu0  ;;  %v11542_v30 = vadd.f32 %v13932_v19, %v5072_v51  ;;  %v4077_v27 = vshrl.u32 %v3323_v1, 16  ;;  %v4645_v51 = vsel %vm1666_vm12, %v4570_v2, %v4197_v4  ;;  %v4261_v19 = vpop.permute.xlu0 %4260  ;;  %v11558_v25 = vsel %vm1297_vm4, %v4089_v26, %v4090_v34  ;;  %v5604_v26 = vld [vmem:[%s13572_s7] sm:$0xf] }
 0x3e7   : > { %v11548_v11 = vpop.f32.mrb[165].mxu0  ;;  %v4729_v13 = vsel %vm1764_vm14, %v4645_v51, %v4261_v19  ;;  %v4473_v52 = vsel %vm1764_vm14, %v4389_v16, %v11470_v44  ;;  %v4086_v4 = vrot.slane %v4084_v63, 1  ;;  %7601 = vmatprep.subr.msk.bf16.mxu1 %vm5660_vm2, %v5604_v26  ;;  %v4327_v19 = vsel %vm1582_vm8, %v13877_v41, %v11503_v56  ;;  %v13937_v56 = vld [vmem:[#allocation4_spill] sm:$0xff] }
 0x3e8   : > { %13933 = vst [vmem:[#allocation36_spill] sm:$0xff] %v11542_v30  ;;  %v11552_v29 = vpop.f32.mrb[166].mxu0  ;;  %v4082_v45 = vor.u32 %v4081_v35, %v4077_v27  ;;  %4154 = vrot.lane.b32.xlu0 %v11558_v25, %s7693_s19  ;;  %5202 = vmatprep.mubr.bf16.mxu1 %v4729_v13  ;;  %v13935_v13 = vld [vmem:[#allocation2_spill] sm:$0xff]  ;;  %v4391_v41 = vsel %vm1666_vm12, %v4327_v19, %v11487_v39  ;;  %vm6085_vm4 = vcmask 1042434  }
 0x3e9   : > { %v11555_v30 = vpop.f32.mrb[167].mxu0  ;;  %5203 = vmatmul.mubr.bf16.gmra.mrb[80].mxu1 %v4473_v52  ;;  %v4057_v1 = vpop.permute.xlu1 %4056 }
 0x3ea   : > { %v4199_v24 = vpop.permute.xlu0 %4198  ;;  %v11571_v2 = vsel %vm1024_vm3, %v4082_v45, %v4086_v4  ;;  %v4573_v45 = vsel %vm1582_vm8, %v11133_v50, %v4135_v28  ;;  %v4476_v50 = vsel %vm1764_vm14, %v4391_v41, %v11523_v8  ;;  %vm6082_vm3 = vcmask 1041409  }
 0x3ec   : > { %4280 = vrot.lane.b32.xlu0 %v11571_v2, %s7697_s28 }
 0x3ed   : > { %v3994_v27 = vpop.permute.xlu1 %3993 }
 0x3ee   : > { %v5076_v46 = vpop.f32.mrb[16].mxu1  ;;  %v4137_v35 = vpop.permute.xlu0 %4136 }
 0x3ef   : > { %v5077_v44 = vadd.f32 %v11319_v38, %v5076_v46  ;;  %v5078_v16 = vpop.f32.mrb[17].mxu1  ;;  %v4647_v46 = vsel %vm1666_vm12, %v4573_v45, %v4199_v24 }
 0x3f0   : > { %v5079_v62 = vpop.f32.mrb[18].mxu1  ;;  %4218 = vrot.lane.b32.xlu0 %v13935_v13, %s7698_s27  ;;  %v4329_v13 = vsel %vm1582_vm8, %v13883_v58, %v3773_v0 }
 0x3f1   : > { %v11578_v34 = vadd.f32 %v11005_v43, %v5077_v44  ;;  %v5080_v63 = vadd.f32 %v11319_v38, %v5079_v62  ;;  %v5081_v51 = vpop.f32.mrb[19].mxu1  ;;  %v3775_v52 = vpop.permute.xlu1 %3774  ;;  %v11592_v43 = vsel %vm5660_vm2, %v5604_v26, 0  ;;  %v4393_v58 = vsel %vm1666_vm12, %v4329_v13, %v11530_v6 }
 0x3f2   : > { %v4263_v44 = vpop.permute.xlu0 %4262  ;;  %v4479_v0 = vsel %vm1764_vm14, %v4393_v58, %v4057_v1 }
 0x3f3   : > { %13934 = vst [vmem:[#allocation42_spill] sm:$0xff] %v11578_v34  ;;  %v11589_v4 = vadd.f32 %v11036_v53, %v5080_v63  ;;  %v4732_v16 = vsel %vm1764_vm14, %v4647_v46, %v4263_v44  ;;  %v4576_v46 = vsel %vm1582_vm8, %v11171_v5, %v4137_v35  ;;  %v13940_v5 = vld [vmem:[#allocation19_spill] sm:$0xff] }
 0x3f4   : > { %4282 = vrot.lane.b32.xlu0 %v13937_v56, %s7697_s28  ;;  %5210 = vmatprep.mubr.bf16.mxu1 %v4732_v16 }
 0x3f5   : > { %13936 = vst [vmem:[#allocation25_spill] sm:$0xff] %v11589_v4  ;;  %5211 = vmatmul.mubr.bf16.gmra.mrb[84].mxu1 %v4476_v50  ;;  %v4059_v28 = vpop.permute.xlu1 %4058 }
 0x3f6   : > { %v4201_v24 = vpop.permute.xlu0 %4200 }
 0x3f7   : > { %v4649_v41 = vsel %vm1666_vm12, %v4576_v46, %v4201_v24 }
 0x3f8   : > { %v11602_v53 = vpop.f32.mrb[168].mxu0 }
 0x3f9   : > { %v11604_v26 = vpop.f32.mrb[169].mxu0  ;;  %v3996_v51 = vpop.permute.xlu1 %3995 }
 0x3fa   : > { %v11606_v62 = vpop.f32.mrb[170].mxu0  ;;  %v4139_v39 = vpop.permute.xlu0 %4138 }
 0x3fb   : > { %13938 = vst [vmem:[#allocation46_spill] sm:$0xff] %v11606_v62  ;;  %v11608_v63 = vpop.f32.mrb[171].mxu0 }
 0x3fd   : > { %v5084_v19 = vpop.f32.mrb[20].mxu1  ;;  %v3777_v44 = vpop.permute.xlu1 %3776 }
 0x3fe   : > { %v5085_v45 = vadd.f32 %v11319_v38, %v5084_v19  ;;  %v5086_v8 = vpop.f32.mrb[21].mxu1  ;;  %v4265_v56 = vpop.permute.xlu0 %4264 }
 0x3ff   : > { %v5087_v16 = vpop.f32.mrb[22].mxu1  ;;  %v4735_v62 = vsel %vm1764_vm14, %v4649_v41, %v4265_v56 }
 0x400   : > { %v11617_v50 = vadd.f32 %v10998_v37, %v5085_v45  ;;  %v5088_v4 = vadd.f32 %v11319_v38, %v5087_v16  ;;  %v5089_v34 = vpop.f32.mrb[23].mxu1  ;;  %5218 = vmatprep.mubr.bf16.mxu1 %v4735_v62  ;;  %v4331_v45 = vsel %vm1582_vm8, %v13887_v61, %v3775_v52 }
 0x401   : > { %5219 = vmatmul.mubr.bf16.gmra.mrb[88].mxu1 %v4479_v0  ;;  %v4061_v24 = vpop.permute.xlu1 %4060  ;;  %v4579_v34 = vsel %vm1582_vm8, %v11210_v12, %v4139_v39  ;;  %v4395_v41 = vsel %vm1666_vm12, %v4331_v45, %v3994_v27 }
 0x402   : > { %13939 = vst [vmem:[#allocation20_spill] sm:$0xff] %v11617_v50  ;;  %v11625_v35 = vadd.f32 %v13940_v5, %v5088_v4  ;;  %v4203_v19 = vpop.permute.xlu0 %4202  ;;  %v4482_v61 = vsel %vm1764_vm14, %v4395_v41, %v4059_v28 }
 0x403   : > { %v4651_v6 = vsel %vm1666_vm12, %v4579_v34, %v4203_v19 }
 0x404   : > { %13941 = vst [vmem:[#allocation10_spill] sm:$0xff] %v11625_v35 }
 0x405   : > { %v3998_v8 = vpop.permute.xlu1 %3997 }
 0x406   : > { %v4141_v37 = vpop.permute.xlu0 %4140 }
 0x409   : > { %v3779_v46 = vpop.permute.xlu1 %3778 }
 0x40a   : > { %v4267_v1 = vpop.permute.xlu0 %4266 }
 0x40b   : > { %v11631_v16 = vpop.f32.mrb[172].mxu0  ;;  %v4738_v4 = vsel %vm1764_vm14, %v4651_v6, %v4267_v1  ;;  %v4333_v1 = vsel %vm1582_vm8, %v10695_v59, %v3777_v44 }
 0x40c   : > { %v11634_v62 = vpop.f32.mrb[173].mxu0  ;;  %5226 = vmatprep.mubr.bf16.mxu1 %v4738_v4  ;;  %v4582_v4 = vsel %vm1582_vm8, %v11243_v20, %v4141_v37 }
 0x40d   : > { %v11637_v13 = vpop.f32.mrb[174].mxu0  ;;  %v5092_v56 = vpop.f32.mrb[24].mxu1  ;;  %5227 = vmatmul.mubr.bf16.gmra.mrb[92].mxu1 %v4482_v61 }
 0x40e   : > { %v11641_v52 = vpop.f32.mrb[175].mxu0  ;;  %v5093_v12 = vadd.f32 %v11319_v38, %v5092_v56  ;;  %v5094_v39 = vpop.f32.mrb[25].mxu1 }
 0x40f   : > { %v4063_v58 = vpop.permute.xlu1 %4062  ;;  %v5095_v0 = vpop.f32.mrb[26].mxu1 }
 0x410   : > { %v4205_v5 = vpop.permute.xlu0 %4204  ;;  %v11645_v19 = vadd.f32 %v11122_v18, %v5093_v12  ;;  %v5096_v34 = vadd.f32 %v11319_v38, %v5095_v0  ;;  %v5097_v6 = vpop.f32.mrb[27].mxu1  ;;  %v4397_v12 = vsel %vm1666_vm12, %v4333_v1, %v3996_v51 }
 0x411   : > { %v4653_v56 = vsel %vm1666_vm12, %v4582_v4, %v4205_v5 }
 0x412   : > { %v11649_v27 = vadd.f32 %v11136_v55, %v5096_v34  ;;  %v4485_v55 = vsel %vm1764_vm14, %v4397_v12, %v4061_v24  ;;  %v4335_v24 = vsel %vm1582_vm8, %v13895_v49, %v3779_v46 }
 0x413   : > { %v4000_v45 = vpop.permute.xlu1 %3999 }
 0x414   : > { %v4143_v28 = vpop.permute.xlu0 %4142 }
 0x417   : > { %v3781_v41 = vpop.permute.xlu1 %3780 }
 0x418   : > { %v4269_v61 = vpop.permute.xlu0 %4268  ;;  %v5100_v39 = vpop.f32.mrb[28].mxu1 }
 0x419   : > { %v4741_v18 = vsel %vm1764_vm14, %v4653_v56, %v4269_v61  ;;  %v5101_v34 = vadd.f32 %v11319_v38, %v5100_v39  ;;  %v5102_v59 = vpop.f32.mrb[29].mxu1  ;;  %v4585_v61 = vsel %vm1582_vm8, %v11273_v48, %v4143_v28 }
 0x41a   : > { %5234 = vmatprep.mubr.bf16.mxu1 %v4741_v18  ;;  %v5103_v6 = vpop.f32.mrb[30].mxu1  ;;  %v4399_v59 = vsel %vm1666_vm12, %v4335_v24, %v3998_v8 }
 0x41b   : > { %5235 = vmatmul.mubr.bf16.gmra.mrb[96].mxu1 %v4485_v55  ;;  %v4065_v0 = vpop.permute.xlu1 %4064  ;;  %v11661_v20 = vadd.f32 %v11118_v3, %v5101_v34  ;;  %v5104_v37 = vadd.f32 %v11319_v38, %v5103_v6  ;;  %v5105_v5 = vpop.f32.mrb[31].mxu1  ;;  %v4488_v49 = vsel %vm1764_vm14, %v4399_v59, %v4063_v58 }
 0x41c   : > { %v4207_v44 = vpop.permute.xlu0 %4206 }
 0x41d   : > { %v11665_v51 = vadd.f32 %v11130_v14, %v5104_v37  ;;  %v4655_v12 = vsel %vm1666_vm12, %v4585_v61, %v4207_v44  ;;  %v4337_v61 = vsel %vm1582_vm8, %v13903_v23, %v3781_v41 }
 0x41e   : > { %v4401_v23 = vsel %vm1666_vm12, %v4337_v61, %v4000_v45  ;;  %v13944_v61 = vld [vmem:[#allocation34_spill] sm:$0xff] }
 0x41f   : > { %v4002_v4 = vpop.permute.xlu1 %4001 }
 0x420   : > { %v4145_v1 = vpop.permute.xlu0 %4144  ;;  %v11669_v56 = vpop.f32.mrb[176].mxu0 }
 0x421   : > { %v11673_v18 = vpop.f32.mrb[177].mxu0  ;;  %v4588_v8 = vsel %vm1582_vm8, %v11313_v36, %v4145_v1  ;;  %v4491_v36 = vsel %vm1764_vm14, %v4401_v23, %v4065_v0 }
 0x422   : > { %v11676_v55 = vpop.f32.mrb[178].mxu0 }
 0x423   : > { %v3783_v3 = vpop.permute.xlu1 %3782  ;;  %v11678_v34 = vpop.f32.mrb[179].mxu0 }
 0x424   : > { %v4271_v39 = vpop.permute.xlu0 %4270 }
 0x425   : > { %v4744_v14 = vsel %vm1764_vm14, %v4655_v12, %v4271_v39 }
 0x426   : > { %5242 = vmatprep.mubr.bf16.mxu1 %v4744_v14 }
 0x427   : > { %5243 = vmatmul.mubr.bf16.gmra.mrb[100].mxu1 %v4488_v49  ;;  %v4067_v46 = vpop.permute.xlu1 %4066 }
 0x428   : > { %v4209_v48 = vpop.permute.xlu0 %4208  ;;  %v5108_v37 = vpop.f32.mrb[32].mxu1 }
 0x429   : > { %v5109_v44 = vadd.f32 %v11319_v38, %v5108_v37  ;;  %v5110_v5 = vpop.f32.mrb[33].mxu1  ;;  %v4657_v14 = vsel %vm1666_vm12, %v4588_v8, %v4209_v48 }
 0x42a   : > { %v5111_v35 = vpop.f32.mrb[34].mxu1 }
 0x42b   : > { %v11683_v28 = vpop.permute.xlu1 %4003  ;;  %v11691_v24 = vadd.f32 %v11182_v22, %v5109_v44  ;;  %v5112_v12 = vadd.f32 %v11319_v38, %v5111_v35  ;;  %v5113_v39 = vpop.f32.mrb[35].mxu1 }
 0x42c   : > { %v4147_v6 = vpop.permute.xlu0 %4146 }
 0x42d   : > { %13942 = vst [vmem:[#allocation37_spill] sm:$0xff] %v11691_v24  ;;  %v11696_v49 = vadd.f32 %v11197_v40, %v5112_v12 }
 0x42f   : > { %v3785_v58 = vpop.permute.xlu1 %3784  ;;  %13943 = vst [vmem:[#allocation47_spill] sm:$0xff] %v11696_v49 }
 0x430   : > { %v4273_v59 = vpop.permute.xlu0 %4272  ;;  %v11701_v41 = vpop.f32.mrb[180].mxu0 }
 0x431   : > { %v4747_v37 = vsel %vm1764_vm14, %v4657_v14, %v4273_v59  ;;  %v11703_v35 = vpop.f32.mrb[181].mxu0  ;;  %v5116_v44 = vpop.f32.mrb[36].mxu1 }
 0x432   : > { %5250 = vmatprep.mubr.bf16.mxu1 %v4747_v37  ;;  %v11705_v48 = vpop.f32.mrb[182].mxu0  ;;  %v5117_v40 = vadd.f32 %v11319_v38, %v5116_v44  ;;  %v5118_v5 = vpop.f32.mrb[37].mxu1  ;;  %v13946_v37 = vld [vmem:[#allocation6_spill] sm:$0xff]  ;;  %v13947_v44 = vld [vmem:[#allocation21_spill] sm:$0xff] }
 0x433   : > { %5251 = vmatmul.mubr.bf16.gmra.mrb[104].mxu1 %v4491_v36  ;;  %v4069_v22 = vpop.permute.xlu1 %4068  ;;  %v11708_v8 = vpop.f32.mrb[183].mxu0  ;;  %v4339_v23 = vsel %vm1582_vm8, %v13946_v37, %v3783_v3  ;;  %v4591_v36 = vsel %vm1582_vm8, %v11361_v7, %v4147_v6 }
 0x434   : > { %v4211_v1 = vpop.permute.xlu0 %4210  ;;  %v11713_v0 = vadd.f32 %v13944_v61, %v5117_v40  ;;  %v5119_v39 = vpop.f32.mrb[38].mxu1  ;;  %v4403_v61 = vsel %vm1666_vm12, %v4339_v23, %v4002_v4 }
 0x435   : > { %v5120_v14 = vadd.f32 %v11319_v38, %v5119_v39  ;;  %v5121_v59 = vpop.f32.mrb[39].mxu1  ;;  %v4659_v49 = vsel %vm1666_vm12, %v4591_v36, %v4211_v1  ;;  %v4494_v39 = vsel %vm1764_vm14, %v4403_v61, %v4067_v46  ;;  %v4341_v46 = vsel %vm1582_vm8, %v10931_v47, %v3785_v58 }
 0x436   : > { %13945 = vst [vmem:[#allocation23_spill] sm:$0xff] %v11713_v0  ;;  %v4405_v47 = vsel %vm1666_vm12, %v4341_v46, %v11683_v28 }
 0x437   : > { %v11710_v12 = vpop.permute.xlu1 %4005  ;;  %v11721_v5 = vadd.f32 %v13947_v44, %v5120_v14  ;;  %v13949_v14 = vld [vmem:[#allocation33_spill] sm:$0xff]  ;;  %v4497_v58 = vsel %vm1764_vm14, %v4405_v47, %v4069_v22 }
 0x438   : > { %v4149_v45 = vpop.permute.xlu0 %4148  ;;  %v5124_v0 = vpop.f32.mrb[40].mxu1  ;;  %v13950_v44 = vld [vmem:[#allocation13_spill] sm:$0xff] }
 0x439   : > { %13948 = vst [vmem:[#allocation15_spill] sm:$0xff] %v11721_v5  ;;  %v5125_v3 = vadd.f32 %v11319_v38, %v5124_v0  ;;  %v5126_v59 = vpop.f32.mrb[41].mxu1  ;;  %v4594_v61 = vsel %vm1582_vm8, %v11419_v32, %v4149_v45  ;;  %v13952_v32 = vld [vmem:[#allocation35_spill] sm:$0xff] }
 0x43a   : > { %v5127_v7 = vpop.f32.mrb[42].mxu1 }
 0x43b   : > { %v3787_v50 = vpop.permute.xlu1 %3786  ;;  %v11729_v37 = vadd.f32 %v13949_v14, %v5125_v3  ;;  %v5128_v1 = vadd.f32 %v11319_v38, %v5127_v7  ;;  %v5129_v36 = vpop.f32.mrb[43].mxu1  ;;  %v13951_v7 = vld [vmem:[#allocation41_spill] sm:$0xff] }
 0x43c   : > { %v4275_v24 = vpop.permute.xlu0 %4274 }
 0x43d   : > { %v4750_v40 = vsel %vm1764_vm14, %v4659_v49, %v4275_v24  ;;  %v11733_v24 = vadd.f32 %v13950_v44, %v5128_v1 }
 0x43e   : > { %5258 = vmatprep.mubr.bf16.mxu1 %v4750_v40 }
 0x43f   : > { %5259 = vmatmul.mubr.bf16.gmra.mrb[108].mxu1 %v4494_v39  ;;  %v4071_v4 = vpop.permute.xlu1 %4070 }
 0x440   : > { %v4213_v6 = vpop.permute.xlu0 %4212  ;;  %v5132_v23 = vpop.f32.mrb[44].mxu1 }
 0x441   : > { %v5133_v0 = vadd.f32 %v11319_v38, %v5132_v23  ;;  %v5134_v40 = vpop.f32.mrb[45].mxu1  ;;  %v4661_v3 = vsel %vm1666_vm12, %v4594_v61, %v4213_v6 }
 0x442   : > { %v5135_v39 = vpop.f32.mrb[46].mxu1 }
 0x443   : > { %v11742_v14 = vadd.f32 %v13951_v7, %v5133_v0  ;;  %v5136_v1 = vadd.f32 %v11319_v38, %v5135_v39  ;;  %v5137_v36 = vpop.f32.mrb[47].mxu1  ;;  %v4008_v44 = vpop.permute.xlu1 %4007  ;;  %v13953_v7 = vld [vmem:[#allocation11_spill] sm:$0xff] }
 0x444   : > { %v4151_v49 = vpop.permute.xlu0 %4150 }
 0x445   : > { %v11750_v45 = vadd.f32 %v13952_v32, %v5136_v1  ;;  %v4597_v28 = vsel %vm1582_vm8, %v11476_v33, %v4151_v49 }
 0x447   : > { %v3789_v23 = vpop.permute.xlu1 %3788 }
 0x448   : > { %v4277_v59 = vpop.permute.xlu0 %4276 }
 0x449   : > { %v4753_v5 = vsel %vm1764_vm14, %v4661_v3, %v4277_v59  ;;  %v4343_v3 = vsel %vm1582_vm8, %v13953_v7, %v3787_v50  ;;  %v13955_v50 = vld [vmem:[#allocation16_spill] sm:$0xff] }
 0x44a   : > { %5266 = vmatprep.mubr.bf16.mxu1 %v4753_v5  ;;  %v13954_v5 = vld [vmem:[#allocation27_spill] sm:$0xff] }
 0x44b   : > { %5267 = vmatmul.mubr.bf16.gmra.mrb[112].mxu1 %v4497_v58  ;;  %v4073_v58 = vpop.permute.xlu1 %4072 }
 0x44c   : > { %v4215_v6 = vpop.permute.xlu0 %4214 }
 0x44d   : > { %v4663_v36 = vsel %vm1666_vm12, %v4597_v28, %v4215_v6  ;;  %v4345_v6 = vsel %vm1582_vm8, %v11408_v60, %v3789_v23 }
 0x44e   : > { %v4409_v60 = vsel %vm1666_vm12, %v4345_v6, %v4008_v44 }
 0x44f   : > { %v4503_v23 = vsel %vm1764_vm14, %v4409_v60, %v4073_v58 }
 0x450   : > { %v4153_v0 = vpop.permute.xlu0 %4152 }
 0x451   : > { %v5140_v40 = vpop.f32.mrb[48].mxu1 }
 0x452   : > { %v5141_v61 = vadd.f32 %v11319_v38, %v5140_v40  ;;  %v5142_v39 = vpop.f32.mrb[49].mxu1  ;;  %v4407_v40 = vsel %vm1666_vm12, %v4343_v3, %v11710_v12  ;;  %v4600_v12 = vsel %vm1582_vm8, %v11507_v42, %v4153_v0 }
 0x453   : > { %v5143_v59 = vpop.f32.mrb[50].mxu1  ;;  %v4500_v33 = vsel %vm1764_vm14, %v4407_v40, %v4071_v4 }
 0x454   : > { %v11758_v22 = vadd.f32 %v13954_v5, %v5141_v61  ;;  %v5144_v46 = vadd.f32 %v11319_v38, %v5143_v59  ;;  %v5145_v1 = vpop.f32.mrb[51].mxu1  ;;  %v4279_v47 = vpop.permute.xlu0 %4278 }
 0x455   : > { %v4756_v32 = vsel %vm1764_vm14, %v4663_v36, %v4279_v47  ;;  %v3791_v61 = vpop.permute.xlu1 %3790  ;;  %v13956_v36 = vld [vmem:[#allocation14_spill] sm:$0xff] }
 0x456   : > { %v11766_v39 = vadd.f32 %v13955_v50, %v5144_v46  ;;  %5274 = vmatprep.mubr.bf16.mxu1 %v4756_v32 }
 0x457   : > { %5275 = vmatmul.mubr.bf16.gmra.mrb[116].mxu1 %v4500_v33  ;;  %v13957_v33 = vld [vmem:[#allocation9_spill] sm:$0xff] }
 0x458   : > { %v4217_v49 = vpop.permute.xlu0 %4216 }
 0x459   : > { %v4665_v46 = vsel %vm1666_vm12, %v4600_v12, %v4217_v49  ;;  %v4010_v40 = vpop.permute.xlu1 %4009 }
 0x45c   : > { %v4155_v7 = vpop.permute.xlu0 %4154 }
 0x45d   : > { %v4075_v49 = vpop.permute.xlu1 %4074 }
 0x45e   : > { %v5148_v59 = vpop.f32.mrb[52].mxu1 }
 0x45f   : > { %v5149_v28 = vadd.f32 %v11319_v38, %v5148_v59  ;;  %v5150_v5 = vpop.f32.mrb[53].mxu1  ;;  %v4603_v59 = vsel %vm1582_vm8, %v11571_v2, %v4155_v7 }
 0x460   : > { %v5151_v3 = vpop.f32.mrb[54].mxu1  ;;  %v4281_v1 = vpop.permute.xlu0 %4280 }
 0x461   : > { %v11776_v4 = vadd.f32 %v13956_v36, %v5149_v28  ;;  %v5152_v47 = vadd.f32 %v11319_v38, %v5151_v3  ;;  %v5153_v32 = vpop.f32.mrb[55].mxu1  ;;  %v4759_v50 = vsel %vm1764_vm14, %v4665_v46, %v4281_v1  ;;  %v4347_v28 = vsel %vm1582_vm8, %v11435_v10, %v3791_v61  ;;  %v13958_v3 = vld [vmem:[#allocation5_spill] sm:$0xff] }
 0x462   : > { %5282 = vmatprep.mubr.bf16.mxu1 %v4759_v50  ;;  %v4411_v44 = vsel %vm1666_vm12, %v4347_v28, %v4010_v40  ;;  %v7651_v32 = vld [vmem:[%s7785_s15] sm:$0xff]  ;;  %v7652_v40 = vld [vmem:[%s7785_s15 + $0x8] sm:$0xff] }
 0x463   : > { %v11783_v42 = vadd.f32 %v13957_v33, %v5152_v47  ;;  %5283 = vmatmul.mubr.bf16.gmra.mrb[120].mxu1 %v4503_v23  ;;  %v4506_v58 = vsel %vm1764_vm14, %v4411_v44, %v4075_v49  ;;  %v13960_v50 = vld [vmem:[#allocation3_spill] sm:$0xff]  ;;  %v7654_v33 = vld [vmem:[%s7785_s15 + $0x18] sm:$0xff]  ;;  %v7655_v44 = vld [vmem:[%s7785_s15 + $0x20] sm:$0xff] }
 0x464   : > { %v4219_v0 = vpop.permute.xlu0 %4218 }
 0x465   : > { %v4667_v5 = vsel %vm1666_vm12, %v4603_v59, %v4219_v0  ;;  %v13961_v59 = vld [vmem:[#allocation38_spill] sm:$0xff] }
 0x468   : > { %v4283_v12 = vpop.permute.xlu0 %4282 }
 0x469   : > { %v4762_v6 = vsel %vm1764_vm14, %v4667_v5, %v4283_v12 }
 0x46a   : > { %5290 = vmatprep.mubr.bf16.mxu1 %v4762_v6  ;;  %v7656_v6 = vld [vmem:[%s7785_s15 + $0x28] sm:$0xff] }
 0x46b   : > { %5291 = vmatmul.mubr.bf16.gmra.mrb[124].mxu1 %v4506_v58  ;;  %v5590_v58 = vpack.c.bf16 %v7656_v6, %v7655_v44  ;;  %v7665_v44 = vld [vmem:[%s7785_s15 + $0x70] sm:$0xff]  ;;  %v7666_v6 = vld [vmem:[%s7785_s15 + $0x78] sm:$0xff] }
 0x46c   : > { %7555 = vmatprep.mubr.msk.bf16.mxu1 %vm1582_vm8, %v11451_v54  ;;  %v13959_v54 = vld [vmem:[#allocation39_spill] sm:$0xff] }
 0x471   : > { %v5156_v2 = vpop.f32.mrb[56].mxu1 }
 0x472   : > { %v5157_v7 = vadd.f32 %v11319_v38, %v5156_v2  ;;  %v5158_v10 = vpop.f32.mrb[57].mxu1  ;;  %v13962_v2 = vld [vmem:[#allocation24_spill] sm:$0xff] }
 0x473   : > { %v5159_v61 = vpop.f32.mrb[58].mxu1  ;;  %7556 = vmatmul.mubr.msk.bf16.vlgmr.msra.gmra.mrb[128].mxu1 %vm1582_vm8, %v11512_v9  ;;  %v5588_v9 = vpack.c.bf16 %v7652_v40, %v7651_v32  ;;  %v7657_v10 = vld [vmem:[%s7785_s15 + $0x30] sm:$0xff] }
 0x474   : > { %v11799_v46 = vadd.f32 %v13958_v3, %v5157_v7  ;;  %v5160_v1 = vadd.f32 %v11319_v38, %v5159_v61  ;;  %v5161_v36 = vpop.f32.mrb[59].mxu1  ;;  %7564 = vmatpush3.bf16.msra.mxu1 %v11592_v43  ;;  %7559 = vmatprep.mubr.msk.bf16.mxu1 %vm1582_vm8, %v11558_v25  ;;  %v7653_v25 = vld [vmem:[%s7785_s15 + $0x10] sm:$0xff]  ;;  %v7658_v61 = vld [vmem:[%s7785_s15 + $0x38] sm:$0xff] }
 0x475   : > { %v5589_v0 = vpack.c.bf16 %v7654_v33, %v7653_v25  ;;  %v5591_v3 = vpack.c.bf16 %v7658_v61, %v7657_v10  ;;  %v7660_v36 = vld [vmem:[%s7785_s15 + $0x48] sm:$0xff] }
 0x476   : > { %v11806_v47 = vadd.f32 %v13959_v54, %v5160_v1  ;;  %v7659_v1 = vld [vmem:[%s7785_s15 + $0x40] sm:$0xff] }
 0x477   : > { %v5592_v54 = vpack.c.bf16 %v7660_v36, %v7659_v1 }
 0x47b   : > { %7560 = vmatmul.mubr.msk.bf16.gmra.mrb[132].mxu1 %vm1582_vm8, %v13960_v50 }
 0x47c   : > { %7565 = vmatprep.mubr.msk.bf16.mxu1 %vm801_vm10, %v5588_v9 }
 0x47d   : > { %v5164_v60 = vpop.f32.mrb[60].mxu1 }
 0x47e   : > { %v5165_v43 = vadd.f32 %v11319_v38, %v5164_v60  ;;  %v5166_v23 = vpop.f32.mrb[61].mxu1  ;;  %v7661_v60 = vld [vmem:[%s7785_s15 + $0x50] sm:$0xff] }
 0x47f   : > { %v5167_v49 = vpop.f32.mrb[62].mxu1 }
 0x480   : > { %v11817_v28 = vadd.f32 %v13961_v59, %v5165_v43  ;;  %v5168_v5 = vadd.f32 %v11319_v38, %v5167_v49  ;;  %v5169_v12 = vpop.f32.mrb[63].mxu1  ;;  %v7662_v43 = vld [vmem:[%s7785_s15 + $0x58] sm:$0xff]  ;;  %v7663_v49 = vld [vmem:[%s7785_s15 + $0x60] sm:$0xff]  ;;  %v7664_v59 = vld [vmem:[%s7785_s15 + $0x68] sm:$0xff] }
 0x481   : > { %v5593_v23 = vpack.c.bf16 %v7662_v43, %v7661_v60  ;;  %v7671_v43 = vld [vmem:[%s7785_s15 + $0xa0] sm:$0xff] }
 0x482   : > { %v11823_v7 = vadd.f32 %v13962_v2, %v5168_v5  ;;  %v5594_v5 = vpack.c.bf16 %v7664_v59, %v7663_v49  ;;  %v7668_v2 = vld [vmem:[%s7785_s15 + $0x88] sm:$0xff]  ;;  %v7674_v49 = vld [vmem:[%s7785_s15 + $0xb0] sm:$0xff]  ;;  %v7675_v59 = vld [vmem:[%s7785_s15 + $0xb8] sm:$0xff] }
 0x483   : > { %7566 = vmatmul.mubr.msk.bf16.vlgmr.msra.gmra.mrb[136].mxu1 %vm801_vm10, %v5589_v0 }
 0x484   : > { %7569 = vmatprep.mubr.msk.bf16.mxu1 %vm801_vm10, %v5590_v58  ;;  %v5595_v58 = vpack.c.bf16 %v7666_v6, %v7665_v44  ;;  %v7676_v6 = vld [vmem:[%s7785_s15 + $0xc0] sm:$0xff] }
 0x48b   : > { %7570 = vmatmul.mubr.msk.bf16.gmra.mrb[140].mxu1 %vm801_vm10, %v5591_v3 }
 0x48c   : > { %7573 = vmatprep.mubr.msk.bf16.mxu1 %vm801_vm10, %v5592_v54  ;;  %v5172_v32 = vpop.f32.mrb[64].mxu1 }
 0x48d   : > { %v5173_v40 = vadd.f32 %v11319_v38, %v5172_v32  ;;  %v5174_v9 = vpop.f32.mrb[65].mxu1 }
 0x48e   : > { %v5175_v50 = vpop.f32.mrb[66].mxu1  ;;  %v7669_v9 = vld [vmem:[%s7785_s15 + $0x90] sm:$0xff] }
 0x48f   : > { %v11837_v25 = vadd.f32 %v11453_v31, %v5173_v40  ;;  %v5176_v33 = vadd.f32 %v11319_v38, %v5175_v50  ;;  %v5177_v0 = vpop.f32.mrb[67].mxu1  ;;  %v7667_v31 = vld [vmem:[%s7785_s15 + $0x80] sm:$0xff]  ;;  %v7670_v50 = vld [vmem:[%s7785_s15 + $0x98] sm:$0xff] }
 0x490   : > { %v5596_v10 = vpack.c.bf16 %v7668_v2, %v7667_v31  ;;  %v5597_v60 = vpack.c.bf16 %v7670_v50, %v7669_v9  ;;  %v7681_v9 = vld [vmem:[%s7785_s15 + $0xe8] sm:$0xff] }
 0x491   : > { %v11843_v12 = vadd.f32 %v11467_v57, %v5176_v33 }
 0x493   : > { %7574 = vmatmul.mubr.msk.bf16.gmra.mrb[144].mxu1 %vm801_vm10, %v5593_v23  ;;  %v7672_v23 = vld [vmem:[%s7785_s15 + $0xa8] sm:$0xff] }
 0x494   : > { %7577 = vmatprep.mubr.msk.bf16.mxu1 %vm801_vm10, %v5594_v5  ;;  %v5598_v33 = vpack.c.bf16 %v7672_v23, %v7671_v43  ;;  %v5599_v5 = vpack.c.bf16 %v7675_v59, %v7674_v49  ;;  %v7683_v49 = vld [vmem:[%s7785_s15 + $0xf8] sm:$0xff] }
 0x498   : > { %v5180_v61 = vpop.f32.mrb[68].mxu1 }
 0x499   : > { %v5181_v3 = vadd.f32 %v11319_v38, %v5180_v61  ;;  %v5182_v1 = vpop.f32.mrb[69].mxu1 }
 0x49a   : > { %v5183_v57 = vpop.f32.mrb[70].mxu1  ;;  %v7678_v1 = vld [vmem:[%s7785_s15 + $0xd0] sm:$0xff] }
 0x49b   : > { %7578 = vmatmul.mubr.msk.bf16.gmra.mrb[148].mxu1 %vm801_vm10, %v5595_v58  ;;  %v11854_v36 = vadd.f32 %v11447_v15, %v5181_v3  ;;  %v5184_v54 = vadd.f32 %v11319_v38, %v5183_v57  ;;  %v5185_v32 = vpop.f32.mrb[71].mxu1  ;;  %v11870_v15 = vld [vmem:[%s13571_s6] ss:$0 sm:$0xff]  ;;  %v7677_v58 = vld [vmem:[%s7785_s15 + $0xc8] sm:$0xff]  ;;  %v7679_v57 = vld [vmem:[%s7785_s15 + $0xd8] sm:$0xff] }
 0x49c   : > { %7581 = vmatprep.mubr.msk.bf16.mxu1 %vm801_vm10, %v5596_v10  ;;  %v5600_v31 = vpack.c.bf16 %v7677_v58, %v7676_v6  ;;  %v7680_v32 = vld [vmem:[%s7785_s15 + $0xe0] sm:$0xff] }
 0x49d   : > { %v11859_v40 = vadd.f32 %v11461_v21, %v5184_v54  ;;  %v5601_v54 = vpack.c.bf16 %v7679_v57, %v7678_v1  ;;  %v5602_v50 = vpack.c.bf16 %v7681_v9, %v7680_v32 }
 0x4a3   : > { %7582 = vmatmul.mubr.msk.bf16.gmra.mrb[152].mxu1 %vm801_vm10, %v5597_v60 }
 0x4a4   : > { %7585 = vmatprep.mubr.msk.bf16.mxu1 %vm801_vm10, %v5598_v33  ;;  %v5188_v38 = vpop.f32.mrb[72].mxu1 }
 0x4a5   : > { %v5189_v21 = vadd.f32 %v11870_v15, %v5188_v38  ;;  %v5190_v0 = vpop.f32.mrb[73].mxu1 }
 0x4a6   : > { %v5191_v44 = vpop.f32.mrb[74].mxu1  ;;  %v7682_v0 = vld [vmem:[%s7785_s15 + $0xf0] sm:$0xff] }
 0x4a7   : > { %v11878_v2 = vadd.f32 %v11548_v11, %v5189_v21  ;;  %v5192_v10 = vadd.f32 %v11870_v15, %v5191_v44  ;;  %v5193_v61 = vpop.f32.mrb[75].mxu1  ;;  %v5603_v59 = vpack.c.bf16 %v7683_v49, %v7682_v0 }
 0x4a9   : > { %v11882_v3 = vadd.f32 %v11555_v30, %v5192_v10 }
 0x4ab   : > { %7586 = vmatmul.mubr.msk.bf16.gmra.mrb[156].mxu1 %vm801_vm10, %v5599_v5 }
 0x4ac   : > { %7589 = vmatprep.mubr.msk.bf16.mxu1 %vm801_vm10, %v5600_v31 }
 0x4b0   : > { %v5196_v11 = vpop.f32.mrb[76].mxu1 }
 0x4b1   : > { %v5197_v60 = vadd.f32 %v11870_v15, %v5196_v11  ;;  %v5198_v43 = vpop.f32.mrb[77].mxu1  ;;  %v13966_v11 = vld [vmem:[#allocation46_spill] sm:$0xff] }
 0x4b2   : > { %v5199_v30 = vpop.f32.mrb[78].mxu1 }
 0x4b3   : > { %7590 = vmatmul.mubr.msk.bf16.gmra.mrb[160].mxu1 %vm801_vm10, %v5601_v54  ;;  %v11894_v23 = vadd.f32 %v11539_v17, %v5197_v60  ;;  %v5200_v33 = vadd.f32 %v11870_v15, %v5199_v30  ;;  %v5201_v38 = vpop.f32.mrb[79].mxu1 }
 0x4b4   : > { %7593 = vmatprep.mubr.msk.bf16.mxu1 %vm801_vm10, %v5602_v50 }
 0x4b5   : > { %v11898_v21 = vadd.f32 %v11552_v29, %v5200_v33 }
 0x4bb   : > { %7594 = vmatmul.mubr.msk.bf16.gmra.mrb[164].mxu1 %vm801_vm10, %v5603_v59  ;;  %vm6088_vm10 = vcmask 1043459  }
 0x4bc   : > { %v5204_v5 = vpop.f32.mrb[80].mxu1 }
 0x4bd   : > { %v5205_v44 = vadd.f32 %v11870_v15, %v5204_v5  ;;  %v5206_v6 = vpop.f32.mrb[81].mxu1 }
 0x4be   : > { %v5207_v58 = vpop.f32.mrb[82].mxu1 }
 0x4bf   : > { %v11905_v31 = vadd.f32 %v11604_v26, %v5205_v44  ;;  %v5208_v17 = vadd.f32 %v11870_v15, %v5207_v58  ;;  %v5209_v10 = vpop.f32.mrb[83].mxu1 }
 0x4c1   : > { %13963 = vst [vmem:[#allocation26_spill] sm:$0xff] %v11905_v31  ;;  %v11909_v61 = vadd.f32 %v11608_v63, %v5208_v17 }
 0x4c3   : > { %13964 = vst [vmem:[#allocation43_spill] sm:$0xff] %v11909_v61 }
 0x4c8   : > { %v5212_v29 = vpop.f32.mrb[84].mxu1 }
 0x4c9   : > { %v5213_v1 = vadd.f32 %v11870_v15, %v5212_v29  ;;  %v5214_v57 = vpop.f32.mrb[85].mxu1 }
 0x4ca   : > { %v5215_v54 = vpop.f32.mrb[86].mxu1 }
 0x4cb   : > { %v11913_v32 = vadd.f32 %v11602_v53, %v5213_v1  ;;  %v5216_v9 = vadd.f32 %v11870_v15, %v5215_v54  ;;  %v5217_v50 = vpop.f32.mrb[87].mxu1 }
 0x4cd   : > { %13965 = vst [vmem:[#allocation12_spill] sm:$0xff] %v11913_v32  ;;  %v11917_v26 = vadd.f32 %v13966_v11, %v5216_v9 }
 0x4cf   : > { %13967 = vst [vmem:[#allocation45_spill] sm:$0xff] %v11917_v26 }
 0x4d4   : > { %v5220_v60 = vpop.f32.mrb[88].mxu1 }
 0x4d5   : > { %v5221_v43 = vadd.f32 %v11870_v15, %v5220_v60  ;;  %v5222_v30 = vpop.f32.mrb[89].mxu1 }
 0x4d6   : > { %v5223_v63 = vpop.f32.mrb[90].mxu1 }
 0x4d7   : > { %v11921_v33 = vadd.f32 %v11634_v62, %v5221_v43  ;;  %v5224_v38 = vadd.f32 %v11870_v15, %v5223_v63  ;;  %v5225_v0 = vpop.f32.mrb[91].mxu1 }
 0x4d9   : > { %13968 = vst [vmem:[#allocation28_spill] sm:$0xff] %v11921_v33  ;;  %v11925_v53 = vadd.f32 %v11641_v52, %v5224_v38  ;;  %v14011_v33 = vld [vmem:[#allocation29_spill] sm:$0xff] }
 0x4db   : > { %13969 = vst [vmem:[#allocation18_spill] sm:$0xff] %v11925_v53 }
 0x4e0   : > { %v5228_v49 = vpop.f32.mrb[92].mxu1 }
 0x4e1   : > { %v5229_v59 = vadd.f32 %v11870_v15, %v5228_v49  ;;  %v5230_v5 = vpop.f32.mrb[93].mxu1 }
 0x4e2   : > { %v5231_v44 = vpop.f32.mrb[94].mxu1 }
 0x4e3   : > { %v11929_v6 = vadd.f32 %v11631_v16, %v5229_v59  ;;  %v5232_v58 = vadd.f32 %v11870_v15, %v5231_v44  ;;  %v5233_v17 = vpop.f32.mrb[95].mxu1 }
 0x4e5   : > { %13970 = vst [vmem:[#allocation44_spill] sm:$0xff] %v11929_v6  ;;  %v11933_v62 = vadd.f32 %v11637_v13, %v5232_v58 }
 0x4e7   : > { %13971 = vst [vmem:[#allocation31_spill] sm:$0xff] %v11933_v62 }
 0x4ee   : > { %v5236_v10 = vpop.f32.mrb[96].mxu1 }
 0x4ef   : > { %v5237_v29 = vadd.f32 %v11870_v15, %v5236_v10  ;;  %v5238_v1 = vpop.f32.mrb[97].mxu1 }
 0x4f0   : > { %v5239_v52 = vpop.f32.mrb[98].mxu1 }
 0x4f1   : > { %v11937_v57 = vadd.f32 %v11673_v18, %v5237_v29  ;;  %v5240_v54 = vadd.f32 %v11870_v15, %v5239_v52  ;;  %v5241_v9 = vpop.f32.mrb[99].mxu1 }
 0x4f3   : > { %13972 = vst [vmem:[#allocation30_spill] sm:$0xff] %v11937_v57  ;;  %v11941_v16 = vadd.f32 %v11678_v34, %v5240_v54 }
 0x4f5   : > { %13973 = vst [vmem:[#allocation48_spill] sm:$0xff] %v11941_v16 }
 0x4fa   : > { %v5244_v50 = vpop.f32.mrb[100].mxu1 }
 0x4fb   : > { %v5245_v11 = vadd.f32 %v11870_v15, %v5244_v50  ;;  %v5246_v60 = vpop.f32.mrb[101].mxu1 }
 0x4fc   : > { %v5247_v13 = vpop.f32.mrb[102].mxu1 }
 0x4fd   : > { %v11945_v43 = vadd.f32 %v11669_v56, %v5245_v11  ;;  %v5248_v30 = vadd.f32 %v11870_v15, %v5247_v13  ;;  %v5249_v63 = vpop.f32.mrb[103].mxu1 }
 0x4ff   : > { %13974 = vst [vmem:[#allocation2_spill] sm:$0xff] %v11945_v43  ;;  %v11949_v18 = vadd.f32 %v11676_v55, %v5248_v30 }
 0x501   : > { %13975 = vst [vmem:[#allocation4_spill] sm:$0xff] %v11949_v18 }
 0x506   : > { %v5252_v38 = vpop.f32.mrb[104].mxu1 }
 0x507   : > { %v5253_v0 = vadd.f32 %v11870_v15, %v5252_v38  ;;  %v5254_v49 = vpop.f32.mrb[105].mxu1 }
 0x508   : > { %v5255_v34 = vpop.f32.mrb[106].mxu1 }
 0x509   : > { %v11953_v59 = vadd.f32 %v11703_v35, %v5253_v0  ;;  %v5256_v5 = vadd.f32 %v11870_v15, %v5255_v34  ;;  %v5257_v44 = vpop.f32.mrb[107].mxu1 }
 0x50b   : > { %13976 = vst [vmem:[#allocation19_spill] sm:$0xff] %v11953_v59  ;;  %v11957_v56 = vadd.f32 %v11708_v8, %v5256_v5 }
 0x50d   : > { %13977 = vst [vmem:[#allocation34_spill] sm:$0xff] %v11957_v56 }
 0x512   : > { %v5260_v58 = vpop.f32.mrb[108].mxu1 }
 0x513   : > { %v5261_v17 = vadd.f32 %v11870_v15, %v5260_v58  ;;  %v5262_v10 = vpop.f32.mrb[109].mxu1 }
 0x514   : > { %v5263_v55 = vpop.f32.mrb[110].mxu1 }
 0x515   : > { %v11961_v29 = vadd.f32 %v11701_v41, %v5261_v17  ;;  %v5264_v1 = vadd.f32 %v11870_v15, %v5263_v55  ;;  %v5265_v52 = vpop.f32.mrb[111].mxu1 }
 0x517   : > { %13978 = vst [vmem:[#allocation6_spill] sm:$0xff] %v11961_v29  ;;  %v11965_v35 = vadd.f32 %v11705_v48, %v5264_v1 }
 0x519   : > { %13979 = vst [vmem:[#allocation21_spill] sm:$0xff] %v11965_v35 }
 0x51e   : > { %v5268_v54 = vpop.f32.mrb[112].mxu1 }
 0x51f   : > { %v5270_v9 = vpop.f32.mrb[113].mxu1  ;;  %v5269_v48 = vadd.f32 %v11870_v15, %v5268_v54 }
 0x520   : > { %v5271_v50 = vpop.f32.mrb[114].mxu1 }
 0x521   : > { %v5273_v11 = vpop.f32.mrb[115].mxu1  ;;  %v5272_v52 = vadd.f32 %v11870_v15, %v5271_v50 }
 0x52a   : > { %v5276_v8 = vpop.f32.mrb[116].mxu1 }
 0x52b   : > { %v5278_v60 = vpop.f32.mrb[117].mxu1  ;;  %v5277_v58 = vadd.f32 %v11870_v15, %v5276_v8 }
 0x52c   : > { %v5279_v13 = vpop.f32.mrb[118].mxu1 }
 0x52d   : > { %v5281_v30 = vpop.f32.mrb[119].mxu1  ;;  %v5280_v10 = vadd.f32 %v11870_v15, %v5279_v13 }
 0x536   : > { %v5284_v63 = vpop.f32.mrb[120].mxu1 }
 0x537   : > { %v5286_v38 = vpop.f32.mrb[121].mxu1  ;;  %v5285_v54 = vadd.f32 %v11870_v15, %v5284_v63  ;;  %v11994_v63 = vld [vmem:[%s13573_s8] ss:$0 sm:$0xff] }
 0x538   : > { %v5287_v0 = vpop.f32.mrb[122].mxu1 }
 0x539   : > { %v5289_v49 = vpop.f32.mrb[123].mxu1  ;;  %v5288_v50 = vadd.f32 %v11870_v15, %v5287_v0 }
 0x53e   : > { %v5292_v41 = vpop.f32.mrb[124].mxu1 }
 0x53f   : > { %v5294_v34 = vpop.f32.mrb[125].mxu1  ;;  %v5293_v8 = vadd.f32 %v11870_v15, %v5292_v41 }
 0x540   : > { %v5295_v5 = vpop.f32.mrb[126].mxu1 }
 0x541   : > { %v5297_v44 = vpop.f32.mrb[127].mxu1  ;;  %v5296_v13 = vadd.f32 %v11870_v15, %v5295_v5 }
 0x546   : > { %v7557_v17 = vpop.f32.mrb[128].mxu1 }
 0x547   : > { %v11970_v55 = vadd.f32 %v7557_v17, %v5277_v58  ;;  %v5557_v1 = vpop.f32.mrb[129].mxu1 }
 0x548   : > { %v11973_v9 = vadd.f32 %v5557_v1, %v5269_v48  ;;  %v7558_v11 = vpop.f32.mrb[130].mxu1 }
 0x549   : > { %13980 = vst [vmem:[#allocation33_spill] sm:$0xff] %v11970_v55  ;;  %v11975_v60 = vadd.f32 %v7558_v11, %v5280_v10  ;;  %v5560_v30 = vpop.f32.mrb[131].mxu1 }
 0x54a   : > { %13981 = vst [vmem:[#allocation13_spill] sm:$0xff] %v11973_v9  ;;  %v11977_v38 = vadd.f32 %v5560_v30, %v5272_v52 }
 0x54b   : > { %13982 = vst [vmem:[#allocation41_spill] sm:$0xff] %v11975_v60 }
 0x54c   : > { %13983 = vst [vmem:[#allocation35_spill] sm:$0xff] %v11977_v38 }
 0x54e   : > { %v7561_v49 = vpop.f32.mrb[132].mxu1 }
 0x54f   : > { %v11982_v34 = vadd.f32 %v7561_v49, %v5293_v8  ;;  %v5573_v44 = vpop.f32.mrb[133].mxu1 }
 0x550   : > { %v11985_v58 = vadd.f32 %v5573_v44, %v5285_v54  ;;  %v7562_v48 = vpop.f32.mrb[134].mxu1 }
 0x551   : > { %13984 = vst [vmem:[#allocation11_spill] sm:$0xff] %v11982_v34  ;;  %v11987_v17 = vadd.f32 %v7562_v48, %v5296_v13  ;;  %v5576_v10 = vpop.f32.mrb[135].mxu1 }
 0x552   : > { %13985 = vst [vmem:[#allocation27_spill] sm:$0xff] %v11985_v58  ;;  %v11989_v1 = vadd.f32 %v5576_v10, %v5288_v50 }
 0x553   : > { %13986 = vst [vmem:[#allocation16_spill] sm:$0xff] %v11987_v17 }
 0x554   : > { %13987 = vst [vmem:[#allocation14_spill] sm:$0xff] %v11989_v1 }
 0x556   : > { %v7567_v41 = vpop.f32.mrb[136].mxu1 }
 0x557   : > { %v11997_v5 = vadd.f32 %v7567_v41, %v11994_v63  ;;  %v5698_v52 = vpop.f32.mrb[137].mxu1 }
 0x558   : > { %v7568_v11 = vpop.f32.mrb[138].mxu1  ;;  %v12005_v30 = vadd.f32 %v11994_v63, %v5698_v52 }
 0x559   : > { %v12000_v15 = vadd.f32 %v7568_v11, %v11994_v63  ;;  %5861 = vrot.lane.b32.xlu0 %v11997_v5, %s7694_s23  ;;  %v5701_v0 = vpop.f32.mrb[139].mxu1 }
 0x55a   : > { %v12010_v8 = vadd.f32 %v11994_v63, %v5701_v0 }
 0x55b   : > { %5863 = vrot.lane.b32.xlu1 %v12000_v15, %s7694_s23 }
 0x55d   : > { %5857 = vrot.lane.b32.xlu0 %v12005_v30, %s7694_s23 }
 0x55e   : > { %v7571_v54 = vpop.f32.mrb[140].mxu1 }
 0x55f   : > { %v12015_v49 = vadd.f32 %v7571_v54, %v11994_v63  ;;  %v5714_v13 = vpop.f32.mrb[141].mxu1  ;;  %5859 = vrot.lane.b32.xlu1 %v12010_v8, %s7694_s23 }
 0x560   : > { %v7572_v44 = vpop.f32.mrb[142].mxu1  ;;  %v12025_v10 = vadd.f32 %v11994_v63, %v5714_v13 }
 0x561   : > { %v12020_v50 = vadd.f32 %v7572_v44, %v11994_v63  ;;  %v5717_v48 = vpop.f32.mrb[143].mxu1  ;;  %5869 = vrot.lane.b32.xlu0 %v12015_v49, %s7694_s23 }
 0x562   : > { %v12030_v41 = vadd.f32 %v11994_v63, %v5717_v48 }
 0x563   : > { %5871 = vrot.lane.b32.xlu1 %v12020_v50, %s7694_s23 }
 0x565   : > { %5865 = vrot.lane.b32.xlu0 %v12025_v10, %s7694_s23 }
 0x566   : > { %v7575_v52 = vpop.f32.mrb[144].mxu1 }
 0x567   : > { %v12035_v11 = vadd.f32 %v7575_v52, %v11994_v63  ;;  %v5730_v0 = vpop.f32.mrb[145].mxu1  ;;  %5867 = vrot.lane.b32.xlu1 %v12030_v41, %s7694_s23 }
 0x568   : > { %v7576_v54 = vpop.f32.mrb[146].mxu1  ;;  %v12045_v48 = vadd.f32 %v11994_v63, %v5730_v0 }
 0x569   : > { %v12040_v13 = vadd.f32 %v7576_v54, %v11994_v63  ;;  %v5733_v44 = vpop.f32.mrb[147].mxu1  ;;  %5877 = vrot.lane.b32.xlu0 %v12035_v11, %s7694_s23 }
 0x56a   : > { %v12050_v52 = vadd.f32 %v11994_v63, %v5733_v44 }
 0x56b   : > { %5879 = vrot.lane.b32.xlu1 %v12040_v13, %s7694_s23 }
 0x56d   : > { %5873 = vrot.lane.b32.xlu0 %v12045_v48, %s7694_s23 }
 0x56e   : > { %v7579_v60 = vpop.f32.mrb[148].mxu1 }
 0x56f   : > { %v12055_v54 = vadd.f32 %v7579_v60, %v11994_v63  ;;  %v5746_v38 = vpop.f32.mrb[149].mxu1  ;;  %5875 = vrot.lane.b32.xlu1 %v12050_v52, %s7694_s23 }
 0x570   : > { %v7580_v17 = vpop.f32.mrb[150].mxu1  ;;  %v12065_v44 = vadd.f32 %v11994_v63, %v5746_v38 }
 0x571   : > { %v12060_v0 = vadd.f32 %v7580_v17, %v11994_v63  ;;  %v5749_v1 = vpop.f32.mrb[151].mxu1  ;;  %5885 = vrot.lane.b32.xlu0 %v12055_v54, %s7694_s23 }
 0x572   : > { %v12070_v60 = vadd.f32 %v11994_v63, %v5749_v1 }
 0x573   : > { %5887 = vrot.lane.b32.xlu1 %v12060_v0, %s7694_s23 }
 0x575   : > { %5881 = vrot.lane.b32.xlu0 %v12065_v44, %s7694_s23 }
 0x576   : > { %v7583_v34 = vpop.f32.mrb[152].mxu1 }
 0x577   : > { %v12075_v17 = vadd.f32 %v7583_v34, %v11994_v63  ;;  %v5762_v58 = vpop.f32.mrb[153].mxu1  ;;  %5883 = vrot.lane.b32.xlu1 %v12070_v60, %s7694_s23 }
 0x578   : > { %v7584_v55 = vpop.f32.mrb[154].mxu1  ;;  %v12083_v18 = vadd.f32 %v11994_v63, %v5762_v58 }
 0x579   : > { %v12080_v38 = vadd.f32 %v7584_v55, %v11994_v63  ;;  %v5765_v9 = vpop.f32.mrb[155].mxu1 }
 0x57a   : > { %v12090_v34 = vadd.f32 %v11994_v63, %v5765_v9 }
 0x57b   : > { %5893 = vrot.lane.b32.xlu1 %v12075_v17, %s7694_s23  ;;  %5895 = vrot.lane.b32.xlu0 %v12080_v38, %s7694_s23 }
 0x57e   : > { %v7587_v1 = vpop.f32.mrb[156].mxu1 }
 0x57f   : > { %v12093_v16 = vadd.f32 %v7587_v1, %v11994_v63  ;;  %5889 = vrot.lane.b32.xlu1 %v12083_v18, %s7694_s23  ;;  %5891 = vrot.lane.b32.xlu0 %v12090_v34, %s7694_s23  ;;  %v5778_v55 = vpop.f32.mrb[157].mxu1 }
 0x580   : > { %v12100_v58 = vadd.f32 %v11994_v63, %v5778_v55  ;;  %v7588_v43 = vpop.f32.mrb[158].mxu1 }
 0x581   : > { %13988 = vst [vmem:[#allocation9_spill] sm:$0xff] %v12093_v16  ;;  %v5781_v57 = vpop.f32.mrb[159].mxu1  ;;  %v12103_v35 = vadd.f32 %v7588_v43, %v11994_v63 }
 0x582   : > { %v12110_v9 = vadd.f32 %v11994_v63, %v5781_v57 }
 0x583   : > { %13989 = vst [vmem:[#allocation5_spill] sm:$0xff] %v12103_v35  ;;  %5897 = vrot.lane.b32.xlu1 %v12100_v58, %s7694_s23  ;;  %5901 = vrot.lane.b32.xlu0 %v12093_v16, %s7694_s23 }
 0x584   : > { %13990 = vst [vmem:[#allocation39_spill] sm:$0xff] %v12110_v9 }
 0x586   : > { %v7591_v1 = vpop.f32.mrb[160].mxu1 }
 0x587   : > { %v12113_v56 = vadd.f32 %v7591_v1, %v11994_v63  ;;  %v5794_v55 = vpop.f32.mrb[161].mxu1  ;;  %5903 = vrot.lane.b32.xlu1 %v12103_v35, %s7694_s23  ;;  %5899 = vrot.lane.b32.xlu0 %v12110_v9, %s7694_s23 }
 0x588   : > { %v7592_v43 = vpop.f32.mrb[162].mxu1  ;;  %v12123_v26 = vadd.f32 %v11994_v63, %v5794_v55 }
 0x589   : > { %13991 = vst [vmem:[#allocation3_spill] sm:$0xff] %v12113_v56  ;;  %v12120_v29 = vadd.f32 %v7592_v43, %v11994_v63  ;;  %v5797_v59 = vpop.f32.mrb[163].mxu1 }
 0x58a   : > { %13993 = vst [vmem:[#allocation24_spill] sm:$0xff] %v12123_v26  ;;  %v12130_v57 = vadd.f32 %v11994_v63, %v5797_v59 }
 0x58b   : > { %13992 = vst [vmem:[#allocation38_spill] sm:$0xff] %v12120_v29  ;;  %5909 = vrot.lane.b32.xlu1 %v12113_v56, %s7694_s23  ;;  %5911 = vrot.lane.b32.xlu0 %v12120_v29, %s7694_s23 }
 0x58c   : > { %13994 = vst [vmem:[#allocation46_spill] sm:$0xff] %v12130_v57 }
 0x58e   : > { %v7595_v1 = vpop.f32.mrb[164].mxu1 }
 0x58f   : > { %v12133_v61 = vadd.f32 %v7595_v1, %v11994_v63  ;;  %5905 = vrot.lane.b32.xlu1 %v12123_v26, %s7694_s23  ;;  %5907 = vrot.lane.b32.xlu0 %v12130_v57, %s7694_s23  ;;  %v5810_v55 = vpop.f32.mrb[165].mxu1 }
 0x590   : > { %v12140_v43 = vadd.f32 %v11994_v63, %v5810_v55  ;;  %v7596_v56 = vpop.f32.mrb[166].mxu1  ;;  %v13999_v55 = vld [vmem:[#allocation32_spill] sm:$0xff] }
 0x591   : > { %13995 = vst [vmem:[#allocation49_spill] sm:$0xff] %v12133_v61  ;;  %v5813_v9 = vpop.f32.mrb[167].mxu1  ;;  %v12143_v29 = vadd.f32 %v7596_v56, %v11994_v63 }
 0x592   : > { %13996 = vst [vmem:[#allocation50_spill] sm:$0xff] %v12140_v43  ;;  %v12150_v59 = vadd.f32 %v11994_v63, %v5813_v9  ;;  %v14003_v9 = vld [vmem:[#allocation17_spill] sm:$0xff] }
 0x593   : > { %13997 = vst [vmem:[#allocation51_spill] sm:$0xff] %v12143_v29  ;;  %5913 = vrot.lane.b32.xlu1 %v12140_v43, %s7694_s23  ;;  %5917 = vrot.lane.b32.xlu0 %v12133_v61, %s7694_s23  ;;  %v14001_v43 = vld [vmem:[#allocation8_spill] sm:$0xff] }
 0x594   : > { %13998 = vst [vmem:[#allocation52_spill] sm:$0xff] %v12150_v59 }
 0x597   : > { %5919 = vrot.lane.b32.xlu1 %v12143_v29, %s7694_s23  ;;  %5915 = vrot.lane.b32.xlu0 %v12150_v59, %s7694_s23  ;;  %v14005_v59 = vld [vmem:[#allocation36_spill] sm:$0xff] }
 0x5cb   : > { %v5862_v1 = vpop.permute.xlu0 %5861 }
 0x5cc   : > { %v5955_v56 = vsel %vm1547_vm11, %v11997_v5, %v5862_v1 }
 0x5cd   : > { %v12159_v57 = vadd.f32 %v5955_v56, %v13999_v55  ;;  %v12162_v26 = vadd.f32 %v5955_v56, %v14001_v43  ;;  %v5864_v61 = vpop.permute.xlu1 %5863 }
 0x5ce   : > { %v5956_v63 = vsel %vm1547_vm11, %v12000_v15, %v5864_v61  ;;  %v14007_v15 = vld [vmem:[#allocation22_spill] sm:$0xff] }
 0x5cf   : > { %14000 = vst [vmem:[#allocation32_spill] sm:$0xff] %v12159_v57  ;;  %14002 = vst [vmem:[#allocation8_spill] sm:$0xff] %v12162_v26  ;;  %v12167_v29 = vadd.f32 %v5956_v63, %v14003_v9  ;;  %v12170_v62 = vadd.f32 %v5956_v63, %v14005_v59  ;;  %v5858_v53 = vpop.permute.xlu0 %5857  ;;  %v6150_v5 = vrot.slane %v12159_v57, 7  ;;  %v6152_v1 = vrot.slane %v12162_v26, 6  ;;  %v14009_v9 = vld [vmem:[#allocation40_spill] sm:$0xff] }
 0x5d0   : > { %v5953_v43 = vsel %vm1547_vm11, %v12005_v30, %v5858_v53  ;;  %v6220_v56 = vrot.slane %v12162_v26, 7  ;;  %v6287_v61 = vrot.slane %v12159_v57, 1 }
 0x5d1   : > { %14004 = vst [vmem:[#allocation17_spill] sm:$0xff] %v12167_v29  ;;  %14006 = vst [vmem:[#allocation36_spill] sm:$0xff] %v12170_v62  ;;  %v12179_v55 = vadd.f32 %v5953_v43, %v14007_v15  ;;  %v12182_v6 = vadd.f32 %v5953_v43, %v14009_v9  ;;  %v5860_v59 = vpop.permute.xlu1 %5859  ;;  %v14013_v29 = vld [vmem:[#allocation7_spill] sm:$0xff] }
 0x5d2   : > { %v5954_v53 = vsel %vm1547_vm11, %v12010_v8, %v5860_v59 }
 0x5d3   : > { %14008 = vst [vmem:[#allocation22_spill] sm:$0xff] %v12179_v55  ;;  %14010 = vst [vmem:[#allocation40_spill] sm:$0xff] %v12182_v6  ;;  %v12192_v15 = vadd.f32 %v5954_v53, %v14011_v33  ;;  %v5870_v32 = vpop.permute.xlu0 %5869  ;;  %v6148_v43 = vrot.slane %v12179_v55, 1  ;;  %v6216_v9 = vrot.slane %v12179_v55, 2  ;;  %v6217_v59 = vrot.slane %v12182_v6, 1 }
 0x5d4   : > { %v5959_v8 = vsel %vm1547_vm11, %v12015_v49, %v5870_v32  ;;  %v6284_v35 = vrot.slane %v12179_v55, 3  ;;  %v6285_v33 = vrot.slane %v12182_v6, 2  ;;  %v12203_v30 = vadd.f32 %v5954_v53, %v14013_v29 }
 0x5d5   : > { %14012 = vst [vmem:[#allocation29_spill] sm:$0xff] %v12192_v15  ;;  %v12206_v63 = vadd.f32 %v5959_v8, %v11645_v19  ;;  %v12209_v15 = vadd.f32 %v5959_v8, %v11661_v20  ;;  %v5872_v62 = vpop.permute.xlu1 %5871  ;;  %v6149_v32 = vsel %vm6082_vm3, %v12182_v6, %v6148_v43  ;;  %v6218_v31 = vsel %vm6082_vm3, %v6217_v59, %v6216_v9 }
 0x5d6   : > { %14014 = vst [vmem:[#allocation7_spill] sm:$0xff] %v12203_v30  ;;  %v5960_v49 = vsel %vm1547_vm11, %v12020_v50, %v5872_v62  ;;  %v6151_v16 = vsel %vm6085_vm4, %v6150_v5, %v6149_v32  ;;  %v6286_v43 = vsel %vm6082_vm3, %v6285_v33, %v6284_v35  ;;  %v6219_v9 = vsel %vm6085_vm4, %v12159_v57, %v6218_v31 }
 0x5d7   : > { %14015 = vst [vmem:[#allocation53_spill] sm:$0xff] %v12206_v63  ;;  %14016 = vst [vmem:[#allocation54_spill] sm:$0xff] %v12209_v15  ;;  %v12219_v19 = vadd.f32 %v5960_v49, %v11649_v27  ;;  %v12222_v20 = vadd.f32 %v5960_v49, %v11665_v51  ;;  %v5866_v53 = vpop.permute.xlu0 %5865  ;;  %v6153_v8 = vsel %vm6088_vm10, %v6152_v1, %v6151_v16  ;;  %v6158_v50 = vrot.slane %v12206_v63, 3  ;;  %v14019_v27 = vld [vmem:[#allocation42_spill] sm:$0xff]  ;;  %v14021_v51 = vld [vmem:[#allocation20_spill] sm:$0xff] }
 0x5d8   : > { %v5957_v62 = vsel %vm1547_vm11, %v12025_v10, %v5866_v53  ;;  %v6160_v5 = vrot.slane %v12209_v15, 2  ;;  %v6221_v16 = vsel %vm6088_vm10, %v6220_v56, %v6219_v9  ;;  %v6226_v35 = vrot.slane %v12206_v63, 4  ;;  %v14023_v53 = vld [vmem:[#allocation25_spill] sm:$0xff]  ;;  %v14025_v9 = vld [vmem:[#allocation10_spill] sm:$0xff] }
 0x5d9   : > { %14017 = vst [vmem:[#allocation55_spill] sm:$0xff] %v12219_v19  ;;  %14018 = vst [vmem:[#allocation56_spill] sm:$0xff] %v12222_v20  ;;  %v12233_v59 = vadd.f32 %v5957_v62, %v14019_v27  ;;  %v12236_v32 = vadd.f32 %v5957_v62, %v14021_v51  ;;  %v5868_v49 = vpop.permute.xlu1 %5867  ;;  %v6228_v1 = vrot.slane %v12209_v15, 3  ;;  %v6288_v33 = vsel %vm6085_vm4, %v6287_v61, %v6286_v43 }
 0x5da   : > { %v5958_v10 = vsel %vm1547_vm11, %v12030_v41, %v5868_v49  ;;  %v6294_v31 = vrot.slane %v12206_v63, 5  ;;  %v6296_v56 = vrot.slane %v12209_v15, 4 }
 0x5db   : > { %14020 = vst [vmem:[#allocation42_spill] sm:$0xff] %v12233_v59  ;;  %14022 = vst [vmem:[#allocation20_spill] sm:$0xff] %v12236_v32  ;;  %v12246_v27 = vadd.f32 %v5958_v10, %v14023_v53  ;;  %v5878_v29 = vpop.permute.xlu0 %5877  ;;  %v6154_v62 = vrot.slane %v12233_v59, 5  ;;  %v6156_v51 = vrot.slane %v12236_v32, 4  ;;  %v12252_v20 = vadd.f32 %v5958_v10, %v14025_v9 }
 0x5dc   : > { %v5963_v41 = vsel %vm1547_vm11, %v12035_v11, %v5878_v29  ;;  %v6222_v61 = vrot.slane %v12233_v59, 6  ;;  %v6224_v43 = vrot.slane %v12236_v32, 5  ;;  %v6290_v30 = vrot.slane %v12233_v59, 7 }
 0x5dd   : > { %14024 = vst [vmem:[#allocation25_spill] sm:$0xff] %v12246_v27  ;;  %14026 = vst [vmem:[#allocation10_spill] sm:$0xff] %v12252_v20  ;;  %v12259_v49 = vadd.f32 %v5963_v41, %v11729_v37  ;;  %v5880_v53 = vpop.permute.xlu1 %5879  ;;  %v6155_v19 = vsel %vm6091_vm6, %v6154_v62, %v6153_v8  ;;  %v6289_v27 = vsel %vm6088_vm10, %v12162_v26, %v6288_v33  ;;  %v6292_v9 = vrot.slane %v12236_v32, 6 }
 0x5de   : > { %v5964_v10 = vsel %vm1547_vm11, %v12040_v13, %v5880_v53  ;;  %v6157_v11 = vsel %vm6094_vm5, %v6156_v51, %v6155_v19  ;;  %v6223_v29 = vsel %vm6091_vm6, %v6222_v61, %v6221_v16  ;;  %v12271_v37 = vadd.f32 %v5963_v41, %v11742_v14  ;;  %v14028_v41 = vld [vmem:[#allocation37_spill] sm:$0xff]  ;;  %v14030_v61 = vld [vmem:[#allocation23_spill] sm:$0xff] }
 0x5df   : > { %v12274_v20 = vadd.f32 %v5964_v10, %v11733_v24  ;;  %v5874_v8 = vpop.permute.xlu0 %5873  ;;  %v6159_v33 = vsel %vm6097_vm13, %v6158_v50, %v6157_v11  ;;  %v6225_v62 = vsel %vm6094_vm5, %v6224_v43, %v6223_v29  ;;  %v6291_v51 = vsel %vm6091_vm6, %v6290_v30, %v6289_v27  ;;  %v14031_v27 = vld [vmem:[#allocation47_spill] sm:$0xff] }
 0x5e0   : > { %14027 = vst [vmem:[#allocation57_spill] sm:$0xff] %v12271_v37  ;;  %v5961_v13 = vsel %vm1547_vm11, %v12045_v48, %v5874_v8  ;;  %v6161_v19 = vsel %vm6100_vm7, %v6160_v5, %v6159_v33  ;;  %v6227_v16 = vsel %vm6097_vm13, %v6226_v35, %v6225_v62  ;;  %v12284_v14 = vadd.f32 %v5964_v10, %v11750_v45  ;;  %v14032_v10 = vld [vmem:[#allocation15_spill] sm:$0xff] }
 0x5e1   : > { %v12287_v24 = vadd.f32 %v5961_v13, %v14028_v41  ;;  %v12290_v53 = vadd.f32 %v5961_v13, %v14030_v61  ;;  %v5876_v50 = vpop.permute.xlu1 %5875  ;;  %6204 = vrot.lane.b32.xlu0 %v6161_v19, %s7693_s19  ;;  %v6293_v48 = vsel %vm6094_vm5, %v6292_v9, %v6291_v51  ;;  %v6229_v35 = vsel %vm6100_vm7, %v6228_v1, %v6227_v16 }
 0x5e2   : > { %v5962_v5 = vsel %vm1547_vm11, %v12050_v52, %v5876_v50  ;;  %v6295_v30 = vsel %vm6097_vm13, %v6294_v31, %v6293_v48  ;;  %v6413_v45 = vrot.slane %v12182_v6, 4  ;;  %v6419_v9 = vrot.slane %v12233_v59, 1 }
 0x5e3   : > { %14029 = vst [vmem:[#allocation37_spill] sm:$0xff] %v12287_v24  ;;  %v12300_v43 = vadd.f32 %v5962_v5, %v14031_v27  ;;  %v12303_v11 = vadd.f32 %v5962_v5, %v14032_v10  ;;  %v5886_v29 = vpop.permute.xlu0 %5885  ;;  %v6297_v8 = vsel %vm6100_vm7, %v6296_v56, %v6295_v30  ;;  %v14033_v1 = vrot.slane %v12179_v55, 5 }
 0x5e4   : > { %v5967_v52 = vsel %vm1547_vm11, %v12055_v54, %v5886_v29  ;;  %v6422_v33 = vrot.slane %v12206_v63, 7  ;;  %v6480_v62 = vrot.slane %v12179_v55, 6  ;;  %v14035_v56 = vrot.slane %v12159_v57, 3 }
 0x5e5   : > { %v6414_v31 = vsel %vm6082_vm3, %v6413_v45, %v14033_v1  ;;  %v12315_v13 = vadd.f32 %v5967_v52, %v11799_v46  ;;  %v5888_v19 = vpop.permute.xlu1 %5887  ;;  %6272 = vrot.lane.b32.xlu0 %v6229_v35, %s7698_s27  ;;  %v6424_v54 = vrot.slane %v12209_v15, 6  ;;  %v6481_v51 = vrot.slane %v12182_v6, 5 }
 0x5e6   : > { %v6416_v16 = vsel %vm6085_vm4, %v14035_v56, %v6414_v31  ;;  %v12324_v41 = vadd.f32 %v5967_v52, %v11817_v28  ;;  %v5968_v61 = vsel %vm1547_vm11, %v12060_v0, %v5888_v19  ;;  %v14037_v46 = vrot.slane %v12162_v26, 2 }
 0x5e7   : > { %14034 = vst [vmem:[#allocation23_spill] sm:$0xff] %v12315_v13  ;;  %v6487_v48 = vrot.slane %v12233_v59, 2  ;;  %v12333_v5 = vadd.f32 %v5968_v61, %v11806_v47  ;;  %v5882_v35 = vpop.permute.xlu0 %5881  ;;  %v6482_v45 = vsel %vm6082_vm3, %v6481_v51, %v6480_v62  ;;  %v6489_v28 = vrot.slane %v12236_v32, 1 }
 0x5e8   : > { %14036 = vst [vmem:[#allocation47_spill] sm:$0xff] %v12324_v41  ;;  %v6418_v50 = vsel %vm6088_vm10, %v14037_v46, %v6416_v16  ;;  %v12339_v27 = vadd.f32 %v5968_v61, %v11823_v7  ;;  %v5965_v0 = vsel %vm1547_vm11, %v12065_v44, %v5882_v35  ;;  %v14038_v29 = vrot.slane %v12159_v57, 4 }
 0x5e9   : > { %v6420_v30 = vsel %vm6091_vm6, %v6419_v9, %v6418_v50  ;;  %v12349_v52 = vadd.f32 %v5965_v0, %v11758_v22  ;;  %v12352_v9 = vadd.f32 %v5965_v0, %v11776_v4  ;;  %v5884_v1 = vpop.permute.xlu1 %5883  ;;  %6340 = vrot.lane.b32.xlu0 %v6297_v8, %s7697_s28  ;;  %v14040_v44 = vrot.slane %v12162_v26, 3 }
 0x5ea   : > { %v6421_v10 = vsel %vm6094_vm5, %v12236_v32, %v6420_v30  ;;  %v6484_v47 = vsel %vm6085_vm4, %v14038_v29, %v6482_v45  ;;  %v5966_v62 = vsel %vm1547_vm11, %v12070_v60, %v5884_v1  ;;  %v6492_v22 = vrot.slane %v12209_v15, 7 }
 0x5eb   : > { %14039 = vst [vmem:[#allocation15_spill] sm:$0xff] %v12349_v52  ;;  %v6423_v7 = vsel %vm6097_vm13, %v6422_v33, %v6421_v10  ;;  %v6486_v31 = vsel %vm6088_vm10, %v14040_v44, %v6484_v47  ;;  %v6162_v56 = vrot.slane %v12287_v24, 1  ;;  %v12365_v4 = vadd.f32 %v5966_v62, %v11766_v39 }
 0x5ec   : > { %v6488_v19 = vsel %vm6091_vm6, %v6487_v48, %v6486_v31  ;;  %v6425_v8 = vsel %vm6100_vm7, %v6424_v54, %v6423_v7  ;;  %v6164_v16 = vrot.slane %v12259_v49, 7  ;;  %v6166_v61 = vrot.slane %v12271_v37, 6 }
 0x5ed   : > { %v6490_v33 = vsel %vm6094_vm5, %v6489_v28, %v6488_v19  ;;  %v6163_v60 = vsel %vm6082_vm3, %v12290_v53, %v6162_v56  ;;  %v6168_v46 = vrot.slane %v12349_v52, 5  ;;  %v12377_v50 = vadd.f32 %v5966_v62, %v11783_v42  ;;  %v5894_v39 = vpop.permute.xlu1 %5893  ;;  %6468 = vrot.lane.b32.xlu0 %v6425_v8, %s7693_s19  ;;  %v5896_v54 = vpop.permute.xlu0 %5895 }
 0x5ee   : > { %v6491_v51 = vsel %vm6097_vm13, %v12206_v63, %v6490_v33  ;;  %v6165_v35 = vsel %vm6085_vm4, %v6164_v16, %v6163_v60  ;;  %v6170_v30 = vrot.slane %v12352_v9, 4  ;;  %v5971_v45 = vsel %vm1547_vm11, %v12075_v17, %v5894_v39 }
 0x5ef   : > { %v6493_v48 = vsel %vm6100_vm7, %v6492_v22, %v6491_v51  ;;  %v5972_v28 = vsel %vm1547_vm11, %v12080_v38, %v5896_v54  ;;  %v6167_v0 = vsel %vm6088_vm10, %v6166_v61, %v6165_v35  ;;  %v6172_v42 = vrot.slane %v12315_v13, 3 }
 0x5f0   : > { %v12390_v10 = vadd.f32 %v5971_v45, %v11878_v2  ;;  %v12393_v29 = vadd.f32 %v5971_v45, %v11894_v23  ;;  %v12396_v47 = vadd.f32 %v5972_v28, %v11882_v3  ;;  %v6174_v1 = vrot.slane %v12324_v41, 2 }
 0x5f1   : > { %v12400_v17 = vadd.f32 %v5972_v28, %v11898_v21  ;;  %v6169_v38 = vsel %vm6091_vm6, %v6168_v46, %v6167_v0  ;;  %v6548_v7 = vrot.slane %v12179_v55, 7  ;;  %v6549_v44 = vrot.slane %v12182_v6, 6  ;;  %v5890_v31 = vpop.permute.xlu1 %5889  ;;  %6536 = vrot.lane.b32.xlu0 %v6493_v48, %s7698_s27  ;;  %v5892_v23 = vpop.permute.xlu0 %5891  ;;  %v14085_v6 = vld [vmem:[#allocation46_spill] sm:$0xff] }
 0x5f2   : > { %14041 = vst [vmem:[#allocation58_spill] sm:$0xff] %v12396_v47  ;;  %v6171_v2 = vsel %vm6094_vm5, %v6170_v30, %v6169_v38  ;;  %v6555_v3 = vrot.slane %v12233_v59, 3  ;;  %v6557_v62 = vrot.slane %v12236_v32, 2  ;;  %v6230_v19 = vrot.slane %v12287_v24, 2  ;;  %v14071_v32 = vld [vmem:[#allocation43_spill] sm:$0xff] }
 0x5f3   : > { %14042 = vst [vmem:[#allocation59_spill] sm:$0xff] %v12400_v17  ;;  %v5969_v21 = vsel %vm1547_vm11, %v12083_v18, %v5890_v31  ;;  %v6173_v22 = vsel %vm6097_vm13, %v6172_v42, %v6171_v2  ;;  %v5970_v56 = vsel %vm1547_vm11, %v12090_v34, %v5892_v23  ;;  %v6550_v8 = vsel %vm6082_vm3, %v6549_v44, %v6548_v7  ;;  %v14047_v42 = vld [vmem:[#allocation26_spill] sm:$0xff]  ;;  %v14049_v2 = vld [vmem:[#allocation9_spill] sm:$0xff] }
 0x5f4   : > { %v12417_v33 = vadd.f32 %v5969_v21, %v11837_v25  ;;  %v12420_v16 = vadd.f32 %v5969_v21, %v11854_v36  ;;  %v6175_v51 = vsel %vm6100_vm7, %v6174_v1, %v6173_v22  ;;  %v6559_v60 = vrot.slane %v12206_v63, 1  ;;  %v14051_v21 = vld [vmem:[#allocation12_spill] sm:$0xff] }
 0x5f5   : > { %6206 = vrot.lane.b32.xlu1 %v6175_v51, %s7693_s19  ;;  %v12426_v18 = vadd.f32 %v5970_v56, %v11843_v12  ;;  %v12429_v61 = vadd.f32 %v5970_v56, %v11859_v40  ;;  %v14045_v34 = vrot.slane %v12159_v57, 5  ;;  %v6231_v46 = vrot.slane %v12290_v53, 1  ;;  %v5898_v36 = vpop.permute.xlu1 %5897  ;;  %v5902_v30 = vpop.permute.xlu0 %5901 }
 0x5f6   : > { %v14046_v39 = vrot.slane %v12162_v26, 4  ;;  %v6234_v48 = vrot.slane %v12271_v37, 7  ;;  %v6236_v35 = vrot.slane %v12349_v52, 6  ;;  %v6238_v12 = vrot.slane %v12352_v9, 5 }
 0x5f7   : > { %14043 = vst [vmem:[#allocation60_spill] sm:$0xff] %v12426_v18  ;;  %14044 = vst [vmem:[#allocation61_spill] sm:$0xff] %v12429_v61  ;;  %v6552_v25 = vsel %vm6085_vm4, %v14045_v34, %v6550_v8  ;;  %v5973_v40 = vsel %vm1547_vm11, %v12100_v58, %v5898_v36  ;;  %v6232_v28 = vsel %vm6082_vm3, %v6231_v46, %v6230_v19  ;;  %v6240_v0 = vrot.slane %v12315_v13, 4  ;;  %v14053_v8 = vld [vmem:[#allocation28_spill] sm:$0xff]  ;;  %v14056_v36 = vld [vmem:[#allocation7_spill] sm:$0xff] }
 0x5f8   : > { %v6554_v54 = vsel %vm6088_vm10, %v14046_v39, %v6552_v25  ;;  %v12447_v1 = vadd.f32 %v5973_v40, %v14047_v42  ;;  %v6233_v7 = vsel %vm6085_vm4, %v12259_v49, %v6232_v28  ;;  %v6242_v44 = vrot.slane %v12324_v41, 3  ;;  %v14055_v25 = vld [vmem:[#allocation5_spill] sm:$0xff]  ;;  %v14062_v42 = vld [vmem:[#allocation36_spill] sm:$0xff] }
 0x5f9   : > { %v6556_v45 = vsel %vm6091_vm6, %v6555_v3, %v6554_v54  ;;  %v6235_v58 = vsel %vm6088_vm10, %v6234_v48, %v6233_v7  ;;  %v5975_v23 = vsel %vm1547_vm11, %v14049_v2, %v5902_v30  ;;  %v14050_v3 = vld [vmem:[#allocation29_spill] sm:$0xff]  ;;  %v12459_v22 = vadd.f32 %v5973_v40, %v14051_v21  ;;  %v5904_v34 = vpop.permute.xlu1 %5903  ;;  %v14058_v40 = vld [vmem:[#allocation44_spill] sm:$0xff]  ;;  %v14064_v2 = vld [vmem:[#allocation10_spill] sm:$0xff] }
 0x5fa   : > { %14048 = vst [vmem:[#allocation26_spill] sm:$0xff] %v12447_v1  ;;  %v6558_v38 = vsel %vm6094_vm5, %v6557_v62, %v6556_v45  ;;  %v6708_v19 = vrot.slane %v14050_v3, 1  ;;  %v6237_v56 = vsel %vm6091_vm6, %v6236_v35, %v6235_v58  ;;  %v12465_v51 = vadd.f32 %v5975_v23, %v14053_v8  ;;  %v14057_v54 = vld [vmem:[#allocation17_spill] sm:$0xff]  ;;  %v14060_v45 = vld [vmem:[#allocation18_spill] sm:$0xff]  ;;  %v14065_v21 = vld [vmem:[#allocation31_spill] sm:$0xff] }
 0x5fb   : > { %v6560_v31 = vsel %vm6097_vm13, %v6559_v60, %v6558_v38  ;;  %14052 = vst [vmem:[#allocation9_spill] sm:$0xff] %v12459_v22  ;;  %v6239_v60 = vsel %vm6094_vm5, %v6238_v12, %v6237_v56  ;;  %v5976_v46 = vsel %vm1547_vm11, %v14055_v25, %v5904_v34  ;;  %v6710_v48 = vrot.slane %v14057_v54, 7  ;;  %v5900_v34 = vpop.permute.xlu0 %5899  ;;  %v14068_v25 = vld [vmem:[#allocation56_spill] sm:$0xff] }
 0x5fc   : > { %v6561_v62 = vsel %vm6100_vm7, %v12209_v15, %v6560_v31  ;;  %14054 = vst [vmem:[#allocation29_spill] sm:$0xff] %v12465_v51  ;;  %v6709_v39 = vsel %vm6082_vm3, %v14056_v36, %v6708_v19  ;;  %v6241_v30 = vsel %vm6097_vm13, %v6240_v0, %v6239_v60  ;;  %v12476_v35 = vadd.f32 %v5975_v23, %v14058_v40  ;;  %v14063_v31 = vld [vmem:[#allocation25_spill] sm:$0xff] }
 0x5fd   : > { %6604 = vrot.lane.b32.xlu0 %v6561_v62, %s7697_s28  ;;  %v12479_v28 = vadd.f32 %v5976_v46, %v14060_v45  ;;  %v6712_v38 = vrot.slane %v14062_v42, 6  ;;  %v6243_v12 = vsel %vm6100_vm7, %v6242_v44, %v6241_v30  ;;  %v6711_v7 = vsel %vm6085_vm4, %v6710_v48, %v6709_v39  ;;  %v14067_v62 = vld [vmem:[#allocation55_spill] sm:$0xff]  ;;  %v5910_v60 = vpop.permute.xlu1 %5909 }
 0x5fe   : > { %14059 = vst [vmem:[#allocation12_spill] sm:$0xff] %v12476_v35  ;;  %v6714_v58 = vrot.slane %v14063_v31, 5  ;;  %v6716_v19 = vrot.slane %v14064_v2, 4  ;;  %6274 = vrot.lane.b32.xlu1 %v6243_v12, %s7698_s27  ;;  %v12488_v0 = vadd.f32 %v5976_v46, %v14065_v21  ;;  %v6718_v56 = vrot.slane %v14067_v62, 3  ;;  %v14069_v21 = vld [vmem:[#allocation39_spill] sm:$0xff] }
 0x5ff   : > { %14061 = vst [vmem:[#allocation28_spill] sm:$0xff] %v12479_v28  ;;  %v6713_v23 = vsel %vm6088_vm10, %v6712_v38, %v6711_v7  ;;  %v6298_v8 = vrot.slane %v12287_v24, 3  ;;  %v6720_v39 = vrot.slane %v14068_v25, 2  ;;  %v6299_v48 = vrot.slane %v12290_v53, 2  ;;  %v14086_v28 = vld [vmem:[#allocation48_spill] sm:$0xff] }
 0x600   : > { %14066 = vst [vmem:[#allocation5_spill] sm:$0xff] %v12488_v0  ;;  %v6715_v44 = vsel %vm6091_vm6, %v6714_v58, %v6713_v23  ;;  %v6301_v30 = vrot.slane %v12259_v49, 1  ;;  %v6304_v46 = vrot.slane %v12349_v52, 7  ;;  %v6306_v45 = vrot.slane %v12352_v9, 6  ;;  %v14070_v23 = vld [vmem:[#allocation3_spill] sm:$0xff] }
 0x601   : > { %v6717_v40 = vsel %vm6094_vm5, %v6716_v19, %v6715_v44  ;;  %v6308_v38 = vrot.slane %v12315_v13, 5  ;;  %v6300_v7 = vsel %vm6082_vm3, %v6299_v48, %v6298_v8  ;;  %v5974_v58 = vsel %vm1547_vm11, %v14069_v21, %v5900_v34  ;;  %v14073_v8 = vld [vmem:[#allocation45_spill] sm:$0xff]  ;;  %v14075_v34 = vld [vmem:[#allocation19_spill] sm:$0xff] }
 0x602   : > { %v6719_v12 = vsel %vm6097_vm13, %v6718_v56, %v6717_v40  ;;  %v5979_v15 = vsel %vm1547_vm11, %v14070_v23, %v5910_v60  ;;  %v6302_v19 = vsel %vm6085_vm4, %v6301_v30, %v6300_v7  ;;  %v6310_v44 = vrot.slane %v12324_v41, 4  ;;  %v14076_v30 = vld [vmem:[#allocation6_spill] sm:$0xff] }
 0x603   : > { %v6721_v63 = vsel %vm6100_vm7, %v6720_v39, %v6719_v12  ;;  %v12511_v26 = vadd.f32 %v5974_v58, %v14071_v32  ;;  %v6303_v56 = vsel %vm6088_vm10, %v12271_v37, %v6302_v19  ;;  %v12517_v48 = vadd.f32 %v5974_v58, %v14073_v8 }
 0x604   : > { %6764 = vrot.lane.b32.xlu0 %v6721_v63, %s7693_s19  ;;  %v12520_v40 = vadd.f32 %v5979_v15, %v14075_v34  ;;  %v6972_v60 = vrot.slane %v14050_v3, 5  ;;  %v6305_v39 = vsel %vm6091_vm6, %v6304_v46, %v6303_v56  ;;  %v12525_v12 = vadd.f32 %v5979_v15, %v14076_v30  ;;  %v5912_v56 = vpop.permute.xlu0 %5911 }
 0x605   : > { %14072 = vst [vmem:[#allocation7_spill] sm:$0xff] %v12511_v26  ;;  %14074 = vst [vmem:[#allocation17_spill] sm:$0xff] %v12517_v48  ;;  %v6973_v32 = vrot.slane %v14056_v36, 4  ;;  %v6975_v63 = vrot.slane %v14057_v54, 3  ;;  %v6307_v7 = vsel %vm6094_vm5, %v6306_v45, %v6305_v39  ;;  %v6977_v21 = vrot.slane %v14062_v42, 2 }
 0x606   : > { %v6979_v58 = vrot.slane %v14063_v31, 1  ;;  %v6982_v23 = vrot.slane %v14067_v62, 7  ;;  %v6309_v19 = vsel %vm6097_vm13, %v6308_v38, %v6307_v7  ;;  %v6426_v46 = vrot.slane %v12287_v24, 5  ;;  %v5906_v7 = vpop.permute.xlu1 %5905 }
 0x607   : > { %v6974_v8 = vsel %vm6082_vm3, %v6973_v32, %v6972_v60  ;;  %v6427_v15 = vrot.slane %v12290_v53, 4  ;;  %v6311_v34 = vsel %vm6100_vm7, %v6310_v44, %v6309_v19  ;;  %v6984_v45 = vrot.slane %v14068_v25, 6  ;;  %v14077_v19 = vld [vmem:[#allocation38_spill] sm:$0xff] }
 0x608   : > { %v6976_v30 = vsel %vm6085_vm4, %v6975_v63, %v6974_v8  ;;  %v6429_v39 = vrot.slane %v12259_v49, 3  ;;  %6342 = vrot.lane.b32.xlu1 %v6311_v34, %s7697_s28  ;;  %v6431_v60 = vrot.slane %v12271_v37, 2  ;;  %v6433_v32 = vrot.slane %v12349_v52, 1 }
 0x609   : > { %v6978_v55 = vsel %vm6088_vm10, %v6977_v21, %v6976_v30  ;;  %v6428_v38 = vsel %vm6082_vm3, %v6427_v15, %v6426_v46  ;;  %v6436_v63 = vrot.slane %v12315_v13, 7  ;;  %v5980_v8 = vsel %vm1547_vm11, %v14077_v19, %v5912_v56  ;;  %v14078_v15 = vld [vmem:[#allocation34_spill] sm:$0xff] }
 0x60a   : > { %v6980_v59 = vsel %vm6091_vm6, %v6979_v58, %v6978_v55  ;;  %v6430_v44 = vsel %vm6085_vm4, %v6429_v39, %v6428_v38  ;;  %v6438_v46 = vrot.slane %v12324_v41, 6  ;;  %v12556_v30 = vadd.f32 %v5980_v8, %v14078_v15  ;;  %v14080_v58 = vld [vmem:[#allocation24_spill] sm:$0xff]  ;;  %v14083_v19 = vld [vmem:[#allocation30_spill] sm:$0xff] }
 0x60b   : > { %v6981_v34 = vsel %vm6094_vm5, %v14064_v2, %v6980_v59  ;;  %v6432_v21 = vsel %vm6088_vm10, %v6431_v60, %v6430_v44  ;;  %v5977_v39 = vsel %vm1547_vm11, %v14080_v58, %v5906_v7  ;;  %v6776_v38 = vrot.slane %v14050_v3, 2  ;;  %v14081_v60 = vld [vmem:[#allocation21_spill] sm:$0xff]  ;;  %v5908_v58 = vpop.permute.xlu0 %5907 }
 0x60c   : > { %14079 = vst [vmem:[#allocation44_spill] sm:$0xff] %v12556_v30  ;;  %v6983_v57 = vsel %vm6097_vm13, %v6982_v23, %v6981_v34  ;;  %v6434_v55 = vsel %vm6091_vm6, %v6433_v32, %v6432_v21  ;;  %v12567_v44 = vadd.f32 %v5980_v8, %v14081_v60  ;;  %v12570_v15 = vadd.f32 %v5977_v39, %v14083_v19  ;;  %v14084_v32 = vld [vmem:[#allocation2_spill] sm:$0xff] }
 0x60d   : > { %v6985_v56 = vsel %vm6100_vm7, %v6984_v45, %v6983_v57  ;;  %v6435_v59 = vsel %vm6094_vm5, %v12352_v9, %v6434_v55  ;;  %v12575_v34 = vadd.f32 %v5977_v39, %v14084_v32  ;;  %v6777_v7 = vrot.slane %v14056_v36, 1  ;;  %v5914_v32 = vpop.permute.xlu1 %5913 }
 0x60e   : > { %14082 = vst [vmem:[#allocation18_spill] sm:$0xff] %v12567_v44  ;;  %7028 = vrot.lane.b32.xlu0 %v6985_v56, %s7693_s19  ;;  %v6437_v23 = vsel %vm6097_vm13, %v6436_v63, %v6435_v59  ;;  %v6780_v57 = vrot.slane %v14062_v42, 7  ;;  %v6782_v21 = vrot.slane %v14063_v31, 6  ;;  %v6784_v8 = vrot.slane %v14064_v2, 5 }
 0x60f   : > { %v6439_v45 = vsel %vm6100_vm7, %v6438_v46, %v6437_v23  ;;  %v6786_v55 = vrot.slane %v14067_v62, 4  ;;  %v6778_v63 = vsel %vm6082_vm3, %v6777_v7, %v6776_v38  ;;  %v6788_v39 = vrot.slane %v14068_v25, 3 }
 0x610   : > { %6470 = vrot.lane.b32.xlu1 %v6439_v45, %s7693_s19  ;;  %v6494_v56 = vrot.slane %v12287_v24, 6  ;;  %v6495_v59 = vrot.slane %v12290_v53, 5  ;;  %v6779_v46 = vsel %vm6085_vm4, %v14057_v54, %v6778_v63  ;;  %v6497_v60 = vrot.slane %v12259_v49, 4 }
 0x611   : > { %v6499_v19 = vrot.slane %v12271_v37, 3  ;;  %v6501_v23 = vrot.slane %v12349_v52, 2  ;;  %v6781_v45 = vsel %vm6088_vm10, %v6780_v57, %v6779_v46  ;;  %v6503_v7 = vrot.slane %v12352_v9, 1  ;;  %v14088_v46 = vld [vmem:[#allocation50_spill] sm:$0xff] }
 0x612   : > { %v6496_v38 = vsel %vm6082_vm3, %v6495_v59, %v6494_v56  ;;  %v5978_v44 = vsel %vm1547_vm11, %v14085_v6, %v5908_v58  ;;  %v6783_v30 = vsel %vm6091_vm6, %v6782_v21, %v6781_v45  ;;  %v6506_v0 = vrot.slane %v12324_v41, 7  ;;  %v14089_v58 = vld [vmem:[#allocation4_spill] sm:$0xff]  ;;  %v14091_v45 = vld [vmem:[#allocation13_spill] sm:$0xff] }
 0x613   : > { %v6498_v63 = vsel %vm6085_vm4, %v6497_v60, %v6496_v38  ;;  %v12602_v48 = vadd.f32 %v5978_v44, %v14086_v28  ;;  %v6785_v26 = vsel %vm6094_vm5, %v6784_v8, %v6783_v30  ;;  %v5981_v56 = vsel %vm1547_vm11, %v14088_v46, %v5914_v32  ;;  %v14093_v8 = vld [vmem:[#allocation33_spill] sm:$0xff]  ;;  %v5918_v46 = vpop.permute.xlu0 %5917 }
 0x614   : > { %v6500_v57 = vsel %vm6088_vm10, %v6499_v19, %v6498_v63  ;;  %v7040_v59 = vrot.slane %v14050_v3, 6  ;;  %v6787_v6 = vsel %vm6097_vm13, %v6786_v55, %v6785_v26  ;;  %v12612_v60 = vadd.f32 %v5978_v44, %v14089_v58 }
 0x615   : > { %14087 = vst [vmem:[#allocation36_spill] sm:$0xff] %v12602_v48  ;;  %v6502_v21 = vsel %vm6091_vm6, %v6501_v23, %v6500_v57  ;;  %v12615_v38 = vadd.f32 %v5981_v56, %v14091_v45  ;;  %v6789_v28 = vsel %vm6100_vm7, %v6788_v39, %v6787_v6  ;;  %v12620_v19 = vadd.f32 %v5981_v56, %v14093_v8  ;;  %v5920_v56 = vpop.permute.xlu1 %5919 }
 0x616   : > { %14090 = vst [vmem:[#allocation25_spill] sm:$0xff] %v12612_v60  ;;  %v6504_v30 = vsel %vm6094_vm5, %v6503_v7, %v6502_v21  ;;  %v7041_v32 = vrot.slane %v14056_v36, 5  ;;  %6832 = vrot.lane.b32.xlu0 %v6789_v28, %s7698_s27  ;;  %v7043_v44 = vrot.slane %v14057_v54, 4  ;;  %v7045_v55 = vrot.slane %v14062_v42, 3 }
 0x617   : > { %14092 = vst [vmem:[#allocation10_spill] sm:$0xff] %v12615_v38  ;;  %14094 = vst [vmem:[#allocation31_spill] sm:$0xff] %v12620_v19  ;;  %v6505_v26 = vsel %vm6097_vm13, %v12315_v13, %v6504_v30  ;;  %v7047_v23 = vrot.slane %v14063_v31, 2  ;;  %v7049_v63 = vrot.slane %v14064_v2, 1  ;;  %v6562_v57 = vrot.slane %v12287_v24, 7 }
 0x618   : > { %v6507_v39 = vsel %vm6100_vm7, %v6506_v0, %v6505_v26  ;;  %v7042_v7 = vsel %vm6082_vm3, %v7041_v32, %v7040_v59  ;;  %v7052_v21 = vrot.slane %v14068_v25, 7  ;;  %v6563_v58 = vrot.slane %v12290_v53, 6  ;;  %v14095_v26 = vld [vmem:[#allocation49_spill] sm:$0xff] }
 0x619   : > { %6538 = vrot.lane.b32.xlu1 %v6507_v39, %s7698_s27  ;;  %v7044_v6 = vsel %vm6085_vm4, %v7043_v44, %v7042_v7  ;;  %v6565_v45 = vrot.slane %v12259_v49, 5  ;;  %v6567_v59 = vrot.slane %v12271_v37, 4  ;;  %v6569_v28 = vrot.slane %v12349_v52, 3  ;;  %v14096_v39 = vld [vmem:[#allocation51_spill] sm:$0xff] }
 0x61a   : > { %v7046_v0 = vsel %vm6088_vm10, %v7045_v55, %v7044_v6  ;;  %v6571_v30 = vrot.slane %v12352_v9, 2  ;;  %v6564_v32 = vsel %vm6082_vm3, %v6563_v58, %v6562_v57  ;;  %v5983_v44 = vsel %vm1547_vm11, %v14095_v26, %v5918_v46  ;;  %v14097_v37 = vld [vmem:[#allocation27_spill] sm:$0xff]  ;;  %v14101_v46 = vld [vmem:[#allocation14_spill] sm:$0xff] }
 0x61b   : > { %v7048_v8 = vsel %vm6091_vm6, %v7047_v23, %v7046_v0  ;;  %v5984_v7 = vsel %vm1547_vm11, %v14096_v39, %v5920_v56  ;;  %v6566_v55 = vsel %vm6085_vm4, %v6565_v45, %v6564_v32  ;;  %v6573_v6 = vrot.slane %v12315_v13, 1  ;;  %v14099_v58 = vld [vmem:[#allocation11_spill] sm:$0xff] }
 0x61c   : > { %v7050_v24 = vsel %vm6094_vm5, %v7049_v63, %v7048_v8  ;;  %v12652_v52 = vadd.f32 %v5983_v44, %v14097_v37  ;;  %v6568_v57 = vsel %vm6088_vm10, %v6567_v59, %v6566_v55  ;;  %v12658_v0 = vadd.f32 %v5983_v44, %v14099_v58  ;;  %v14103_v8 = vld [vmem:[#allocation16_spill] sm:$0xff]  ;;  %v5916_v58 = vpop.permute.xlu0 %5915 }
 0x61d   : > { %v7051_v23 = vsel %vm6097_vm13, %v14067_v62, %v7050_v24  ;;  %v12661_v26 = vadd.f32 %v5984_v7, %v14101_v46  ;;  %v6570_v56 = vsel %vm6091_vm6, %v6569_v28, %v6568_v57  ;;  %v6844_v45 = vrot.slane %v14050_v3, 3 }
 0x61e   : > { %14098 = vst [vmem:[#allocation39_spill] sm:$0xff] %v12652_v52  ;;  %14100 = vst [vmem:[#allocation3_spill] sm:$0xff] %v12658_v0  ;;  %v7053_v63 = vsel %vm6100_vm7, %v7052_v21, %v7051_v23  ;;  %v6845_v37 = vrot.slane %v14056_v36, 2  ;;  %v6572_v24 = vsel %vm6094_vm5, %v6571_v30, %v6570_v56  ;;  %v12670_v59 = vadd.f32 %v5984_v7, %v14103_v8 }
 0x61f   : > { %14102 = vst [vmem:[#allocation43_spill] sm:$0xff] %v12661_v26  ;;  %7096 = vrot.lane.b32.xlu0 %v7053_v63, %s7698_s27  ;;  %v6847_v32 = vrot.slane %v14057_v54, 1  ;;  %v6850_v44 = vrot.slane %v14063_v31, 7  ;;  %v6574_v39 = vsel %vm6097_vm13, %v6573_v6, %v6572_v24  ;;  %v6852_v28 = vrot.slane %v14064_v2, 6 }
 0x620   : > { %v6846_v21 = vsel %vm6082_vm3, %v6845_v37, %v6844_v45  ;;  %v6854_v55 = vrot.slane %v14067_v62, 5  ;;  %v6575_v23 = vsel %vm6100_vm7, %v12324_v41, %v6574_v39  ;;  %v6856_v7 = vrot.slane %v14068_v25, 4 }
 0x621   : > { %v6848_v30 = vsel %vm6085_vm4, %v6847_v32, %v6846_v21  ;;  %v6722_v57 = vrot.slane %v12300_v43, 1  ;;  %6606 = vrot.lane.b32.xlu1 %v6575_v23, %s7697_s28  ;;  %v6724_v46 = vrot.slane %v12274_v20, 7  ;;  %v6726_v63 = vrot.slane %v12284_v14, 6  ;;  %v14104_v21 = vld [vmem:[#allocation52_spill] sm:$0xff] }
 0x622   : > { %v6849_v6 = vsel %vm6088_vm10, %v14062_v42, %v6848_v30  ;;  %v6728_v56 = vrot.slane %v12365_v4, 5  ;;  %v6730_v24 = vrot.slane %v12377_v50, 4  ;;  %v6732_v8 = vrot.slane %v12333_v5, 3 }
 0x623   : > { %v6851_v45 = vsel %vm6091_vm6, %v6850_v44, %v6849_v6  ;;  %v6723_v37 = vsel %vm6082_vm3, %v12303_v11, %v6722_v57  ;;  %v12698_v23 = vsel %vm1547_vm11, %v14104_v21, %v5916_v58  ;;  %v7108_v30 = vrot.slane %v14050_v3, 7  ;;  %v14105_v6 = vld [vmem:[#allocation35_spill] sm:$0xff] }
 0x624   : > { %v6853_v32 = vsel %vm6094_vm5, %v6852_v28, %v6851_v45  ;;  %v6725_v39 = vsel %vm6085_vm4, %v6724_v46, %v6723_v37  ;;  %v6734_v57 = vrot.slane %v12339_v27, 2  ;;  %v12706_v13 = vadd.f32 %v12698_v23, %v14105_v6 }
 0x625   : > { %v6855_v41 = vsel %vm6097_vm13, %v6854_v55, %v6853_v32  ;;  %v6727_v44 = vsel %vm6088_vm10, %v6726_v63, %v6725_v39  ;;  %v7109_v45 = vrot.slane %v14056_v36, 6  ;;  %v7111_v58 = vrot.slane %v14057_v54, 5 }
 0x626   : > { %14106 = vst [vmem:[#allocation45_spill] sm:$0xff] %v12706_v13  ;;  %v6857_v28 = vsel %vm6100_vm7, %v6856_v7, %v6855_v41  ;;  %v6729_v46 = vsel %vm6091_vm6, %v6728_v56, %v6727_v44  ;;  %v7113_v63 = vrot.slane %v14062_v42, 4  ;;  %v7115_v37 = vrot.slane %v14063_v31, 3 }
 0x627   : > { %6900 = vrot.lane.b32.xlu0 %v6857_v28, %s7697_s28  ;;  %v6731_v55 = vsel %vm6094_vm5, %v6730_v24, %v6729_v46  ;;  %v7117_v32 = vrot.slane %v14064_v2, 2  ;;  %v7110_v41 = vsel %vm6082_vm3, %v7109_v45, %v7108_v30  ;;  %v7119_v7 = vrot.slane %v14067_v62, 1 }
 0x628   : > { %v6733_v39 = vsel %vm6097_vm13, %v6732_v8, %v6731_v55  ;;  %v6986_v56 = vrot.slane %v12300_v43, 5  ;;  %v7112_v44 = vsel %vm6085_vm4, %v7111_v58, %v7110_v41  ;;  %v6987_v24 = vrot.slane %v12303_v11, 4 }
 0x629   : > { %v6735_v21 = vsel %vm6100_vm7, %v6734_v57, %v6733_v39  ;;  %v6989_v6 = vrot.slane %v12274_v20, 3  ;;  %v7114_v28 = vsel %vm6088_vm10, %v7113_v63, %v7112_v44  ;;  %v6991_v8 = vrot.slane %v12284_v14, 2 }
 0x62a   : > { %6766 = vrot.lane.b32.xlu1 %v6735_v21, %s7693_s19  ;;  %v6993_v30 = vrot.slane %v12365_v4, 1  ;;  %v6996_v46 = vrot.slane %v12333_v5, 7  ;;  %v7116_v45 = vsel %vm6091_vm6, %v7115_v37, %v7114_v28  ;;  %v6988_v57 = vsel %vm6082_vm3, %v6987_v24, %v6986_v56 }
 0x62b   : > { %v6998_v58 = vrot.slane %v12339_v27, 6  ;;  %v6790_v55 = vrot.slane %v12300_v43, 2  ;;  %v7118_v39 = vsel %vm6094_vm5, %v7117_v32, %v7116_v45  ;;  %v6990_v41 = vsel %vm6085_vm4, %v6989_v6, %v6988_v57 }
 0x62c   : > { %v6791_v63 = vrot.slane %v12303_v11, 1  ;;  %v6794_v21 = vrot.slane %v12284_v14, 7  ;;  %v7120_v44 = vsel %vm6097_vm13, %v7119_v7, %v7118_v39  ;;  %v6992_v62 = vsel %vm6088_vm10, %v6991_v8, %v6990_v41 }
 0x62d   : > { %v6796_v37 = vrot.slane %v12365_v4, 6  ;;  %v6798_v56 = vrot.slane %v12377_v50, 5  ;;  %v7121_v24 = vsel %vm6100_vm7, %v14068_v25, %v7120_v44  ;;  %v6994_v28 = vsel %vm6091_vm6, %v6993_v30, %v6992_v62 }
 0x62e   : > { %v6792_v32 = vsel %vm6082_vm3, %v6791_v63, %v6790_v55  ;;  %v6800_v6 = vrot.slane %v12333_v5, 4  ;;  %7164 = vrot.lane.b32.xlu0 %v7121_v24, %s7697_s28  ;;  %v6995_v7 = vsel %vm6094_vm5, %v12377_v50, %v6994_v28  ;;  %v6802_v45 = vrot.slane %v12339_v27, 3 }
 0x62f   : > { %v6793_v8 = vsel %vm6085_vm4, %v12274_v20, %v6792_v32  ;;  %v6176_v57 = vrot.slane %v12417_v33, 1  ;;  %v6997_v39 = vsel %vm6097_vm13, %v6996_v46, %v6995_v7  ;;  %v6178_v30 = vrot.slane %v12390_v10, 7 }
 0x630   : > { %v6795_v62 = vsel %vm6088_vm10, %v6794_v21, %v6793_v8  ;;  %v6180_v55 = vrot.slane %v12393_v29, 6  ;;  %v6999_v41 = vsel %vm6100_vm7, %v6998_v58, %v6997_v39  ;;  %v6182_v24 = vrot.slane %v12447_v1, 5 }
 0x631   : > { %v6797_v63 = vsel %vm6091_vm6, %v6796_v37, %v6795_v62  ;;  %v6177_v44 = vsel %vm6082_vm3, %v12420_v16, %v6176_v57  ;;  %7030 = vrot.lane.b32.xlu1 %v6999_v41, %s7693_s19  ;;  %v6184_v21 = vrot.slane %v12459_v22, 4  ;;  %v6186_v32 = vrot.slane %v12465_v51, 3 }
 0x632   : > { %v6799_v28 = vsel %vm6094_vm5, %v6798_v56, %v6797_v63  ;;  %v6179_v46 = vsel %vm6085_vm4, %v6178_v30, %v6177_v44  ;;  %v6188_v37 = vrot.slane %v12476_v35, 2  ;;  %v7054_v8 = vrot.slane %v12300_v43, 6 }
 0x633   : > { %v6801_v7 = vsel %vm6097_vm13, %v6800_v6, %v6799_v28  ;;  %v6181_v58 = vsel %vm6088_vm10, %v6180_v55, %v6179_v46  ;;  %v7055_v56 = vrot.slane %v12303_v11, 5  ;;  %v7057_v62 = vrot.slane %v12274_v20, 4 }
 0x634   : > { %v6803_v57 = vsel %vm6100_vm7, %v6802_v45, %v6801_v7  ;;  %v6183_v39 = vsel %vm6091_vm6, %v6182_v24, %v6181_v58  ;;  %v7059_v41 = vrot.slane %v12284_v14, 3  ;;  %v7061_v6 = vrot.slane %v12365_v4, 2 }
 0x635   : > { %v6185_v30 = vsel %vm6094_vm5, %v6184_v21, %v6183_v39  ;;  %v7063_v55 = vrot.slane %v12377_v50, 1  ;;  %6834 = vrot.lane.b32.xlu1 %v6803_v57, %s7698_s27  ;;  %v7056_v45 = vsel %vm6082_vm3, %v7055_v56, %v7054_v8  ;;  %v7066_v44 = vrot.slane %v12339_v27, 7 }
 0x636   : > { %v6187_v63 = vsel %vm6097_vm13, %v6186_v32, %v6185_v30  ;;  %v6244_v24 = vrot.slane %v12417_v33, 2  ;;  %v7058_v46 = vsel %vm6085_vm4, %v7057_v62, %v7056_v45  ;;  %v6245_v21 = vrot.slane %v12420_v16, 1 }
 0x637   : > { %v6189_v28 = vsel %vm6100_vm7, %v6188_v37, %v6187_v63  ;;  %v6248_v7 = vrot.slane %v12393_v29, 7  ;;  %v7060_v58 = vsel %vm6088_vm10, %v7059_v41, %v7058_v46  ;;  %v6250_v32 = vrot.slane %v12447_v1, 6 }
 0x638   : > { %6208 = vrot.lane.b32.xlu0 %v6189_v28, %s7693_s19  ;;  %v6252_v8 = vrot.slane %v12459_v22, 5  ;;  %v6254_v57 = vrot.slane %v12465_v51, 4  ;;  %v7062_v39 = vsel %vm6091_vm6, %v7061_v6, %v7060_v58  ;;  %v6246_v37 = vsel %vm6082_vm3, %v6245_v21, %v6244_v24 }
 0x639   : > { %v6256_v56 = vrot.slane %v12476_v35, 3  ;;  %v6858_v62 = vrot.slane %v12300_v43, 3  ;;  %v7064_v30 = vsel %vm6094_vm5, %v7063_v55, %v7062_v39  ;;  %v6247_v63 = vsel %vm6085_vm4, %v12390_v10, %v6246_v37 }
 0x63a   : > { %v6859_v41 = vrot.slane %v12303_v11, 2  ;;  %v6861_v45 = vrot.slane %v12274_v20, 1  ;;  %v7065_v28 = vsel %vm6097_vm13, %v12333_v5, %v7064_v30  ;;  %v6249_v6 = vsel %vm6088_vm10, %v6248_v7, %v6247_v63 }
 0x63b   : > { %v6864_v24 = vrot.slane %v12365_v4, 7  ;;  %v6866_v46 = vrot.slane %v12377_v50, 6  ;;  %v7067_v21 = vsel %vm6100_vm7, %v7066_v44, %v7065_v28  ;;  %v6251_v55 = vsel %vm6091_vm6, %v6250_v32, %v6249_v6 }
 0x63c   : > { %v6860_v58 = vsel %vm6082_vm3, %v6859_v41, %v6858_v62  ;;  %v6868_v39 = vrot.slane %v12333_v5, 5  ;;  %7098 = vrot.lane.b32.xlu1 %v7067_v21, %s7698_s27  ;;  %v6253_v37 = vsel %vm6094_vm5, %v6252_v8, %v6251_v55  ;;  %v6870_v7 = vrot.slane %v12339_v27, 4 }
 0x63d   : > { %v6862_v30 = vsel %vm6085_vm4, %v6861_v45, %v6860_v58  ;;  %v6312_v63 = vrot.slane %v12417_v33, 3  ;;  %v6255_v25 = vsel %vm6097_vm13, %v6254_v57, %v6253_v37  ;;  %v6313_v32 = vrot.slane %v12420_v16, 2 }
 0x63e   : > { %v6863_v44 = vsel %vm6088_vm10, %v12284_v14, %v6862_v30  ;;  %v6315_v62 = vrot.slane %v12390_v10, 1  ;;  %v6257_v41 = vsel %vm6100_vm7, %v6256_v56, %v6255_v25  ;;  %v6318_v8 = vrot.slane %v12447_v1, 7 }
 0x63f   : > { %v6865_v28 = vsel %vm6091_vm6, %v6864_v24, %v6863_v44  ;;  %v6320_v45 = vrot.slane %v12459_v22, 6  ;;  %6276 = vrot.lane.b32.xlu0 %v6257_v41, %s7698_s27  ;;  %v6314_v57 = vsel %vm6082_vm3, %v6313_v32, %v6312_v63  ;;  %v6322_v21 = vrot.slane %v12465_v51, 5 }
 0x640   : > { %v6867_v6 = vsel %vm6094_vm5, %v6866_v46, %v6865_v28  ;;  %v6324_v55 = vrot.slane %v12476_v35, 4  ;;  %v6316_v25 = vsel %vm6085_vm4, %v6315_v62, %v6314_v57  ;;  %v7122_v56 = vrot.slane %v12300_v43, 7 }
 0x641   : > { %v6869_v58 = vsel %vm6097_vm13, %v6868_v39, %v6867_v6  ;;  %v7123_v24 = vrot.slane %v12303_v11, 6  ;;  %v6317_v30 = vsel %vm6088_vm10, %v12393_v29, %v6316_v25  ;;  %v7125_v46 = vrot.slane %v12274_v20, 5 }
 0x642   : > { %v6871_v37 = vsel %vm6100_vm7, %v6870_v7, %v6869_v58  ;;  %v7127_v63 = vrot.slane %v12284_v14, 4  ;;  %v6319_v44 = vsel %vm6091_vm6, %v6318_v8, %v6317_v30  ;;  %v7129_v32 = vrot.slane %v12365_v4, 3 }
 0x643   : > { %6902 = vrot.lane.b32.xlu1 %v6871_v37, %s7697_s28  ;;  %v7124_v39 = vsel %vm6082_vm3, %v7123_v24, %v7122_v56  ;;  %v7131_v62 = vrot.slane %v12377_v50, 2  ;;  %v6321_v41 = vsel %vm6094_vm5, %v6320_v45, %v6319_v44  ;;  %v7133_v28 = vrot.slane %v12333_v5, 1 }
 0x644   : > { %v7126_v7 = vsel %vm6085_vm4, %v7125_v46, %v7124_v39  ;;  %v6440_v6 = vrot.slane %v12417_v33, 5  ;;  %v6323_v57 = vsel %vm6097_vm13, %v6322_v21, %v6321_v41  ;;  %v6441_v8 = vrot.slane %v12420_v16, 4 }
 0x645   : > { %v7128_v58 = vsel %vm6088_vm10, %v7127_v63, %v7126_v7  ;;  %v6443_v25 = vrot.slane %v12390_v10, 3  ;;  %v6325_v56 = vsel %vm6100_vm7, %v6324_v55, %v6323_v57  ;;  %v6445_v45 = vrot.slane %v12393_v29, 2 }
 0x646   : > { %v7130_v24 = vsel %vm6091_vm6, %v7129_v32, %v7128_v58  ;;  %v6447_v37 = vrot.slane %v12447_v1, 1  ;;  %6344 = vrot.lane.b32.xlu0 %v6325_v56, %s7697_s28  ;;  %v6442_v21 = vsel %vm6082_vm3, %v6441_v8, %v6440_v6  ;;  %v6450_v46 = vrot.slane %v12465_v51, 7 }
 0x647   : > { %v7132_v30 = vsel %vm6094_vm5, %v7131_v62, %v7130_v24  ;;  %v6452_v63 = vrot.slane %v12476_v35, 6  ;;  %v6444_v55 = vsel %vm6085_vm4, %v6443_v25, %v6442_v21  ;;  %v6508_v39 = vrot.slane %v12417_v33, 6 }
 0x648   : > { %v7134_v44 = vsel %vm6097_vm13, %v7133_v28, %v7132_v30  ;;  %v6509_v32 = vrot.slane %v12420_v16, 5  ;;  %v6446_v7 = vsel %vm6088_vm10, %v6445_v45, %v6444_v55  ;;  %v6511_v62 = vrot.slane %v12390_v10, 4 }
 0x649   : > { %v7135_v41 = vsel %vm6100_vm7, %v12339_v27, %v7134_v44  ;;  %v6513_v6 = vrot.slane %v12393_v29, 3  ;;  %v6448_v57 = vsel %vm6091_vm6, %v6447_v37, %v6446_v7  ;;  %v6515_v58 = vrot.slane %v12447_v1, 2 }
 0x64a   : > { %7166 = vrot.lane.b32.xlu1 %v7135_v41, %s7697_s28  ;;  %v6510_v28 = vsel %vm6082_vm3, %v6509_v32, %v6508_v39  ;;  %v6517_v8 = vrot.slane %v12459_v22, 1  ;;  %v6449_v25 = vsel %vm6094_vm5, %v12459_v22, %v6448_v57  ;;  %v6520_v24 = vrot.slane %v12476_v35, 7 }
 0x64b   : > { %v6512_v56 = vsel %vm6085_vm4, %v6511_v62, %v6510_v28  ;;  %v6190_v45 = vrot.slane %v12570_v15, 1  ;;  %v6451_v30 = vsel %vm6097_vm13, %v6450_v46, %v6449_v25  ;;  %v6192_v37 = vrot.slane %v12520_v40, 7 }
 0x64c   : > { %v6514_v21 = vsel %vm6088_vm10, %v6513_v6, %v6512_v56  ;;  %v6194_v44 = vrot.slane %v12525_v12, 6  ;;  %v6453_v55 = vsel %vm6100_vm7, %v6452_v63, %v6451_v30  ;;  %v6196_v41 = vrot.slane %v12615_v38, 5 }
 0x64d   : > { %v6516_v39 = vsel %vm6091_vm6, %v6515_v58, %v6514_v21  ;;  %v6191_v32 = vsel %vm6082_vm3, %v12575_v34, %v6190_v45  ;;  %6472 = vrot.lane.b32.xlu0 %v6453_v55, %s7693_s19  ;;  %v6198_v62 = vrot.slane %v12620_v19, 4  ;;  %v6200_v6 = vrot.slane %v12652_v52, 3 }
 0x64e   : > { %v6518_v7 = vsel %vm6094_vm5, %v6517_v8, %v6516_v39  ;;  %v6193_v46 = vsel %vm6085_vm4, %v6192_v37, %v6191_v32  ;;  %v6202_v28 = vrot.slane %v12658_v0, 2  ;;  %v6576_v58 = vrot.slane %v12417_v33, 7 }
 0x64f   : > { %v6519_v63 = vsel %vm6097_vm13, %v12465_v51, %v6518_v7  ;;  %v6195_v57 = vsel %vm6088_vm10, %v6194_v44, %v6193_v46  ;;  %v6577_v8 = vrot.slane %v12420_v16, 6  ;;  %v6579_v45 = vrot.slane %v12390_v10, 5 }
 0x650   : > { %v6521_v25 = vsel %vm6100_vm7, %v6520_v24, %v6519_v63  ;;  %v6197_v56 = vsel %vm6091_vm6, %v6196_v41, %v6195_v57  ;;  %v6581_v21 = vrot.slane %v12393_v29, 4  ;;  %v6583_v37 = vrot.slane %v12447_v1, 3 }
 0x651   : > { %v6199_v30 = vsel %vm6094_vm5, %v6198_v62, %v6197_v56  ;;  %v6585_v44 = vrot.slane %v12459_v22, 2  ;;  %6540 = vrot.lane.b32.xlu0 %v6521_v25, %s7698_s27  ;;  %v6578_v24 = vsel %vm6082_vm3, %v6577_v8, %v6576_v58  ;;  %v6587_v39 = vrot.slane %v12465_v51, 1 }
 0x652   : > { %v6201_v55 = vsel %vm6097_vm13, %v6200_v6, %v6199_v30  ;;  %v6258_v32 = vrot.slane %v12570_v15, 2  ;;  %v6580_v7 = vsel %vm6085_vm4, %v6579_v45, %v6578_v24  ;;  %v6259_v46 = vrot.slane %v12575_v34, 1 }
 0x653   : > { %v6203_v41 = vsel %vm6100_vm7, %v6202_v28, %v6201_v55  ;;  %v6262_v62 = vrot.slane %v12525_v12, 7  ;;  %v6582_v63 = vsel %vm6088_vm10, %v6581_v21, %v6580_v7  ;;  %v6264_v6 = vrot.slane %v12615_v38, 6 }
 0x654   : > { %6210 = vrot.lane.b32.xlu1 %v6203_v41, %s7693_s19  ;;  %v6266_v57 = vrot.slane %v12620_v19, 5  ;;  %v6268_v58 = vrot.slane %v12652_v52, 4  ;;  %v6584_v25 = vsel %vm6091_vm6, %v6583_v37, %v6582_v63  ;;  %v6260_v28 = vsel %vm6082_vm3, %v6259_v46, %v6258_v32  ;;  %v14107_v32 = vld [vmem:[#allocation7_spill] sm:$0xff] }
 0x655   : > { %v6270_v56 = vrot.slane %v12658_v0, 3  ;;  %v6736_v8 = vrot.slane %v12426_v18, 1  ;;  %v6586_v45 = vsel %vm6094_vm5, %v6585_v44, %v6584_v25  ;;  %v6261_v30 = vsel %vm6085_vm4, %v12520_v40, %v6260_v28  ;;  %v14108_v25 = vld [vmem:[#allocation17_spill] sm:$0xff] }
 0x656   : > { %v6738_v21 = vrot.slane %v12396_v47, 7  ;;  %v6740_v55 = vrot.slane %v12400_v17, 6  ;;  %v6588_v24 = vsel %vm6097_vm13, %v6587_v39, %v6586_v45  ;;  %v6263_v41 = vsel %vm6088_vm10, %v6262_v62, %v6261_v30  ;;  %v14109_v45 = vld [vmem:[#allocation28_spill] sm:$0xff] }
 0x657   : > { %v6737_v37 = vsel %vm6082_vm3, %v12429_v61, %v6736_v8  ;;  %v6742_v7 = vrot.slane %v14107_v32, 5  ;;  %v6589_v46 = vsel %vm6100_vm7, %v12476_v35, %v6588_v24  ;;  %v6265_v44 = vsel %vm6091_vm6, %v6264_v6, %v6263_v41  ;;  %v14110_v8 = vld [vmem:[#allocation5_spill] sm:$0xff] }
 0x658   : > { %v6739_v63 = vsel %vm6085_vm4, %v6738_v21, %v6737_v37  ;;  %v6744_v28 = vrot.slane %v14108_v25, 4  ;;  %6608 = vrot.lane.b32.xlu0 %v6589_v46, %s7697_s28  ;;  %v6267_v39 = vsel %vm6094_vm5, %v6266_v57, %v6265_v44  ;;  %v6746_v30 = vrot.slane %v14109_v45, 3 }
 0x659   : > { %v6741_v62 = vsel %vm6088_vm10, %v6740_v55, %v6739_v63  ;;  %v6748_v51 = vrot.slane %v14110_v8, 2  ;;  %v6269_v22 = vsel %vm6097_vm13, %v6268_v58, %v6267_v39  ;;  %v6326_v6 = vrot.slane %v12570_v15, 3 }
 0x65a   : > { %v6743_v24 = vsel %vm6091_vm6, %v6742_v7, %v6741_v62  ;;  %v6327_v21 = vrot.slane %v12575_v34, 2  ;;  %v6271_v41 = vsel %vm6100_vm7, %v6270_v56, %v6269_v22  ;;  %v6329_v57 = vrot.slane %v12520_v40, 1 }
 0x65b   : > { %v6745_v37 = vsel %vm6094_vm5, %v6744_v28, %v6743_v24  ;;  %v6332_v55 = vrot.slane %v12615_v38, 7  ;;  %6278 = vrot.lane.b32.xlu1 %v6271_v41, %s7698_s27  ;;  %v6334_v7 = vrot.slane %v12620_v19, 6  ;;  %v6336_v44 = vrot.slane %v12652_v52, 5 }
 0x65c   : > { %v6747_v46 = vsel %vm6097_vm13, %v6746_v30, %v6745_v37  ;;  %v6328_v58 = vsel %vm6082_vm3, %v6327_v21, %v6326_v6  ;;  %v6338_v56 = vrot.slane %v12658_v0, 4  ;;  %v7000_v28 = vrot.slane %v12426_v18, 5 }
 0x65d   : > { %v6749_v63 = vsel %vm6100_vm7, %v6748_v51, %v6747_v46  ;;  %v6330_v22 = vsel %vm6085_vm4, %v6329_v57, %v6328_v58  ;;  %v7001_v62 = vrot.slane %v12429_v61, 4  ;;  %v7003_v30 = vrot.slane %v12396_v47, 3 }
 0x65e   : > { %6768 = vrot.lane.b32.xlu0 %v6749_v63, %s7693_s19  ;;  %v6331_v39 = vsel %vm6088_vm10, %v12525_v12, %v6330_v22  ;;  %v7005_v24 = vrot.slane %v12400_v17, 2  ;;  %v7007_v51 = vrot.slane %v14107_v32, 1  ;;  %v7010_v21 = vrot.slane %v14109_v45, 7 }
 0x65f   : > { %v6333_v6 = vsel %vm6091_vm6, %v6332_v55, %v6331_v39  ;;  %v7012_v41 = vrot.slane %v14110_v8, 6  ;;  %v7002_v57 = vsel %vm6082_vm3, %v7001_v62, %v7000_v28  ;;  %v6454_v46 = vrot.slane %v12570_v15, 5 }
 0x660   : > { %v6335_v37 = vsel %vm6094_vm5, %v6334_v7, %v6333_v6  ;;  %v6455_v58 = vrot.slane %v12575_v34, 4  ;;  %v7004_v22 = vsel %vm6085_vm4, %v7003_v30, %v7002_v57  ;;  %v6457_v55 = vrot.slane %v12520_v40, 3 }
 0x661   : > { %v6337_v63 = vsel %vm6097_vm13, %v6336_v44, %v6335_v37  ;;  %v6459_v39 = vrot.slane %v12525_v12, 2  ;;  %v7006_v1 = vsel %vm6088_vm10, %v7005_v24, %v7004_v22  ;;  %v6461_v28 = vrot.slane %v12615_v38, 1 }
 0x662   : > { %v6339_v35 = vsel %vm6100_vm7, %v6338_v56, %v6337_v63  ;;  %v6456_v7 = vsel %vm6082_vm3, %v6455_v58, %v6454_v46  ;;  %v7008_v62 = vsel %vm6091_vm6, %v7007_v51, %v7006_v1  ;;  %v6464_v30 = vrot.slane %v12652_v52, 7  ;;  %v12999_v58 = vpop.permute.xlu0 %6204 }
 0x663   : > { %6346 = vrot.lane.b32.xlu1 %v6339_v35, %s7697_s28  ;;  %v6458_v44 = vsel %vm6085_vm4, %v6457_v55, %v6456_v7  ;;  %v6466_v6 = vrot.slane %v12658_v0, 6  ;;  %v7009_v37 = vsel %vm6094_vm5, %v14108_v25, %v7008_v62  ;;  %v6804_v24 = vrot.slane %v12426_v18, 2  ;;  %v14111_v7 = vld [vmem:[#allocation41_spill] sm:$0xff] }
 0x664   : > { %v6460_v56 = vsel %vm6088_vm10, %v6459_v39, %v6458_v44  ;;  %v6805_v57 = vrot.slane %v12429_v61, 1  ;;  %v7011_v46 = vsel %vm6097_vm13, %v7010_v21, %v7009_v37  ;;  %v6808_v1 = vrot.slane %v12400_v17, 7 }
 0x665   : > { %v6462_v35 = vsel %vm6091_vm6, %v6461_v28, %v6460_v56  ;;  %v6810_v51 = vrot.slane %v14107_v32, 6  ;;  %v7013_v63 = vsel %vm6100_vm7, %v7012_v41, %v7011_v46  ;;  %v6812_v39 = vrot.slane %v14108_v25, 5 }
 0x666   : > { %v6463_v22 = vsel %vm6094_vm5, %v12620_v19, %v6462_v35  ;;  %v6806_v55 = vsel %vm6082_vm3, %v6805_v57, %v6804_v24  ;;  %v13008_v21 = vadd.f32 %v12698_v23, %v14111_v7  ;;  %7032 = vrot.lane.b32.xlu0 %v7013_v63, %s7693_s19  ;;  %v6814_v41 = vrot.slane %v14109_v45, 4 }
 0x667   : > { %v6465_v28 = vsel %vm6097_vm13, %v6464_v30, %v6463_v22  ;;  %v6807_v62 = vsel %vm6085_vm4, %v12396_v47, %v6806_v55  ;;  %v6522_v56 = vrot.slane %v12570_v15, 6  ;;  %v6523_v24 = vrot.slane %v12575_v34, 5 }
 0x668   : > { %14112 = vst [vmem:[#allocation19_spill] sm:$0xff] %v13008_v21  ;;  %v6467_v44 = vsel %vm6100_vm7, %v6466_v6, %v6465_v28  ;;  %v6809_v37 = vsel %vm6088_vm10, %v6808_v1, %v6807_v62  ;;  %v6816_v57 = vrot.slane %v14110_v8, 3  ;;  %v6525_v30 = vrot.slane %v12520_v40, 4  ;;  %v13032_v28 = vpop.permute.xlu0 %6272 }
 0x669   : > { %6474 = vrot.lane.b32.xlu1 %v6467_v44, %s7693_s19  ;;  %v6811_v23 = vsel %vm6091_vm6, %v6810_v51, %v6809_v37  ;;  %v6529_v46 = vrot.slane %v12615_v38, 2  ;;  %v6524_v6 = vsel %vm6082_vm3, %v6523_v24, %v6522_v56  ;;  %v6527_v1 = vrot.slane %v12525_v12, 3 }
 0x66a   : > { %v6813_v35 = vsel %vm6094_vm5, %v6812_v39, %v6811_v23  ;;  %v6531_v63 = vrot.slane %v12620_v19, 1  ;;  %v6526_v55 = vsel %vm6085_vm4, %v6525_v30, %v6524_v6  ;;  %v7068_v51 = vrot.slane %v12426_v18, 6 }
 0x66b   : > { %v6815_v22 = vsel %vm6097_vm13, %v6814_v41, %v6813_v35  ;;  %v7069_v7 = vrot.slane %v12429_v61, 5  ;;  %v6528_v39 = vsel %vm6088_vm10, %v6527_v1, %v6526_v55  ;;  %v7071_v44 = vrot.slane %v12396_v47, 4 }
 0x66c   : > { %v6817_v62 = vsel %vm6100_vm7, %v6816_v57, %v6815_v22  ;;  %v7073_v37 = vrot.slane %v12400_v17, 3  ;;  %v6530_v41 = vsel %vm6091_vm6, %v6529_v46, %v6528_v39  ;;  %v7075_v24 = vrot.slane %v14107_v32, 2 }
 0x66d   : > { %6836 = vrot.lane.b32.xlu0 %v6817_v62, %s7698_s27  ;;  %v7070_v56 = vsel %vm6082_vm3, %v7069_v7, %v7068_v51  ;;  %v7077_v23 = vrot.slane %v14108_v25, 1  ;;  %v6532_v30 = vsel %vm6094_vm5, %v6531_v63, %v6530_v41  ;;  %v6534_v57 = vrot.slane %v12658_v0, 7 }
 0x66e   : > { %v7072_v35 = vsel %vm6085_vm4, %v7071_v44, %v7070_v56  ;;  %v6590_v6 = vrot.slane %v12570_v15, 7  ;;  %v6533_v1 = vsel %vm6097_vm13, %v12652_v52, %v6532_v30  ;;  %v7080_v46 = vrot.slane %v14110_v8, 7  ;;  %v13061_v56 = vpop.permute.xlu0 %6340 }
 0x66f   : > { %v7074_v22 = vsel %vm6088_vm10, %v7073_v37, %v7072_v35  ;;  %v6591_v55 = vrot.slane %v12575_v34, 6  ;;  %v6535_v51 = vsel %vm6100_vm7, %v6534_v57, %v6533_v1  ;;  %v6593_v63 = vrot.slane %v12520_v40, 5 }
 0x670   : > { %v7076_v7 = vsel %vm6091_vm6, %v7075_v24, %v7074_v22  ;;  %v6597_v62 = vrot.slane %v12615_v38, 3  ;;  %6542 = vrot.lane.b32.xlu1 %v6535_v51, %s7698_s27  ;;  %v6595_v37 = vrot.slane %v12525_v12, 4  ;;  %v6599_v41 = vrot.slane %v12620_v19, 2  ;;  %v13107_v19 = vpop.permute.xlu1 %6206 }
 0x671   : > { %v7078_v39 = vsel %vm6094_vm5, %v7077_v23, %v7076_v7  ;;  %v6592_v44 = vsel %vm6082_vm3, %v6591_v55, %v6590_v6  ;;  %v6872_v57 = vrot.slane %v12426_v18, 3  ;;  %v6873_v35 = vrot.slane %v12429_v61, 2 }
 0x672   : > { %v7079_v30 = vsel %vm6097_vm13, %v14109_v45, %v7078_v39  ;;  %v6594_v24 = vsel %vm6085_vm4, %v6593_v63, %v6592_v44  ;;  %v6875_v6 = vrot.slane %v12396_v47, 1  ;;  %v6878_v22 = vrot.slane %v14107_v32, 7 }
 0x673   : > { %v7081_v1 = vsel %vm6100_vm7, %v7080_v46, %v7079_v30  ;;  %v6596_v23 = vsel %vm6088_vm10, %v6595_v37, %v6594_v24  ;;  %v6601_v51 = vrot.slane %v12652_v52, 1  ;;  %v6874_v7 = vsel %vm6082_vm3, %v6873_v35, %v6872_v57 }
 0x674   : > { %7100 = vrot.lane.b32.xlu0 %v7081_v1, %s7698_s27  ;;  %v6598_v55 = vsel %vm6091_vm6, %v6597_v62, %v6596_v23  ;;  %v6880_v63 = vrot.slane %v14108_v25, 6  ;;  %v6876_v46 = vsel %vm6085_vm4, %v6875_v6, %v6874_v7  ;;  %v6882_v44 = vrot.slane %v14109_v45, 5  ;;  %v14113_v62 = vld [vmem:[#allocation44_spill] sm:$0xff]  ;;  %v14114_v23 = vld [vmem:[#allocation18_spill] sm:$0xff] }
 0x675   : > { %v6600_v39 = vsel %vm6094_vm5, %v6599_v41, %v6598_v55  ;;  %v6750_v37 = vrot.slane %v12602_v48, 1  ;;  %v6877_v24 = vsel %vm6088_vm10, %v12400_v17, %v6876_v46  ;;  %v6752_v1 = vrot.slane %v14113_v62, 7  ;;  %v13092_v55 = vpop.permute.xlu0 %6468 }
 0x676   : > { %v6602_v30 = vsel %vm6097_vm13, %v6601_v51, %v6600_v39  ;;  %v6754_v52 = vrot.slane %v14114_v23, 6  ;;  %v6879_v41 = vsel %vm6091_vm6, %v6878_v22, %v6877_v24  ;;  %v6756_v6 = vrot.slane %v12706_v13, 5 }
 0x677   : > { %v6603_v57 = vsel %vm6100_vm7, %v12658_v0, %v6602_v30  ;;  %v6751_v35 = vsel %vm6082_vm3, %v12612_v60, %v6750_v37  ;;  %v6881_v51 = vsel %vm6094_vm5, %v6880_v63, %v6879_v41  ;;  %v6884_v7 = vrot.slane %v14110_v8, 4 }
 0x678   : > { %6610 = vrot.lane.b32.xlu1 %v6603_v57, %s7697_s28  ;;  %v6753_v39 = vsel %vm6085_vm4, %v6752_v1, %v6751_v35  ;;  %v6758_v46 = vrot.slane %v13008_v21, 4  ;;  %v6883_v30 = vsel %vm6097_vm13, %v6882_v44, %v6881_v51  ;;  %v6760_v37 = vrot.slane %v12661_v26, 3 }
 0x679   : > { %v6755_v22 = vsel %vm6088_vm10, %v6754_v52, %v6753_v39  ;;  %v7136_v24 = vrot.slane %v12426_v18, 7  ;;  %v6885_v0 = vsel %vm6100_vm7, %v6884_v7, %v6883_v30  ;;  %v6762_v63 = vrot.slane %v12670_v59, 2 }
 0x67a   : > { %v6757_v57 = vsel %vm6091_vm6, %v6756_v6, %v6755_v22  ;;  %v7137_v41 = vrot.slane %v12429_v61, 6  ;;  %6904 = vrot.lane.b32.xlu0 %v6885_v0, %s7697_s28  ;;  %v7139_v52 = vrot.slane %v12396_v47, 5  ;;  %v7141_v1 = vrot.slane %v12400_v17, 4 }
 0x67b   : > { %v6759_v44 = vsel %vm6094_vm5, %v6758_v46, %v6757_v57  ;;  %v7143_v35 = vrot.slane %v14107_v32, 3  ;;  %v7145_v7 = vrot.slane %v14108_v25, 2  ;;  %v7014_v39 = vrot.slane %v12602_v48, 5  ;;  %v13122_v57 = vpop.permute.xlu0 %6536  ;;  %v13137_v25 = vpop.permute.xlu1 %6274 }
 0x67c   : > { %v6761_v51 = vsel %vm6097_vm13, %v6760_v37, %v6759_v44  ;;  %v7138_v6 = vsel %vm6082_vm3, %v7137_v41, %v7136_v24  ;;  %v7147_v46 = vrot.slane %v14109_v45, 1  ;;  %v7015_v22 = vrot.slane %v12612_v60, 4 }
 0x67d   : > { %v6763_v30 = vsel %vm6100_vm7, %v6762_v63, %v6761_v51  ;;  %v7140_v0 = vsel %vm6085_vm4, %v7139_v52, %v7138_v6  ;;  %v7017_v24 = vrot.slane %v14113_v62, 3  ;;  %v7019_v41 = vrot.slane %v14114_v23, 2 }
 0x67e   : > { %6770 = vrot.lane.b32.xlu1 %v6763_v30, %s7693_s19  ;;  %v7142_v37 = vsel %vm6088_vm10, %v7141_v1, %v7140_v0  ;;  %v7021_v44 = vrot.slane %v12706_v13, 1  ;;  %v7016_v52 = vsel %vm6082_vm3, %v7015_v22, %v7014_v39  ;;  %v7024_v51 = vrot.slane %v12661_v26, 7 }
 0x67f   : > { %v7144_v63 = vsel %vm6091_vm6, %v7143_v35, %v7142_v37  ;;  %v6818_v6 = vrot.slane %v12602_v48, 2  ;;  %v7018_v30 = vsel %vm6085_vm4, %v7017_v24, %v7016_v52  ;;  %v7026_v1 = vrot.slane %v12670_v59, 6 }
 0x680   : > { %v7146_v45 = vsel %vm6094_vm5, %v7145_v7, %v7144_v63  ;;  %v6819_v0 = vrot.slane %v12612_v60, 1  ;;  %v7020_v35 = vsel %vm6088_vm10, %v7019_v41, %v7018_v30  ;;  %v6822_v39 = vrot.slane %v14114_v23, 7  ;;  %v13155_v30 = vpop.permute.xlu0 %6604 }
 0x681   : > { %v7148_v17 = vsel %vm6097_vm13, %v7147_v46, %v7146_v45  ;;  %v6824_v22 = vrot.slane %v12706_v13, 6  ;;  %v7022_v7 = vsel %vm6091_vm6, %v7021_v44, %v7020_v35  ;;  %v6826_v63 = vrot.slane %v13008_v21, 5 }
 0x682   : > { %v7149_v37 = vsel %vm6100_vm7, %v14110_v8, %v7148_v17  ;;  %v6820_v24 = vsel %vm6082_vm3, %v6819_v0, %v6818_v6  ;;  %v7023_v45 = vsel %vm6094_vm5, %v13008_v21, %v7022_v7  ;;  %v6828_v41 = vrot.slane %v12661_v26, 4 }
 0x683   : > { %7168 = vrot.lane.b32.xlu0 %v7149_v37, %s7697_s28  ;;  %v6821_v46 = vsel %vm6085_vm4, %v14113_v62, %v6820_v24  ;;  %v7082_v52 = vrot.slane %v12602_v48, 6  ;;  %v7025_v17 = vsel %vm6097_vm13, %v7024_v51, %v7023_v45  ;;  %v6830_v6 = vrot.slane %v12670_v59, 3 }
 0x684   : > { %v6823_v44 = vsel %vm6088_vm10, %v6822_v39, %v6821_v46  ;;  %v7083_v0 = vrot.slane %v12612_v60, 5  ;;  %v7027_v35 = vsel %vm6100_vm7, %v7026_v1, %v7025_v17  ;;  %v7085_v7 = vrot.slane %v14113_v62, 4  ;;  %v13170_v46 = vpop.permute.xlu1 %6342 }
 0x685   : > { %v6825_v37 = vsel %vm6091_vm6, %v6824_v22, %v6823_v44  ;;  %v7089_v24 = vrot.slane %v12706_v13, 2  ;;  %7034 = vrot.lane.b32.xlu1 %v7027_v35, %s7693_s19  ;;  %v7087_v39 = vrot.slane %v14114_v23, 3  ;;  %v7091_v45 = vrot.slane %v13008_v21, 1  ;;  %s7443_s19 = sshll.u32 %s14154_s10, 7 }
 0x686   : > { %v6827_v8 = vsel %vm6094_vm5, %v6826_v63, %v6825_v37  ;;  %v7084_v51 = vsel %vm6082_vm3, %v7083_v0, %v7082_v52  ;;  %v6886_v17 = vrot.slane %v12602_v48, 3  ;;  %v6887_v44 = vrot.slane %v12612_v60, 2 }
 0x687   : > { %v6829_v1 = vsel %vm6097_vm13, %v6828_v41, %v6827_v8  ;;  %v7086_v22 = vsel %vm6085_vm4, %v7085_v7, %v7084_v51  ;;  %v7094_v63 = vrot.slane %v12670_v59, 7  ;;  %v6889_v52 = vrot.slane %v14113_v62, 1  ;;  %v13184_v7 = vpop.permute.xlu0 %6764 }
 0x688   : > { %v7088_v35 = vsel %vm6088_vm10, %v7087_v39, %v7086_v22  ;;  %v6892_v0 = vrot.slane %v12706_v13, 7  ;;  %v6831_v37 = vsel %vm6100_vm7, %v6830_v6, %v6829_v1  ;;  %v6888_v8 = vsel %vm6082_vm3, %v6887_v44, %v6886_v17 }
 0x689   : > { %v7090_v32 = vsel %vm6091_vm6, %v7089_v24, %v7088_v35  ;;  %v6894_v41 = vrot.slane %v13008_v21, 6  ;;  %6838 = vrot.lane.b32.xlu1 %v6831_v37, %s7698_s27  ;;  %v6890_v39 = vsel %vm6085_vm4, %v6889_v52, %v6888_v8  ;;  %v6896_v22 = vrot.slane %v12661_v26, 5  ;;  %v13201_v52 = vpop.permute.xlu1 %6470 }
 0x68a   : > { %v7092_v51 = vsel %vm6094_vm5, %v7091_v45, %v7090_v32  ;;  %v7150_v47 = vrot.slane %v12602_v48, 7  ;;  %v6891_v24 = vsel %vm6088_vm10, %v14114_v23, %v6890_v39  ;;  %v6898_v1 = vrot.slane %v12670_v59, 4 }
 0x68b   : > { %v7093_v6 = vsel %vm6097_vm13, %v12661_v26, %v7092_v51  ;;  %v7151_v17 = vrot.slane %v12612_v60, 6  ;;  %v6893_v32 = vsel %vm6091_vm6, %v6892_v0, %v6891_v24  ;;  %v7153_v45 = vrot.slane %v14113_v62, 5  ;;  %v14115_v24 = vld [vmem:[#allocation40_spill] sm:$0xff]  ;;  %v13216_v48 = vpop.permute.xlu0 %7028 }
 0x68c   : > { %v7095_v44 = vsel %vm6100_vm7, %v7094_v63, %v7093_v6  ;;  %v7157_v35 = vrot.slane %v12706_v13, 3  ;;  %v6895_v37 = vsel %vm6094_vm5, %v6894_v41, %v6893_v32  ;;  %v7155_v51 = vrot.slane %v14114_v23, 4  ;;  %v14116_v32 = vld [vmem:[#allocation32_spill] sm:$0xff] }
 0x68d   : > { %v7152_v8 = vsel %vm6082_vm3, %v7151_v17, %v7150_v47  ;;  %v7159_v39 = vrot.slane %v13008_v21, 2  ;;  %7102 = vrot.lane.b32.xlu1 %v7095_v44, %s7698_s27  ;;  %v6897_v63 = vsel %vm6097_vm13, %v6896_v22, %v6895_v37  ;;  %v7161_v6 = vrot.slane %v12661_v26, 1  ;;  %v14117_v17 = vld [vmem:[#allocation42_spill] sm:$0xff]  ;;  %v13232_v38 = vpop.permute.xlu1 %6538  ;;  %s13260_s27 = scalar_lea.vmem %s13574_s9, %s7443_s19 }
 0x68e   : > { %v7154_v0 = vsel %vm6085_vm4, %v7153_v45, %v7152_v8  ;;  %v6081_v13 = vrot.slane %v14115_v24, 7  ;;  %v6899_v62 = vsel %vm6100_vm7, %v6898_v1, %v6897_v63  ;;  %v6084_v47 = vrot.slane %v14116_v32, 6  ;;  %v14118_v21 = vld [vmem:[#allocation22_spill] sm:$0xff]  ;;  %v14119_v45 = vld [vmem:[#allocation8_spill] sm:$0xff]  ;;  %v14121_v63 = vld [vmem:[#allocation53_spill] sm:$0xff] }
 0x68f   : > { %v7156_v41 = vsel %vm6088_vm10, %v7155_v51, %v7154_v0  ;;  %v6090_v23 = vrot.slane %v14117_v17, 4  ;;  %v6087_v37 = vrot.slane %v14119_v45, 5  ;;  %v14120_v8 = vld [vmem:[#allocation20_spill] sm:$0xff]  ;;  %v6096_v0 = vrot.slane %v14121_v63, 2 }
 0x690   : > { %v7158_v44 = vsel %vm6091_vm6, %v7157_v35, %v7156_v41  ;;  %v6083_v22 = vsel %vm6082_vm3, %v6081_v13, %v14118_v21  ;;  %v6093_v26 = vrot.slane %v14120_v8, 3  ;;  %v6352_v60 = vrot.slane %v14118_v21, 4  ;;  %v14122_v13 = vld [vmem:[#allocation54_spill] sm:$0xff] }
 0x691   : > { %v7160_v1 = vsel %vm6094_vm5, %v7159_v39, %v7158_v44  ;;  %v6086_v51 = vsel %vm6085_vm4, %v6084_v47, %v6083_v22  ;;  %6906 = vrot.lane.b32.xlu1 %v6899_v62, %s7697_s28  ;;  %v6099_v18 = vrot.slane %v14122_v13, 1  ;;  %v6353_v61 = vrot.slane %v14115_v24, 3 }
 0x692   : > { %v7162_v35 = vsel %vm6097_vm13, %v7161_v6, %v7160_v1  ;;  %v6089_v41 = vsel %vm6088_vm10, %v6087_v37, %v6086_v51  ;;  %v6355_v44 = vrot.slane %v14116_v32, 2  ;;  %v6357_v21 = vrot.slane %v14119_v45, 1  ;;  %v13248_v32 = vpop.permute.xlu0 %6832  ;;  %v14123_v45 = vld [vmem:[#allocation57_spill] sm:$0xff] }
 0x693   : > { %v7163_v39 = vsel %vm6100_vm7, %v12670_v59, %v7162_v35  ;;  %v6092_v47 = vsel %vm6091_vm6, %v6090_v23, %v6089_v41  ;;  %v6354_v6 = vsel %vm6082_vm3, %v6353_v61, %v6352_v60  ;;  %v6360_v22 = vrot.slane %v14120_v8, 7  ;;  %v14124_v35 = vld [vmem:[#allocation37_spill] sm:$0xff] }
 0x694   : > { %v6095_v62 = vsel %vm6094_vm5, %v6093_v26, %v6092_v47  ;;  %v6362_v24 = vrot.slane %v14121_v63, 6  ;;  %v6356_v1 = vsel %vm6085_vm4, %v6355_v44, %v6354_v6  ;;  %v6364_v51 = vrot.slane %v14122_v13, 5  ;;  %v14125_v47 = vld [vmem:[#allocation23_spill] sm:$0xff] }
 0x695   : > { %v6098_v37 = vsel %vm6097_vm13, %v6096_v0, %v6095_v62  ;;  %v6102_v23 = vrot.slane %v12290_v53, 7  ;;  %7170 = vrot.lane.b32.xlu1 %v7163_v39, %s7697_s28  ;;  %v6358_v61 = vsel %vm6088_vm10, %v6357_v21, %v6356_v1  ;;  %v6104_v60 = vrot.slane %v12259_v49, 6  ;;  %v13272_v21 = vpop.permute.xlu1 %6606  ;;  %v14126_v6 = vld [vmem:[#allocation47_spill] sm:$0xff] }
 0x696   : > { %v6101_v26 = vsel %vm6100_vm7, %v6099_v18, %v6098_v37  ;;  %v6106_v8 = vrot.slane %v14123_v45, 5  ;;  %v6359_v0 = vsel %vm6091_vm6, %v14117_v17, %v6358_v61  ;;  %v6110_v41 = vrot.slane %v12352_v9, 3  ;;  %v14127_v1 = vld [vmem:[#allocation15_spill] sm:$0xff] }
 0x697   : > { %v7176_v63 = vsel %vm1582_vm8, %v6101_v26, %v12999_v58  ;;  %v6103_v18 = vsel %vm6082_vm3, %v6102_v23, %v14124_v35  ;;  %v6361_v39 = vsel %vm6094_vm5, %v6360_v22, %v6359_v0  ;;  %v6112_v44 = vrot.slane %v14125_v47, 2  ;;  %v13289_v0 = vpop.permute.xlu0 %7096 }
 0x698   : > { %v7180_v13 = vsel %vm1666_vm12, %v7176_v63, %v13032_v28  ;;  %v6105_v58 = vsel %vm6085_vm4, %v6104_v60, %v6103_v18  ;;  %v6363_v17 = vsel %vm6097_vm13, %v6362_v24, %v6361_v39  ;;  %v6114_v37 = vrot.slane %v14126_v6, 1 }
 0x699   : > { %v7184_v62 = vsel %vm1764_vm14, %v7180_v13, %v13061_v56  ;;  %v6108_v23 = vrot.slane %v14127_v1, 4  ;;  %v6365_v28 = vsel %vm6100_vm7, %v6364_v51, %v6363_v17  ;;  %v6107_v22 = vsel %vm6088_vm10, %v6106_v8, %v6105_v58 }
 0x69a   : > { %7224 = vst [vmem:[%s13260_s27] sm:$0xff] %v7184_v62  ;;  %v6648_v26 = vrot.slane %v14056_v36, 7  ;;  %v6650_v61 = vrot.slane %v14057_v54, 6  ;;  %v7188_v60 = vsel %vm1582_vm8, %v6365_v28, %v13092_v55  ;;  %v6652_v24 = vrot.slane %v14062_v42, 5  ;;  %v14128_v62 = vld [vmem:[#allocation55_spill] sm:$0xff] }
 0x69b   : > { %v6109_v56 = vsel %vm6091_vm6, %v6108_v23, %v6107_v22  ;;  %v6654_v63 = vrot.slane %v14063_v31, 4  ;;  %v7192_v8 = vsel %vm1666_vm12, %v7188_v60, %v13122_v57  ;;  %v6656_v13 = vrot.slane %v14064_v2, 3 }
 0x69c   : > { %v6111_v51 = vsel %vm6094_vm5, %v6110_v41, %v6109_v56  ;;  %v6649_v18 = vsel %vm6082_vm3, %v6648_v26, %v14050_v3  ;;  %v7196_v39 = vsel %vm1764_vm14, %v7192_v8, %v13155_v30  ;;  %v6658_v17 = vrot.slane %v14128_v62, 2  ;;  %v13307_v22 = vpop.permute.xlu1 %6766 }
 0x69d   : > { %v6113_v55 = vsel %vm6097_vm13, %v6112_v44, %v6111_v51  ;;  %v6651_v58 = vsel %vm6085_vm4, %v6650_v61, %v6649_v18  ;;  %7225 = vst [vmem:[%s13260_s27 + $0x8] sm:$0xff] %v7196_v39  ;;  %v6366_v57 = vrot.slane %v14124_v35, 4  ;;  %v6367_v28 = vrot.slane %v12290_v53, 3  ;;  %v6901_v51 = vpop.permute.xlu0 %6900 }
 0x69e   : > { %v6115_v23 = vsel %vm6100_vm7, %v6114_v37, %v6113_v55  ;;  %v6653_v41 = vsel %vm6088_vm10, %v6652_v24, %v6651_v58  ;;  %v6369_v26 = vrot.slane %v12259_v49, 2  ;;  %v6371_v61 = vrot.slane %v14123_v45, 1  ;;  %v14129_v24 = vld [vmem:[#allocation56_spill] sm:$0xff] }
 0x69f   : > { %v7177_v44 = vsel %vm1582_vm8, %v6115_v23, %v13107_v19  ;;  %v6655_v30 = vsel %vm6091_vm6, %v6654_v63, %v6653_v41  ;;  %v6368_v35 = vsel %vm6082_vm3, %v6367_v28, %v6366_v57  ;;  %v6374_v53 = vrot.slane %v12352_v9, 7 }
 0x6a0   : > { %v7181_v37 = vsel %vm1666_vm12, %v7177_v44, %v13137_v25  ;;  %v6657_v60 = vsel %vm6094_vm5, %v6656_v13, %v6655_v30  ;;  %v6660_v63 = vrot.slane %v14129_v24, 1  ;;  %v6370_v49 = vsel %vm6085_vm4, %v6369_v26, %v6368_v35 }
 0x6a1   : > { %v7185_v56 = vsel %vm1764_vm14, %v7181_v37, %v13170_v46  ;;  %v6659_v19 = vsel %vm6097_vm13, %v6658_v17, %v6657_v60  ;;  %v6372_v45 = vsel %vm6088_vm10, %v6371_v61, %v6370_v49  ;;  %v6376_v25 = vrot.slane %v14125_v47, 6 }
 0x6a2   : > { %7228 = vst [vmem:[%s13260_s27 + $0x20] sm:$0xff] %v7185_v56  ;;  %v6912_v8 = vrot.slane %v14050_v3, 4  ;;  %v6661_v18 = vsel %vm6100_vm7, %v6660_v63, %v6659_v19  ;;  %v6373_v9 = vsel %vm6091_vm6, %v14127_v1, %v6372_v45  ;;  %v6378_v46 = vrot.slane %v14126_v6, 5 }
 0x6a3   : > { %v6913_v13 = vrot.slane %v14056_v36, 3  ;;  %v7200_v55 = vsel %vm1582_vm8, %v6661_v18, %v13184_v7  ;;  %v6375_v39 = vsel %vm6094_vm5, %v6374_v53, %v6373_v9  ;;  %v6915_v58 = vrot.slane %v14057_v54, 2  ;;  %v13338_v17 = vpop.permute.xlu1 %7030 }
 0x6a4   : > { %v6917_v47 = vrot.slane %v14062_v42, 1  ;;  %v6377_v3 = vsel %vm6097_vm13, %v6376_v25, %v6375_v39  ;;  %v6920_v1 = vrot.slane %v14064_v2, 7  ;;  %v6922_v6 = vrot.slane %v14128_v62, 6  ;;  %v7165_v62 = vpop.permute.xlu0 %7164 }
 0x6a5   : > { %v6914_v23 = vsel %vm6082_vm3, %v6913_v13, %v6912_v8  ;;  %v6379_v36 = vsel %vm6100_vm7, %v6378_v46, %v6377_v3  ;;  %v7204_v41 = vsel %vm1666_vm12, %v7200_v55, %v13248_v32  ;;  %v6662_v54 = vrot.slane %v12303_v11, 7 }
 0x6a6   : > { %v6916_v7 = vsel %vm6085_vm4, %v6915_v58, %v6914_v23  ;;  %v7189_v42 = vsel %vm1582_vm8, %v6379_v36, %v13201_v52  ;;  %v6664_v28 = vrot.slane %v12274_v20, 6  ;;  %v6668_v2 = vrot.slane %v12365_v4, 4  ;;  %v14130_v23 = vld [vmem:[#allocation26_spill] sm:$0xff] }
 0x6a7   : > { %v6918_v57 = vsel %vm6088_vm10, %v6917_v47, %v6916_v7  ;;  %v7193_v32 = vsel %vm1666_vm12, %v7189_v42, %v13232_v38  ;;  %v6663_v30 = vsel %vm6082_vm3, %v6662_v54, %v12300_v43  ;;  %v6666_v52 = vrot.slane %v12284_v14, 5  ;;  %v6835_v35 = vpop.permute.xlu1 %6834 }
 0x6a8   : > { %v6919_v44 = vsel %vm6091_vm6, %v14063_v31, %v6918_v57  ;;  %v7197_v61 = vsel %vm1764_vm14, %v7193_v32, %v13272_v21  ;;  %v6665_v37 = vsel %vm6085_vm4, %v6664_v28, %v6663_v30  ;;  %v6670_v60 = vrot.slane %v12377_v50, 3 }
 0x6a9   : > { %v6921_v26 = vsel %vm6094_vm5, %v6920_v1, %v6919_v44  ;;  %v6924_v53 = vrot.slane %v14129_v24, 5  ;;  %7229 = vst [vmem:[%s13260_s27 + $0x28] sm:$0xff] %v7197_v61  ;;  %v6667_v38 = vsel %vm6088_vm10, %v6666_v52, %v6665_v37  ;;  %v7208_v56 = vsel %vm1764_vm14, %v7204_v41, %v6901_v51 }
 0x6aa   : > { %v6923_v31 = vsel %vm6097_vm13, %v6922_v6, %v6921_v26  ;;  %v6669_v19 = vsel %vm6091_vm6, %v6668_v2, %v6667_v38  ;;  %7226 = vst [vmem:[%s13260_s27 + $0x10] sm:$0xff] %v7208_v56  ;;  %v6926_v63 = vrot.slane %v12300_v43, 4  ;;  %v6927_v21 = vrot.slane %v12303_v11, 3  ;;  %v6209_v18 = vpop.permute.xlu0 %6208  ;;  %v14131_v6 = vld [vmem:[#allocation9_spill] sm:$0xff]  ;;  %v14133_v26 = vld [vmem:[#allocation12_spill] sm:$0xff] }
 0x6ab   : > { %v6925_v49 = vsel %vm6100_vm7, %v6924_v53, %v6923_v31  ;;  %v6929_v45 = vrot.slane %v12274_v20, 2  ;;  %v6671_v24 = vsel %vm6094_vm5, %v6670_v60, %v6669_v19  ;;  %v6931_v51 = vrot.slane %v12284_v14, 1 }
 0x6ac   : > { %v7212_v25 = vsel %vm1582_vm8, %v6925_v49, %v13216_v48  ;;  %v6928_v8 = vsel %vm6082_vm3, %v6927_v21, %v6926_v63  ;;  %v6672_v11 = vrot.slane %v12333_v5, 2  ;;  %v6674_v20 = vrot.slane %v12339_v27, 1 }
 0x6ad   : > { %v7216_v43 = vsel %vm1666_vm12, %v7212_v25, %v13289_v0  ;;  %v6930_v9 = vsel %vm6085_vm4, %v6929_v45, %v6928_v8  ;;  %v6116_v13 = vrot.slane %v12420_v16, 7  ;;  %v6934_v0 = vrot.slane %v12377_v50, 7 }
 0x6ae   : > { %v6932_v46 = vsel %vm6088_vm10, %v6931_v51, %v6930_v9  ;;  %v7220_v48 = vsel %vm1764_vm14, %v7216_v43, %v7165_v62  ;;  %v7099_v55 = vpop.permute.xlu1 %7098  ;;  %v6673_v39 = vsel %vm6097_vm13, %v6672_v11, %v6671_v24  ;;  %v6118_v58 = vrot.slane %v12390_v10, 6  ;;  %v14132_v62 = vld [vmem:[#allocation29_spill] sm:$0xff] }
 0x6af   : > { %v6933_v14 = vsel %vm6091_vm6, %v12365_v4, %v6932_v46  ;;  %7227 = vst [vmem:[%s13260_s27 + $0x18] sm:$0xff] %v7220_v48  ;;  %v6117_v47 = vsel %vm6082_vm3, %v6116_v13, %v12417_v33  ;;  %v6120_v3 = vrot.slane %v12393_v29, 5  ;;  %v6122_v1 = vrot.slane %v14130_v23, 4 }
 0x6b0   : > { %v6124_v36 = vrot.slane %v14131_v6, 3  ;;  %v6119_v7 = vsel %vm6085_vm4, %v6118_v58, %v6117_v47  ;;  %v6675_v41 = vsel %vm6100_vm7, %v6674_v20, %v6673_v39  ;;  %v6380_v50 = vrot.slane %v12417_v33, 4  ;;  %v14135_v47 = vld [vmem:[#allocation31_spill] sm:$0xff] }
 0x6b1   : > { %v6121_v4 = vsel %vm6088_vm10, %v6120_v3, %v6119_v7  ;;  %v6277_v54 = vpop.permute.xlu0 %6276  ;;  %v6381_v42 = vrot.slane %v12420_v16, 3  ;;  %v7201_v57 = vsel %vm1582_vm8, %v6675_v41, %v13307_v22  ;;  %v6935_v28 = vsel %vm6094_vm5, %v6934_v0, %v6933_v14 }
 0x6b2   : > { %v6123_v2 = vsel %vm6091_vm6, %v6122_v1, %v6121_v4  ;;  %v6126_v44 = vrot.slane %v14132_v62, 2  ;;  %v6936_v32 = vrot.slane %v12333_v5, 6  ;;  %v7205_v30 = vsel %vm1666_vm12, %v7201_v57, %v6835_v35 }
 0x6b3   : > { %v6125_v52 = vsel %vm6094_vm5, %v6124_v36, %v6123_v2  ;;  %v6128_v61 = vrot.slane %v14133_v26, 1  ;;  %v6382_v31 = vsel %vm6082_vm3, %v6381_v42, %v6380_v50  ;;  %v6938_v5 = vrot.slane %v12339_v27, 5 }
 0x6b4   : > { %v6127_v16 = vsel %vm6097_vm13, %v6126_v44, %v6125_v52  ;;  %v6937_v37 = vsel %vm6097_vm13, %v6936_v32, %v6935_v28  ;;  %v6383_v53 = vrot.slane %v12390_v10, 2  ;;  %v6385_v27 = vrot.slane %v12393_v29, 1  ;;  %v14137_v28 = vld [vmem:[#allocation3_spill] sm:$0xff] }
 0x6b5   : > { %v6903_v33 = vpop.permute.xlu1 %6902  ;;  %v6129_v60 = vsel %vm6100_vm7, %v6128_v61, %v6127_v16  ;;  %v6939_v19 = vsel %vm6100_vm7, %v6938_v5, %v6937_v37  ;;  %v6130_v8 = vrot.slane %v12575_v34, 7  ;;  %v6388_v51 = vrot.slane %v14131_v6, 7 }
 0x6b6   : > { %v7209_v22 = vsel %vm1764_vm14, %v7205_v30, %v6903_v33  ;;  %v7178_v35 = vsel %vm1582_vm8, %v6129_v60, %v6209_v18  ;;  %v6384_v21 = vsel %vm6085_vm4, %v6383_v53, %v6382_v31  ;;  %v7213_v49 = vsel %vm1582_vm8, %v6939_v19, %v13338_v17  ;;  %v14139_v31 = vld [vmem:[#allocation60_spill] sm:$0xff]  ;;  %v14140_v53 = vld [vmem:[#allocation58_spill] sm:$0xff] }
 0x6b7   : > { %7230 = vst [vmem:[%s13260_s27 + $0x30] sm:$0xff] %v7209_v22  ;;  %v7182_v38 = vsel %vm1666_vm12, %v7178_v35, %v6277_v54  ;;  %v7217_v45 = vsel %vm1666_vm12, %v7213_v49, %v7099_v55  ;;  %v6386_v24 = vsel %vm6088_vm10, %v6385_v27, %v6384_v21  ;;  %v6131_v17 = vsel %vm6082_vm3, %v6130_v8, %v12570_v15  ;;  %v14134_v55 = vld [vmem:[#allocation10_spill] sm:$0xff]  ;;  %v14136_v54 = vld [vmem:[#allocation39_spill] sm:$0xff]  ;;  %v14138_v22 = vld [vmem:[#allocation61_spill] sm:$0xff] }
 0x6b8   : > { %v6345_v56 = vpop.permute.xlu0 %6344  ;;  %v6387_v18 = vsel %vm6091_vm6, %v14130_v23, %v6386_v24  ;;  %v6390_v29 = vrot.slane %v14132_v62, 6  ;;  %v6132_v11 = vrot.slane %v12520_v40, 6  ;;  %v6134_v48 = vrot.slane %v12525_v12, 5  ;;  %v14143_v8 = vld [vmem:[#allocation17_spill] sm:$0xff] }
 0x6b9   : > { %v7186_v63 = vsel %vm1764_vm14, %v7182_v38, %v6345_v56  ;;  %v6389_v9 = vsel %vm6094_vm5, %v6388_v51, %v6387_v18  ;;  %v6136_v39 = vrot.slane %v14134_v55, 4  ;;  %v6392_v14 = vrot.slane %v14133_v26, 5 }
 0x6ba   : > { %7232 = vst [vmem:[%s13260_s27 + $0x40] sm:$0xff] %v7186_v63  ;;  %v6133_v20 = vsel %vm6085_vm4, %v6132_v11, %v6131_v17  ;;  %v6391_v13 = vsel %vm6097_vm13, %v6390_v29, %v6389_v9  ;;  %v6138_v3 = vrot.slane %v14135_v47, 3  ;;  %v6140_v50 = vrot.slane %v14136_v54, 2  ;;  %v14141_v63 = vld [vmem:[#allocation7_spill] sm:$0xff] }
 0x6bb   : > { %v6135_v0 = vsel %vm6088_vm10, %v6134_v48, %v6133_v20  ;;  %v6393_v58 = vsel %vm6100_vm7, %v6392_v14, %v6391_v13  ;;  %v6142_v2 = vrot.slane %v14137_v28, 1  ;;  %v6394_v62 = vrot.slane %v12570_v15, 4  ;;  %v14144_v13 = vld [vmem:[#allocation28_spill] sm:$0xff] }
 0x6bc   : > { %v7167_v25 = vpop.permute.xlu1 %7166  ;;  %v6137_v6 = vsel %vm6091_vm6, %v6136_v39, %v6135_v0  ;;  %v6395_v44 = vrot.slane %v12575_v34, 3  ;;  %v6676_v37 = vrot.slane %v14138_v22, 7  ;;  %v6397_v60 = vrot.slane %v12520_v40, 2  ;;  %v14142_v40 = vld [vmem:[#allocation59_spill] sm:$0xff] }
 0x6bd   : > { %v7221_v10 = vsel %vm1764_vm14, %v7217_v45, %v7167_v25  ;;  %v6139_v4 = vsel %vm6094_vm5, %v6138_v3, %v6137_v6  ;;  %v6399_v34 = vrot.slane %v12525_v12, 1  ;;  %v6678_v38 = vrot.slane %v14140_v53, 6 }
 0x6be   : > { %7231 = vst [vmem:[%s13260_s27 + $0x38] sm:$0xff] %v7221_v10  ;;  %v6141_v57 = vsel %vm6097_vm13, %v6140_v50, %v6139_v4  ;;  %v6396_v16 = vsel %vm6082_vm3, %v6395_v44, %v6394_v62  ;;  %v6677_v5 = vsel %vm6082_vm3, %v6676_v37, %v14139_v31  ;;  %v6682_v21 = vrot.slane %v14141_v63, 4 }
 0x6bf   : > { %v6473_v43 = vpop.permute.xlu0 %6472  ;;  %v6143_v32 = vsel %vm6100_vm7, %v6142_v2, %v6141_v57  ;;  %v6398_v15 = vsel %vm6085_vm4, %v6397_v60, %v6396_v16  ;;  %v6679_v19 = vsel %vm6085_vm4, %v6678_v38, %v6677_v5  ;;  %v6402_v49 = vrot.slane %v14135_v47, 7  ;;  %v14147_v16 = vld [vmem:[#allocation36_spill] sm:$0xff] }
 0x6c0   : > { %v7190_v1 = vsel %vm1582_vm8, %v6393_v58, %v6473_v43  ;;  %v6400_v56 = vsel %vm6088_vm10, %v6399_v34, %v6398_v15  ;;  %v6680_v45 = vrot.slane %v14142_v40, 5  ;;  %v6940_v25 = vrot.slane %v14139_v31, 4  ;;  %v14148_v34 = vld [vmem:[#allocation44_spill] sm:$0xff] }
 0x6c1   : > { %v6941_v12 = vrot.slane %v14138_v22, 3  ;;  %v6401_v10 = vsel %vm6091_vm6, %v14134_v55, %v6400_v56  ;;  %v6684_v51 = vrot.slane %v14143_v8, 3  ;;  %v6404_v18 = vrot.slane %v14136_v54, 6  ;;  %v14149_v56 = vld [vmem:[#allocation45_spill] sm:$0xff] }
 0x6c2   : > { %v6681_v24 = vsel %vm6088_vm10, %v6680_v45, %v6679_v19  ;;  %v6403_v29 = vsel %vm6094_vm5, %v6402_v49, %v6401_v10  ;;  %v6943_v9 = vrot.slane %v14140_v53, 2  ;;  %v6686_v55 = vrot.slane %v14144_v13, 2 }
 0x6c3   : > { %v6541_v46 = vpop.permute.xlu0 %6540  ;;  %v6683_v17 = vsel %vm6091_vm6, %v6682_v21, %v6681_v24  ;;  %v6942_v11 = vsel %vm6082_vm3, %v6941_v12, %v6940_v25  ;;  %v6405_v48 = vsel %vm6097_vm13, %v6404_v18, %v6403_v29  ;;  %v6406_v14 = vrot.slane %v14137_v28, 5  ;;  %v14150_v21 = vld [vmem:[#allocation18_spill] sm:$0xff]  ;;  %v14151_v12 = vld [vmem:[#allocation19_spill] sm:$0xff] }
 0x6c4   : > { %v7194_v36 = vsel %vm1666_vm12, %v7190_v1, %v6541_v46  ;;  %v6685_v46 = vsel %vm6094_vm5, %v6684_v51, %v6683_v17  ;;  %v6944_v39 = vsel %vm6085_vm4, %v6943_v9, %v6942_v11  ;;  %v6945_v0 = vrot.slane %v14142_v40, 1  ;;  %v14152_v11 = vld [vmem:[#allocation43_spill] sm:$0xff] }
 0x6c5   : > { %v6687_v47 = vsel %vm6097_vm13, %v6686_v55, %v6685_v46  ;;  %v6407_v3 = vsel %vm6100_vm7, %v6406_v14, %v6405_v48  ;;  %v6950_v28 = vrot.slane %v14144_v13, 6  ;;  %v6954_v37 = vrot.slane %v14147_v16, 4 }
 0x6c6   : > { %v6211_v23 = vpop.permute.xlu1 %6210  ;;  %v6946_v6 = vsel %vm6088_vm10, %v6945_v0, %v6944_v39  ;;  %v6692_v31 = vrot.slane %v14148_v34, 6  ;;  %v6696_v19 = vrot.slane %v14149_v56, 4  ;;  %v6694_v49 = vrot.slane %v14150_v21, 5 }
 0x6c7   : > { %v7179_v30 = vsel %vm1582_vm8, %v6143_v32, %v6211_v23  ;;  %v14145_v23 = vld [vmem:[#allocation5_spill] sm:$0xff]  ;;  %v6957_v45 = vrot.slane %v14148_v34, 2  ;;  %v6959_v51 = vrot.slane %v14150_v21, 1  ;;  %v6962_v17 = vrot.slane %v14151_v12, 7 }
 0x6c8   : > { %v6688_v1 = vrot.slane %v14145_v23, 1  ;;  %v6700_v9 = vrot.slane %v14152_v11, 2  ;;  %v6964_v48 = vrot.slane %v14152_v11, 6  ;;  %v6702_v13 = vrot.slane %v12670_v59, 1 }
 0x6ca   : > { %v6609_v7 = vpop.permute.xlu0 %6608  ;;  %v6689_v50 = vsel %vm6100_vm7, %v6688_v1, %v6687_v47  ;;  %v6966_v47 = vrot.slane %v12670_v59, 5 }
 0x6cb   : > { %v7198_v41 = vsel %vm1764_vm14, %v7194_v36, %v6609_v7  ;;  %v6948_v36 = vrot.slane %v14143_v8, 7 }
 0x6cc   : > { %7233 = vst [vmem:[%s13260_s27 + $0x48] sm:$0xff] %v7198_v41  ;;  %v6947_v41 = vsel %vm6091_vm6, %v14141_v63, %v6946_v6 }
 0x6cd   : > { %v6279_v42 = vpop.permute.xlu1 %6278  ;;  %v6949_v2 = vsel %vm6094_vm5, %v6948_v36, %v6947_v41 }
 0x6ce   : > { %v7183_v52 = vsel %vm1666_vm12, %v7179_v30, %v6279_v42  ;;  %v14146_v30 = vld [vmem:[#allocation25_spill] sm:$0xff] }
 0x6cf   : > { %v6955_v60 = vrot.slane %v14146_v30, 3 }
 0x6d0   : > { %v6769_v26 = vpop.permute.xlu0 %6768 }
 0x6d1   : > { %v7202_v57 = vsel %vm1582_vm8, %v6689_v50, %v6769_v26  ;;  %v6956_v40 = vsel %vm6082_vm3, %v6955_v60, %v6954_v37 }
 0x6d2   : > { %v6958_v8 = vsel %vm6085_vm4, %v6957_v45, %v6956_v40 }
 0x6d5   : > { %v6347_v61 = vpop.permute.xlu1 %6346 }
 0x6d6   : > { %v7187_v33 = vsel %vm1764_vm14, %v7183_v52, %v6347_v61  ;;  %v6690_v52 = vrot.slane %v14146_v30, 7  ;;  %v6951_v61 = vsel %vm6097_vm13, %v6950_v28, %v6949_v2 }
 0x6d7   : > { %7236 = vst [vmem:[%s13260_s27 + $0x60] sm:$0xff] %v7187_v33  ;;  %v6952_v33 = vrot.slane %v14145_v23, 5 }
 0x6d8   : > { %v7033_v35 = vpop.permute.xlu0 %7032  ;;  %v6691_v26 = vsel %vm6082_vm3, %v6690_v52, %v14147_v16 }
 0x6d9   : > { %v6953_v15 = vsel %vm6100_vm7, %v6952_v33, %v6951_v61  ;;  %v6693_v38 = vsel %vm6085_vm4, %v6692_v31, %v6691_v26 }
 0x6da   : > { %v7214_v5 = vsel %vm1582_vm8, %v6953_v15, %v7033_v35  ;;  %v6695_v25 = vsel %vm6088_vm10, %v6694_v49, %v6693_v38  ;;  %v6698_v35 = vrot.slane %v14151_v12, 3 }
 0x6db   : > { %v6475_v27 = vpop.permute.xlu1 %6474  ;;  %v6697_v24 = vsel %vm6091_vm6, %v6696_v19, %v6695_v25 }
 0x6dc   : > { %v7191_v7 = vsel %vm1582_vm8, %v6407_v3, %v6475_v27  ;;  %v6699_v18 = vsel %vm6094_vm5, %v6698_v35, %v6697_v24 }
 0x6dd   : > { %v6701_v46 = vsel %vm6097_vm13, %v6700_v9, %v6699_v18 }
 0x6de   : > { %v6703_v14 = vsel %vm6100_vm7, %v6702_v13, %v6701_v46 }
 0x6df   : > { %v6837_v43 = vpop.permute.xlu0 %6836 }
 0x6e0   : > { %v7206_v62 = vsel %vm1666_vm12, %v7202_v57, %v6837_v43  ;;  %v6960_v43 = vsel %vm6088_vm10, %v6959_v51, %v6958_v8 }
 0x6e2   : > { %v6543_v20 = vpop.permute.xlu1 %6542 }
 0x6e3   : > { %v7195_v4 = vsel %vm1666_vm12, %v7191_v7, %v6543_v20  ;;  %v6961_v20 = vsel %vm6091_vm6, %v14149_v56, %v6960_v43 }
 0x6e4   : > { %v6963_v55 = vsel %vm6094_vm5, %v6962_v17, %v6961_v20 }
 0x6e6   : > { %v7101_v58 = vpop.permute.xlu0 %7100 }
 0x6e7   : > { %v7218_v53 = vsel %vm1666_vm12, %v7214_v5, %v7101_v58  ;;  %v6965_v58 = vsel %vm6097_vm13, %v6964_v48, %v6963_v55 }
 0x6e8   : > { %v6967_v6 = vsel %vm6100_vm7, %v6966_v47, %v6965_v58 }
 0x6ea   : > { %v6611_v54 = vpop.permute.xlu1 %6610 }
 0x6eb   : > { %v7199_v42 = vsel %vm1764_vm14, %v7195_v4, %v6611_v54 }
 0x6ec   : > { %7237 = vst [vmem:[%s13260_s27 + $0x68] sm:$0xff] %v7199_v42  ;;  %v6905_v44 = vpop.permute.xlu0 %6904 }
 0x6ed   : > { %v7210_v32 = vsel %vm1764_vm14, %v7206_v62, %v6905_v44 }
 0x6ee   : > { %7234 = vst [vmem:[%s13260_s27 + $0x50] sm:$0xff] %v7210_v32 }
 0x6f0   : > { %v6771_v22 = vpop.permute.xlu1 %6770 }
 0x6f1   : > { %v7203_v0 = vsel %vm1582_vm8, %v6703_v14, %v6771_v22 }
 0x6f5   : > { %v7169_v63 = vpop.permute.xlu0 %7168 }
 0x6f6   : > { %v7222_v27 = vsel %vm1764_vm14, %v7218_v53, %v7169_v63 }
 0x6f7   : > { %7235 = vst [vmem:[%s13260_s27 + $0x58] sm:$0xff] %v7222_v27  ;;  %v7035_v10 = vpop.permute.xlu1 %7034 }
 0x6f8   : > { %v7215_v36 = vsel %vm1582_vm8, %v6967_v6, %v7035_v10 }
 0x6fb   : > { %v6839_v29 = vpop.permute.xlu1 %6838 }
 0x6fc   : > { %v7207_v3 = vsel %vm1666_vm12, %v7203_v0, %v6839_v29 }
 0x6ff   : > { %v7103_v39 = vpop.permute.xlu1 %7102 }
 0x700   : > { %v7219_v7 = vsel %vm1666_vm12, %v7215_v36, %v7103_v39 }
 0x703   : > { %v6907_v23 = vpop.permute.xlu1 %6906 }
 0x704   : > { %v7211_v1 = vsel %vm1764_vm14, %v7207_v3, %v6907_v23 }
 0x705   : > { %7238 = vst [vmem:[%s13260_s27 + $0x70] sm:$0xff] %v7211_v1 }
 0x707   : > { %v7171_v41 = vpop.permute.xlu1 %7170 }
 0x708   : > { %v7223_v4 = vsel %vm1764_vm14, %v7219_v7, %v7171_v41 }
 0x709   : > { %7239 = vst [vmem:[%s13260_s27 + $0x78] sm:$0xff] %v7223_v4 }
 0x70a PF: > { %s19_s30 = sadd.s32 1, %s7690_s30  }
 0x70b   : > { %p16_p4 = scmp.ge.s32.totalorder %s19_s30, 4  }
 0x70d   :  { %18 = sbr.rel (!%p16_p4) target bundleno = 1 (0x1), region = 92 }

</bundles_post_ra>
